<compile_context>
chip_gen: v6e
topology: v6e:2x2x1
jax: 0.10.0
libtpu: 0.0.40
codegen_flags: <defaults>
</compile_context>

<pallas_src>
import functools

import jax
import jax.numpy as jnp
from jax.experimental import pallas as pl
from jax.experimental.pallas import tpu as pltpu

# MLP architecture from the PyTorch module.
HIDDEN_SIZES = [256, 512, 1024, 512, 256, 128]
LANE = 128
MAX_BLOCK_B = 512


def _cdiv(a, b):
    return (a + b - 1) // b


def _round_up(a, b):
    return _cdiv(a, b) * b


def _choose_tiling(B, max_block=MAX_BLOCK_B):
    """Pick (block_b, grid): block_b a multiple of 16 (bf16 sublane packing),
    block_b <= max_block, and an even grid (>=2) whenever the batch is big
    enough to split — so both v7x TensorCores get balanced work."""
    if B < 128:
        return _round_up(max(B, 16), 16), 1
    grid = max(2, _cdiv(B, max_block))
    if grid % 2:
        grid += 1                      # even grid -> no TC load imbalance on v7x
    block_b = min(max_block, _round_up(_cdiv(B, grid), 16))
    return block_b, grid


def _pcg3d_kernel(x_ref,
                  w1_ref, b1_ref, w2_ref, b2_ref, w3_ref, b3_ref,
                  w4_ref, b4_ref, w5_ref, b5_ref, w6_ref, b6_ref,
                  w7_ref, b7_ref,
                  o_ref):
    """Fused 7-layer MLP: 6x (Linear + LeakyReLU(0.01)) then Linear + Sigmoid.

    Matmuls: bf16 operands, f32 accumulation (MXU).  Bias add / LeakyReLU /
    sigmoid: f32 (VPU/EUP).  Hidden activations materialized in bf16.
    """

    def hidden(h_bf16, w_ref, b_ref):
        y = jnp.dot(h_bf16, w_ref[...], preferred_element_type=jnp.float32)
        y = y + b_ref[...]                      # f32 bias add
        y = jnp.where(y > 0, y, 0.01 * y)       # f32 LeakyReLU
        return y.astype(jnp.bfloat16)           # bf16 intermediate: halves vst/VMEM traffic

    h = x_ref[...]                              # already bf16 (padded features)
    h = hidden(h, w1_ref, b1_ref)
    h = hidden(h, w2_ref, b2_ref)
    h = hidden(h, w3_ref, b3_ref)
    h = hidden(h, w4_ref, b4_ref)
    h = hidden(h, w5_ref, b5_ref)
    h = hidden(h, w6_ref, b6_ref)
    y = jnp.dot(h, w7_ref[...], preferred_element_type=jnp.float32) + b7_ref[...]
    o_ref[...] = jax.nn.sigmoid(y).astype(o_ref.dtype)


def init_params(key, input_size, output_size):
    """PyTorch nn.Linear default init: U(-1/sqrt(fan_in), 1/sqrt(fan_in)).

    Master weights kept in f32 (parity with the PyTorch module); cast to bf16
    at call time.  Weights stored (in, out); biases (1, out).
    """
    dims = [input_size] + HIDDEN_SIZES + [output_size]
    params = []
    for i in range(len(dims) - 1):
        fan_in, fan_out = dims[i], dims[i + 1]
        key, kw, kb = jax.random.split(key, 3)
        bound = 1.0 / float(fan_in) ** 0.5
        w = jax.random.uniform(kw, (fan_in, fan_out), jnp.float32, -bound, bound)
        b = jax.random.uniform(kb, (1, fan_out), jnp.float32, -bound, bound)
        params.append((w, b))
    return params


@functools.partial(jax.jit, static_argnames=("block_b", "grid", "in_pad", "out_pad"))
def _pcg3d_call(x, params, *, block_b, grid, in_pad, out_pad):
    B, in_dim = x.shape
    Bp = block_b * grid

    # Pad batch + feature dims; cast x to bf16 (MXU LHS dtype, half the DMA).
    x = jnp.pad(x, ((0, Bp - B), (0, in_pad - in_dim))).astype(jnp.bfloat16)

    # Pad w1 rows to the padded feature width and the last layer to a full
    # 128-lane output; cast weights to bf16 (MXU RHS), keep biases f32.
    n = len(params)
    kern_params = []
    for idx, (w, b) in enumerate(params):
        if idx == 0 and w.shape[0] != in_pad:
            w = jnp.pad(w, ((0, in_pad - w.shape[0]), (0, 0)))
        if idx == n - 1 and w.shape[1] != out_pad:
            w = jnp.pad(w, ((0, 0), (0, out_pad - w.shape[1])))
            b = jnp.pad(b, ((0, 0), (0, out_pad - b.shape[1])))
        kern_params.extend([w.astype(jnp.bfloat16), b.astype(jnp.float32)])

    x_spec = pl.BlockSpec((block_b, in_pad), lambda i: (i, 0))
    # Weights/biases: full arrays, constant index_map -> never re-fetched across
    # grid steps; single-buffer them to reclaim VMEM.
    param_specs = [
        pl.BlockSpec(p.shape, lambda i: (0, 0), pipeline_mode=pl.Buffered(1))
        for p in kern_params
    ]
    out_spec = pl.BlockSpec((block_b, out_pad), lambda i: (i, 0))

    return pl.pallas_call(
        _pcg3d_kernel,
        out_shape=jax.ShapeDtypeStruct((Bp, out_pad), jnp.float32),
        grid_spec=pltpu.PrefetchScalarGridSpec(
            num_scalar_prefetch=0,
            grid=(grid,),
            in_specs=[x_spec] + param_specs,
            out_specs=out_spec,
        ),
        compiler_params=pltpu.CompilerParams(
            dimension_semantics=("parallel",),
            vmem_limit_bytes=32 * 1024 * 1024,
        ),
    )(x, *kern_params)


def pcg3d_float(x, params, block_b=None):
    """x: (B, input_size) float32.  Returns (B, output_size) float32."""
    B, in_dim = x.shape
    out_dim = params[-1][1].shape[1]

    if block_b is None:
        block_b, grid = _choose_tiling(B)
    else:
        block_b = _round_up(block_b, 16)
        grid = _cdiv(B, block_b)

    in_pad = _round_up(max(in_dim, 16), 16)        # bf16-friendly layer-1 contraction dim
    out_pad = _round_up(max(out_dim, LANE), LANE)  # lane-dense output stores

    out = _pcg3d_call(x, tuple(params), block_b=block_b, grid=grid,
                      in_pad=in_pad, out_pad=out_pad)
    return out[:B, :out_dim]


def pcg3d_float_ref(x, params):
    """Pure-JAX full-f32 reference (PyTorch-parity forward)."""
    h = x.astype(jnp.float32)
    for i, (w, b) in enumerate(params):
        h = h @ w + b
        if i < len(params) - 1:
            h = jnp.where(h > 0, h, 0.01 * h)
        else:
            h = jax.nn.sigmoid(h)
    return h


if __name__ == "__main__":
    key = jax.random.PRNGKey(0)
    input_size, output_size = 3, 3          # "PCG 3d": 3-D in, 3-D out
    batch = 300                             # small; not a multiple of the tile

    kx, kp = jax.random.split(key)
    x = jax.random.normal(kx, (batch, input_size), jnp.float32)
    params = init_params(kp, input_size, output_size)

    out = pcg3d_float(x, params)
    out = jax.block_until_ready(out)

    ref = pcg3d_float_ref(x, params)
    assert out.shape == (batch, output_size)
    # Kernel uses bf16 matmul operands/activations vs an f32 reference ->
    # loosened tolerance (post-sigmoid values are in [0, 1]).
    assert jnp.allclose(out, ref, atol=5e-2, rtol=5e-2), "mismatch vs f32 JAX reference"

    print("KERNEL_OK")
</pallas_src>

<mosaic_0001>
module attributes {stable_mosaic.version = 11 : i64} {
  func.func @_pcg3d_kernel(%arg0: i32, %arg1: memref<160x16xbf16, #tpu.memory_space<vmem>>, %arg2: memref<16x256xbf16, #tpu.memory_space<vmem>>, %arg3: memref<1x256xf32, #tpu.memory_space<vmem>>, %arg4: memref<256x512xbf16, #tpu.memory_space<vmem>>, %arg5: memref<1x512xf32, #tpu.memory_space<vmem>>, %arg6: memref<512x1024xbf16, #tpu.memory_space<vmem>>, %arg7: memref<1x1024xf32, #tpu.memory_space<vmem>>, %arg8: memref<1024x512xbf16, #tpu.memory_space<vmem>>, %arg9: memref<1x512xf32, #tpu.memory_space<vmem>>, %arg10: memref<512x256xbf16, #tpu.memory_space<vmem>>, %arg11: memref<1x256xf32, #tpu.memory_space<vmem>>, %arg12: memref<256x128xbf16, #tpu.memory_space<vmem>>, %arg13: memref<1x128xf32, #tpu.memory_space<vmem>>, %arg14: memref<128x128xbf16, #tpu.memory_space<vmem>>, %arg15: memref<1x128xf32, #tpu.memory_space<vmem>>, %arg16: memref<160x128xf32, #tpu.memory_space<vmem>>) attributes {dimension_semantics = [#tpu.dimension_semantics<parallel>], iteration_bounds = array<i64: 2>, scalar_prefetch = 0 : i64, scratch_operands = 0 : i64, tpu.core_type = #tpu.core_type<tc>, window_params = [{transform_indices = @transform_0, window_bounds = array<i64: 160, 16>}, {pipeline_mode = #tpu.pipeline_mode<synchronous>, transform_indices = @transform_1, window_bounds = array<i64: 16, 256>}, {pipeline_mode = #tpu.pipeline_mode<synchronous>, transform_indices = @transform_2, window_bounds = array<i64: 1, 256>}, {pipeline_mode = #tpu.pipeline_mode<synchronous>, transform_indices = @transform_3, window_bounds = array<i64: 256, 512>}, {pipeline_mode = #tpu.pipeline_mode<synchronous>, transform_indices = @transform_4, window_bounds = array<i64: 1, 512>}, {pipeline_mode = #tpu.pipeline_mode<synchronous>, transform_indices = @transform_5, window_bounds = array<i64: 512, 1024>}, {pipeline_mode = #tpu.pipeline_mode<synchronous>, transform_indices = @transform_6, window_bounds = array<i64: 1, 1024>}, {pipeline_mode = #tpu.pipeline_mode<synchronous>, transform_indices = @transform_7, window_bounds = array<i64: 1024, 512>}, {pipeline_mode = #tpu.pipeline_mode<synchronous>, transform_indices = @transform_8, window_bounds = array<i64: 1, 512>}, {pipeline_mode = #tpu.pipeline_mode<synchronous>, transform_indices = @transform_9, window_bounds = array<i64: 512, 256>}, {pipeline_mode = #tpu.pipeline_mode<synchronous>, transform_indices = @transform_10, window_bounds = array<i64: 1, 256>}, {pipeline_mode = #tpu.pipeline_mode<synchronous>, transform_indices = @transform_11, window_bounds = array<i64: 256, 128>}, {pipeline_mode = #tpu.pipeline_mode<synchronous>, transform_indices = @transform_12, window_bounds = array<i64: 1, 128>}, {pipeline_mode = #tpu.pipeline_mode<synchronous>, transform_indices = @transform_13, window_bounds = array<i64: 128, 128>}, {pipeline_mode = #tpu.pipeline_mode<synchronous>, transform_indices = @transform_14, window_bounds = array<i64: 1, 128>}, {transform_indices = @transform_15, window_bounds = array<i64: 160, 128>}]} {
    %c0 = arith.constant 0 : index
    %c0_0 = arith.constant 0 : index
    %0 = vector.load %arg1[%c0, %c0_0] : memref<160x16xbf16, #tpu.memory_space<vmem>>, vector<160x16xbf16>
    %c0_1 = arith.constant 0 : index
    %c0_2 = arith.constant 0 : index
    %1 = vector.load %arg2[%c0_1, %c0_2] : memref<16x256xbf16, #tpu.memory_space<vmem>>, vector<16x256xbf16>
    %cst = arith.constant dense<0.000000e+00> : vector<160x256xf32>
    %2 = tpu.matmul %0, %1, %cst {dimension_numbers = #tpu.dot_dimension_numbers<[1], [0], [0], [1], [0, 0, 1, 1], [], []>} : vector<160x16xbf16>, vector<16x256xbf16>, vector<160x256xf32> -> vector<160x256xf32>
    %c0_3 = arith.constant 0 : index
    %c0_4 = arith.constant 0 : index
    %3 = vector.load %arg3[%c0_3, %c0_4] : memref<1x256xf32, #tpu.memory_space<vmem>>, vector<1x256xf32>
    %4 = vector.broadcast %3 : vector<1x256xf32> to vector<160x256xf32>
    %5 = arith.addf %2, %4 : vector<160x256xf32>
    %cst_5 = arith.constant 0.000000e+00 : f32
    %6 = vector.broadcast %cst_5 : f32 to vector<160x256xf32>
    %7 = arith.cmpf ogt, %5, %6 : vector<160x256xf32>
    %cst_6 = arith.constant 0.00999999977 : f32
    %8 = vector.broadcast %cst_6 : f32 to vector<160x256xf32>
    %9 = arith.mulf %8, %5 : vector<160x256xf32>
    %10 = arith.select %7, %5, %9 : vector<160x256xi1>, vector<160x256xf32>
    %11 = arith.truncf %10 : vector<160x256xf32> to vector<160x256xbf16>
    %c0_7 = arith.constant 0 : index
    %c0_8 = arith.constant 0 : index
    %12 = vector.load %arg4[%c0_7, %c0_8] : memref<256x512xbf16, #tpu.memory_space<vmem>>, vector<256x512xbf16>
    %cst_9 = arith.constant dense<0.000000e+00> : vector<160x512xf32>
    %13 = tpu.matmul %11, %12, %cst_9 {dimension_numbers = #tpu.dot_dimension_numbers<[1], [0], [0], [1], [0, 0, 1, 1], [], []>} : vector<160x256xbf16>, vector<256x512xbf16>, vector<160x512xf32> -> vector<160x512xf32>
    %c0_10 = arith.constant 0 : index
    %c0_11 = arith.constant 0 : index
    %14 = vector.load %arg5[%c0_10, %c0_11] : memref<1x512xf32, #tpu.memory_space<vmem>>, vector<1x512xf32>
    %15 = vector.broadcast %14 : vector<1x512xf32> to vector<160x512xf32>
    %16 = arith.addf %13, %15 : vector<160x512xf32>
    %cst_12 = arith.constant 0.000000e+00 : f32
    %17 = vector.broadcast %cst_12 : f32 to vector<160x512xf32>
    %18 = arith.cmpf ogt, %16, %17 : vector<160x512xf32>
    %cst_13 = arith.constant 0.00999999977 : f32
    %19 = vector.broadcast %cst_13 : f32 to vector<160x512xf32>
    %20 = arith.mulf %19, %16 : vector<160x512xf32>
    %21 = arith.select %18, %16, %20 : vector<160x512xi1>, vector<160x512xf32>
    %22 = arith.truncf %21 : vector<160x512xf32> to vector<160x512xbf16>
    %c0_14 = arith.constant 0 : index
    %c0_15 = arith.constant 0 : index
    %23 = vector.load %arg6[%c0_14, %c0_15] : memref<512x1024xbf16, #tpu.memory_space<vmem>>, vector<512x1024xbf16>
    %cst_16 = arith.constant dense<0.000000e+00> : vector<160x1024xf32>
    %24 = tpu.matmul %22, %23, %cst_16 {dimension_numbers = #tpu.dot_dimension_numbers<[1], [0], [0], [1], [0, 0, 1, 1], [], []>} : vector<160x512xbf16>, vector<512x1024xbf16>, vector<160x1024xf32> -> vector<160x1024xf32>
    %c0_17 = arith.constant 0 : index
    %c0_18 = arith.constant 0 : index
    %25 = vector.load %arg7[%c0_17, %c0_18] : memref<1x1024xf32, #tpu.memory_space<vmem>>, vector<1x1024xf32>
    %26 = vector.broadcast %25 : vector<1x1024xf32> to vector<160x1024xf32>
    %27 = arith.addf %24, %26 : vector<160x1024xf32>
    %cst_19 = arith.constant 0.000000e+00 : f32
    %28 = vector.broadcast %cst_19 : f32 to vector<160x1024xf32>
    %29 = arith.cmpf ogt, %27, %28 : vector<160x1024xf32>
    %cst_20 = arith.constant 0.00999999977 : f32
    %30 = vector.broadcast %cst_20 : f32 to vector<160x1024xf32>
    %31 = arith.mulf %30, %27 : vector<160x1024xf32>
    %32 = arith.select %29, %27, %31 : vector<160x1024xi1>, vector<160x1024xf32>
    %33 = arith.truncf %32 : vector<160x1024xf32> to vector<160x1024xbf16>
    %c0_21 = arith.constant 0 : index
    %c0_22 = arith.constant 0 : index
    %34 = vector.load %arg8[%c0_21, %c0_22] : memref<1024x512xbf16, #tpu.memory_space<vmem>>, vector<1024x512xbf16>
    %cst_23 = arith.constant dense<0.000000e+00> : vector<160x512xf32>
    %35 = tpu.matmul %33, %34, %cst_23 {dimension_numbers = #tpu.dot_dimension_numbers<[1], [0], [0], [1], [0, 0, 1, 1], [], []>} : vector<160x1024xbf16>, vector<1024x512xbf16>, vector<160x512xf32> -> vector<160x512xf32>
    %c0_24 = arith.constant 0 : index
    %c0_25 = arith.constant 0 : index
    %36 = vector.load %arg9[%c0_24, %c0_25] : memref<1x512xf32, #tpu.memory_space<vmem>>, vector<1x512xf32>
    %37 = vector.broadcast %36 : vector<1x512xf32> to vector<160x512xf32>
    %38 = arith.addf %35, %37 : vector<160x512xf32>
    %cst_26 = arith.constant 0.000000e+00 : f32
    %39 = vector.broadcast %cst_26 : f32 to vector<160x512xf32>
    %40 = arith.cmpf ogt, %38, %39 : vector<160x512xf32>
    %cst_27 = arith.constant 0.00999999977 : f32
    %41 = vector.broadcast %cst_27 : f32 to vector<160x512xf32>
    %42 = arith.mulf %41, %38 : vector<160x512xf32>
    %43 = arith.select %40, %38, %42 : vector<160x512xi1>, vector<160x512xf32>
    %44 = arith.truncf %43 : vector<160x512xf32> to vector<160x512xbf16>
    %c0_28 = arith.constant 0 : index
    %c0_29 = arith.constant 0 : index
    %45 = vector.load %arg10[%c0_28, %c0_29] : memref<512x256xbf16, #tpu.memory_space<vmem>>, vector<512x256xbf16>
    %cst_30 = arith.constant dense<0.000000e+00> : vector<160x256xf32>
    %46 = tpu.matmul %44, %45, %cst_30 {dimension_numbers = #tpu.dot_dimension_numbers<[1], [0], [0], [1], [0, 0, 1, 1], [], []>} : vector<160x512xbf16>, vector<512x256xbf16>, vector<160x256xf32> -> vector<160x256xf32>
    %c0_31 = arith.constant 0 : index
    %c0_32 = arith.constant 0 : index
    %47 = vector.load %arg11[%c0_31, %c0_32] : memref<1x256xf32, #tpu.memory_space<vmem>>, vector<1x256xf32>
    %48 = vector.broadcast %47 : vector<1x256xf32> to vector<160x256xf32>
    %49 = arith.addf %46, %48 : vector<160x256xf32>
    %cst_33 = arith.constant 0.000000e+00 : f32
    %50 = vector.broadcast %cst_33 : f32 to vector<160x256xf32>
    %51 = arith.cmpf ogt, %49, %50 : vector<160x256xf32>
    %cst_34 = arith.constant 0.00999999977 : f32
    %52 = vector.broadcast %cst_34 : f32 to vector<160x256xf32>
    %53 = arith.mulf %52, %49 : vector<160x256xf32>
    %54 = arith.select %51, %49, %53 : vector<160x256xi1>, vector<160x256xf32>
    %55 = arith.truncf %54 : vector<160x256xf32> to vector<160x256xbf16>
    %c0_35 = arith.constant 0 : index
    %c0_36 = arith.constant 0 : index
    %56 = vector.load %arg12[%c0_35, %c0_36] : memref<256x128xbf16, #tpu.memory_space<vmem>>, vector<256x128xbf16>
    %cst_37 = arith.constant dense<0.000000e+00> : vector<160x128xf32>
    %57 = tpu.matmul %55, %56, %cst_37 {dimension_numbers = #tpu.dot_dimension_numbers<[1], [0], [0], [1], [0, 0, 1, 1], [], []>} : vector<160x256xbf16>, vector<256x128xbf16>, vector<160x128xf32> -> vector<160x128xf32>
    %c0_38 = arith.constant 0 : index
    %c0_39 = arith.constant 0 : index
    %58 = vector.load %arg13[%c0_38, %c0_39] : memref<1x128xf32, #tpu.memory_space<vmem>>, vector<1x128xf32>
    %59 = vector.broadcast %58 : vector<1x128xf32> to vector<160x128xf32>
    %60 = arith.addf %57, %59 : vector<160x128xf32>
    %cst_40 = arith.constant 0.000000e+00 : f32
    %61 = vector.broadcast %cst_40 : f32 to vector<160x128xf32>
    %62 = arith.cmpf ogt, %60, %61 : vector<160x128xf32>
    %cst_41 = arith.constant 0.00999999977 : f32
    %63 = vector.broadcast %cst_41 : f32 to vector<160x128xf32>
    %64 = arith.mulf %63, %60 : vector<160x128xf32>
    %65 = arith.select %62, %60, %64 : vector<160x128xi1>, vector<160x128xf32>
    %66 = arith.truncf %65 : vector<160x128xf32> to vector<160x128xbf16>
    %c0_42 = arith.constant 0 : index
    %c0_43 = arith.constant 0 : index
    %67 = vector.load %arg14[%c0_42, %c0_43] : memref<128x128xbf16, #tpu.memory_space<vmem>>, vector<128x128xbf16>
    %cst_44 = arith.constant dense<0.000000e+00> : vector<160x128xf32>
    %68 = tpu.matmul %66, %67, %cst_44 {dimension_numbers = #tpu.dot_dimension_numbers<[1], [0], [0], [1], [0, 0, 1, 1], [], []>} : vector<160x128xbf16>, vector<128x128xbf16>, vector<160x128xf32> -> vector<160x128xf32>
    %c0_45 = arith.constant 0 : index
    %c0_46 = arith.constant 0 : index
    %69 = vector.load %arg15[%c0_45, %c0_46] : memref<1x128xf32, #tpu.memory_space<vmem>>, vector<1x128xf32>
    %70 = vector.broadcast %69 : vector<1x128xf32> to vector<160x128xf32>
    %71 = arith.addf %68, %70 : vector<160x128xf32>
    %72 = arith.negf %71 : vector<160x128xf32>
    %73 = math.exp %72 : vector<160x128xf32>
    %cst_47 = arith.constant 1.000000e+00 : f32
    %74 = vector.broadcast %cst_47 : f32 to vector<160x128xf32>
    %75 = arith.addf %74, %73 : vector<160x128xf32>
    %76 = arith.divf %74, %75 : vector<160x128xf32>
    %c0_48 = arith.constant 0 : index
    %c0_49 = arith.constant 0 : index
    %77 = vector.load %arg16[%c0_48, %c0_49] : memref<160x128xf32, #tpu.memory_space<vmem>>, vector<160x128xf32>
    tpu.vector_store %arg16[%c0_48, %c0_49], %76 {strides = array<i32>} : memref<160x128xf32, #tpu.memory_space<vmem>>, vector<160x128xf32>,
    return
  }
  func.func @transform_0(%arg0: i32) -> (i32, i32) {
    %c0_i32 = arith.constant 0 : i32
    %c0_i32_0 = arith.constant 0 : i32
    return %arg0, %c0_i32 : i32, i32
  }
  func.func @transform_1(%arg0: i32) -> (i32, i32) {
    %c0_i32 = arith.constant 0 : i32
    %c0_i32_0 = arith.constant 0 : i32
    %c0_i32_1 = arith.constant 0 : i32
    return %c0_i32, %c0_i32_0 : i32, i32
  }
  func.func @transform_2(%arg0: i32) -> (i32, i32) {
    %c0_i32 = arith.constant 0 : i32
    %c0_i32_0 = arith.constant 0 : i32
    %c0_i32_1 = arith.constant 0 : i32
    return %c0_i32, %c0_i32_0 : i32, i32
  }
  func.func @transform_3(%arg0: i32) -> (i32, i32) {
    %c0_i32 = arith.constant 0 : i32
    %c0_i32_0 = arith.constant 0 : i32
    %c0_i32_1 = arith.constant 0 : i32
    return %c0_i32, %c0_i32_0 : i32, i32
  }
  func.func @transform_4(%arg0: i32) -> (i32, i32) {
    %c0_i32 = arith.constant 0 : i32
    %c0_i32_0 = arith.constant 0 : i32
    %c0_i32_1 = arith.constant 0 : i32
    return %c0_i32, %c0_i32_0 : i32, i32
  }
  func.func @transform_5(%arg0: i32) -> (i32, i32) {
    %c0_i32 = arith.constant 0 : i32
    %c0_i32_0 = arith.constant 0 : i32
    %c0_i32_1 = arith.constant 0 : i32
    return %c0_i32, %c0_i32_0 : i32, i32
  }
  func.func @transform_6(%arg0: i32) -> (i32, i32) {
    %c0_i32 = arith.constant 0 : i32
    %c0_i32_0 = arith.constant 0 : i32
    %c0_i32_1 = arith.constant 0 : i32
    return %c0_i32, %c0_i32_0 : i32, i32
  }
  func.func @transform_7(%arg0: i32) -> (i32, i32) {
    %c0_i32 = arith.constant 0 : i32
    %c0_i32_0 = arith.constant 0 : i32
    %c0_i32_1 = arith.constant 0 : i32
    return %c0_i32, %c0_i32_0 : i32, i32
  }
  func.func @transform_8(%arg0: i32) -> (i32, i32) {
    %c0_i32 = arith.constant 0 : i32
    %c0_i32_0 = arith.constant 0 : i32
    %c0_i32_1 = arith.constant 0 : i32
    return %c0_i32, %c0_i32_0 : i32, i32
  }
  func.func @transform_9(%arg0: i32) -> (i32, i32) {
    %c0_i32 = arith.constant 0 : i32
    %c0_i32_0 = arith.constant 0 : i32
    %c0_i32_1 = arith.constant 0 : i32
    return %c0_i32, %c0_i32_0 : i32, i32
  }
  func.func @transform_10(%arg0: i32) -> (i32, i32) {
    %c0_i32 = arith.constant 0 : i32
    %c0_i32_0 = arith.constant 0 : i32
    %c0_i32_1 = arith.constant 0 : i32
    return %c0_i32, %c0_i32_0 : i32, i32
  }
  func.func @transform_11(%arg0: i32) -> (i32, i32) {
    %c0_i32 = arith.constant 0 : i32
    %c0_i32_0 = arith.constant 0 : i32
    %c0_i32_1 = arith.constant 0 : i32
    return %c0_i32, %c0_i32_0 : i32, i32
  }
  func.func @transform_12(%arg0: i32) -> (i32, i32) {
    %c0_i32 = arith.constant 0 : i32
    %c0_i32_0 = arith.constant 0 : i32
    %c0_i32_1 = arith.constant 0 : i32
    return %c0_i32, %c0_i32_0 : i32, i32
  }
  func.func @transform_13(%arg0: i32) -> (i32, i32) {
    %c0_i32 = arith.constant 0 : i32
    %c0_i32_0 = arith.constant 0 : i32
    %c0_i32_1 = arith.constant 0 : i32
    return %c0_i32, %c0_i32_0 : i32, i32
  }
  func.func @transform_14(%arg0: i32) -> (i32, i32) {
    %c0_i32 = arith.constant 0 : i32
    %c0_i32_0 = arith.constant 0 : i32
    %c0_i32_1 = arith.constant 0 : i32
    return %c0_i32, %c0_i32_0 : i32, i32
  }
  func.func @transform_15(%arg0: i32) -> (i32, i32) {
    %c0_i32 = arith.constant 0 : i32
    %c0_i32_0 = arith.constant 0 : i32
    return %arg0, %c0_i32 : i32, i32
  }
}

</mosaic_0001>

<bundles_post_ra>
// kernel: _pcg3d_call.1
= control target key start
LH: loop header
LB: loop body
LE: loop exit
PB: predicated region body
PF: predicated region fallthrough
CT: control target
= control target key end

     0   :  { %s16558_s0 = inlined_call_operand.vmem [shape: bf16[320,16], index: 0, kind: input, shape index: {}]   ;;  %s16559_s1 = inlined_call_operand.vmem [shape: bf16[16,256], index: 1, kind: input, shape index: {}]   ;;  %s16560_s2 = inlined_call_operand.vmem [shape: f32[1,256], index: 2, kind: input, shape index: {}]   ;;  %s16561_s3 = inlined_call_operand.vmem [shape: bf16[256,512], index: 3, kind: input, shape index: {}]   ;;  %s16562_s4 = inlined_call_operand.vmem [shape: f32[1,512], index: 4, kind: input, shape index: {}]   ;;  %s16563_s5 = inlined_call_operand.vmem [shape: bf16[512,1024], index: 5, kind: input, shape index: {}]   ;;  %s16564_s6 = inlined_call_operand.vmem [shape: f32[1,1024], index: 6, kind: input, shape index: {}]   ;;  %s16565_s7 = inlined_call_operand.vmem [shape: bf16[1024,512], index: 7, kind: input, shape index: {}]   ;;  %s16566_s8 = inlined_call_operand.vmem [shape: f32[1,512], index: 8, kind: input, shape index: {}]   ;;  %s16567_s9 = inlined_call_operand.vmem [shape: bf16[512,256], index: 9, kind: input, shape index: {}]   ;;  %s16568_s10 = inlined_call_operand.vmem [shape: f32[1,256], index: 10, kind: input, shape index: {}]   ;;  %s16569_s11 = inlined_call_operand.vmem [shape: bf16[256,128], index: 11, kind: input, shape index: {}]   ;;  %s16570_s12 = inlined_call_operand.vmem [shape: f32[1,128], index: 12, kind: input, shape index: {}]   ;;  %s16571_s13 = inlined_call_operand.vmem [shape: bf16[128,128], index: 13, kind: input, shape index: {}]   ;;  %s16572_s14 = inlined_call_operand.vmem [shape: f32[1,128], index: 14, kind: input, shape index: {}]   ;;  %s16573_s15 = inlined_call_operand.hbm [shape: f32[320,128], index: 15, kind: output, shape index: {}]  }
   0x1   :  { %16730 = sst [smem:[#allocation57_spill]] %s16559_s1 }
   0x2   :  { %20 = vsyncpa [#allocation3], 0 }
   0x3   :  { %22 = vsyncpa [#allocation3 + $0x1], 0  ;;  %s11207_s18 = smov 0   ;;  %s11209_s19 = smov 0  }
   0x4   :  { %s11211_s20 = smov 0   ;;  %s11213_s21 = smov 0  }
   0x5 LB: > { %16731 = sst [smem:[#allocation5_spill]] %s11109_s18  ;;  %s11228_s22 = sadd.s32 4294967295, %s11121_s21   ;;  %s11121_s21 = sphi %s11213_s21, %s17122_s21   ;;  %s11117_s20 = sphi %s11211_s20, %s17124_s20   ;;  %s11113_s19 = sphi %s11209_s19, %s17126_s19   ;;  %s11109_s18 = sphi %s11207_s18, %s17125_s18  }
   0x6   : > { %16732 = sst [smem:[#allocation6_spill]] %s11117_s20  ;;  %s9471_s23 = sadd.s32 4294967294, %s11121_s21  }
   0x7   : > { %s11232_s24 = sadd.s32 1, %s11121_s21   ;;  %s355_s25 = sadd.s32 1, %s11117_s20 }
   0x8   : > { %16733 = sst [smem:[#allocation7_spill]] %s11232_s24  ;;  %s352_s26 = ssub.s32 %s11121_s21, %s11232_s24 }
   0x9   : > { %p365_p0 = scmp.ne.s32.totalorder %s11117_s20, %s11113_s19  ;;  %p353_p1 = scmp.eq.s32.totalorder %s352_s26, 0 }
   0xa   : > { %p366_p2 = scmp.eq.s32.totalorder %s11228_s22, 1  ;;  %p371_p3 = scmp.ne.s32.totalorder %s11113_s19, %s11109_s18 }
   0xb   : > { %p372_p4 = scmp.eq.s32.totalorder %s9471_s23, 1  ;;  %p9474_p7 = scmp.ge.s32.totalorder %s11121_s21, 1 }
   0xc   : > { %s11243_s27 = scalar_select %p353_p1, %s11117_s20, %s355_s25  }
   0xd   : > { %p11245_p5 = por %p366_p2, %p365_p0  ;;  %p11249_p6 = por %p372_p4, %p371_p3 }
   0xe   : > { %16734 = sst [smem:[#allocation8_spill]] %s11243_s27  ;;  %p441_p8 = scmp.lt.s32.totalorder %s11121_s21, 3 }
   0xf   : > { %s16736_s29 = scalar_select %p11249_p6, 1, 0 }
  0x10   : > { %p442_p9 = pnand %p9474_p7, %p441_p8 }
  0x11   : > { %16737 = sst [smem:[#allocation9_spill]] %s16736_s29 }
  0x12   : > { %445 = sbr.rel (%p442_p9) target bundleno = 2024 (0x7e8), region = 80 }
  0x17   : > { %s16738_s1 = sld [smem:[#allocation57_spill]]  ;;  %s489_s17 = smul.u32 20, %s11228_s22  ;;  %v11123_v2 = vmov 0   ;;  %v10376_v3 = vld [vmem:[%s16561_s3 + $0xec] ss:$16 sps:$4 sm:$0xff]   ;;  %vm591_vm0 = vcmask 130048  }
  0x18   : > { %654 = vmatprep.mubr.bf16.mxu0 %v11123_v2  ;;  %v10383_v4 = vld [vmem:[%s16561_s3 + $0xe4] ss:$16 sps:$4 sm:$0xff]   ;;  %v10374_v5 = vld [vmem:[%s16561_s3 + $0xe8] ss:$16 sps:$4 sm:$0xff]   ;;  %v10379_v6 = vld [vmem:[%s16561_s3 + $0xcc] ss:$16 sps:$4 sm:$0xff]  }
  0x19   : > { %p490_p10 = scmp.lt.s32.totalorder %s489_s17, 39  ;;  %v10388_v7 = vld [vmem:[%s16561_s3 + $0xe0] ss:$16 sps:$4 sm:$0xff]   ;;  %1301 = vmatprep.subr.bf16.mxu1 %v10383_v4  ;;  %v10377_v9 = vld [vmem:[%s16561_s3 + $0xc8] ss:$16 sps:$4 sm:$0xff]   ;;  %s10187_s29 = smul.u32 2560, %s11228_s22 }
  0x1a   : > { %1302 = vmatpush1.bf16.msra.mxu1 %v10388_v7  ;;  %v10382_v10 = vld [vmem:[%s16561_s3 + $0xac] ss:$16 sps:$4 sm:$0xff]   ;;  %v10380_v12 = vld [vmem:[%s16561_s3 + $0xa8] ss:$16 sps:$4 sm:$0xff]   ;;  %v10389_v15 = vld [vmem:[%s16561_s3 + $0xc4] ss:$16 sps:$4 sm:$0xff]  }
  0x1b   : > { %s17128_s17 = smov (!%p490_p10, %s489_s17), 39  ;;  %v10387_v13 = vld [vmem:[%s16561_s3 + $0x8c] ss:$16 sps:$4 sm:$0xff]   ;;  %v10385_v14 = vld [vmem:[%s16561_s3 + $0x88] ss:$16 sps:$4 sm:$0xff]   ;;  %1303 = vmatprep.subr.bf16.mxu1 %v10389_v15  ;;  %v11502_v15 = vld [vmem:[%s16563_s5 + $0x5c0] sm:$0xff]  ;;  %s16513_s23 = scalar_lea.hbm %s16573_s15, %s10187_s29 }
  0x1c   : > { %s9475_s30 = sshll.u32 %s17128_s17, 2  ;;  %v10391_v16 = vld [vmem:[%s16561_s3 + $0xc0] ss:$16 sps:$4 sm:$0xff]   ;;  %v10394_v17 = vld [vmem:[%s16561_s3 + $0x6c] ss:$16 sps:$4 sm:$0xff]   ;;  %s486_s17 = sand.u32 1, %s11113_s19  }
  0x1d   : > { %v10361_v0 = vld [vmem:[%s16738_s1 + $0x4] ss:$8 sps:$4 sm:$0xff]   ;;  %v10363_v1 = vld [vmem:[%s16738_s1] ss:$8 sps:$4 sm:$0xff]   ;;  %s11272_s1 = scalar_lea.vmem %s16558_s0, %s9475_s30  ;;  %s10318_s20 = smul.u32 160, %s486_s17 }
  0x1e   : > { %636 = vmatprep.subr.bf16.mxu0 %v10361_v0  ;;  %v10364_v8 = vld [vmem:[%s11272_s1] sm:$0xff]   ;;  %v10365_v11 = vld [vmem:[%s11272_s1 + $0x8] sm:$0xff]   ;;  %1304 = vmatpush1.bf16.msra.mxu1 %v10391_v16  ;;  %v10366_v20 = vld [vmem:[%s11272_s1 + $0x10] sm:$0xff]   ;;  %s11124_s25 = smov [#allocation2]  }
  0x1f   : > { %637 = vmatpush1.bf16.msra.mxu0 %v10363_v1  ;;  %v10395_v18 = vld [vmem:[%s16561_s3 + $0xa4] ss:$16 sps:$4 sm:$0xff]   ;;  %v10397_v19 = vld [vmem:[%s16561_s3 + $0xa0] ss:$16 sps:$4 sm:$0xff]   ;;  %v10392_v21 = vld [vmem:[%s16561_s3 + $0x68] ss:$16 sps:$4 sm:$0xff]  }
  0x20   : > { %1434 = vmatprep.subr.bf16.mxu0 %v10376_v3  ;;  %1305 = vmatprep.subr.bf16.mxu1 %v10395_v18  ;;  %v10400_v22 = vld [vmem:[%s16561_s3 + $0x4c] ss:$16 sps:$4 sm:$0xff]   ;;  %v10401_v23 = vld [vmem:[%s16561_s3 + $0x84] ss:$16 sps:$4 sm:$0xff]   ;;  %v10403_v24 = vld [vmem:[%s16561_s3 + $0x80] ss:$16 sps:$4 sm:$0xff]  }
  0x21   : > { %v10407_v25 = vld [vmem:[%s16561_s3 + $0x64] ss:$16 sps:$4 sm:$0xff]   ;;  %v10398_v26 = vld [vmem:[%s16561_s3 + $0x48] ss:$16 sps:$4 sm:$0xff]   ;;  %v10406_v27 = vld [vmem:[%s16561_s3 + $0x2c] ss:$16 sps:$4 sm:$0xff]  }
  0x22   : > { %9488 = vmatmul.mubr.msk.bf16.vlgmr.msra.gmra.mxu0 %vm591_vm0, %v10364_v8  ;;  %1306 = vmatpush1.bf16.msra.mxu1 %v10397_v19  ;;  %v10367_v28 = vld [vmem:[%s11272_s1 + $0x18] sm:$0xff]   ;;  %v10409_v29 = vld [vmem:[%s16561_s3 + $0x60] ss:$16 sps:$4 sm:$0xff]   ;;  %v10410_v30 = vld [vmem:[%s16561_s3 + $0x44] ss:$16 sps:$4 sm:$0xff]   ;;  %v521_v19 = vlaneseq  ;;  %s16474_s24 = scalar_lea.vmem [#allocation2], %s10318_s20 }
  0x23   : > { %664 = vmatprep.mubr.bf16.mxu0 %v11123_v2  ;;  %1435 = vmatpush1.bf16.msra.mxu0 %v10374_v5  ;;  %v10404_v31 = vld [vmem:[%s16561_s3 + $0x28] ss:$16 sps:$4 sm:$0xff]   ;;  %v10414_v32 = vld [vmem:[%s16561_s3 + $0xc] ss:$16 sps:$4 sm:$0xff]   ;;  %v10415_v33 = vld [vmem:[%s16561_s3 + $0x40] ss:$16 sps:$4 sm:$0xff]  }
  0x24   : > { %1436 = vmatprep.subr.bf16.mxu0 %v10379_v6  ;;  %1307 = vmatprep.subr.bf16.mxu1 %v10401_v23  ;;  %v10416_v34 = vld [vmem:[%s16561_s3 + $0x24] ss:$16 sps:$4 sm:$0xff]   ;;  %v10412_v35 = vld [vmem:[%s16561_s3 + $0x8] ss:$16 sps:$4 sm:$0xff]   ;;  %v10421_v36 = vld [vmem:[%s16561_s3 + $0x1ec] ss:$16 sps:$4 sm:$0xff]  }
  0x25   : > { %v10368_v37 = vld [vmem:[%s11272_s1 + $0x20] sm:$0xff]   ;;  %v10419_v40 = vld [vmem:[%s16561_s3 + $0x1e8] ss:$16 sps:$4 sm:$0xff]   ;;  %v10427_v41 = vld [vmem:[%s16561_s3 + $0x1cc] ss:$16 sps:$4 sm:$0xff]   ;;  %s9409_s30 = sshll.u32 %s16474_s24, 4  ;;  %s16507_s30 = int_to_ptr.vmem [resolvable:$true] %s9409_s30 }
  0x26   : > { %1308 = vmatpush1.bf16.msra.mxu1 %v10403_v24  ;;  %v10418_v38 = vld [vmem:[%s16561_s3 + $0x20] ss:$16 sps:$4 sm:$0xff]   ;;  %v10422_v39 = vld [vmem:[%s16561_s3 + $0x4] ss:$16 sps:$4 sm:$0xff]   ;;  %v10425_v44 = vld [vmem:[%s16561_s3 + $0x1c8] ss:$16 sps:$4 sm:$0xff]  }
  0x27   : > { %1437 = vmatpush1.bf16.msra.mxu0 %v10377_v9  ;;  %1309 = vmatprep.subr.bf16.mxu1 %v10407_v25  ;;  %v10424_v42 = vld [vmem:[%s16561_s3] ss:$16 sps:$4 sm:$0xff]   ;;  %v10428_v43 = vld [vmem:[%s16561_s3 + $0x1e4] ss:$16 sps:$4 sm:$0xff]   ;;  %v10369_v45 = vld [vmem:[%s11272_s1 + $0x28] sm:$0xff]   ;;  %s11061_s22 = scalar_lea.vmem %s16507_s30, 2560 }
  0x28   : > { %1438 = vmatprep.subr.bf16.mxu0 %v10382_v10  ;;  %v10430_v46 = vld [vmem:[%s16561_s3 + $0x1e0] ss:$16 sps:$4 sm:$0xff]   ;;  %v10433_v47 = vld [vmem:[%s16561_s3 + $0x1ac] ss:$16 sps:$4 sm:$0xff]   ;;  %v10431_v48 = vld [vmem:[%s16561_s3 + $0x1a8] ss:$16 sps:$4 sm:$0xff]   ;;  %p11062_p11 = scmp.ne.s32.totalorder %s16507_s30, %s11061_s22 }
  0x29   : > { %v10434_v49 = vld [vmem:[%s16561_s3 + $0x1c4] ss:$16 sps:$4 sm:$0xff]   ;;  %v10441_v50 = vld [vmem:[%s16561_s3 + $0x18c] ss:$16 sps:$4 sm:$0xff]   ;;  %v10436_v51 = vld [vmem:[%s16561_s3 + $0x1c0] ss:$16 sps:$4 sm:$0xff]  }
  0x2a   : > { %9489 = vmatmul.mubr.msk.bf16.gmra.mxu0 %vm591_vm0, %v10365_v11  ;;  %1310 = vmatpush1.bf16.msra.mxu1 %v10409_v29  ;;  %v10437_v52 = vld [vmem:[%s16561_s3 + $0x1a4] ss:$16 sps:$4 sm:$0xff]   ;;  %v10439_v53 = vld [vmem:[%s16561_s3 + $0x188] ss:$16 sps:$4 sm:$0xff]   ;;  %v10448_v54 = vld [vmem:[%s16561_s3 + $0x16c] ss:$16 sps:$4 sm:$0xff]   ;;  %p11063_p12 = pnand %p11062_p11, %p11245_p5 }
  0x2b   : > { %674 = vmatprep.mubr.bf16.mxu0 %v11123_v2  ;;  %1439 = vmatpush1.bf16.msra.mxu0 %v10380_v12  ;;  %v10442_v55 = vld [vmem:[%s16561_s3 + $0x1a0] ss:$16 sps:$4 sm:$0xff]   ;;  %v10443_v57 = vld [vmem:[%s16561_s3 + $0x184] ss:$16 sps:$4 sm:$0xff]   ;;  %v10446_v58 = vld [vmem:[%s16561_s3 + $0x168] ss:$16 sps:$4 sm:$0xff]  }
  0x2c   : > { %1440 = vmatprep.subr.bf16.mxu0 %v10387_v13  ;;  %1311 = vmatprep.subr.bf16.mxu1 %v10410_v30  ;;  %v10370_v56 = vld [vmem:[%s11272_s1 + $0x30] sm:$0xff]   ;;  %v10371_v61 = vld [vmem:[%s11272_s1 + $0x38] sm:$0xff]   ;;  %v10372_v62 = vld [vmem:[%s11272_s1 + $0x40] sm:$0xff]   ;;  %p11064_p13 = pneg %p11063_p12  ;;  %s11065_s27 = sshll.u32 %s11124_s25, 4  ;;  %s11066_s27 = int_to_ptr.vmem [resolvable:$false] %s11065_s27 }
  0x2d   : > { %v10445_v59 = vld [vmem:[%s16561_s3 + $0x180] ss:$16 sps:$4 sm:$0xff]   ;;  %v10449_v60 = vld [vmem:[%s16561_s3 + $0x164] ss:$16 sps:$4 sm:$0xff]   ;;  %v10454_v0 = vld [vmem:[%s16561_s3 + $0x14c] ss:$16 sps:$4 sm:$0xff]   ;;  %p11068_p0 = scmp.lt.s32.totalorder %s16507_s30, %s11066_s27 }
  0x2e   : > { %1312 = vmatpush1.bf16.msra.mxu1 %v10415_v33  ;;  %v10451_v63 = vld [vmem:[%s16561_s3 + $0x160] ss:$16 sps:$4 sm:$0xff]   ;;  %v10455_v1 = vld [vmem:[%s16561_s3 + $0x144] ss:$16 sps:$4 sm:$0xff]   ;;  %v10373_v3 = vld [vmem:[%s11272_s1 + $0x48] sm:$0xff]   ;;  %s16518_s1 = scalar_lea.sflag [#allocation3], %s486_s17 }
  0x2f   : > { %1441 = vmatpush1.bf16.msra.mxu0 %v10385_v14  ;;  %1313 = vmatprep.subr.bf16.mxu1 %v10416_v34  ;;  %v10452_v4 = vld [vmem:[%s16561_s3 + $0x148] ss:$16 sps:$4 sm:$0xff]   ;;  %v10457_v5 = vld [vmem:[%s16561_s3 + $0x140] ss:$16 sps:$4 sm:$0xff]   ;;  %v10461_v6 = vld [vmem:[%s16561_s3 + $0x124] ss:$16 sps:$4 sm:$0xff]  }
  0x30   : > { %1442 = vmatprep.subr.bf16.mxu0 %v10394_v17  ;;  %v10458_v7 = vld [vmem:[%s16561_s3 + $0x128] ss:$16 sps:$4 sm:$0xff]   ;;  %v10463_v8 = vld [vmem:[%s16561_s3 + $0x120] ss:$16 sps:$4 sm:$0xff]   ;;  %v10464_v9 = vld [vmem:[%s16561_s3 + $0x104] ss:$16 sps:$4 sm:$0xff]  }
  0x31   : > { %v10468_v10 = vld [vmem:[%s16561_s3 + $0x10c] ss:$16 sps:$4 sm:$0xff]   ;;  %v10466_v11 = vld [vmem:[%s16561_s3 + $0x108] ss:$16 sps:$4 sm:$0xff]   ;;  %v10469_v12 = vld [vmem:[%s16561_s3 + $0x100] ss:$16 sps:$4 sm:$0xff]  }
  0x32   : > { %9490 = vmatmul.mubr.msk.bf16.gmra.mxu0 %vm591_vm0, %v10366_v20  ;;  %1314 = vmatpush1.bf16.msra.mxu1 %v10418_v38  ;;  %v11492_v13 = vld [vmem:[%s16563_s5 + $0x1c0] sm:$0xff]  ;;  %v11513_v20 = vshrl.u32 %v521_v19, 7  ;;  %s11067_s26 = scalar_lea.vmem %s11066_s27, 5120 }
  0x33   : > { %684 = vmatprep.mubr.bf16.mxu0 %v11123_v2  ;;  %1443 = vmatpush1.bf16.msra.mxu0 %v10392_v21  ;;  %v11497_v14 = vld [vmem:[%s16563_s5 + $0x1e0] sm:$0xff]  ;;  %p11069_p1 = scmp.lt.s32.totalorder %s11067_s26, %s11061_s22 }
  0x34   : > { %1444 = vmatprep.subr.bf16.mxu0 %v10400_v22  ;;  %1315 = vmatprep.subr.bf16.mxu1 %v10422_v39  ;;  %v9619_v16 = vcombine.high %v11492_v13, %v11497_v14  ;;  %v11509_v17 = vld [vmem:[%s16563_s5 + $0x5e0] sm:$0xff]  ;;  %16739 = vst [vmem:[#allocation10_spill] sm:$0xff] %v11513_v20  ;;  %v11516_v21 = vsub.s32 1, %v11513_v20  ;;  %v11519_v22 = vsub.s32 0, %v11513_v20 }
  0x35   : > { %v9747_v18 = vcombine.high %v11502_v15, %v11509_v17  ;;  %v519_v23 = vld [vmem:[%s16560_s2] sm:$0x3]  ;;  %p11070_p2 = por %p11069_p1, %p11068_p0 }
  0x36   : > { %1316 = vmatpush1.bf16.msra.mxu1 %v10424_v42  ;;  %16740 = vst [vmem:[#allocation11_spill] sm:$0xff] %v11516_v21  ;;  %16741 = vst [vmem:[#allocation12_spill] sm:$0xff] %v11519_v22  ;;  %v11525_v24 = vrot.slane %v519_v23, %v11516_v21  ;;  %v11528_v25 = vrot.slane %v519_v23, %v11519_v22  ;;  %v11537_v39 = vld [vmem:[%s16563_s5 + $0x180] sm:$0xff] }
  0x37   : > { %1445 = vmatpush1.bf16.msra.mxu0 %v10398_v26  ;;  %1317 = vmatprep.subr.bf16.mxu1 %v10428_v43  ;;  %v1899_v42 = vld [vmem:[%s16563_s5 + $0x1a0] sm:$0xff]  ;;  %p11071_p3 = pnand %p11070_p2, %p11064_p13 }
  0x38   : > { %1446 = vmatprep.subr.bf16.mxu0 %v10406_v27  ;;  %v2023_v43 = vld [vmem:[%s16563_s5 + $0x580] sm:$0xff] }
  0x3a   : > { %9491 = vmatmul.mubr.msk.bf16.gmra.mxu0 %vm591_vm0, %v10367_v28  ;;  %1318 = vmatpush2.bf16.msra.mxu1 %v10430_v46 }
  0x3b   : > { %694 = vmatprep.mubr.bf16.mxu0 %v11123_v2  ;;  %1447 = vmatpush1.bf16.msra.mxu0 %v10404_v31 }
  0x3c   : > { %1448 = vmatprep.subr.bf16.mxu0 %v10414_v32  ;;  %1319 = vmatprep.subr.bf16.mxu1 %v10434_v49 }
  0x3e   : > { %1320 = vmatpush2.bf16.msra.mxu1 %v10436_v51 }
  0x3f   : > { %1449 = vmatpush1.bf16.msra.mxu0 %v10412_v35  ;;  %1321 = vmatprep.subr.bf16.mxu1 %v10437_v52 }
  0x40   : > { %1450 = vmatprep.subr.bf16.mxu0 %v10421_v36 }
  0x42   : > { %9492 = vmatmul.mubr.msk.bf16.gmra.mxu0 %vm591_vm0, %v10368_v37  ;;  %1322 = vmatpush2.bf16.msra.mxu1 %v10442_v55 }
  0x43   : > { %704 = vmatprep.mubr.bf16.mxu0 %v11123_v2  ;;  %1451 = vmatpush2.bf16.msra.mxu0 %v10419_v40 }
  0x44   : > { %1452 = vmatprep.subr.bf16.mxu0 %v10427_v41  ;;  %1323 = vmatprep.subr.bf16.mxu1 %v10443_v57 }
  0x46   : > { %1324 = vmatpush2.bf16.msra.mxu1 %v10445_v59  ;;  %v11565_v59 = vld [vmem:[%s16563_s5 + $0x160] sm:$0xff] }
  0x47   : > { %1453 = vmatpush2.bf16.msra.mxu0 %v10425_v44  ;;  %1325 = vmatprep.subr.bf16.mxu1 %v10449_v60  ;;  %v2027_v44 = vld [vmem:[%s16563_s5 + $0x5a0] sm:$0xff] }
  0x48   : > { %1454 = vmatprep.subr.bf16.mxu0 %v10433_v47  ;;  %v9739_v57 = vcombine.high %v2023_v43, %v2027_v44 }
  0x4a   : > { %9493 = vmatmul.mubr.msk.bf16.gmra.mxu0 %vm591_vm0, %v10369_v45  ;;  %1326 = vmatpush2.bf16.msra.mxu1 %v10451_v63  ;;  %v2019_v63 = vld [vmem:[%s16563_s5 + $0x560] sm:$0xff] }
  0x4b   : > { %714 = vmatprep.mubr.bf16.mxu0 %v11123_v2  ;;  %1455 = vmatpush2.bf16.msra.mxu0 %v10431_v48  ;;  %v9618_v48 = vcombine.low %v11492_v13, %v11497_v14 }
  0x4c   : > { %1456 = vmatprep.subr.bf16.mxu0 %v10441_v50  ;;  %1327 = vmatprep.subr.bf16.mxu1 %v10455_v1 }
  0x4e   : > { %1328 = vmatpush2.bf16.msra.mxu1 %v10457_v5 }
  0x4f   : > { %1457 = vmatpush2.bf16.msra.mxu0 %v10439_v53  ;;  %1329 = vmatprep.subr.bf16.mxu1 %v10461_v6  ;;  %v9746_v53 = vcombine.low %v11502_v15, %v11509_v17  ;;  %v2007_v15 = vld [vmem:[%s16563_s5 + $0x500] sm:$0xff] }
  0x50   : > { %1458 = vmatprep.subr.bf16.mxu0 %v10448_v54 }
  0x52   : > { %9494 = vmatmul.mubr.msk.bf16.gmra.mxu0 %vm591_vm0, %v10370_v56  ;;  %1330 = vmatpush2.bf16.msra.mxu1 %v10463_v8  ;;  %v9611_v56 = vcombine.high %v11537_v39, %v1899_v42  ;;  %v11585_v8 = vld [vmem:[%s16563_s5 + $0x120] sm:$0xff] }
  0x53   : > { %724 = vmatprep.mubr.bf16.mxu0 %v11123_v2  ;;  %1459 = vmatpush2.bf16.msra.mxu0 %v10446_v58  ;;  %v11560_v58 = vld [vmem:[%s16563_s5 + $0x140] sm:$0xff] }
  0x54   : > { %1460 = vmatprep.subr.bf16.mxu0 %v10454_v0  ;;  %1331 = vmatprep.subr.bf16.mxu1 %v10464_v9  ;;  %v9603_v6 = vcombine.high %v11560_v58, %v11565_v59  ;;  %v9602_v13 = vcombine.low %v11560_v58, %v11565_v59 }
  0x56   : > { %1332 = vmatpush2.bf16.msra.mxu1 %v10469_v12 }
  0x57   : > { %1461 = vmatpush2.bf16.msra.mxu0 %v10452_v4  ;;  %3425 = vmatprep.subr.bf16.mxu1 %v9619_v16  ;;  %v2011_v16 = vld [vmem:[%s16563_s5 + $0x520] sm:$0xff] }
  0x5a   : > { %9495 = vmatmul.mubr.msk.bf16.gmra.mxu0 %vm591_vm0, %v10371_v61  ;;  %v9610_v61 = vcombine.low %v11537_v39, %v1899_v42 }
  0x5b   : > { %734 = vmatprep.mubr.bf16.mxu0 %v11123_v2 }
  0x62   : > { %9496 = vmatmul.mubr.msk.bf16.gmra.mxu0 %vm591_vm0, %v10372_v62  ;;  %v2015_v62 = vld [vmem:[%s16563_s5 + $0x540] sm:$0xff] }
  0x63   : > { %744 = vmatprep.mubr.bf16.mxu0 %v11123_v2  ;;  %v10460_v2 = vld [vmem:[%s16561_s3 + $0x12c] ss:$16 sps:$4 sm:$0xff]   ;;  %v9730_v14 = vcombine.low %v2015_v62, %v2019_v63 }
  0x64   : > { %1462 = vmatprep.subr.bf16.mxu0 %v10460_v2  ;;  %v9738_v2 = vcombine.low %v2023_v43, %v2027_v44  ;;  %v9722_v44 = vcombine.low %v2007_v15, %v2011_v16 }
  0x65   : > { %1463 = vmatpush2.bf16.msra.mxu0 %v10458_v7  ;;  %v11580_v7 = vld [vmem:[%s16563_s5 + $0x100] sm:$0xff] }
  0x66   : > { %1464 = vmatprep.subr.bf16.mxu0 %v10468_v10  ;;  %v9731_v10 = vcombine.high %v2015_v62, %v2019_v63  ;;  %v9595_v23 = vcombine.high %v11580_v7, %v11585_v8 }
  0x69   : > { %1465 = vmatpush2.bf16.msra.mxu0 %v10466_v11 }
  0x6a   : > { %9497 = vmatmul.mubr.msk.bf16.gmra.mxu0 %vm591_vm0, %v10373_v3  ;;  %3558 = vmatprep.subr.bf16.mxu0 %v9747_v18 }
  0xe2   : > { %v656_v26 = vpop.f32.mrf.mxu0 }
  0xe3   : > { %v657_v29 = vadd.f32 %v656_v26, %v11528_v25 }
  0xe4   : > { %v658_v27 = vpop.f32.mrf.mxu0 }
  0xe5   : > { %v659_v28 = vadd.f32 %v658_v27, %v11525_v24  ;;  %v795_v36 = vmul.f32 0.01, %v657_v29  ;;  %vm755_vm3 = vcmp.gt.f32.partialorder %v657_v29, 0.0 }
  0xe6   : > { %v660_v30 = vpop.f32.mrf.mxu0 }
  0xe7   : > { %v661_v31 = vadd.f32 %v660_v30, %v11528_v25  ;;  %v796_v33 = vmul.f32 0.01, %v659_v28  ;;  %vm756_vm2 = vcmp.gt.f32.partialorder %v659_v28, 0.0  ;;  %v835_v52 = vsel %vm755_vm3, %v657_v29, %v795_v36 }
  0xe8   : > { %v662_v32 = vpop.f32.mrf.mxu0  ;;  %v9594_v36 = vcombine.low %v11580_v7, %v11585_v8  ;;  %v1983_v7 = vld [vmem:[%s16563_s5 + $0x440] sm:$0xff] }
  0xe9   : > { %vm757_vm1 = vcmp.gt.f32.partialorder %v661_v31, 0.0  ;;  %v797_v34 = vmul.f32 0.01, %v661_v31  ;;  %v663_v35 = vadd.f32 %v662_v32, %v11525_v24  ;;  %v836_v46 = vsel %vm756_vm2, %v659_v28, %v796_v33  ;;  %v11606_v33 = vld [vmem:[%s16563_s5 + $0xc0] sm:$0xff] }
  0xea   : > { %v666_v37 = vpop.f32.mrf.mxu0  ;;  %v9723_v32 = vcombine.high %v2007_v15, %v2011_v16  ;;  %v1987_v8 = vld [vmem:[%s16563_s5 + $0x460] sm:$0xff] }
  0xeb   : > { %v798_v38 = vmul.f32 0.01, %v663_v35  ;;  %vm758_vm4 = vcmp.gt.f32.partialorder %v663_v35, 0.0  ;;  %v837_v41 = vsel %vm757_vm1, %v661_v31, %v797_v34  ;;  %v667_v49 = vadd.f32 %v666_v37, %v11528_v25  ;;  %v11611_v34 = vld [vmem:[%s16563_s5 + $0xe0] sm:$0xff] }
  0xec   : > { %v668_v40 = vpop.f32.mrf.mxu0  ;;  %v875_v55 = vpack.c.bf16 %v837_v41, %v835_v52  ;;  %v1999_v37 = vld [vmem:[%s16563_s5 + $0x4c0] sm:$0xff]  ;;  %v9586_v52 = vcombine.low %v11606_v33, %v11611_v34 }
  0xed   : > { %v669_v45 = vadd.f32 %v668_v40, %v11525_v24  ;;  %v838_v47 = vsel %vm758_vm4, %v663_v35, %v798_v38  ;;  %v799_v4 = vmul.f32 0.01, %v667_v49  ;;  %vm759_vm7 = vcmp.gt.f32.partialorder %v667_v49, 0.0  ;;  %v2003_v38 = vld [vmem:[%s16563_s5 + $0x4e0] sm:$0xff] }
  0xee   : > { %v670_v50 = vpop.f32.mrf.mxu0  ;;  %v876_v51 = vpack.c.bf16 %v838_v47, %v836_v46  ;;  %v11627_v46 = vld [vmem:[%s16563_s5 + $0x80] sm:$0xff] }
  0xef   : > { %v671_v54 = vadd.f32 %v670_v50, %v11528_v25  ;;  %v800_v0 = vmul.f32 0.01, %v669_v45  ;;  %vm760_vm6 = vcmp.gt.f32.partialorder %v669_v45, 0.0  ;;  %v839_v29 = vsel %vm759_vm7, %v667_v49, %v799_v4  ;;  %v11632_v47 = vld [vmem:[%s16563_s5 + $0xa0] sm:$0xff] }
  0xf0   : > { %v672_v60 = vpop.f32.mrf.mxu0  ;;  %1333 = vmatprep.mubr.bf16.mxu1 %v876_v51  ;;  %1466 = vmatprep.mubr.bf16.mxu0 %v876_v51  ;;  %v9715_v49 = vcombine.high %v1999_v37, %v2003_v38  ;;  %v9579_v59 = vcombine.high %v11627_v46, %v11632_v47  ;;  %v11653_v4 = vld [vmem:[%s16563_s5 + $0x40] sm:$0xff] }
  0xf1   : > { %vm761_vm5 = vcmp.gt.f32.partialorder %v671_v54, 0.0  ;;  %v801_v1 = vmul.f32 0.01, %v671_v54  ;;  %v673_v3 = vadd.f32 %v672_v60, %v11525_v24  ;;  %1334 = vmatmul.mubr.bf16.vlgmr.msra.gmra.mxu1 %v875_v55  ;;  %1467 = vmatmul.mubr.bf16.vlgmr.msra.gmra.mxu0 %v875_v55  ;;  %v840_v18 = vsel %vm760_vm6, %v669_v45, %v800_v0  ;;  %v1995_v55 = vld [vmem:[%s16563_s5 + $0x4a0] sm:$0xff] }
  0xf2   : > { %v676_v5 = vpop.f32.mrf.mxu0  ;;  %3426 = vmatpush1.bf16.msra.mxu1 %v9618_v48  ;;  %3559 = vmatpush1.bf16.msra.mxu0 %v9746_v53  ;;  %v9587_v45 = vcombine.high %v11606_v33, %v11611_v34  ;;  %v9714_v53 = vcombine.low %v1999_v37, %v2003_v38  ;;  %v11674_v16 = vld [vmem:[%s16563_s5] sm:$0xff] }
  0xf3   : > { %vm762_vm8 = vcmp.gt.f32.partialorder %v673_v3, 0.0  ;;  %v802_v9 = vmul.f32 0.01, %v673_v3  ;;  %3427 = vmatprep.subr.bf16.mxu1 %v9611_v56  ;;  %3560 = vmatprep.subr.bf16.mxu0 %v9739_v57  ;;  %v841_v12 = vsel %vm761_vm5, %v671_v54, %v801_v1  ;;  %v677_v26 = vadd.f32 %v676_v5, %v11528_v25  ;;  %v1991_v54 = vld [vmem:[%s16563_s5 + $0x480] sm:$0xff] }
  0xf4   : > { %v678_v11 = vpop.f32.mrf.mxu0  ;;  %v877_v31 = vpack.c.bf16 %v841_v12, %v839_v29  ;;  %v11658_v5 = vld [vmem:[%s16563_s5 + $0x60] sm:$0xff] }
  0xf5   : > { %v679_v17 = vadd.f32 %v678_v11, %v11525_v24  ;;  %v842_v19 = vsel %vm762_vm8, %v673_v3, %v802_v9  ;;  %v803_v42 = vmul.f32 0.01, %v677_v26  ;;  %vm763_vm11 = vcmp.gt.f32.partialorder %v677_v26, 0.0  ;;  %v1975_v29 = vld [vmem:[%s16563_s5 + $0x400] sm:$0xff] }
  0xf6   : > { %v680_v27 = vpop.f32.mrf.mxu0  ;;  %v878_v28 = vpack.c.bf16 %v842_v19, %v840_v18  ;;  %3428 = vmatpush1.bf16.msra.mxu1 %v9610_v61  ;;  %3561 = vmatpush1.bf16.msra.mxu0 %v9738_v2  ;;  %v9707_v3 = vcombine.high %v1991_v54, %v1995_v55  ;;  %v9571_v15 = vcombine.high %v11653_v4, %v11658_v5 }
  0xf7   : > { %v681_v30 = vadd.f32 %v680_v27, %v11528_v25  ;;  %3429 = vmatprep.subr.bf16.mxu1 %v9603_v6  ;;  %3562 = vmatprep.subr.bf16.mxu0 %v9731_v10  ;;  %v804_v39 = vmul.f32 0.01, %v679_v17  ;;  %vm764_vm10 = vcmp.gt.f32.partialorder %v679_v17, 0.0  ;;  %v843_v63 = vsel %vm763_vm11, %v677_v26, %v803_v42  ;;  %v11700_v42 = vld [vmem:[%s16563_s5 + $0x3c0] sm:$0xff] }
  0xf8   : > { %v682_v35 = vpop.f32.mrf.mxu0  ;;  %1343 = vmatprep.mubr.bf16.mxu1 %v878_v28  ;;  %1476 = vmatprep.mubr.bf16.mxu0 %v878_v28  ;;  %v9578_v6 = vcombine.low %v11627_v46, %v11632_v47  ;;  %v9699_v19 = vcombine.high %v1983_v7, %v1987_v8  ;;  %v9570_v27 = vcombine.low %v11653_v4, %v11658_v5  ;;  %v2095_v46 = vld [vmem:[%s16563_s5 + $0x7c0] sm:$0xff] }
  0xf9   : > { %vm765_vm9 = vcmp.gt.f32.partialorder %v681_v30, 0.0  ;;  %v805_v40 = vmul.f32 0.01, %v681_v30  ;;  %v683_v41 = vadd.f32 %v682_v35, %v11525_v24  ;;  %1344 = vmatmul.mubr.bf16.gmra.mxu1 %v877_v31  ;;  %1477 = vmatmul.mubr.bf16.gmra.mxu0 %v877_v31  ;;  %v844_v57 = vsel %vm764_vm10, %v679_v17, %v804_v39  ;;  %v11679_v17 = vld [vmem:[%s16563_s5 + $0x20] sm:$0xff] }
  0xfa   : > { %v686_v43 = vpop.f32.mrf.mxu0  ;;  %3430 = vmatpush1.bf16.msra.mxu1 %v9602_v13  ;;  %3563 = vmatpush1.bf16.msra.mxu0 %v9730_v14  ;;  %v9706_v14 = vcombine.low %v1991_v54, %v1995_v55  ;;  %v9698_v28 = vcombine.low %v1983_v7, %v1987_v8  ;;  %v9563_v34 = vcombine.high %v11674_v16, %v11679_v17  ;;  %v2099_v47 = vld [vmem:[%s16563_s5 + $0x7e0] sm:$0xff] }
  0xfb   : > { %vm766_vm12 = vcmp.gt.f32.partialorder %v683_v41, 0.0  ;;  %v806_v48 = vmul.f32 0.01, %v683_v41  ;;  %3431 = vmatprep.subr.bf16.mxu1 %v9595_v23  ;;  %3564 = vmatprep.subr.bf16.mxu0 %v9723_v32  ;;  %v845_v51 = vsel %vm765_vm9, %v681_v30, %v805_v40  ;;  %v687_v60 = vadd.f32 %v686_v43, %v11528_v25  ;;  %v1979_v30 = vld [vmem:[%s16563_s5 + $0x420] sm:$0xff] }
  0xfc   : > { %v688_v50 = vpop.f32.mrf.mxu0  ;;  %v879_v1 = vpack.c.bf16 %v845_v51, %v843_v63  ;;  %v11705_v43 = vld [vmem:[%s16563_s5 + $0x3e0] sm:$0xff] }
  0xfd   : > { %v689_v56 = vadd.f32 %v688_v50, %v11525_v24  ;;  %v846_v58 = vsel %vm766_vm12, %v683_v41, %v806_v48  ;;  %v807_v12 = vmul.f32 0.01, %v687_v60  ;;  %vm767_vm15 = vcmp.gt.f32.partialorder %v687_v60, 0.0  ;;  %v11721_v55 = vld [vmem:[%s16563_s5 + $0x380] sm:$0xff] }
  0xfe   : > { %v690_v61 = vpop.f32.mrf.mxu0  ;;  %v880_v62 = vpack.c.bf16 %v846_v58, %v844_v57  ;;  %3432 = vmatpush1.bf16.msra.mxu1 %v9594_v36  ;;  %3565 = vmatpush1.bf16.msra.mxu0 %v9722_v44  ;;  %v9691_v41 = vcombine.high %v1975_v29, %v1979_v30  ;;  %v9683_v54 = vcombine.high %v11700_v42, %v11705_v43  ;;  %v2087_v63 = vld [vmem:[%s16563_s5 + $0x780] sm:$0xff] }
  0xff   : > { %v691_v0 = vadd.f32 %v690_v61, %v11528_v25  ;;  %3433 = vmatprep.subr.bf16.mxu1 %v9587_v45  ;;  %3566 = vmatprep.subr.bf16.mxu0 %v9715_v49  ;;  %v808_v9 = vmul.f32 0.01, %v689_v56  ;;  %vm768_vm14 = vcmp.gt.f32.partialorder %v689_v56, 0.0  ;;  %v847_v38 = vsel %vm767_vm15, %v687_v60, %v807_v12  ;;  %v11747_v12 = vld [vmem:[%s16563_s5 + $0x340] sm:$0xff] }
 0x100   : > { %v692_v2 = vpop.f32.mrf.mxu0  ;;  %1353 = vmatprep.mubr.bf16.mxu1 %v880_v62  ;;  %1486 = vmatprep.mubr.bf16.mxu0 %v880_v62  ;;  %v9562_v45 = vcombine.low %v11674_v16, %v11679_v17  ;;  %v9811_v58 = vcombine.high %v2095_v46, %v2099_v47  ;;  %v9682_v61 = vcombine.low %v11700_v42, %v11705_v43  ;;  %v2079_v16 = vld [vmem:[%s16563_s5 + $0x740] sm:$0xff] }
 0x101   : > { %vm769_vm13 = vcmp.gt.f32.partialorder %v691_v0, 0.0  ;;  %v809_v10 = vmul.f32 0.01, %v691_v0  ;;  %v693_v11 = vadd.f32 %v692_v2, %v11525_v24  ;;  %1354 = vmatmul.mubr.bf16.gmra.mxu1 %v879_v1  ;;  %1487 = vmatmul.mubr.bf16.gmra.mxu0 %v879_v1  ;;  %v848_v32 = vsel %vm768_vm14, %v689_v56, %v808_v9  ;;  %v11726_v56 = vld [vmem:[%s16563_s5 + $0x3a0] sm:$0xff] }
 0x102   : > { %v696_v13 = vpop.f32.mrf.mxu0  ;;  %3434 = vmatpush1.bf16.msra.mxu1 %v9586_v52  ;;  %3567 = vmatpush1.bf16.msra.mxu0 %v9714_v53  ;;  %v9690_v53 = vcombine.low %v1975_v29, %v1979_v30  ;;  %v9810_v62 = vcombine.low %v2095_v46, %v2099_v47  ;;  %v9675_v5 = vcombine.high %v11721_v55, %v11726_v56  ;;  %v2083_v17 = vld [vmem:[%s16563_s5 + $0x760] sm:$0xff] }
 0x103   : > { %vm770_vm0 = vcmp.gt.f32.partialorder %v693_v11, 0.0  ;;  %v810_v18 = vmul.f32 0.01, %v693_v11  ;;  %3435 = vmatprep.subr.bf16.mxu1 %v9579_v59  ;;  %3568 = vmatprep.subr.bf16.mxu0 %v9707_v3  ;;  %v849_v26 = vsel %vm769_vm13, %v691_v0, %v809_v10  ;;  %v697_v35 = vadd.f32 %v696_v13, %v11528_v25  ;;  %v2091_v0 = vld [vmem:[%s16563_s5 + $0x7a0] sm:$0xff] }
 0x104   : > { %v698_v23 = vpop.f32.mrf.mxu0  ;;  %v881_v40 = vpack.c.bf16 %v849_v26, %v847_v38  ;;  %v11752_v13 = vld [vmem:[%s16563_s5 + $0x360] sm:$0xff] }
 0x105   : > { %v699_v31 = vadd.f32 %v698_v23, %v11525_v24  ;;  %v850_v33 = vsel %vm770_vm0, %v693_v11, %v810_v18  ;;  %v811_v51 = vmul.f32 0.01, %v697_v35  ;;  %vm771_vm3 = vcmp.gt.f32.partialorder %v697_v35, 0.0  ;;  %v11768_v30 = vld [vmem:[%s16563_s5 + $0x300] sm:$0xff] }
 0x106   : > { %v700_v36 = vpop.f32.mrf.mxu0  ;;  %v882_v37 = vpack.c.bf16 %v850_v33, %v848_v32  ;;  %3436 = vmatpush1.bf16.msra.mxu1 %v9578_v6  ;;  %3569 = vmatpush1.bf16.msra.mxu0 %v9706_v14  ;;  %v9803_v11 = vcombine.high %v2087_v63, %v2091_v0  ;;  %v9667_v29 = vcombine.high %v11747_v12, %v11752_v13  ;;  %v2071_v38 = vld [vmem:[%s16563_s5 + $0x700] sm:$0xff] }
 0x107   : > { %v701_v39 = vadd.f32 %v700_v36, %v11528_v25  ;;  %3437 = vmatprep.subr.bf16.mxu1 %v9571_v15  ;;  %3570 = vmatprep.subr.bf16.mxu0 %v9699_v19  ;;  %v812_v48 = vmul.f32 0.01, %v699_v31  ;;  %vm772_vm2 = vcmp.gt.f32.partialorder %v699_v31, 0.0  ;;  %v851_v8 = vsel %vm771_vm3, %v697_v35, %v811_v51  ;;  %v1935_v51 = vld [vmem:[%s16563_s5 + $0x2c0] sm:$0xff] }
 0x108   : > { %v702_v44 = vpop.f32.mrf.mxu0  ;;  %1363 = vmatprep.mubr.bf16.mxu1 %v882_v37  ;;  %1496 = vmatprep.mubr.bf16.mxu0 %v882_v37  ;;  %v9674_v15 = vcombine.low %v11721_v55, %v11726_v56  ;;  %v9795_v33 = vcombine.high %v2079_v16, %v2083_v17  ;;  %v9666_v36 = vcombine.low %v11747_v12, %v11752_v13  ;;  %v2063_v55 = vld [vmem:[%s16563_s5 + $0x6c0] sm:$0xff] }
 0x109   : > { %vm773_vm1 = vcmp.gt.f32.partialorder %v701_v39, 0.0  ;;  %v813_v49 = vmul.f32 0.01, %v701_v39  ;;  %v703_v50 = vadd.f32 %v702_v44, %v11525_v24  ;;  %1364 = vmatmul.mubr.bf16.gmra.mxu1 %v881_v40  ;;  %1497 = vmatmul.mubr.bf16.gmra.mxu0 %v881_v40  ;;  %v852_v3 = vsel %vm772_vm2, %v699_v31, %v812_v48  ;;  %v11773_v31 = vld [vmem:[%s16563_s5 + $0x320] sm:$0xff] }
 0x10a   : > { %v706_v52 = vpop.f32.mrf.mxu0  ;;  %3438 = vmatpush1.bf16.msra.mxu1 %v9570_v27  ;;  %3571 = vmatpush1.bf16.msra.mxu0 %v9698_v28  ;;  %v9802_v28 = vcombine.low %v2087_v63, %v2091_v0  ;;  %v9794_v37 = vcombine.low %v2079_v16, %v2083_v17  ;;  %v9659_v43 = vcombine.high %v11768_v30, %v11773_v31  ;;  %v2067_v56 = vld [vmem:[%s16563_s5 + $0x6e0] sm:$0xff] }
 0x10b   : > { %vm774_vm4 = vcmp.gt.f32.partialorder %v703_v50, 0.0  ;;  %v814_v57 = vmul.f32 0.01, %v703_v50  ;;  %3439 = vmatprep.subr.bf16.mxu1 %v9563_v34  ;;  %3572 = vmatprep.subr.bf16.mxu0 %v9691_v41  ;;  %v853_v60 = vsel %vm773_vm1, %v701_v39, %v813_v49  ;;  %v707_v2 = vadd.f32 %v706_v52, %v11528_v25  ;;  %v2075_v39 = vld [vmem:[%s16563_s5 + $0x720] sm:$0xff] }
 0x10c   : > { %v708_v59 = vpop.f32.mrf.mxu0  ;;  %v883_v10 = vpack.c.bf16 %v853_v60, %v851_v8  ;;  %v1939_v52 = vld [vmem:[%s16563_s5 + $0x2e0] sm:$0xff] }
 0x10d   : > { %v709_v1 = vadd.f32 %v708_v59, %v11525_v24  ;;  %v854_v4 = vsel %vm774_vm4, %v703_v50, %v814_v57  ;;  %v815_v26 = vmul.f32 0.01, %v707_v2  ;;  %vm775_vm7 = vcmp.gt.f32.partialorder %v707_v2, 0.0 }
 0x10e   : > { %v710_v6 = vpop.f32.mrf.mxu0  ;;  %v884_v7 = vpack.c.bf16 %v854_v4, %v852_v3  ;;  %3440 = vmatpush1.bf16.msra.mxu1 %v9562_v45  ;;  %3573 = vmatpush1.bf16.msra.mxu0 %v9690_v53  ;;  %v9787_v50 = vcombine.high %v2071_v38, %v2075_v39  ;;  %v9651_v63 = vcombine.high %v1935_v51, %v1939_v52 }
 0x10f   : > { %v711_v9 = vadd.f32 %v710_v6, %v11528_v25  ;;  %3441 = vmatprep.subr.bf16.mxu1 %v9683_v54  ;;  %3574 = vmatprep.subr.bf16.mxu0 %v9811_v58  ;;  %v816_v18 = vmul.f32 0.01, %v709_v1  ;;  %vm776_vm6 = vcmp.gt.f32.partialorder %v709_v1, 0.0  ;;  %v855_v47 = vsel %vm775_vm7, %v707_v2, %v815_v26  ;;  %v1927_v2 = vld [vmem:[%s16563_s5 + $0x280] sm:$0xff] }
 0x110   : > { %v712_v14 = vpop.f32.mrf.mxu0  ;;  %1373 = vmatprep.mubr.bf16.mxu1 %v884_v7  ;;  %1506 = vmatprep.mubr.bf16.mxu0 %v884_v7  ;;  %v9658_v54 = vcombine.low %v11768_v30, %v11773_v31  ;;  %v1931_v6 = vld [vmem:[%s16563_s5 + $0x2a0] sm:$0xff] }
 0x111   : > { %vm777_vm5 = vcmp.gt.f32.partialorder %v711_v9, 0.0  ;;  %v817_v19 = vmul.f32 0.01, %v711_v9  ;;  %v713_v23 = vadd.f32 %v712_v14, %v11525_v24  ;;  %1374 = vmatmul.mubr.bf16.gmra.mxu1 %v883_v10  ;;  %1507 = vmatmul.mubr.bf16.gmra.mxu0 %v883_v10  ;;  %v856_v41 = vsel %vm776_vm6, %v709_v1, %v816_v18 }
 0x112   : > { %v716_v27 = vpop.f32.mrf.mxu0  ;;  %3442 = vmatpush2.bf16.msra.mxu1 %v9682_v61  ;;  %3575 = vmatpush2.bf16.msra.mxu0 %v9810_v62  ;;  %v9786_v62 = vcombine.low %v2071_v38, %v2075_v39  ;;  %v9779_v1 = vcombine.high %v2063_v55, %v2067_v56  ;;  %v9778_v10 = vcombine.low %v2063_v55, %v2067_v56 }
 0x113   : > { %vm778_vm8 = vcmp.gt.f32.partialorder %v713_v23, 0.0  ;;  %v818_v32 = vmul.f32 0.01, %v713_v23  ;;  %3443 = vmatprep.subr.bf16.mxu1 %v9675_v5  ;;  %3576 = vmatprep.subr.bf16.mxu0 %v9803_v11  ;;  %v857_v35 = vsel %vm777_vm5, %v711_v9, %v817_v19  ;;  %v717_v44 = vadd.f32 %v716_v27, %v11528_v25 }
 0x114   : > { %v718_v34 = vpop.f32.mrf.mxu0  ;;  %v885_v49 = vpack.c.bf16 %v857_v35, %v855_v47  ;;  %v9650_v5 = vcombine.low %v1935_v51, %v1939_v52  ;;  %v9643_v17 = vcombine.high %v1927_v2, %v1931_v6 }
 0x115   : > { %v719_v40 = vadd.f32 %v718_v34, %v11525_v24  ;;  %v858_v42 = vsel %vm778_vm8, %v713_v23, %v818_v32  ;;  %v819_v60 = vmul.f32 0.01, %v717_v44  ;;  %vm779_vm11 = vcmp.gt.f32.partialorder %v717_v44, 0.0 }
 0x116   : > { %v720_v45 = vpop.f32.mrf.mxu0  ;;  %v886_v46 = vpack.c.bf16 %v858_v42, %v856_v41  ;;  %3444 = vmatpush2.bf16.msra.mxu1 %v9674_v15  ;;  %3577 = vmatpush2.bf16.msra.mxu0 %v9802_v28 }
 0x117   : > { %v721_v48 = vadd.f32 %v720_v45, %v11528_v25  ;;  %3445 = vmatprep.subr.bf16.mxu1 %v9667_v29  ;;  %3578 = vmatprep.subr.bf16.mxu0 %v9795_v33  ;;  %v820_v57 = vmul.f32 0.01, %v719_v40  ;;  %vm780_vm10 = vcmp.gt.f32.partialorder %v719_v40, 0.0  ;;  %v859_v14 = vsel %vm779_vm11, %v717_v44, %v819_v60 }
 0x118   : > { %v722_v53 = vpop.f32.mrf.mxu0  ;;  %1383 = vmatprep.mubr.bf16.mxu1 %v886_v46  ;;  %1516 = vmatprep.mubr.bf16.mxu0 %v886_v46  ;;  %v9642_v29 = vcombine.low %v1927_v2, %v1931_v6 }
 0x119   : > { %vm781_vm9 = vcmp.gt.f32.partialorder %v721_v48, 0.0  ;;  %v821_v58 = vmul.f32 0.01, %v721_v48  ;;  %v723_v59 = vadd.f32 %v722_v53, %v11525_v24  ;;  %1384 = vmatmul.mubr.bf16.gmra.mxu1 %v885_v49  ;;  %1517 = vmatmul.mubr.bf16.gmra.mxu0 %v885_v49  ;;  %v860_v8 = vsel %vm780_vm10, %v719_v40, %v820_v57 }
 0x11a   : > { %v726_v61 = vpop.f32.mrf.mxu0  ;;  %3446 = vmatpush2.bf16.msra.mxu1 %v9666_v36  ;;  %3579 = vmatpush2.bf16.msra.mxu0 %v9794_v37 }
 0x11b   : > { %vm782_vm12 = vcmp.gt.f32.partialorder %v723_v59, 0.0  ;;  %v822_v0 = vmul.f32 0.01, %v723_v59  ;;  %3447 = vmatprep.subr.bf16.mxu1 %v9659_v43  ;;  %3580 = vmatprep.subr.bf16.mxu0 %v9787_v50  ;;  %v861_v4 = vsel %vm781_vm9, %v721_v48, %v821_v58  ;;  %v727_v11 = vadd.f32 %v726_v61, %v11528_v25 }
 0x11c   : > { %v728_v3 = vpop.f32.mrf.mxu0  ;;  %v887_v16 = vpack.c.bf16 %v861_v4, %v859_v14  ;;  %v2051_v14 = vld [vmem:[%s16563_s5 + $0x660] sm:$0xff] }
 0x11d   : > { %v729_v7 = vadd.f32 %v728_v3, %v11525_v24  ;;  %v862_v9 = vsel %vm782_vm12, %v723_v59, %v822_v0  ;;  %v823_v27 = vmul.f32 0.01, %v727_v11  ;;  %vm783_vm15 = vcmp.gt.f32.partialorder %v727_v11, 0.0  ;;  %v2055_v0 = vld [vmem:[%s16563_s5 + $0x680] sm:$0xff] }
 0x11e   : > { %v730_v12 = vpop.f32.mrf.mxu0  ;;  %v888_v13 = vpack.c.bf16 %v862_v9, %v860_v8  ;;  %3448 = vmatpush2.bf16.msra.mxu1 %v9658_v54  ;;  %3581 = vmatpush2.bf16.msra.mxu0 %v9786_v62  ;;  %v1919_v9 = vld [vmem:[%s16563_s5 + $0x240] sm:$0xff] }
 0x11f   : > { %v731_v15 = vadd.f32 %v730_v12, %v11528_v25  ;;  %3449 = vmatprep.subr.bf16.mxu1 %v9651_v63  ;;  %3582 = vmatprep.subr.bf16.mxu0 %v9779_v1  ;;  %v824_v19 = vmul.f32 0.01, %v729_v7  ;;  %vm784_vm14 = vcmp.gt.f32.partialorder %v729_v7, 0.0  ;;  %v863_v39 = vsel %vm783_vm15, %v727_v11, %v823_v27  ;;  %v2059_v1 = vld [vmem:[%s16563_s5 + $0x6a0] sm:$0xff] }
 0x120   : > { %v732_v18 = vpop.f32.mrf.mxu0  ;;  %1393 = vmatprep.mubr.bf16.mxu1 %v888_v13  ;;  %1526 = vmatprep.mubr.bf16.mxu0 %v888_v13  ;;  %v9771_v3 = vcombine.high %v2055_v0, %v2059_v1  ;;  %v2047_v13 = vld [vmem:[%s16563_s5 + $0x640] sm:$0xff] }
 0x121   : > { %vm785_vm13 = vcmp.gt.f32.partialorder %v731_v15, 0.0  ;;  %v825_v23 = vmul.f32 0.01, %v731_v15  ;;  %v733_v26 = vadd.f32 %v732_v18, %v11525_v24  ;;  %1394 = vmatmul.mubr.bf16.gmra.mxu1 %v887_v16  ;;  %1527 = vmatmul.mubr.bf16.gmra.mxu0 %v887_v16  ;;  %v864_v34 = vsel %vm784_vm14, %v729_v7, %v824_v19  ;;  %v1911_v18 = vld [vmem:[%s16563_s5 + $0x200] sm:$0xff] }
 0x122   : > { %v736_v28 = vpop.f32.mrf.mxu0  ;;  %3450 = vmatpush2.bf16.msra.mxu1 %v9650_v5  ;;  %3583 = vmatpush2.bf16.msra.mxu0 %v9778_v10  ;;  %v9770_v5 = vcombine.low %v2055_v0, %v2059_v1  ;;  %v1923_v10 = vld [vmem:[%s16563_s5 + $0x260] sm:$0xff]  ;;  %v9763_v16 = vcombine.high %v2047_v13, %v2051_v14  ;;  %v12180_v0 = vld [vmem:[%s16563_s5 + $0x708] sm:$0xff] }
 0x123   : > { %vm786_vm0 = vcmp.gt.f32.partialorder %v733_v26, 0.0  ;;  %v826_v30 = vmul.f32 0.01, %v733_v26  ;;  %3451 = vmatprep.subr.bf16.mxu1 %v9643_v17  ;;  %v865_v32 = vsel %vm785_vm13, %v731_v15, %v825_v23  ;;  %v737_v36 = vadd.f32 %v736_v28, %v11528_v25  ;;  %3584 = vmatprep.subr.bf16.mxu0 %v9771_v3  ;;  %v1915_v19 = vld [vmem:[%s16563_s5 + $0x220] sm:$0xff]  ;;  %v12009_v3 = vld [vmem:[%s16563_s5 + $0x4a8] sm:$0xff]  ;;  %16758 = vst [vmem:[#allocation29_spill] sm:$0xff] %v12180_v0 }
 0x124   : > { %v738_v31 = vpop.f32.mrf.mxu0  ;;  %v889_v41 = vpack.c.bf16 %v865_v32, %v863_v39  ;;  %v9635_v12 = vcombine.high %v1919_v9, %v1923_v10  ;;  %v9634_v15 = vcombine.low %v1919_v9, %v1923_v10  ;;  %v9762_v17 = vcombine.low %v2047_v13, %v2051_v14  ;;  %v2039_v23 = vld [vmem:[%s16563_s5 + $0x600] sm:$0xff]  ;;  %v11866_v32 = vld [vmem:[%s16563_s5 + $0x1e8] sm:$0xff] }
 0x125   : > { %v739_v33 = vadd.f32 %v738_v31, %v11525_v24  ;;  %v866_v35 = vsel %vm786_vm0, %v733_v26, %v826_v30  ;;  %v827_v46 = vmul.f32 0.01, %v737_v36  ;;  %vm787_vm3 = vcmp.gt.f32.partialorder %v737_v36, 0.0  ;;  %v2043_v27 = vld [vmem:[%s16563_s5 + $0x620] sm:$0xff]  ;;  %v11861_v31 = vld [vmem:[%s16563_s5 + $0x1c8] sm:$0xff] }
 0x126   : > { %v740_v37 = vpop.f32.mrf.mxu0  ;;  %v890_v38 = vpack.c.bf16 %v866_v35, %v864_v34  ;;  %3452 = vmatpush2.bf16.msra.mxu1 %v9642_v29  ;;  %3585 = vmatpush2.bf16.msra.mxu0 %v9770_v5  ;;  %v9627_v26 = vcombine.high %v1911_v18, %v1915_v19  ;;  %v9626_v28 = vcombine.low %v1911_v18, %v1915_v19  ;;  %v11875_v35 = vld [vmem:[%s16563_s5 + $0x5c8] sm:$0xff]  ;;  %v959_v39 = vld [vmem:[%s16562_s4] sm:$0xf] }
 0x127   : > { %v741_v40 = vadd.f32 %v740_v37, %v11528_v25  ;;  %v828_v43 = vmul.f32 0.01, %v739_v33  ;;  %vm788_vm2 = vcmp.gt.f32.partialorder %v739_v33, 0.0  ;;  %v867_v57 = vsel %vm787_vm3, %v737_v36, %v827_v46  ;;  %3453 = vmatprep.subr.bf16.mxu1 %v9635_v12  ;;  %3586 = vmatprep.subr.bf16.mxu0 %v9763_v16  ;;  %v11880_v36 = vld [vmem:[%s16563_s5 + $0x5e8] sm:$0xff] }
 0x128   : > { %v742_v42 = vpop.f32.mrf.mxu0  ;;  %1403 = vmatprep.mubr.bf16.mxu1 %v890_v38  ;;  %1536 = vmatprep.mubr.bf16.mxu0 %v890_v38  ;;  %v9754_v29 = vcombine.low %v2039_v23, %v2043_v27  ;;  %v9755_v30 = vcombine.high %v2039_v23, %v2043_v27  ;;  %v9621_v34 = vcombine.high %v11861_v31, %v11866_v32  ;;  %v11918_v46 = vld [vmem:[%s16563_s5 + $0x148] sm:$0xff] }
 0x129   : > { %vm789_vm1 = vcmp.gt.f32.partialorder %v741_v40, 0.0  ;;  %v829_v44 = vmul.f32 0.01, %v741_v40  ;;  %v743_v45 = vadd.f32 %v742_v42, %v11525_v24  ;;  %1404 = vmatmul.mubr.bf16.gmra.mxu1 %v889_v41  ;;  %1537 = vmatmul.mubr.bf16.gmra.mxu0 %v889_v41  ;;  %v868_v52 = vsel %vm788_vm2, %v739_v33, %v828_v43  ;;  %v11895_v41 = vld [vmem:[%s16563_s5 + $0x188] sm:$0xff] }
 0x12a   : > { %v746_v47 = vpop.f32.mrf.mxu0  ;;  %3454 = vmatpush2.bf16.msra.mxu1 %v9634_v15  ;;  %3587 = vmatpush2.bf16.msra.mxu0 %v9762_v17  ;;  %v9749_v38 = vcombine.high %v11875_v35, %v11880_v36  ;;  %v11900_v42 = vld [vmem:[%s16563_s5 + $0x1a8] sm:$0xff]  ;;  %v11903_v43 = vsub.s32 3, %v11513_v20 }
 0x12b   : > { %vm790_vm4 = vcmp.gt.f32.partialorder %v743_v45, 0.0  ;;  %v830_v48 = vmul.f32 0.01, %v743_v45  ;;  %v869_v50 = vsel %vm789_vm1, %v741_v40, %v829_v44  ;;  %v747_v54 = vadd.f32 %v746_v47, %v11528_v25  ;;  %3455 = vmatprep.subr.bf16.mxu1 %v9627_v26  ;;  %3588 = vmatprep.subr.bf16.mxu0 %v9755_v30  ;;  %v11908_v44 = vld [vmem:[%s16563_s5 + $0x588] sm:$0xff] }
 0x12c   : > { %v748_v49 = vpop.f32.mrf.mxu0  ;;  %v891_v59 = vpack.c.bf16 %v869_v50, %v867_v57  ;;  %v11890_v40 = vsub.s32 2, %v11513_v20  ;;  %16743 = vst [vmem:[#allocation14_spill] sm:$0xff] %v11903_v43  ;;  %v11923_v47 = vld [vmem:[%s16563_s5 + $0x168] sm:$0xff] }
 0x12d   : > { %v749_v51 = vadd.f32 %v748_v49, %v11525_v24  ;;  %v870_v53 = vsel %vm790_vm4, %v743_v45, %v830_v48  ;;  %vm791_vm7 = vcmp.gt.f32.partialorder %v747_v54, 0.0  ;;  %v11913_v45 = vld [vmem:[%s16563_s5 + $0x5a8] sm:$0xff] }
 0x12e   : > { %v750_v55 = vpop.f32.mrf.mxu0  ;;  %v892_v56 = vpack.c.bf16 %v870_v53, %v868_v52  ;;  %3456 = vmatpush2.bf16.msra.mxu1 %v9626_v28  ;;  %3589 = vmatpush2.bf16.msra.mxu0 %v9754_v29  ;;  %16742 = vst [vmem:[#allocation13_spill] sm:$0xff] %v11890_v40  ;;  %v11928_v48 = vld [vmem:[%s16563_s5 + $0x548] sm:$0xff]  ;;  %v11969_v57 = vrot.slane %v959_v39, %v11890_v40 }
 0x12f   : > { %v751_v58 = vadd.f32 %v750_v55, %v11528_v25  ;;  %v832_v60 = vmul.f32 0.01, %v749_v51  ;;  %v831_v25 = vmul.f32 0.01, %v747_v54  ;;  %vm792_vm6 = vcmp.gt.f32.partialorder %v749_v51, 0.0  ;;  %3691 = vmatprep.subr.bf16.mxu1 %v9621_v34  ;;  %3824 = vmatprep.subr.bf16.mxu0 %v9749_v38  ;;  %v11933_v49 = vld [vmem:[%s16563_s5 + $0x568] sm:$0xff] }
 0x130   : > { %v752_v61 = vpop.f32.mrf.mxu0  ;;  %1413 = vmatprep.mubr.bf16.mxu1 %v892_v56  ;;  %1546 = vmatprep.mubr.bf16.mxu0 %v892_v56  ;;  %v11938_v50 = vld [vmem:[%s16563_s5 + $0x108] sm:$0xff]  ;;  %v11966_v56 = vrot.slane %v959_v39, %v11519_v22 }
 0x131   : > { %vm793_vm5 = vcmp.gt.f32.partialorder %v751_v58, 0.0  ;;  %v833_v62 = vmul.f32 0.01, %v751_v58  ;;  %v753_v63 = vadd.f32 %v752_v61, %v11525_v24  ;;  %1414 = vmatmul.mubr.bf16.gmra.mxu1 %v891_v59  ;;  %1547 = vmatmul.mubr.bf16.gmra.mxu0 %v891_v59  ;;  %v872_v24 = vsel %vm792_vm6, %v749_v51, %v832_v60  ;;  %v11943_v51 = vld [vmem:[%s16563_s5 + $0x128] sm:$0xff] }
 0x132   : > { %v871_v8 = vsel %vm791_vm7, %v747_v54, %v831_v25  ;;  %v11948_v52 = vld [vmem:[%s16563_s5 + $0x508] sm:$0xff] }
 0x133   : > { %vm794_vm8 = vcmp.gt.f32.partialorder %v753_v63, 0.0  ;;  %v834_v4 = vmul.f32 0.01, %v753_v63  ;;  %v873_v2 = vsel %vm793_vm5, %v751_v58, %v833_v62  ;;  %v11953_v53 = vld [vmem:[%s16563_s5 + $0x528] sm:$0xff]  ;;  %v11992_v62 = vrot.slane %v959_v39, %v11516_v21 }
 0x134   : > { %v893_v11 = vpack.c.bf16 %v873_v2, %v871_v8  ;;  %v11958_v54 = vld [vmem:[%s16563_s5 + $0xc8] sm:$0xff] }
 0x135   : > { %v874_v6 = vsel %vm794_vm8, %v753_v63, %v834_v4  ;;  %v11963_v55 = vld [vmem:[%s16563_s5 + $0xe8] sm:$0xff]  ;;  %v11995_v63 = vrot.slane %v959_v39, %v11903_v43 }
 0x136   : > { %v894_v7 = vpack.c.bf16 %v874_v6, %v872_v24  ;;  %v11974_v58 = vld [vmem:[%s16563_s5 + $0x4c8] sm:$0xff] }
 0x137   : > { %v11979_v59 = vld [vmem:[%s16563_s5 + $0x4e8] sm:$0xff] }
 0x138   : > { %1423 = vmatprep.mubr.bf16.mxu1 %v894_v7  ;;  %1556 = vmatprep.mubr.bf16.mxu0 %v894_v7  ;;  %v11984_v60 = vld [vmem:[%s16563_s5 + $0x88] sm:$0xff] }
 0x139   : > { %1424 = vmatmul.mubr.bf16.gmra.mxu1 %v893_v11  ;;  %1557 = vmatmul.mubr.bf16.gmra.mxu0 %v893_v11  ;;  %v11989_v61 = vld [vmem:[%s16563_s5 + $0xa8] sm:$0xff] }
 0x13a   : > { %v12004_v25 = vld [vmem:[%s16563_s5 + $0x488] sm:$0xff] }
 0x13b   : > { %v12014_v4 = vld [vmem:[%s16563_s5 + $0x48] sm:$0xff] }
 0x13c   : > { %v12019_v5 = vld [vmem:[%s16563_s5 + $0x68] sm:$0xff] }
 0x13d   : > { %v12032_v8 = vld [vmem:[%s16563_s5 + $0x448] sm:$0xff] }
 0x13e   : > { %v12037_v9 = vld [vmem:[%s16563_s5 + $0x468] sm:$0xff] }
 0x13f   : > { %v12042_v10 = vld [vmem:[%s16563_s5 + $0x8] sm:$0xff] }
 0x140   : > { %v12047_v11 = vld [vmem:[%s16563_s5 + $0x28] sm:$0xff] }
 0x141   : > { %v12060_v16 = vld [vmem:[%s16563_s5 + $0x408] sm:$0xff] }
 0x142   : > { %v12065_v17 = vld [vmem:[%s16563_s5 + $0x428] sm:$0xff] }
 0x143   : > { %v12070_v18 = vld [vmem:[%s16563_s5 + $0x3c8] sm:$0xff] }
 0x144   : > { %16744 = vst [vmem:[#allocation15_spill] sm:$0xff] %v12070_v18  ;;  %v12075_v19 = vld [vmem:[%s16563_s5 + $0x3e8] sm:$0xff] }
 0x145   : > { %16745 = vst [vmem:[#allocation16_spill] sm:$0xff] %v12075_v19  ;;  %v12088_v29 = vld [vmem:[%s16563_s5 + $0x7c8] sm:$0xff] }
 0x146   : > { %16746 = vst [vmem:[#allocation17_spill] sm:$0xff] %v12088_v29  ;;  %v12093_v30 = vld [vmem:[%s16563_s5 + $0x7e8] sm:$0xff] }
 0x147   : > { %16747 = vst [vmem:[#allocation18_spill] sm:$0xff] %v12093_v30  ;;  %v12098_v34 = vld [vmem:[%s16563_s5 + $0x388] sm:$0xff] }
 0x148   : > { %16748 = vst [vmem:[#allocation19_spill] sm:$0xff] %v12098_v34  ;;  %v12111_v23 = vld [vmem:[%s16563_s5 + $0x3a8] sm:$0xff] }
 0x149   : > { %16749 = vst [vmem:[#allocation20_spill] sm:$0xff] %v12111_v23  ;;  %v12116_v14 = vld [vmem:[%s16563_s5 + $0x788] sm:$0xff] }
 0x14a   : > { %16750 = vst [vmem:[#allocation21_spill] sm:$0xff] %v12116_v14  ;;  %v12121_v38 = vld [vmem:[%s16563_s5 + $0x7a8] sm:$0xff] }
 0x14b   : > { %16751 = vst [vmem:[#allocation22_spill] sm:$0xff] %v12121_v38  ;;  %v12134_v15 = vld [vmem:[%s16563_s5 + $0x348] sm:$0xff] }
 0x14c   : > { %16752 = vst [vmem:[#allocation23_spill] sm:$0xff] %v12134_v15  ;;  %v12139_v12 = vld [vmem:[%s16563_s5 + $0x368] sm:$0xff] }
 0x14d   : > { %16753 = vst [vmem:[#allocation24_spill] sm:$0xff] %v12139_v12  ;;  %v12144_v27 = vld [vmem:[%s16563_s5 + $0x748] sm:$0xff] }
 0x14e   : > { %16754 = vst [vmem:[#allocation25_spill] sm:$0xff] %v12144_v27  ;;  %v12157_v13 = vld [vmem:[%s16563_s5 + $0x768] sm:$0xff] }
 0x14f   : > { %16755 = vst [vmem:[#allocation26_spill] sm:$0xff] %v12157_v13  ;;  %v12162_v7 = vld [vmem:[%s16563_s5 + $0x308] sm:$0xff] }
 0x150   : > { %16756 = vst [vmem:[#allocation27_spill] sm:$0xff] %v12162_v7  ;;  %v12167_v39 = vld [vmem:[%s16563_s5 + $0x328] sm:$0xff] }
 0x151   : > { %16757 = vst [vmem:[#allocation28_spill] sm:$0xff] %v12167_v39  ;;  %v12185_v24 = vld [vmem:[%s16563_s5 + $0x728] sm:$0xff] }
 0x152   : > { %16759 = vst [vmem:[#allocation30_spill] sm:$0xff] %v12185_v24  ;;  %v12190_v28 = vld [vmem:[%s16563_s5 + $0x2c8] sm:$0xff]  ;;  %v12329_v24 = vld [vmem:[%s16563_s5 + $0x1f0] sm:$0xff] }
 0x153   : > { %16760 = vst [vmem:[#allocation31_spill] sm:$0xff] %v12190_v28  ;;  %v12203_v37 = vld [vmem:[%s16563_s5 + $0x2e8] sm:$0xff]  ;;  %16777 = vst [vmem:[#allocation48_spill] sm:$0xff] %v12329_v24 }
 0x154   : > { %16761 = vst [vmem:[#allocation32_spill] sm:$0xff] %v12203_v37  ;;  %v12208_v33 = vld [vmem:[%s16563_s5 + $0x6c8] sm:$0xff] }
 0x155   : > { %16762 = vst [vmem:[#allocation33_spill] sm:$0xff] %v12208_v33  ;;  %v12213_v26 = vld [vmem:[%s16563_s5 + $0x6e8] sm:$0xff] }
 0x156   : > { %16763 = vst [vmem:[#allocation34_spill] sm:$0xff] %v12213_v26  ;;  %v12226_v40 = vld [vmem:[%s16563_s5 + $0x288] sm:$0xff] }
 0x157   : > { %16764 = vst [vmem:[#allocation35_spill] sm:$0xff] %v12226_v40  ;;  %v12231_v43 = vld [vmem:[%s16563_s5 + $0x2a8] sm:$0xff] }
 0x158   : > { %16765 = vst [vmem:[#allocation36_spill] sm:$0xff] %v12231_v43  ;;  %v12236_v6 = vld [vmem:[%s16563_s5 + $0x688] sm:$0xff]  ;;  %v12340_v43 = vld [vmem:[%s16563_s5 + $0x5d0] sm:$0xff] }
 0x159   : > { %16766 = vst [vmem:[#allocation37_spill] sm:$0xff] %v12236_v6  ;;  %v12249_v22 = vld [vmem:[%s16563_s5 + $0x6a8] sm:$0xff]  ;;  %16778 = vst [vmem:[#allocation49_spill] sm:$0xff] %v12340_v43 }
 0x15a   : > { %16767 = vst [vmem:[#allocation38_spill] sm:$0xff] %v12249_v22  ;;  %v12254_v12 = vld [vmem:[%s16563_s5 + $0x248] sm:$0xff] }
 0x15b   : > { %16768 = vst [vmem:[#allocation39_spill] sm:$0xff] %v12254_v12  ;;  %v12259_v2 = vld [vmem:[%s16563_s5 + $0x268] sm:$0xff] }
 0x15c   : > { %16769 = vst [vmem:[#allocation40_spill] sm:$0xff] %v12259_v2  ;;  %v12272_v7 = vld [vmem:[%s16563_s5 + $0x648] sm:$0xff] }
 0x15d   : > { %16770 = vst [vmem:[#allocation41_spill] sm:$0xff] %v12272_v7  ;;  %v12277_v13 = vld [vmem:[%s16563_s5 + $0x668] sm:$0xff] }
 0x15e   : > { %16771 = vst [vmem:[#allocation42_spill] sm:$0xff] %v12277_v13  ;;  %v12282_v1 = vld [vmem:[%s16563_s5 + $0x208] sm:$0xff]  ;;  %v12345_v13 = vld [vmem:[%s16563_s5 + $0x5f0] sm:$0xff] }
 0x15f   : > { %16772 = vst [vmem:[#allocation43_spill] sm:$0xff] %v12282_v1  ;;  %v12295_v0 = vld [vmem:[%s16563_s5 + $0x228] sm:$0xff]  ;;  %16779 = vst [vmem:[#allocation50_spill] sm:$0xff] %v12345_v13 }
 0x160   : > { %16773 = vst [vmem:[#allocation44_spill] sm:$0xff] %v12295_v0  ;;  %v12300_v27 = vld [vmem:[%s16563_s5 + $0x608] sm:$0xff] }
 0x161   : > { %16774 = vst [vmem:[#allocation45_spill] sm:$0xff] %v12300_v27  ;;  %v12305_v39 = vld [vmem:[%s16563_s5 + $0x628] sm:$0xff] }
 0x162   : > { %16775 = vst [vmem:[#allocation46_spill] sm:$0xff] %v12305_v39 }
 0x1b1   : > { %v1335_v21 = vpop.f32.mrf.mxu1  ;;  %v1468_v20 = vpop.f32.mrf.mxu0 }
 0x1b2   : > { %v1336_v28 = vadd.f32 %v1335_v21, %v11966_v56  ;;  %v1469_v37 = vadd.f32 %v1468_v20, %v11969_v57  ;;  %v12324_v21 = vld [vmem:[%s16563_s5 + $0x1d0] sm:$0xff] }
 0x1b3   : > { %v1337_v40 = vpop.f32.mrf.mxu1  ;;  %v1470_v26 = vpop.f32.mrf.mxu0  ;;  %16776 = vst [vmem:[#allocation47_spill] sm:$0xff] %v12324_v21 }
 0x1b4   : > { %v1647_v33 = vmul.f32 0.01, %v1336_v28  ;;  %vm1567_vm9 = vcmp.gt.f32.partialorder %v1336_v28, 0.0  ;;  %v1338_v7 = vadd.f32 %v1337_v40, %v11992_v62  ;;  %v1471_v15 = vadd.f32 %v1470_v26, %v11995_v63 }
 0x1b5   : > { %v1339_v2 = vpop.f32.mrf.mxu1  ;;  %v1472_v38 = vpop.f32.mrf.mxu0  ;;  %v1649_v0 = vmul.f32 0.01, %v1469_v37  ;;  %vm1569_vm10 = vcmp.gt.f32.partialorder %v1469_v37, 0.0 }
 0x1b6   : > { %v1340_v1 = vadd.f32 %v1339_v2, %v11966_v56  ;;  %v1473_v12 = vadd.f32 %v1472_v38, %v11969_v57  ;;  %vm1568_vm11 = vcmp.gt.f32.partialorder %v1338_v7, 0.0  ;;  %v1648_v6 = vmul.f32 0.01, %v1338_v7 }
 0x1b7   : > { %v1341_v14 = vpop.f32.mrf.mxu1  ;;  %v1474_v40 = vpop.f32.mrf.mxu0  ;;  %v1727_v23 = vsel %vm1567_vm9, %v1336_v28, %v1647_v33  ;;  %v1650_v27 = vmul.f32 0.01, %v1471_v15  ;;  %v1729_v21 = vsel %vm1569_vm10, %v1469_v37, %v1649_v0  ;;  %vm1570_vm14 = vcmp.gt.f32.partialorder %v1471_v15, 0.0 }
 0x1b8   : > { %vm1571_vm12 = vcmp.gt.f32.partialorder %v1340_v1, 0.0  ;;  %v1651_v20 = vmul.f32 0.01, %v1340_v1  ;;  %v1653_v39 = vmul.f32 0.01, %v1473_v12  ;;  %vm1573_vm13 = vcmp.gt.f32.partialorder %v1473_v12, 0.0 }
 0x1b9   : > { %v1342_v2 = vadd.f32 %v1341_v14, %v11992_v62  ;;  %v1475_v38 = vadd.f32 %v1474_v40, %v11995_v63  ;;  %v1345_v22 = vpop.f32.mrf.mxu1  ;;  %v1478_v24 = vpop.f32.mrf.mxu0  ;;  %v1728_v34 = vsel %vm1568_vm11, %v1338_v7, %v1648_v6  ;;  %v1730_v19 = vsel %vm1570_vm14, %v1471_v15, %v1650_v27 }
 0x1ba   : > { %v1346_v26 = vadd.f32 %v1345_v22, %v11966_v56  ;;  %v1731_v13 = vsel %vm1571_vm12, %v1340_v1, %v1651_v20  ;;  %v1479_v28 = vadd.f32 %v1478_v24, %v11969_v57  ;;  %v1733_v29 = vsel %vm1573_vm13, %v1473_v12, %v1653_v39 }
 0x1bb   : > { %vm1572_vm15 = vcmp.gt.f32.partialorder %v1342_v2, 0.0  ;;  %v1652_v33 = vmul.f32 0.01, %v1342_v2  ;;  %v1347_v43 = vpop.f32.mrf.mxu1  ;;  %v1480_v30 = vpop.f32.mrf.mxu0  ;;  %vm1574_vm0 = vcmp.gt.f32.partialorder %v1475_v38, 0.0  ;;  %v1654_v14 = vmul.f32 0.01, %v1475_v38 }
 0x1bc   : > { %v1655_v40 = vmul.f32 0.01, %v1346_v26  ;;  %vm1575_vm1 = vcmp.gt.f32.partialorder %v1346_v26, 0.0  ;;  %v1348_v37 = vadd.f32 %v1347_v43, %v11992_v62  ;;  %v12365_v7 = vpack.c.bf16 %v1731_v13, %v1727_v23 }
 0x1bd   : > { %v1732_v18 = vsel %vm1572_vm15, %v1342_v2, %v1652_v33  ;;  %v1349_v0 = vpop.f32.mrf.mxu1  ;;  %v1482_v6 = vpop.f32.mrf.mxu0  ;;  %v1734_v1 = vsel %vm1574_vm0, %v1475_v38, %v1654_v14  ;;  %v1481_v24 = vadd.f32 %v1480_v30, %v11995_v63  ;;  %v12370_v20 = vpack.c.bf16 %v1733_v29, %v1729_v21 }
 0x1be   : > { %16780 = vst [vmem:[#allocation51_spill] sm:$0xff] %v12365_v7  ;;  %v12367_v22 = vpack.c.bf16 %v1732_v18, %v1728_v34  ;;  %v12372_v12 = vpack.c.bf16 %v1734_v1, %v1730_v19  ;;  %vm1577_vm2 = vcmp.gt.f32.partialorder %v1479_v28, 0.0  ;;  %v1657_v39 = vmul.f32 0.01, %v1479_v28 }
 0x1bf   : > { %16781 = vst [vmem:[#allocation52_spill] sm:$0xff] %v12370_v20  ;;  %v1351_v15 = vpop.f32.mrf.mxu1  ;;  %v1484_v27 = vpop.f32.mrf.mxu0  ;;  %v1735_v2 = vsel %vm1575_vm1, %v1346_v26, %v1655_v40  ;;  %vm1576_vm3 = vcmp.gt.f32.partialorder %v1348_v37, 0.0  ;;  %v1350_v43 = vadd.f32 %v1349_v0, %v11966_v56  ;;  %v1483_v13 = vadd.f32 %v1482_v6, %v11969_v57 }
 0x1c0   : > { %3457 = vmatprep.mubr.bf16.mxu1 %v12367_v22  ;;  %v1656_v18 = vmul.f32 0.01, %v1348_v37  ;;  %vm1578_vm4 = vcmp.gt.f32.partialorder %v1481_v24, 0.0  ;;  %v1352_v23 = vadd.f32 %v1351_v15, %v11992_v62  ;;  %v1485_v29 = vadd.f32 %v1484_v27, %v11995_v63  ;;  %3590 = vmatprep.mubr.bf16.mxu0 %v12372_v12 }
 0x1c1   : > { %3458 = vmatmul.mubr.bf16.vlgmr.msra.gmra.mxu1 %v12365_v7  ;;  %v1355_v19 = vpop.f32.mrf.mxu1  ;;  %v1488_v30 = vpop.f32.mrf.mxu0  ;;  %v1658_v34 = vmul.f32 0.01, %v1481_v24  ;;  %vm1579_vm5 = vcmp.gt.f32.partialorder %v1350_v43, 0.0  ;;  %v1659_v21 = vmul.f32 0.01, %v1350_v43  ;;  %vm1581_vm6 = vcmp.gt.f32.partialorder %v1483_v13, 0.0  ;;  %3591 = vmatmul.mubr.bf16.vlgmr.msra.gmra.mxu0 %v12370_v20 }
 0x1c2   : > { %v16782_v26 = vcombine.low %v11861_v31, %v11866_v32  ;;  %v1661_v38 = vmul.f32 0.01, %v1483_v13  ;;  %vm1580_vm7 = vcmp.gt.f32.partialorder %v1352_v23, 0.0  ;;  %v1660_v33 = vmul.f32 0.01, %v1352_v23 }
 0x1c3   : > { %vm1582_vm8 = vcmp.gt.f32.partialorder %v1485_v29, 0.0  ;;  %v16783_v14 = vcombine.low %v11875_v35, %v11880_v36  ;;  %v1357_v40 = vpop.f32.mrf.mxu1  ;;  %v1490_v0 = vpop.f32.mrf.mxu0  ;;  %v16784_v6 = vcombine.high %v11895_v41, %v11900_v42  ;;  %v1739_v1 = vsel %vm1579_vm5, %v1350_v43, %v1659_v21 }
 0x1c4   : > { %3692 = vmatpush1.bf16.msra.mxu1 %v16782_v26  ;;  %v1662_v15 = vmul.f32 0.01, %v1485_v29  ;;  %v1356_v27 = vadd.f32 %v1355_v19, %v11966_v56  ;;  %v1489_v31 = vadd.f32 %v1488_v30, %v11969_v57  ;;  %v16785_v32 = vcombine.high %v11908_v44, %v11913_v45 }
 0x1c5   : > { %3825 = vmatpush1.bf16.msra.mxu0 %v16783_v14  ;;  %3693 = vmatprep.subr.bf16.mxu1 %v16784_v6  ;;  %v1736_v26 = vsel %vm1576_vm3, %v1348_v37, %v1656_v18  ;;  %v1741_v35 = vsel %vm1581_vm6, %v1483_v13, %v1661_v38  ;;  %v1740_v36 = vsel %vm1580_vm7, %v1352_v23, %v1660_v33  ;;  %v1359_v20 = vpop.f32.mrf.mxu1  ;;  %v1492_v7 = vpop.f32.mrf.mxu0 }
 0x1c6   : > { %3826 = vmatprep.subr.bf16.mxu0 %v16785_v32  ;;  %v1358_v14 = vadd.f32 %v1357_v40, %v11992_v62  ;;  %v1737_v43 = vsel %vm1577_vm2, %v1479_v28, %v1657_v39  ;;  %v1738_v21 = vsel %vm1578_vm4, %v1481_v24, %v1658_v34  ;;  %v12401_v19 = vpack.c.bf16 %v1740_v36, %v1736_v26 }
 0x1c7   : > { %v1742_v30 = vsel %vm1582_vm8, %v1485_v29, %v1662_v15  ;;  %v16786_v6 = vcombine.low %v11895_v41, %v11900_v42  ;;  %v12407_v37 = vpack.c.bf16 %v1739_v1, %v1735_v2  ;;  %vm1583_vm9 = vcmp.gt.f32.partialorder %v1356_v27, 0.0  ;;  %v1361_v23 = vpop.f32.mrf.mxu1  ;;  %v1494_v38 = vpop.f32.mrf.mxu0 }
 0x1c8   : > { %v12409_v13 = vpack.c.bf16 %v1742_v30, %v1738_v21  ;;  %v1663_v18 = vmul.f32 0.01, %v1356_v27  ;;  %v16787_v28 = vcombine.low %v11908_v44, %v11913_v45  ;;  %v16788_v24 = vcombine.high %v11918_v46, %v11923_v47  ;;  %3467 = vmatprep.mubr.bf16.mxu1 %v12401_v19 }
 0x1c9   : > { %3694 = vmatpush1.bf16.msra.mxu1 %v16786_v6  ;;  %v12417_v39 = vpack.c.bf16 %v1741_v35, %v1737_v43  ;;  %vm1585_vm10 = vcmp.gt.f32.partialorder %v1489_v31, 0.0  ;;  %v1491_v41 = vadd.f32 %v1490_v0, %v11995_v63  ;;  %v1360_v42 = vadd.f32 %v1359_v20, %v11966_v56  ;;  %v1365_v34 = vpop.f32.mrf.mxu1  ;;  %v1498_v33 = vpop.f32.mrf.mxu0 }
 0x1ca   : > { %3827 = vmatpush1.bf16.msra.mxu0 %v16787_v28  ;;  %3695 = vmatprep.subr.bf16.mxu1 %v16788_v24  ;;  %v16789_v2 = vcombine.high %v11928_v48, %v11933_v49  ;;  %v1665_v29 = vmul.f32 0.01, %v1489_v31  ;;  %vm1584_vm11 = vcmp.gt.f32.partialorder %v1358_v14, 0.0  ;;  %v1493_v44 = vadd.f32 %v1492_v7, %v11969_v57 }
 0x1cb   : > { %v1362_v45 = vadd.f32 %v1361_v23, %v11992_v62  ;;  %3600 = vmatprep.mubr.bf16.mxu0 %v12409_v13  ;;  %v1743_v40 = vsel %vm1583_vm9, %v1356_v27, %v1663_v18  ;;  %v1664_v0 = vmul.f32 0.01, %v1358_v14  ;;  %v1666_v20 = vmul.f32 0.01, %v1491_v41  ;;  %3468 = vmatmul.mubr.bf16.gmra.mxu1 %v12407_v37  ;;  %v1367_v32 = vpop.f32.mrf.mxu1  ;;  %v1500_v26 = vpop.f32.mrf.mxu0 }
 0x1cc   : > { %3828 = vmatprep.subr.bf16.mxu0 %v16789_v2  ;;  %vm1587_vm12 = vcmp.gt.f32.partialorder %v1360_v42, 0.0  ;;  %3601 = vmatmul.mubr.bf16.gmra.mxu0 %v12417_v39  ;;  %v1667_v1 = vmul.f32 0.01, %v1360_v42  ;;  %vm1589_vm13 = vcmp.gt.f32.partialorder %v1493_v44, 0.0  ;;  %v1669_v15 = vmul.f32 0.01, %v1493_v44 }
 0x1cd   : > { %vm1588_vm14 = vcmp.gt.f32.partialorder %v1362_v45, 0.0  ;;  %v16790_v7 = vcombine.low %v11918_v46, %v11923_v47  ;;  %v16791_v27 = vcombine.low %v11928_v48, %v11933_v49  ;;  %vm1586_vm15 = vcmp.gt.f32.partialorder %v1491_v41, 0.0  ;;  %v1369_v6 = vpop.f32.mrf.mxu1  ;;  %v1502_v18 = vpop.f32.mrf.mxu0 }
 0x1ce   : > { %v1668_v35 = vmul.f32 0.01, %v1362_v45  ;;  %v1495_v36 = vadd.f32 %v1494_v38, %v11995_v63  ;;  %v1366_v43 = vadd.f32 %v1365_v34, %v11966_v56  ;;  %v16792_v21 = vcombine.high %v11938_v50, %v11943_v51 }
 0x1cf   : > { %3696 = vmatpush1.bf16.msra.mxu1 %v16790_v7  ;;  %3829 = vmatpush1.bf16.msra.mxu0 %v16791_v27  ;;  %v16793_v46 = vcombine.high %v11948_v52, %v11953_v53  ;;  %v1745_v47 = vsel %vm1585_vm10, %v1489_v31, %v1665_v29  ;;  %v1747_v30 = vsel %vm1587_vm12, %v1360_v42, %v1667_v1  ;;  %v1371_v42 = vpop.f32.mrf.mxu1  ;;  %v1504_v29 = vpop.f32.mrf.mxu0 }
 0x1d0   : > { %3697 = vmatprep.subr.bf16.mxu1 %v16792_v21  ;;  %v1749_v48 = vsel %vm1589_vm13, %v1493_v44, %v1669_v15  ;;  %v1499_v49 = vadd.f32 %v1498_v33, %v11969_v57  ;;  %v1744_v23 = vsel %vm1584_vm11, %v1358_v14, %v1664_v0  ;;  %v1748_v38 = vsel %vm1588_vm14, %v1362_v45, %v1668_v35 }
 0x1d1   : > { %3830 = vmatprep.subr.bf16.mxu0 %v16793_v46  ;;  %vm1590_vm0 = vcmp.gt.f32.partialorder %v1495_v36, 0.0  ;;  %v1368_v28 = vadd.f32 %v1367_v32, %v11992_v62  ;;  %v1746_v24 = vsel %vm1586_vm15, %v1491_v41, %v1666_v20  ;;  %v12452_v2 = vpack.c.bf16 %v1747_v30, %v1743_v40  ;;  %v1508_v20 = vpop.f32.mrf.mxu0 }
 0x1d2   : > { %v12454_v34 = vpack.c.bf16 %v1748_v38, %v1744_v23  ;;  %v1670_v31 = vmul.f32 0.01, %v1495_v36  ;;  %v16794_v44 = vcombine.low %v11938_v50, %v11943_v51  ;;  %v16795_v14 = vcombine.low %v11948_v52, %v11953_v53  ;;  %v1375_v53 = vpop.f32.mrf.mxu1 }
 0x1d3   : > { %v12462_v45 = vpack.c.bf16 %v1749_v48, %v1745_v47  ;;  %vm1591_vm1 = vcmp.gt.f32.partialorder %v1366_v43, 0.0  ;;  %v1671_v33 = vmul.f32 0.01, %v1366_v43  ;;  %vm1593_vm2 = vcmp.gt.f32.partialorder %v1499_v49, 0.0 }
 0x1d4   : > { %3698 = vmatpush1.bf16.msra.mxu1 %v16794_v44  ;;  %3831 = vmatpush1.bf16.msra.mxu0 %v16795_v14  ;;  %v16796_v41 = vcombine.high %v11958_v54, %v11963_v55  ;;  %v16797_v40 = vcombine.high %v11974_v58, %v11979_v59  ;;  %v1750_v50 = vsel %vm1590_vm0, %v1495_v36, %v1670_v31  ;;  %v1673_v51 = vmul.f32 0.01, %v1499_v49  ;;  %v1377_v35 = vpop.f32.mrf.mxu1 }
 0x1d5   : > { %v1501_v0 = vadd.f32 %v1500_v26, %v11995_v63  ;;  %v1370_v52 = vadd.f32 %v1369_v6, %v11966_v56  ;;  %3477 = vmatprep.mubr.bf16.mxu1 %v12454_v34  ;;  %v12474_v1 = vpack.c.bf16 %v1750_v50, %v1746_v24  ;;  %vm1592_vm3 = vcmp.gt.f32.partialorder %v1368_v28, 0.0  ;;  %v1510_v26 = vpop.f32.mrf.mxu0 }
 0x1d6   : > { %3699 = vmatprep.subr.bf16.mxu1 %v16796_v41  ;;  %3832 = vmatprep.subr.bf16.mxu0 %v16797_v40  ;;  %v1672_v15 = vmul.f32 0.01, %v1368_v28  ;;  %v1503_v7 = vadd.f32 %v1502_v18, %v11969_v57  ;;  %v16798_v36 = vcombine.low %v11958_v54, %v11963_v55  ;;  %v16799_v21 = vcombine.low %v11974_v58, %v11979_v59  ;;  %v1379_v59 = vpop.f32.mrf.mxu1 }
 0x1d7   : > { %3478 = vmatmul.mubr.bf16.gmra.mxu1 %v12452_v2  ;;  %vm1594_vm4 = vcmp.gt.f32.partialorder %v1501_v0, 0.0  ;;  %v1674_v32 = vmul.f32 0.01, %v1501_v0  ;;  %vm1595_vm5 = vcmp.gt.f32.partialorder %v1370_v52, 0.0  ;;  %v1675_v27 = vmul.f32 0.01, %v1370_v52  ;;  %3610 = vmatprep.mubr.bf16.mxu0 %v12474_v1  ;;  %v1512_v18 = vpop.f32.mrf.mxu0 }
 0x1d8   : > { %3700 = vmatpush1.bf16.msra.mxu1 %v16798_v36  ;;  %3833 = vmatpush1.bf16.msra.mxu0 %v16799_v21  ;;  %vm1597_vm6 = vcmp.gt.f32.partialorder %v1503_v7, 0.0  ;;  %v1677_v46 = vmul.f32 0.01, %v1503_v7  ;;  %v1372_v47 = vadd.f32 %v1371_v42, %v11992_v62  ;;  %v1505_v30 = vadd.f32 %v1504_v29, %v11995_v63  ;;  %v1381_v29 = vpop.f32.mrf.mxu1 }
 0x1d9   : > { %v16800_v48 = vcombine.high %v11984_v60, %v11989_v61  ;;  %v1751_v6 = vsel %vm1591_vm1, %v1366_v43, %v1671_v33  ;;  %v1753_v54 = vsel %vm1593_vm2, %v1499_v49, %v1673_v51  ;;  %v1755_v55 = vsel %vm1595_vm5, %v1370_v52, %v1675_v27  ;;  %3611 = vmatmul.mubr.bf16.gmra.mxu0 %v12462_v45  ;;  %v1514_v44 = vpop.f32.mrf.mxu0 }
 0x1da   : > { %v1376_v58 = vadd.f32 %v1375_v53, %v11966_v56  ;;  %v1752_v23 = vsel %vm1592_vm3, %v1368_v28, %v1672_v15  ;;  %vm1596_vm7 = vcmp.gt.f32.partialorder %v1372_v47, 0.0  ;;  %v1676_v38 = vmul.f32 0.01, %v1372_v47 }
 0x1db   : > { %3701 = vmatprep.subr.bf16.mxu1 %v16800_v48  ;;  %v12496_v24 = vadd.f32 %v1508_v20, %v11969_v57  ;;  %v16801_v31 = vcombine.high %v12004_v25, %v12009_v3  ;;  %v1754_v43 = vsel %vm1594_vm4, %v1501_v0, %v1674_v32  ;;  %v1757_v49 = vsel %vm1597_vm6, %v1503_v7, %v1677_v46  ;;  %v1518_v52 = vpop.f32.mrf.mxu0 }
 0x1dc   : > { %vm1598_vm8 = vcmp.gt.f32.partialorder %v1505_v30, 0.0  ;;  %v1678_v42 = vmul.f32 0.01, %v1505_v30  ;;  %v16802_v28 = vcombine.low %v11984_v60, %v11989_v61  ;;  %v16803_v14 = vcombine.low %v12004_v25, %v12009_v3  ;;  %v1385_v3 = vpop.f32.mrf.mxu1 }
 0x1dd   : > { %3834 = vmatprep.subr.bf16.mxu0 %v16801_v31  ;;  %v12509_v33 = vpack.c.bf16 %v1755_v55, %v1751_v6  ;;  %v1756_v41 = vsel %vm1596_vm7, %v1372_v47, %v1676_v38  ;;  %vm1599_vm9 = vcmp.gt.f32.partialorder %v1376_v58, 0.0  ;;  %v1679_v40 = vmul.f32 0.01, %v1376_v58  ;;  %v1520_v36 = vpop.f32.mrf.mxu0 }
 0x1de   : > { %3702 = vmatpush1.bf16.msra.mxu1 %v16802_v28  ;;  %3835 = vmatpush1.bf16.msra.mxu0 %v16803_v14  ;;  %v16805_v50 = vcombine.high %v12014_v4, %v12019_v5  ;;  %v16806_v51 = vcombine.high %v12032_v8, %v12037_v9  ;;  %v12517_v0 = vpack.c.bf16 %v1756_v41, %v1752_v23  ;;  %vm1601_vm10 = vcmp.gt.f32.partialorder %v12496_v24, 0.0  ;;  %v16814_v28 = vld [vmem:[#allocation16_spill] sm:$0xff] }
 0x1df   : > { %16804 = vst [vmem:[#allocation53_spill] sm:$0xff] %v12509_v33  ;;  %v1758_v60 = vsel %vm1598_vm8, %v1505_v30, %v1678_v42  ;;  %v1378_v61 = vadd.f32 %v1377_v35, %v11992_v62  ;;  %v1511_v25 = vadd.f32 %v1510_v26, %v11995_v63  ;;  %v12521_v53 = vpack.c.bf16 %v1757_v49, %v1753_v54  ;;  %v1387_v35 = vpop.f32.mrf.mxu1 }
 0x1e0   : > { %3703 = vmatprep.subr.bf16.mxu1 %v16805_v50  ;;  %3836 = vmatprep.subr.bf16.mxu0 %v16806_v51  ;;  %v12523_v20 = vpack.c.bf16 %v1758_v60, %v1754_v43  ;;  %v1380_v15 = vadd.f32 %v1379_v59, %v11966_v56  ;;  %v1759_v7 = vsel %vm1599_vm9, %v1376_v58, %v1679_v40  ;;  %v1681_v32 = vmul.f32 0.01, %v12496_v24 }
 0x1e1   : > { %16807 = vst [vmem:[#allocation54_spill] sm:$0xff] %v12521_v53  ;;  %vm1600_vm11 = vcmp.gt.f32.partialorder %v1378_v61, 0.0  ;;  %v1680_v27 = vmul.f32 0.01, %v1378_v61  ;;  %3487 = vmatprep.mubr.bf16.mxu1 %v12517_v0  ;;  %v16808_v26 = vcombine.low %v12014_v4, %v12019_v5  ;;  %v1513_v46 = vadd.f32 %v1512_v18, %v11969_v57  ;;  %v1389_v4 = vpop.f32.mrf.mxu1  ;;  %v1522_v5 = vpop.f32.mrf.mxu0 }
 0x1e2   : > { %vm1603_vm12 = vcmp.gt.f32.partialorder %v1380_v15, 0.0  ;;  %v1683_v21 = vmul.f32 0.01, %v1380_v15  ;;  %v1382_v47 = vadd.f32 %v1381_v29, %v11992_v62  ;;  %3620 = vmatprep.mubr.bf16.mxu0 %v12523_v20  ;;  %3488 = vmatmul.mubr.bf16.gmra.mxu1 %v12509_v33  ;;  %vm1602_vm13 = vcmp.gt.f32.partialorder %v1511_v25, 0.0 }
 0x1e3   : > { %3704 = vmatpush1.bf16.msra.mxu1 %v16808_v26  ;;  %v1682_v30 = vmul.f32 0.01, %v1511_v25  ;;  %v1515_v48 = vadd.f32 %v1514_v44, %v11995_v63  ;;  %3621 = vmatmul.mubr.bf16.gmra.mxu0 %v12521_v53  ;;  %v1386_v6 = vadd.f32 %v1385_v3, %v11966_v56  ;;  %v1760_v54 = vsel %vm1600_vm11, %v1378_v61, %v1680_v27  ;;  %v1391_v31 = vpop.f32.mrf.mxu1  ;;  %v1524_v43 = vpop.f32.mrf.mxu0  ;;  %v16813_v44 = vld [vmem:[#allocation15_spill] sm:$0xff] }
 0x1e4   : > { %vm1605_vm14 = vcmp.gt.f32.partialorder %v1513_v46, 0.0  ;;  %v1685_v55 = vmul.f32 0.01, %v1513_v46  ;;  %vm1604_vm15 = vcmp.gt.f32.partialorder %v1382_v47, 0.0  ;;  %v16809_v58 = vcombine.low %v12032_v8, %v12037_v9 }
 0x1e5   : > { %v16810_v59 = vcombine.high %v12042_v10, %v12047_v11  ;;  %v1763_v18 = vsel %vm1603_vm12, %v1380_v15, %v1683_v21  ;;  %v1684_v23 = vmul.f32 0.01, %v1382_v47  ;;  %vm1606_vm0 = vcmp.gt.f32.partialorder %v1515_v48, 0.0  ;;  %v1528_v51 = vpop.f32.mrf.mxu0 }
 0x1e6   : > { %3837 = vmatpush1.bf16.msra.mxu0 %v16809_v58  ;;  %v1686_v38 = vmul.f32 0.01, %v1515_v48  ;;  %v16811_v49 = vcombine.low %v12042_v10, %v12047_v11  ;;  %v16812_v42 = vcombine.high %v12060_v16, %v12065_v17  ;;  %v1765_v8 = vsel %vm1605_vm14, %v1513_v46, %v1685_v55  ;;  %v1395_v11 = vpop.f32.mrf.mxu1  ;;  %v16825_v58 = vld [vmem:[#allocation19_spill] sm:$0xff] }
 0x1e7   : > { %3705 = vmatprep.subr.bf16.mxu1 %v16810_v59  ;;  %vm1607_vm1 = vcmp.gt.f32.partialorder %v1386_v6, 0.0  ;;  %v1687_v9 = vmul.f32 0.01, %v1386_v6  ;;  %v1519_v29 = vadd.f32 %v1518_v52, %v11969_v57  ;;  %v16815_v14 = vcombine.high %v16813_v44, %v16814_v28  ;;  %v1530_v46 = vpop.f32.mrf.mxu0  ;;  %v16826_v59 = vld [vmem:[#allocation20_spill] sm:$0xff] }
 0x1e8   : > { %3706 = vmatpush1.bf16.msra.mxu1 %v16811_v49  ;;  %3838 = vmatprep.subr.bf16.mxu0 %v16812_v42  ;;  %v1762_v41 = vsel %vm1602_vm13, %v1511_v25, %v1682_v30  ;;  %v1764_v40 = vsel %vm1604_vm15, %v1382_v47, %v1684_v23  ;;  %v1766_v50 = vsel %vm1606_vm0, %v1515_v48, %v1686_v38  ;;  %v1397_v21 = vpop.f32.mrf.mxu1 }
 0x1e9   : > { %3707 = vmatprep.subr.bf16.mxu1 %v16815_v14  ;;  %v1388_v10 = vadd.f32 %v1387_v35, %v11992_v62  ;;  %v1761_v60 = vsel %vm1601_vm10, %v12496_v24, %v1681_v32  ;;  %v12563_v61 = vpack.c.bf16 %v1763_v18, %v1759_v7  ;;  %v12565_v3 = vpack.c.bf16 %v1764_v40, %v1760_v54  ;;  %v16822_v7 = vld [vmem:[#allocation17_spill] sm:$0xff]  ;;  %v16823_v32 = vld [vmem:[#allocation18_spill] sm:$0xff]  ;;  %v1532_v55 = vpop.f32.mrf.mxu0  ;;  %v16833_v40 = vld [vmem:[#allocation23_spill] sm:$0xff] }
 0x1ea   : > { %v12567_v52 = vpack.c.bf16 %v1766_v50, %v1762_v41  ;;  %v16819_v25 = vcombine.low %v12060_v16, %v12065_v17  ;;  %v12572_v15 = vpack.c.bf16 %v1765_v8, %v1761_v60  ;;  %v1767_v27 = vsel %vm1607_vm1, %v1386_v6, %v1687_v9  ;;  %v1399_v54 = vpop.f32.mrf.mxu1  ;;  %v16831_v14 = vld [vmem:[#allocation22_spill] sm:$0xff]  ;;  %v16834_v50 = vld [vmem:[#allocation24_spill] sm:$0xff] }
 0x1eb   : > { %16816 = vst [vmem:[#allocation15_spill] sm:$0xff] %v12563_v61  ;;  %16817 = vst [vmem:[#allocation16_spill] sm:$0xff] %v12565_v3  ;;  %v1689_v35 = vmul.f32 0.01, %v1519_v29  ;;  %v1521_v26 = vadd.f32 %v1520_v36, %v11995_v63  ;;  %v16821_v24 = vcombine.low %v16813_v44, %v16814_v28  ;;  %v16824_v47 = vcombine.high %v16822_v7, %v16823_v32  ;;  %v16830_v28 = vld [vmem:[#allocation21_spill] sm:$0xff] }
 0x1ec   : > { %16818 = vst [vmem:[#allocation55_spill] sm:$0xff] %v12567_v52  ;;  %3839 = vmatpush1.bf16.msra.mxu0 %v16819_v25  ;;  %16820 = vst [vmem:[#allocation56_spill] sm:$0xff] %v12572_v15  ;;  %v1390_v16 = vadd.f32 %v1389_v4, %v11966_v56  ;;  %v1523_v17 = vadd.f32 %v1522_v5, %v11969_v57  ;;  %v1392_v30 = vadd.f32 %v1391_v31, %v11992_v62  ;;  %v1401_v38 = vpop.f32.mrf.mxu1  ;;  %v1534_v31 = vpop.f32.mrf.mxu0 }
 0x1ed   : > { %3708 = vmatpush2.bf16.msra.mxu1 %v16821_v24  ;;  %3840 = vmatprep.subr.bf16.mxu0 %v16824_v47  ;;  %v1525_v48 = vadd.f32 %v1524_v43, %v11995_v63  ;;  %vm1609_vm2 = vcmp.gt.f32.partialorder %v1519_v29, 0.0  ;;  %vm1608_vm3 = vcmp.gt.f32.partialorder %v1388_v10, 0.0  ;;  %v1688_v36 = vmul.f32 0.01, %v1388_v10 }
 0x1ee   : > { %3497 = vmatprep.mubr.bf16.mxu1 %v12565_v3  ;;  %v1690_v6 = vmul.f32 0.01, %v1521_v26  ;;  %3630 = vmatprep.mubr.bf16.mxu0 %v12567_v52  ;;  %vm1611_vm4 = vcmp.gt.f32.partialorder %v1390_v16, 0.0  ;;  %v1691_v4 = vmul.f32 0.01, %v1390_v16  ;;  %vm1613_vm5 = vcmp.gt.f32.partialorder %v1523_v17, 0.0  ;;  %v1405_v47 = vpop.f32.mrf.mxu1 }
 0x1ef   : > { %3498 = vmatmul.mubr.bf16.gmra.mxu1 %v12563_v61  ;;  %v1693_v5 = vmul.f32 0.01, %v1523_v17  ;;  %3631 = vmatmul.mubr.bf16.gmra.mxu0 %v12572_v15  ;;  %v16827_v18 = vcombine.high %v16825_v58, %v16826_v59  ;;  %vm1610_vm6 = vcmp.gt.f32.partialorder %v1521_v26, 0.0  ;;  %vm1612_vm7 = vcmp.gt.f32.partialorder %v1392_v30, 0.0 }
 0x1f0   : > { %v1692_v23 = vmul.f32 0.01, %v1392_v30  ;;  %vm1614_vm8 = vcmp.gt.f32.partialorder %v1525_v48, 0.0  ;;  %v16828_v43 = vcombine.low %v16822_v7, %v16823_v32  ;;  %v16829_v49 = vcombine.low %v16825_v58, %v16826_v59 }
 0x1f1   : > { %3709 = vmatprep.subr.bf16.mxu1 %v16827_v18  ;;  %v1771_v42 = vsel %vm1611_vm4, %v1390_v16, %v1691_v4  ;;  %v1773_v8 = vsel %vm1613_vm5, %v1523_v17, %v1693_v5  ;;  %v1694_v9 = vmul.f32 0.01, %v1525_v48  ;;  %v1396_v44 = vadd.f32 %v1395_v11, %v11966_v56  ;;  %v1538_v16 = vpop.f32.mrf.mxu0 }
 0x1f2   : > { %3841 = vmatpush2.bf16.msra.mxu0 %v16828_v43  ;;  %3710 = vmatpush2.bf16.msra.mxu1 %v16829_v49  ;;  %v16832_v41 = vcombine.high %v16830_v28, %v16831_v14  ;;  %v16835_v60 = vcombine.high %v16833_v40, %v16834_v50  ;;  %v1769_v25 = vsel %vm1609_vm2, %v1519_v29, %v1689_v35 }
 0x1f3   : > { %v1768_v24 = vsel %vm1608_vm3, %v1388_v10, %v1688_v36  ;;  %v1772_v7 = vsel %vm1612_vm7, %v1392_v30, %v1692_v23  ;;  %v1529_v32 = vadd.f32 %v1528_v51, %v11969_v57  ;;  %v1770_v17 = vsel %vm1610_vm6, %v1521_v26, %v1690_v6  ;;  %v1407_v10 = vpop.f32.mrf.mxu1  ;;  %v1540_v35 = vpop.f32.mrf.mxu0 }
 0x1f4   : > { %3842 = vmatprep.subr.bf16.mxu0 %v16832_v41  ;;  %3711 = vmatprep.subr.bf16.mxu1 %v16835_v60  ;;  %v12610_v11 = vpack.c.bf16 %v1771_v42, %v1767_v27  ;;  %v12612_v4 = vpack.c.bf16 %v1772_v7, %v1768_v24  ;;  %v1774_v5 = vsel %vm1614_vm8, %v1525_v48, %v1694_v9  ;;  %vm1615_vm9 = vcmp.gt.f32.partialorder %v1396_v44, 0.0  ;;  %v16844_v41 = vld [vmem:[#allocation28_spill] sm:$0xff]  ;;  %v16847_v7 = vld [vmem:[#allocation29_spill] sm:$0xff] }
 0x1f5   : > { %v12615_v58 = vpack.c.bf16 %v1773_v8, %v1769_v25  ;;  %v12617_v59 = vpack.c.bf16 %v1774_v5, %v1770_v17  ;;  %v1398_v29 = vadd.f32 %v1397_v21, %v11992_v62  ;;  %v16837_v51 = vcombine.low %v16830_v28, %v16831_v14  ;;  %v1409_v18 = vpop.f32.mrf.mxu1  ;;  %v1542_v23 = vpop.f32.mrf.mxu0  ;;  %v16843_v14 = vld [vmem:[#allocation27_spill] sm:$0xff]  ;;  %v16848_v17 = vld [vmem:[#allocation30_spill] sm:$0xff] }
 0x1f6   : > { %16836 = vst [vmem:[#allocation17_spill] sm:$0xff] %v12612_v4  ;;  %v16838_v27 = vcombine.low %v16833_v40, %v16834_v50  ;;  %v1531_v26 = vadd.f32 %v1530_v46, %v11995_v63  ;;  %v1400_v30 = vadd.f32 %v1399_v54, %v11966_v56  ;;  %v1533_v48 = vadd.f32 %v1532_v55, %v11969_v57  ;;  %v16839_v54 = vld [vmem:[#allocation25_spill] sm:$0xff]  ;;  %v16840_v55 = vld [vmem:[#allocation26_spill] sm:$0xff] }
 0x1f7   : > { %3843 = vmatpush2.bf16.msra.mxu0 %v16837_v51  ;;  %3507 = vmatprep.mubr.bf16.mxu1 %v12612_v4  ;;  %v1695_v21 = vmul.f32 0.01, %v1396_v44  ;;  %vm1617_vm10 = vcmp.gt.f32.partialorder %v1529_v32, 0.0  ;;  %v1697_v36 = vmul.f32 0.01, %v1529_v32  ;;  %v1402_v6 = vadd.f32 %v1401_v38, %v11992_v62  ;;  %v1411_v38 = vpop.f32.mrf.mxu1  ;;  %v1544_v9 = vpop.f32.mrf.mxu0 }
 0x1f8   : > { %3712 = vmatpush2.bf16.msra.mxu1 %v16838_v27  ;;  %3640 = vmatprep.mubr.bf16.mxu0 %v12617_v59  ;;  %vm1616_vm11 = vcmp.gt.f32.partialorder %v1398_v29, 0.0  ;;  %v1696_v43 = vmul.f32 0.01, %v1398_v29  ;;  %vm1619_vm12 = vcmp.gt.f32.partialorder %v1400_v30, 0.0  ;;  %v1699_v46 = vmul.f32 0.01, %v1400_v30 }
 0x1f9   : > { %3508 = vmatmul.mubr.bf16.gmra.mxu1 %v12610_v11  ;;  %3641 = vmatmul.mubr.bf16.gmra.mxu0 %v12615_v58  ;;  %v16841_v49 = vcombine.high %v16839_v54, %v16840_v55  ;;  %vm1618_vm13 = vcmp.gt.f32.partialorder %v1531_v26, 0.0  ;;  %v1698_v42 = vmul.f32 0.01, %v1531_v26  ;;  %v1701_v8 = vmul.f32 0.01, %v1533_v48 }
 0x1fa   : > { %vm1620_vm14 = vcmp.gt.f32.partialorder %v1402_v6, 0.0  ;;  %v16842_v28 = vcombine.low %v16839_v54, %v16840_v55  ;;  %v16845_v40 = vcombine.high %v16843_v14, %v16844_v41  ;;  %v1779_v50 = vsel %vm1619_vm12, %v1400_v30, %v1699_v46  ;;  %v1415_v46 = vpop.f32.mrf.mxu1  ;;  %v1548_v55 = vpop.f32.mrf.mxu0 }
 0x1fb   : > { %3844 = vmatprep.subr.bf16.mxu0 %v16841_v49  ;;  %vm1621_vm15 = vcmp.gt.f32.partialorder %v1533_v48, 0.0  ;;  %v1700_v60 = vmul.f32 0.01, %v1402_v6  ;;  %v1535_v25 = vadd.f32 %v1534_v31, %v11995_v63  ;;  %v16846_v24 = vcombine.low %v16843_v14, %v16844_v41  ;;  %v16850_v49 = vld [vmem:[#allocation31_spill] sm:$0xff]  ;;  %v16851_v31 = vld [vmem:[#allocation32_spill] sm:$0xff] }
 0x1fc   : > { %3845 = vmatpush2.bf16.msra.mxu0 %v16842_v28  ;;  %3713 = vmatprep.subr.bf16.mxu1 %v16845_v40  ;;  %v16849_v5 = vcombine.high %v16847_v7, %v16848_v17  ;;  %v1775_v51 = vsel %vm1615_vm9, %v1396_v44, %v1695_v21  ;;  %v1777_v27 = vsel %vm1617_vm10, %v1529_v32, %v1697_v36  ;;  %v1550_v36 = vpop.f32.mrf.mxu0 }
 0x1fd   : > { %3714 = vmatpush2.bf16.msra.mxu1 %v16846_v24  ;;  %v1406_v54 = vadd.f32 %v1405_v47, %v11966_v56  ;;  %v1539_v30 = vadd.f32 %v1538_v16, %v11969_v57  ;;  %v16852_v28 = vcombine.high %v16850_v49, %v16851_v31  ;;  %v1776_v14 = vsel %vm1616_vm11, %v1398_v29, %v1696_v43  ;;  %v1417_v16 = vpop.f32.mrf.mxu1 }
 0x1fe   : > { %3846 = vmatprep.subr.bf16.mxu0 %v16849_v5  ;;  %v1780_v41 = vsel %vm1620_vm14, %v1402_v6, %v1700_v60  ;;  %vm1622_vm0 = vcmp.gt.f32.partialorder %v1535_v25, 0.0  ;;  %v1702_v40 = vmul.f32 0.01, %v1535_v25  ;;  %v1778_v44 = vsel %vm1618_vm13, %v1531_v26, %v1698_v42  ;;  %v16856_v42 = vld [vmem:[#allocation33_spill] sm:$0xff] }
 0x1ff   : > { %3715 = vmatprep.subr.bf16.mxu1 %v16852_v28  ;;  %v12660_v21 = vpack.c.bf16 %v1779_v50, %v1775_v51  ;;  %v1781_v32 = vsel %vm1621_vm15, %v1533_v48, %v1701_v8  ;;  %v12663_v47 = vpack.c.bf16 %v1780_v41, %v1776_v14  ;;  %v16854_v24 = vcombine.low %v16847_v7, %v16848_v17  ;;  %v16857_v48 = vld [vmem:[#allocation34_spill] sm:$0xff]  ;;  %v1552_v17 = vpop.f32.mrf.mxu0 }
 0x200   : > { %v1782_v5 = vsel %vm1622_vm0, %v1535_v25, %v1702_v40  ;;  %v1703_v29 = vmul.f32 0.01, %v1406_v54  ;;  %v1408_v6 = vadd.f32 %v1407_v10, %v11992_v62  ;;  %v1541_v43 = vadd.f32 %v1540_v35, %v11995_v63  ;;  %v1419_v10 = vpop.f32.mrf.mxu1 }
 0x201   : > { %16853 = vst [vmem:[#allocation18_spill] sm:$0xff] %v12660_v21  ;;  %3847 = vmatpush2.bf16.msra.mxu0 %v16854_v24  ;;  %v16855_v26 = vcombine.low %v16850_v49, %v16851_v31  ;;  %v16858_v8 = vcombine.high %v16856_v42, %v16857_v48  ;;  %v12676_v50 = vpack.c.bf16 %v1782_v5, %v1778_v44  ;;  %v1705_v60 = vmul.f32 0.01, %v1539_v30  ;;  %v16860_v49 = vld [vmem:[#allocation35_spill] sm:$0xff]  ;;  %v16861_v31 = vld [vmem:[#allocation36_spill] sm:$0xff]  ;;  %v1554_v41 = vpop.f32.mrf.mxu0 }
 0x202   : > { %v1410_v7 = vadd.f32 %v1409_v18, %v11966_v56  ;;  %v1543_v25 = vadd.f32 %v1542_v23, %v11969_v57  ;;  %3517 = vmatprep.mubr.bf16.mxu1 %v12663_v47  ;;  %v12681_v35 = vpack.c.bf16 %v1781_v32, %v1777_v27  ;;  %vm1623_vm1 = vcmp.gt.f32.partialorder %v1406_v54, 0.0  ;;  %v1421_v23 = vpop.f32.mrf.mxu1 }
 0x203   : > { %3716 = vmatpush2.bf16.msra.mxu1 %v16855_v26  ;;  %3848 = vmatprep.subr.bf16.mxu0 %v16858_v8  ;;  %vm1625_vm2 = vcmp.gt.f32.partialorder %v1539_v30, 0.0  ;;  %v1704_v51 = vmul.f32 0.01, %v1408_v6  ;;  %v16862_v28 = vcombine.high %v16860_v49, %v16861_v31  ;;  %vm1624_vm3 = vcmp.gt.f32.partialorder %v1408_v6, 0.0 }
 0x204   : > { %16859 = vst [vmem:[#allocation19_spill] sm:$0xff] %v12681_v35  ;;  %3518 = vmatmul.mubr.bf16.gmra.mxu1 %v12660_v21  ;;  %v1706_v14 = vmul.f32 0.01, %v1541_v43  ;;  %vm1627_vm4 = vcmp.gt.f32.partialorder %v1410_v7, 0.0  ;;  %v1707_v18 = vmul.f32 0.01, %v1410_v7  ;;  %3650 = vmatprep.mubr.bf16.mxu0 %v12676_v50  ;;  %v16863_v27 = vcombine.low %v16856_v42, %v16857_v48  ;;  %v1425_v42 = vpop.f32.mrf.mxu1  ;;  %v12699_v48 = vpop.f32.mrf.mxu0 }
 0x205   : > { %3717 = vmatprep.subr.bf16.mxu1 %v16862_v28  ;;  %vm1629_vm5 = vcmp.gt.f32.partialorder %v1543_v25, 0.0  ;;  %v1709_v40 = vmul.f32 0.01, %v1543_v25  ;;  %v1412_v44 = vadd.f32 %v1411_v38, %v11992_v62  ;;  %v1545_v32 = vadd.f32 %v1544_v9, %v11995_v63  ;;  %3651 = vmatmul.mubr.bf16.gmra.mxu0 %v12681_v35  ;;  %v16865_v28 = vld [vmem:[#allocation37_spill] sm:$0xff] }
 0x206   : > { %3849 = vmatpush2.bf16.msra.mxu0 %v16863_v27  ;;  %v16864_v24 = vcombine.low %v16860_v49, %v16861_v31  ;;  %v1783_v5 = vsel %vm1623_vm1, %v1406_v54, %v1703_v29  ;;  %v1785_v26 = vsel %vm1625_vm2, %v1539_v30, %v1705_v60  ;;  %vm1626_vm6 = vcmp.gt.f32.partialorder %v1541_v43, 0.0  ;;  %v16866_v27 = vld [vmem:[#allocation38_spill] sm:$0xff]  ;;  %v16868_v31 = vld [vmem:[#allocation39_spill] sm:$0xff] }
 0x207   : > { %v1787_v8 = vsel %vm1627_vm4, %v1410_v7, %v1707_v18  ;;  %v16867_v38 = vcombine.high %v16865_v28, %v16866_v27  ;;  %v1784_v9 = vsel %vm1624_vm3, %v1408_v6, %v1704_v51  ;;  %vm1628_vm7 = vcmp.gt.f32.partialorder %v1412_v44, 0.0 }
 0x208   : > { %3718 = vmatpush2.bf16.msra.mxu1 %v16864_v24  ;;  %v1708_v35 = vmul.f32 0.01, %v1412_v44  ;;  %v1416_v49 = vadd.f32 %v1415_v46, %v11966_v56  ;;  %v16869_v24 = vld [vmem:[#allocation40_spill] sm:$0xff]  ;;  %v1789_v30 = vsel %vm1629_vm5, %v1543_v25, %v1709_v40  ;;  %vm1630_vm8 = vcmp.gt.f32.partialorder %v1545_v32, 0.0 }
 0x209   : > { %3850 = vmatprep.subr.bf16.mxu0 %v16867_v38  ;;  %v16870_v54 = vcombine.high %v16868_v31, %v16869_v24  ;;  %v1710_v29 = vmul.f32 0.01, %v1545_v32  ;;  %v1549_v60 = vadd.f32 %v1548_v55, %v11969_v57  ;;  %v16871_v7 = vcombine.low %v16865_v28, %v16866_v27  ;;  %v16874_v38 = vld [vmem:[#allocation41_spill] sm:$0xff]  ;;  %v1427_v27 = vpop.f32.mrf.mxu1 }
 0x20a   : > { %v1786_v18 = vsel %vm1626_vm6, %v1541_v43, %v1706_v14  ;;  %v12714_v6 = vpack.c.bf16 %v1787_v8, %v1783_v5  ;;  %v1788_v51 = vsel %vm1628_vm7, %v1412_v44, %v1708_v35  ;;  %v16873_v46 = vcombine.low %v16868_v31, %v16869_v24  ;;  %v1560_v43 = vpop.f32.mrf.mxu0  ;;  %v16878_v14 = vld [vmem:[#allocation43_spill] sm:$0xff]  ;;  %v16879_v5 = vld [vmem:[#allocation44_spill] sm:$0xff] }
 0x20b   : > { %3719 = vmatprep.subr.bf16.mxu1 %v16870_v54  ;;  %3851 = vmatpush2.bf16.msra.mxu0 %v16871_v7  ;;  %v16875_v54 = vld [vmem:[#allocation42_spill] sm:$0xff]  ;;  %v12722_v25 = vpack.c.bf16 %v1788_v51, %v1784_v9  ;;  %v1790_v40 = vsel %vm1630_vm8, %v1545_v32, %v1710_v29  ;;  %v1418_v55 = vadd.f32 %v1417_v16, %v11992_v62  ;;  %v1711_v31 = vmul.f32 0.01, %v1416_v49  ;;  %v1429_v29 = vpop.f32.mrf.mxu1  ;;  %v16885_v51 = vld [vmem:[#allocation45_spill] sm:$0xff] }
 0x20c   : > { %16872 = vst [vmem:[#allocation20_spill] sm:$0xff] %v12714_v6  ;;  %3720 = vmatpush2.bf16.msra.mxu1 %v16873_v46  ;;  %v16876_v21 = vcombine.high %v16874_v38, %v16875_v54  ;;  %v1551_v28 = vadd.f32 %v1550_v36, %v11995_v63  ;;  %v16880_v35 = vcombine.high %v16878_v14, %v16879_v5  ;;  %vm1631_vm9 = vcmp.gt.f32.partialorder %v1416_v49, 0.0  ;;  %v1562_v7 = vpop.f32.mrf.mxu0  ;;  %v16886_v46 = vld [vmem:[#allocation46_spill] sm:$0xff] }
 0x20d   : > { %16877 = vst [vmem:[#allocation21_spill] sm:$0xff] %v12722_v25  ;;  %v12729_v44 = vpack.c.bf16 %v1789_v30, %v1785_v26  ;;  %v12731_v8 = vpack.c.bf16 %v1790_v40, %v1786_v18  ;;  %vm1633_vm10 = vcmp.gt.f32.partialorder %v1549_v60, 0.0  ;;  %v1713_v32 = vmul.f32 0.01, %v1549_v60  ;;  %3527 = vmatprep.mubr.bf16.mxu1 %v12722_v25 }
 0x20e   : > { %3852 = vmatprep.subr.bf16.mxu0 %v16876_v21  ;;  %3721 = vmatprep.subr.bf16.mxu1 %v16880_v35  ;;  %v1420_v21 = vadd.f32 %v1419_v10, %v11966_v56  ;;  %v1712_v9 = vmul.f32 0.01, %v1418_v55  ;;  %v16883_v16 = vcombine.low %v16874_v38, %v16875_v54  ;;  %v1553_v26 = vadd.f32 %v1552_v17, %v11969_v57 }
 0x20f   : > { %16881 = vst [vmem:[#allocation22_spill] sm:$0xff] %v12729_v44  ;;  %16882 = vst [vmem:[#allocation23_spill] sm:$0xff] %v12731_v8  ;;  %v1422_v24 = vadd.f32 %v1421_v23, %v11992_v62  ;;  %3660 = vmatprep.mubr.bf16.mxu0 %v12731_v8  ;;  %3528 = vmatmul.mubr.bf16.gmra.mxu1 %v12714_v6  ;;  %vm1632_vm12 = vcmp.gt.f32.partialorder %v1418_v55, 0.0  ;;  %vm1634_vm13 = vcmp.gt.f32.partialorder %v1551_v28, 0.0  ;;  %v1714_v10 = vmul.f32 0.01, %v1551_v28 }
 0x210   : > { %3853 = vmatpush2.bf16.msra.mxu0 %v16883_v16  ;;  %vm1635_vm11 = vcmp.gt.f32.partialorder %v1420_v21, 0.0  ;;  %v1715_v36 = vmul.f32 0.01, %v1420_v21  ;;  %v1555_v30 = vadd.f32 %v1554_v41, %v11995_v63  ;;  %vm1637_vm14 = vcmp.gt.f32.partialorder %v1553_v26, 0.0  ;;  %v16889_v16 = vld [vmem:[#allocation47_spill] sm:$0xff] }
 0x211   : > { %3661 = vmatmul.mubr.bf16.gmra.mxu0 %v12729_v44  ;;  %v1717_v18 = vmul.f32 0.01, %v1553_v26  ;;  %vm1636_vm15 = vcmp.gt.f32.partialorder %v1422_v24, 0.0  ;;  %v1426_v17 = vadd.f32 %v1425_v42, %v11966_v56  ;;  %v16884_v23 = vcombine.low %v16878_v14, %v16879_v5  ;;  %v16890_v44 = vld [vmem:[#allocation48_spill] sm:$0xff] }
 0x212   : > { %v16887_v38 = vcombine.high %v16885_v51, %v16886_v46  ;;  %v1795_v54 = vsel %vm1635_vm11, %v1420_v21, %v1715_v36  ;;  %v1716_v41 = vmul.f32 0.01, %v1422_v24  ;;  %vm1638_vm0 = vcmp.gt.f32.partialorder %v1555_v30, 0.0  ;;  %v16892_v21 = vld [vmem:[#allocation49_spill] sm:$0xff]  ;;  %v16893_v36 = vld [vmem:[#allocation50_spill] sm:$0xff] }
 0x213   : > { %3722 = vmatpush2.bf16.msra.mxu1 %v16884_v23  ;;  %v1718_v40 = vmul.f32 0.01, %v1555_v30  ;;  %v16888_v35 = vcombine.low %v16885_v51, %v16886_v46  ;;  %v16891_v42 = vcombine.high %v16889_v16, %v16890_v44  ;;  %v1791_v14 = vsel %vm1631_vm9, %v1416_v49, %v1711_v31  ;;  %v1564_v16 = vpop.f32.mrf.mxu0 }
 0x214   : > { %3854 = vmatprep.subr.bf16.mxu0 %v16887_v38  ;;  %v1792_v5 = vsel %vm1632_vm12, %v1418_v55, %v1712_v9  ;;  %v1797_v23 = vsel %vm1637_vm14, %v1553_v26, %v1717_v18  ;;  %v1559_v38 = vadd.f32 %v12699_v48, %v11969_v57  ;;  %v16894_v6 = vcombine.high %v16892_v21, %v16893_v36  ;;  %v11054_v21 = vld [vmem:[%s16563_s5 + $0x1d0] sm:$0xff] }
 0x215   : > { %3855 = vmatpush2.bf16.msra.mxu0 %v16888_v35  ;;  %3957 = vmatprep.subr.bf16.mxu1 %v16891_v42  ;;  %v1794_v8 = vsel %vm1634_vm13, %v1551_v28, %v1714_v10  ;;  %v1796_v51 = vsel %vm1636_vm15, %v1422_v24, %v1716_v41  ;;  %v1798_v46 = vsel %vm1638_vm0, %v1555_v30, %v1718_v40  ;;  %v1431_v35 = vpop.f32.mrf.mxu1  ;;  %vm1639_vm1 = vcmp.gt.f32.partialorder %v1426_v17, 0.0  ;;  %v11055_v36 = vld [vmem:[%s16563_s5 + $0x1f0] sm:$0xff] }
 0x216   : > { %4090 = vmatprep.subr.bf16.mxu0 %v16894_v6  ;;  %v1428_v44 = vadd.f32 %v1427_v27, %v11992_v62  ;;  %v1793_v49 = vsel %vm1633_vm10, %v1549_v60, %v1713_v32  ;;  %v12769_v55 = vpack.c.bf16 %v1795_v54, %v1791_v14  ;;  %v12771_v31 = vpack.c.bf16 %v1796_v51, %v1792_v5 }
 0x217   : > { %v12773_v48 = vpack.c.bf16 %v1798_v46, %v1794_v8  ;;  %v12775_v9 = vpack.c.bf16 %v1797_v23, %v1793_v49  ;;  %v1719_v6 = vmul.f32 0.01, %v1426_v17  ;;  %v1721_v26 = vmul.f32 0.01, %v1559_v38  ;;  %v2025_v46 = vld [vmem:[%s16563_s5 + $0x590] sm:$0xff] }
 0x218   : > { %v1561_v28 = vadd.f32 %v1560_v43, %v11995_v63  ;;  %v1430_v24 = vadd.f32 %v1429_v29, %v11966_v56  ;;  %v1563_v27 = vadd.f32 %v1562_v7, %v11969_v57  ;;  %v1432_v10 = vadd.f32 %v1431_v35, %v11992_v62  ;;  %3537 = vmatprep.mubr.bf16.mxu1 %v12771_v31  ;;  %v11056_v35 = vld [vmem:[%s16563_s5 + $0x5d0] sm:$0xff] }
 0x219   : > { %v1565_v60 = vadd.f32 %v1564_v16, %v11995_v63  ;;  %vm1640_vm2 = vcmp.gt.f32.partialorder %v1428_v44, 0.0  ;;  %v1720_v8 = vmul.f32 0.01, %v1428_v44  ;;  %3670 = vmatprep.mubr.bf16.mxu0 %v12773_v48  ;;  %3538 = vmatmul.mubr.bf16.gmra.mxu1 %v12769_v55  ;;  %vm1641_vm8 = vcmp.gt.f32.partialorder %v1559_v38, 0.0  ;;  %v11057_v16 = vld [vmem:[%s16563_s5 + $0x5f0] sm:$0xff] }
 0x21a   : > { %v1722_v32 = vmul.f32 0.01, %v1561_v28  ;;  %vm1643_vm3 = vcmp.gt.f32.partialorder %v1430_v24, 0.0  ;;  %v1723_v43 = vmul.f32 0.01, %v1430_v24  ;;  %vm1645_vm4 = vcmp.gt.f32.partialorder %v1563_v27, 0.0  ;;  %3671 = vmatmul.mubr.bf16.gmra.mxu0 %v12775_v9 }
 0x21b   : > { %v1725_v56 = vmul.f32 0.01, %v1563_v27  ;;  %vm1642_vm5 = vcmp.gt.f32.partialorder %v1561_v28, 0.0  ;;  %vm1644_vm6 = vcmp.gt.f32.partialorder %v1432_v10, 0.0  ;;  %v1724_v57 = vmul.f32 0.01, %v1432_v10 }
 0x21c   : > { %vm1646_vm7 = vcmp.gt.f32.partialorder %v1565_v60, 0.0  ;;  %v1803_v62 = vsel %vm1643_vm3, %v1430_v24, %v1723_v43  ;;  %v1726_v63 = vmul.f32 0.01, %v1565_v60  ;;  %v1800_v30 = vsel %vm1640_vm2, %v1428_v44, %v1720_v8  ;;  %v2029_v44 = vld [vmem:[%s16563_s5 + $0x5b0] sm:$0xff]  ;;  %v16895_v24 = vld [vmem:[#allocation51_spill] sm:$0xff] }
 0x21d   : > { %v1805_v29 = vsel %vm1645_vm4, %v1563_v27, %v1725_v56  ;;  %v1804_v7 = vsel %vm1644_vm6, %v1432_v10, %v1724_v57  ;;  %v1799_v18 = vsel %vm1639_vm1, %v1426_v17, %v1719_v6  ;;  %v1802_v54 = vsel %vm1642_vm5, %v1561_v28, %v1722_v32  ;;  %v1897_v17 = vld [vmem:[%s16563_s5 + $0x190] sm:$0xff] }
 0x21e   : > { %v12788_v41 = vpack.c.bf16 %v1804_v7, %v1800_v30  ;;  %v1806_v40 = vsel %vm1646_vm7, %v1565_v60, %v1726_v63  ;;  %v1801_v42 = vsel %vm1641_vm8, %v1559_v38, %v1721_v26  ;;  %v12790_v14 = vpack.c.bf16 %v1803_v62, %v1799_v18  ;;  %v1901_v38 = vld [vmem:[%s16563_s5 + $0x1b0] sm:$0xff] }
 0x21f   : > { %v12792_v5 = vpack.c.bf16 %v1806_v40, %v1802_v54  ;;  %v12794_v23 = vpack.c.bf16 %v1805_v29, %v1801_v42  ;;  %v9622_v51 = vcombine.low %v11054_v21, %v11055_v36  ;;  %v9750_v49 = vcombine.low %v11056_v35, %v11057_v16  ;;  %v1889_v26 = vld [vmem:[%s16563_s5 + $0x150] sm:$0xff] }
 0x220   : > { %3547 = vmatprep.mubr.bf16.mxu1 %v12788_v41  ;;  %v9615_v6 = vcombine.high %v1897_v17, %v1901_v38  ;;  %v1893_v28 = vld [vmem:[%s16563_s5 + $0x170] sm:$0xff]  ;;  %v9743_v27 = vcombine.high %v2025_v46, %v2029_v44  ;;  %v9614_v60 = vcombine.low %v1897_v17, %v1901_v38  ;;  %v9742_v56 = vcombine.low %v2025_v46, %v2029_v44 }
 0x221   : > { %3680 = vmatprep.mubr.bf16.mxu0 %v12792_v5  ;;  %3548 = vmatmul.mubr.bf16.gmra.mxu1 %v12790_v14  ;;  %v16896_v10 = vld [vmem:[#allocation52_spill] sm:$0xff]  ;;  %v9607_v43 = vcombine.high %v1889_v26, %v1893_v28  ;;  %v9606_v7 = vcombine.low %v1889_v26, %v1893_v28 }
 0x222   : > { %3681 = vmatmul.mubr.bf16.gmra.mxu0 %v12794_v23  ;;  %3723 = vmatprep.mubr.bf16.mxu1 %v12367_v22  ;;  %v2017_v8 = vld [vmem:[%s16563_s5 + $0x550] sm:$0xff] }
 0x223   : > { %3856 = vmatprep.mubr.bf16.mxu0 %v12372_v12  ;;  %v2021_v32 = vld [vmem:[%s16563_s5 + $0x570] sm:$0xff] }
 0x224   : > { %v9735_v57 = vcombine.high %v2017_v8, %v2021_v32  ;;  %v1881_v62 = vld [vmem:[%s16563_s5 + $0x110] sm:$0xff]  ;;  %v9734_v18 = vcombine.low %v2017_v8, %v2021_v32 }
 0x225   : > { %v1885_v63 = vld [vmem:[%s16563_s5 + $0x130] sm:$0xff] }
 0x226   : > { %v2009_v30 = vld [vmem:[%s16563_s5 + $0x510] sm:$0xff]  ;;  %v9599_v54 = vcombine.high %v1881_v62, %v1885_v63  ;;  %v9598_v36 = vcombine.low %v1881_v62, %v1885_v63 }
 0x227   : > { %v2013_v29 = vld [vmem:[%s16563_s5 + $0x530] sm:$0xff] }
 0x228   : > { %v9727_v40 = vcombine.high %v2009_v30, %v2013_v29  ;;  %v1873_v42 = vld [vmem:[%s16563_s5 + $0xd0] sm:$0xff] }
 0x229   : > { %3724 = vmatmul.mubr.bf16.vlgmr.msra.gmra.mxu1 %v16895_v24  ;;  %v1877_v17 = vld [vmem:[%s16563_s5 + $0xf0] sm:$0xff] }
 0x22a   : > { %3857 = vmatmul.mubr.bf16.vlgmr.msra.gmra.mxu0 %v16896_v10  ;;  %3958 = vmatpush1.bf16.msra.mxu1 %v9622_v51  ;;  %v2001_v38 = vld [vmem:[%s16563_s5 + $0x4d0] sm:$0xff]  ;;  %v9726_v51 = vcombine.low %v2009_v30, %v2013_v29  ;;  %v9591_v46 = vcombine.high %v1873_v42, %v1877_v17  ;;  %v9590_v26 = vcombine.low %v1873_v42, %v1877_v17 }
 0x22b   : > { %3733 = vmatprep.mubr.bf16.mxu1 %v12401_v19  ;;  %3866 = vmatprep.mubr.bf16.mxu0 %v12409_v13  ;;  %v2005_v21 = vld [vmem:[%s16563_s5 + $0x4f0] sm:$0xff] }
 0x22c   : > { %4091 = vmatpush1.bf16.msra.mxu0 %v9750_v49  ;;  %3959 = vmatprep.subr.bf16.mxu1 %v9615_v6  ;;  %v9719_v44 = vcombine.high %v2001_v38, %v2005_v21  ;;  %v1865_v35 = vld [vmem:[%s16563_s5 + $0x90] sm:$0xff]  ;;  %v9718_v28 = vcombine.low %v2001_v38, %v2005_v21 }
 0x22d   : > { %4092 = vmatprep.subr.bf16.mxu0 %v9743_v27  ;;  %v1869_v16 = vld [vmem:[%s16563_s5 + $0xb0] sm:$0xff] }
 0x22e   : > { %3960 = vmatpush1.bf16.msra.mxu1 %v9614_v60  ;;  %v1993_v49 = vld [vmem:[%s16563_s5 + $0x490] sm:$0xff]  ;;  %v9583_v27 = vcombine.high %v1865_v35, %v1869_v16 }
 0x22f   : > { %3961 = vmatprep.subr.bf16.mxu1 %v9607_v43  ;;  %v1997_v6 = vld [vmem:[%s16563_s5 + $0x4b0] sm:$0xff] }
 0x230   : > { %4093 = vmatpush1.bf16.msra.mxu0 %v9742_v56  ;;  %v9711_v60 = vcombine.high %v1993_v49, %v1997_v6  ;;  %v1857_v8 = vld [vmem:[%s16563_s5 + $0x50] sm:$0xff]  ;;  %v9710_v62 = vcombine.low %v1993_v49, %v1997_v6 }
 0x231   : > { %3734 = vmatmul.mubr.bf16.gmra.mxu1 %v12407_v37  ;;  %4094 = vmatprep.subr.bf16.mxu0 %v9735_v57  ;;  %v1861_v32 = vld [vmem:[%s16563_s5 + $0x70] sm:$0xff]  ;;  %v9582_v57 = vcombine.low %v1865_v35, %v1869_v16 }
 0x232   : > { %3867 = vmatmul.mubr.bf16.gmra.mxu0 %v12417_v39  ;;  %3743 = vmatprep.mubr.bf16.mxu1 %v12454_v34  ;;  %v1985_v43 = vld [vmem:[%s16563_s5 + $0x450] sm:$0xff]  ;;  %v9575_v63 = vcombine.high %v1857_v8, %v1861_v32 }
 0x233   : > { %3876 = vmatprep.mubr.bf16.mxu0 %v12474_v1  ;;  %3962 = vmatpush1.bf16.msra.mxu1 %v9606_v7  ;;  %v1989_v56 = vld [vmem:[%s16563_s5 + $0x470] sm:$0xff] }
 0x234   : > { %4095 = vmatpush1.bf16.msra.mxu0 %v9734_v18  ;;  %3963 = vmatprep.subr.bf16.mxu1 %v9599_v54  ;;  %v9703_v30 = vcombine.high %v1985_v43, %v1989_v56  ;;  %v1849_v29 = vld [vmem:[%s16563_s5 + $0x10] sm:$0xff]  ;;  %v9702_v42 = vcombine.low %v1985_v43, %v1989_v56 }
 0x235   : > { %4096 = vmatprep.subr.bf16.mxu0 %v9727_v40  ;;  %v1853_v7 = vld [vmem:[%s16563_s5 + $0x30] sm:$0xff]  ;;  %v9574_v40 = vcombine.low %v1857_v8, %v1861_v32 }
 0x236   : > { %v1977_v18 = vld [vmem:[%s16563_s5 + $0x410] sm:$0xff]  ;;  %v9567_v17 = vcombine.high %v1849_v29, %v1853_v7 }
 0x237   : > { %3964 = vmatpush1.bf16.msra.mxu1 %v9598_v36  ;;  %v1981_v54 = vld [vmem:[%s16563_s5 + $0x430] sm:$0xff] }
 0x238   : > { %4097 = vmatpush1.bf16.msra.mxu0 %v9726_v51  ;;  %3965 = vmatprep.subr.bf16.mxu1 %v9591_v46  ;;  %v9695_v38 = vcombine.high %v1977_v18, %v1981_v54  ;;  %v1969_v21 = vld [vmem:[%s16563_s5 + $0x3d0] sm:$0xff]  ;;  %v9694_v35 = vcombine.low %v1977_v18, %v1981_v54 }
 0x239   : > { %3744 = vmatmul.mubr.bf16.gmra.mxu1 %v12452_v2  ;;  %4098 = vmatprep.subr.bf16.mxu0 %v9719_v44  ;;  %v1973_v36 = vld [vmem:[%s16563_s5 + $0x3f0] sm:$0xff]  ;;  %v9566_v44 = vcombine.low %v1849_v29, %v1853_v7 }
 0x23a   : > { %3877 = vmatmul.mubr.bf16.gmra.mxu0 %v12462_v45  ;;  %3753 = vmatprep.mubr.bf16.mxu1 %v12517_v0  ;;  %v2097_v51 = vld [vmem:[%s16563_s5 + $0x7d0] sm:$0xff]  ;;  %v9687_v16 = vcombine.high %v1969_v21, %v1973_v36 }
 0x23b   : > { %3886 = vmatprep.mubr.bf16.mxu0 %v12523_v20  ;;  %3966 = vmatpush1.bf16.msra.mxu1 %v9590_v26  ;;  %v2101_v46 = vld [vmem:[%s16563_s5 + $0x7f0] sm:$0xff] }
 0x23c   : > { %4099 = vmatpush1.bf16.msra.mxu0 %v9718_v28  ;;  %3967 = vmatprep.subr.bf16.mxu1 %v9583_v27  ;;  %v9815_v49 = vcombine.high %v2097_v51, %v2101_v46  ;;  %v1961_v6 = vld [vmem:[%s16563_s5 + $0x390] sm:$0xff]  ;;  %v9814_v8 = vcombine.low %v2097_v51, %v2101_v46 }
 0x23d   : > { %4100 = vmatprep.subr.bf16.mxu0 %v9711_v60  ;;  %v1965_v26 = vld [vmem:[%s16563_s5 + $0x3b0] sm:$0xff]  ;;  %v9686_v60 = vcombine.low %v1969_v21, %v1973_v36 }
 0x23e   : > { %v2089_v28 = vld [vmem:[%s16563_s5 + $0x790] sm:$0xff]  ;;  %v9679_v32 = vcombine.high %v1961_v6, %v1965_v26 }
 0x23f   : > { %3968 = vmatpush1.bf16.msra.mxu1 %v9582_v57  ;;  %v2093_v27 = vld [vmem:[%s16563_s5 + $0x7b0] sm:$0xff] }
 0x240   : > { %4101 = vmatpush1.bf16.msra.mxu0 %v9710_v62  ;;  %3969 = vmatprep.subr.bf16.mxu1 %v9575_v63  ;;  %v9807_v43 = vcombine.high %v2089_v28, %v2093_v27  ;;  %v1953_v56 = vld [vmem:[%s16563_s5 + $0x350] sm:$0xff]  ;;  %v9806_v29 = vcombine.low %v2089_v28, %v2093_v27 }
 0x241   : > { %3754 = vmatmul.mubr.bf16.gmra.mxu1 %v12509_v33  ;;  %4102 = vmatprep.subr.bf16.mxu0 %v9703_v30  ;;  %v1957_v57 = vld [vmem:[%s16563_s5 + $0x370] sm:$0xff]  ;;  %v9678_v30 = vcombine.low %v1961_v6, %v1965_v26 }
 0x242   : > { %3887 = vmatmul.mubr.bf16.gmra.mxu0 %v12521_v53  ;;  %3763 = vmatprep.mubr.bf16.mxu1 %v12565_v3  ;;  %v2081_v62 = vld [vmem:[%s16563_s5 + $0x750] sm:$0xff]  ;;  %v9671_v7 = vcombine.high %v1953_v56, %v1957_v57 }
 0x243   : > { %3896 = vmatprep.mubr.bf16.mxu0 %v12567_v52  ;;  %3970 = vmatpush1.bf16.msra.mxu1 %v9574_v40  ;;  %v2085_v63 = vld [vmem:[%s16563_s5 + $0x770] sm:$0xff] }
 0x244   : > { %4103 = vmatpush1.bf16.msra.mxu0 %v9702_v42  ;;  %3971 = vmatprep.subr.bf16.mxu1 %v9567_v17  ;;  %v9799_v18 = vcombine.high %v2081_v62, %v2085_v63  ;;  %v1945_v54 = vld [vmem:[%s16563_s5 + $0x310] sm:$0xff]  ;;  %v9798_v21 = vcombine.low %v2081_v62, %v2085_v63  ;;  %v16897_v62 = vld [vmem:[#allocation18_spill] sm:$0xff] }
 0x245   : > { %4104 = vmatprep.subr.bf16.mxu0 %v9695_v38  ;;  %v1949_v40 = vld [vmem:[%s16563_s5 + $0x330] sm:$0xff]  ;;  %v9670_v38 = vcombine.low %v1953_v56, %v1957_v57 }
 0x246   : > { %v2073_v42 = vld [vmem:[%s16563_s5 + $0x710] sm:$0xff]  ;;  %v9663_v36 = vcombine.high %v1945_v54, %v1949_v40 }
 0x247   : > { %3972 = vmatpush1.bf16.msra.mxu1 %v9566_v44  ;;  %v2077_v17 = vld [vmem:[%s16563_s5 + $0x730] sm:$0xff] }
 0x248   : > { %4105 = vmatpush1.bf16.msra.mxu0 %v9694_v35  ;;  %3973 = vmatprep.subr.bf16.mxu1 %v9687_v16  ;;  %v9791_v51 = vcombine.high %v2073_v42, %v2077_v17  ;;  %v1937_v46 = vld [vmem:[%s16563_s5 + $0x2d0] sm:$0xff]  ;;  %v9790_v6 = vcombine.low %v2073_v42, %v2077_v17 }
 0x249   : > { %3764 = vmatmul.mubr.bf16.gmra.mxu1 %v12563_v61  ;;  %4106 = vmatprep.subr.bf16.mxu0 %v9815_v49  ;;  %v1941_v44 = vld [vmem:[%s16563_s5 + $0x2f0] sm:$0xff]  ;;  %v9662_v49 = vcombine.low %v1945_v54, %v1949_v40  ;;  %v16899_v40 = vld [vmem:[#allocation23_spill] sm:$0xff] }
 0x24a   : > { %3897 = vmatmul.mubr.bf16.gmra.mxu0 %v12572_v15  ;;  %3773 = vmatprep.mubr.bf16.mxu1 %v12612_v4  ;;  %v2065_v35 = vld [vmem:[%s16563_s5 + $0x6d0] sm:$0xff]  ;;  %v9655_v26 = vcombine.high %v1937_v46, %v1941_v44 }
 0x24b   : > { %3906 = vmatprep.mubr.bf16.mxu0 %v12617_v59  ;;  %3974 = vmatpush2.bf16.msra.mxu1 %v9686_v60  ;;  %v2069_v16 = vld [vmem:[%s16563_s5 + $0x6f0] sm:$0xff] }
 0x24c   : > { %4107 = vmatpush2.bf16.msra.mxu0 %v9814_v8  ;;  %3975 = vmatprep.subr.bf16.mxu1 %v9679_v32  ;;  %v9783_v28 = vcombine.high %v2065_v35, %v2069_v16  ;;  %v1929_v27 = vld [vmem:[%s16563_s5 + $0x290] sm:$0xff]  ;;  %v9782_v56 = vcombine.low %v2065_v35, %v2069_v16 }
 0x24d   : > { %4108 = vmatprep.subr.bf16.mxu0 %v9807_v43  ;;  %v1933_v60 = vld [vmem:[%s16563_s5 + $0x2b0] sm:$0xff]  ;;  %v9654_v43 = vcombine.low %v1937_v46, %v1941_v44 }
 0x24e   : > { %v2057_v8 = vld [vmem:[%s16563_s5 + $0x690] sm:$0xff]  ;;  %v9647_v57 = vcombine.high %v1929_v27, %v1933_v60  ;;  %v9646_v42 = vcombine.low %v1929_v27, %v1933_v60  ;;  %v1910_v27 = vld [vmem:[%s16563_s5 + $0x1f8] sm:$0xff]  ;;  %v16901_v60 = vld [vmem:[#allocation22_spill] sm:$0xff] }
 0x24f   : > { %3976 = vmatpush2.bf16.msra.mxu1 %v9678_v30  ;;  %v2061_v32 = vld [vmem:[%s16563_s5 + $0x6b0] sm:$0xff] }
 0x250   : > { %4109 = vmatpush2.bf16.msra.mxu0 %v9806_v29  ;;  %3977 = vmatprep.subr.bf16.mxu1 %v9671_v7  ;;  %v9775_v63 = vcombine.high %v2057_v8, %v2061_v32  ;;  %v1921_v30 = vld [vmem:[%s16563_s5 + $0x250] sm:$0xff]  ;;  %v16898_v7 = vld [vmem:[#allocation19_spill] sm:$0xff]  ;;  %v9774_v17 = vcombine.low %v2057_v8, %v2061_v32  ;;  %v2034_v8 = vld [vmem:[%s16563_s5 + $0x5d8] sm:$0xff] }
 0x251   : > { %3774 = vmatmul.mubr.bf16.gmra.mxu1 %v12610_v11  ;;  %4110 = vmatprep.subr.bf16.mxu0 %v9799_v18  ;;  %v1925_v29 = vld [vmem:[%s16563_s5 + $0x270] sm:$0xff]  ;;  %v2038_v32 = vld [vmem:[%s16563_s5 + $0x5f8] sm:$0xff] }
 0x252   : > { %3907 = vmatmul.mubr.bf16.gmra.mxu0 %v12615_v58  ;;  %3783 = vmatprep.mubr.bf16.mxu1 %v12663_v47  ;;  %v2049_v18 = vld [vmem:[%s16563_s5 + $0x650] sm:$0xff]  ;;  %v9638_v35 = vcombine.low %v1921_v30, %v1925_v29 }
 0x253   : > { %3916 = vmatprep.mubr.bf16.mxu0 %v12676_v50  ;;  %3978 = vmatpush2.bf16.msra.mxu1 %v9670_v38  ;;  %v2053_v54 = vld [vmem:[%s16563_s5 + $0x670] sm:$0xff]  ;;  %v9639_v38 = vcombine.high %v1921_v30, %v1925_v29  ;;  %v1898_v30 = vld [vmem:[%s16563_s5 + $0x198] sm:$0xff] }
 0x254   : > { %4111 = vmatpush2.bf16.msra.mxu0 %v9798_v21  ;;  %3979 = vmatprep.subr.bf16.mxu1 %v9663_v36  ;;  %v9767_v21 = vcombine.high %v2049_v18, %v2053_v54  ;;  %v1913_v36 = vld [vmem:[%s16563_s5 + $0x210] sm:$0xff]  ;;  %v9766_v16 = vcombine.low %v2049_v18, %v2053_v54  ;;  %v1902_v29 = vld [vmem:[%s16563_s5 + $0x1b8] sm:$0xff] }
 0x255   : > { %4112 = vmatprep.subr.bf16.mxu0 %v9791_v51  ;;  %v1917_v51 = vld [vmem:[%s16563_s5 + $0x230] sm:$0xff]  ;;  %v2026_v54 = vld [vmem:[%s16563_s5 + $0x598] sm:$0xff] }
 0x256   : > { %v2041_v46 = vld [vmem:[%s16563_s5 + $0x610] sm:$0xff] }
 0x257   : > { %3980 = vmatpush2.bf16.msra.mxu1 %v9662_v49  ;;  %v2045_v44 = vld [vmem:[%s16563_s5 + $0x630] sm:$0xff]  ;;  %v9631_v49 = vcombine.high %v1913_v36, %v1917_v51 }
 0x258   : > { %4113 = vmatpush2.bf16.msra.mxu0 %v9790_v6  ;;  %3981 = vmatprep.subr.bf16.mxu1 %v9655_v26  ;;  %v16900_v6 = vld [vmem:[#allocation20_spill] sm:$0xff]  ;;  %v9759_v26 = vcombine.high %v2041_v46, %v2045_v44 }
 0x259   : > { %3784 = vmatmul.mubr.bf16.gmra.mxu1 %v16897_v62  ;;  %4114 = vmatprep.subr.bf16.mxu0 %v9783_v28  ;;  %v1906_v28 = vld [vmem:[%s16563_s5 + $0x1d8] sm:$0xff] }
 0x25a   : > { %3917 = vmatmul.mubr.bf16.gmra.mxu0 %v16898_v7  ;;  %3793 = vmatprep.mubr.bf16.mxu1 %v12722_v25  ;;  %v9624_v18 = vcombine.low %v1906_v28, %v1910_v27 }
 0x25b   : > { %3926 = vmatprep.mubr.bf16.mxu0 %v16899_v40  ;;  %3982 = vmatpush2.bf16.msra.mxu1 %v9654_v43  ;;  %v9630_v43 = vcombine.low %v1913_v36, %v1917_v51  ;;  %v1894_v36 = vld [vmem:[%s16563_s5 + $0x178] sm:$0xff] }
 0x25c   : > { %4115 = vmatpush2.bf16.msra.mxu0 %v9782_v56  ;;  %3983 = vmatprep.subr.bf16.mxu1 %v9647_v57  ;;  %v9758_v56 = vcombine.low %v2041_v46, %v2045_v44  ;;  %v9625_v57 = vcombine.high %v1906_v28, %v1910_v27  ;;  %v9616_v46 = vcombine.low %v1898_v30, %v1902_v29  ;;  %v2018_v44 = vld [vmem:[%s16563_s5 + $0x558] sm:$0xff] }
 0x25d   : > { %4116 = vmatprep.subr.bf16.mxu0 %v9775_v63  ;;  %v9753_v63 = vcombine.high %v2034_v8, %v2038_v32  ;;  %v1882_v28 = vld [vmem:[%s16563_s5 + $0x118] sm:$0xff] }
 0x25e   : > { %v1886_v27 = vld [vmem:[%s16563_s5 + $0x138] sm:$0xff] }
 0x25f   : > { %3984 = vmatpush2.bf16.msra.mxu1 %v9646_v42  ;;  %v2030_v42 = vld [vmem:[%s16563_s5 + $0x5b8] sm:$0xff] }
 0x260   : > { %4117 = vmatpush2.bf16.msra.mxu0 %v9774_v17  ;;  %3985 = vmatprep.subr.bf16.mxu1 %v9639_v38  ;;  %v9752_v17 = vcombine.low %v2034_v8, %v2038_v32  ;;  %v9617_v38 = vcombine.high %v1898_v30, %v1902_v29  ;;  %v9745_v51 = vcombine.high %v2026_v54, %v2030_v42  ;;  %v2010_v8 = vld [vmem:[%s16563_s5 + $0x518] sm:$0xff] }
 0x261   : > { %3794 = vmatmul.mubr.bf16.gmra.mxu1 %v16900_v6  ;;  %4118 = vmatprep.subr.bf16.mxu0 %v9767_v21  ;;  %v1890_v21 = vld [vmem:[%s16563_s5 + $0x158] sm:$0xff] }
 0x262   : > { %3927 = vmatmul.mubr.bf16.gmra.mxu0 %v16901_v60  ;;  %3803 = vmatprep.mubr.bf16.mxu1 %v12771_v31  ;;  %v2014_v32 = vld [vmem:[%s16563_s5 + $0x538] sm:$0xff] }
 0x263   : > { %3936 = vmatprep.mubr.bf16.mxu0 %v12773_v48  ;;  %3986 = vmatpush2.bf16.msra.mxu1 %v9638_v35  ;;  %v2022_v35 = vld [vmem:[%s16563_s5 + $0x578] sm:$0xff] }
 0x264   : > { %4119 = vmatpush2.bf16.msra.mxu0 %v9766_v16  ;;  %3987 = vmatprep.subr.bf16.mxu1 %v9631_v49  ;;  %v9609_v16 = vcombine.high %v1890_v21, %v1894_v36  ;;  %v9744_v49 = vcombine.low %v2026_v54, %v2030_v42  ;;  %v1874_v30 = vld [vmem:[%s16563_s5 + $0xd8] sm:$0xff]  ;;  %v9600_v42 = vcombine.low %v1882_v28, %v1886_v27 }
 0x265   : > { %4120 = vmatprep.subr.bf16.mxu0 %v9759_v26  ;;  %v9737_v26 = vcombine.high %v2018_v44, %v2022_v35  ;;  %v1878_v29 = vld [vmem:[%s16563_s5 + $0xf8] sm:$0xff] }
 0x266   : > { %v2006_v54 = vld [vmem:[%s16563_s5 + $0x4f8] sm:$0xff] }
 0x267   : > { %3988 = vmatpush2.bf16.msra.mxu1 %v9630_v43  ;;  %v9608_v43 = vcombine.low %v1890_v21, %v1894_v36  ;;  %v1866_v36 = vld [vmem:[%s16563_s5 + $0x98] sm:$0xff] }
 0x268   : > { %4121 = vmatpush2.bf16.msra.mxu0 %v9758_v56  ;;  %4223 = vmatprep.subr.bf16.mxu1 %v9625_v57  ;;  %v9736_v56 = vcombine.low %v2018_v44, %v2022_v35  ;;  %v9601_v57 = vcombine.high %v1882_v28, %v1886_v27  ;;  %v1998_v44 = vld [vmem:[%s16563_s5 + $0x4b8] sm:$0xff]  ;;  %v9592_v35 = vcombine.low %v1874_v30, %v1878_v29 }
 0x269   : > { %3804 = vmatmul.mubr.bf16.gmra.mxu1 %v12769_v55  ;;  %4356 = vmatprep.subr.bf16.mxu0 %v9753_v63  ;;  %v9729_v63 = vcombine.high %v2010_v8, %v2014_v32  ;;  %v1858_v28 = vld [vmem:[%s16563_s5 + $0x58] sm:$0xff] }
 0x26a   : > { %3937 = vmatmul.mubr.bf16.gmra.mxu0 %v12775_v9  ;;  %3813 = vmatprep.mubr.bf16.mxu1 %v12788_v41  ;;  %v1862_v27 = vld [vmem:[%s16563_s5 + $0x78] sm:$0xff] }
 0x26b   : > { %3946 = vmatprep.mubr.bf16.mxu0 %v12792_v5 }
 0x271   : > { %3814 = vmatmul.mubr.bf16.gmra.mxu1 %v12790_v14 }
 0x272   : > { %3947 = vmatmul.mubr.bf16.gmra.mxu0 %v12794_v23  ;;  %3989 = vmatprep.mubr.bf16.mxu1 %v12367_v22 }
 0x273   : > { %4122 = vmatprep.mubr.bf16.mxu0 %v12372_v12 }
 0x279   : > { %3990 = vmatmul.mubr.bf16.vlgmr.msra.gmra.mxu1 %v16895_v24 }
 0x27a   : > { %4123 = vmatmul.mubr.bf16.vlgmr.msra.gmra.mxu0 %v16896_v10  ;;  %4224 = vmatpush1.bf16.msra.mxu1 %v9624_v18  ;;  %v2002_v18 = vld [vmem:[%s16563_s5 + $0x4d8] sm:$0xff] }
 0x27b   : > { %3999 = vmatprep.mubr.bf16.mxu1 %v12401_v19  ;;  %4132 = vmatprep.mubr.bf16.mxu0 %v12409_v13  ;;  %v9721_v21 = vcombine.high %v2002_v18, %v2006_v54 }
 0x27c   : > { %4357 = vmatpush1.bf16.msra.mxu0 %v9752_v17  ;;  %4225 = vmatprep.subr.bf16.mxu1 %v9617_v38  ;;  %v9728_v17 = vcombine.low %v2010_v8, %v2014_v32  ;;  %v9593_v38 = vcombine.high %v1874_v30, %v1878_v29  ;;  %v1986_v8 = vld [vmem:[%s16563_s5 + $0x458] sm:$0xff] }
 0x27d   : > { %4358 = vmatprep.subr.bf16.mxu0 %v9745_v51  ;;  %v1870_v51 = vld [vmem:[%s16563_s5 + $0xb8] sm:$0xff] }
 0x27e   : > { %4226 = vmatpush1.bf16.msra.mxu1 %v9616_v46  ;;  %v1994_v46 = vld [vmem:[%s16563_s5 + $0x498] sm:$0xff] }
 0x27f   : > { %4227 = vmatprep.subr.bf16.mxu1 %v9609_v16  ;;  %v9720_v16 = vcombine.low %v2002_v18, %v2006_v54  ;;  %v1990_v32 = vld [vmem:[%s16563_s5 + $0x478] sm:$0xff]  ;;  %v16902_v54 = vld [vmem:[#allocation12_spill] sm:$0xff] }
 0x280   : > { %4359 = vmatpush1.bf16.msra.mxu0 %v9744_v49  ;;  %v9585_v49 = vcombine.high %v1866_v36, %v1870_v51  ;;  %v9705_v30 = vcombine.high %v1986_v8, %v1990_v32  ;;  %v1850_v29 = vld [vmem:[%s16563_s5 + $0x18] sm:$0xff] }
 0x281   : > { %4000 = vmatmul.mubr.bf16.gmra.mxu1 %v12407_v37  ;;  %4360 = vmatprep.subr.bf16.mxu0 %v9737_v26  ;;  %v9713_v26 = vcombine.high %v1994_v46, %v1998_v44  ;;  %v1854_v18 = vld [vmem:[%s16563_s5 + $0x38] sm:$0xff] }
 0x282   : > { %4133 = vmatmul.mubr.bf16.gmra.mxu0 %v12417_v39  ;;  %4009 = vmatprep.mubr.bf16.mxu1 %v12454_v34 }
 0x283   : > { %4142 = vmatprep.mubr.bf16.mxu0 %v12474_v1  ;;  %4228 = vmatpush1.bf16.msra.mxu1 %v9608_v43  ;;  %v9584_v43 = vcombine.low %v1866_v36, %v1870_v51  ;;  %v9704_v36 = vcombine.low %v1986_v8, %v1990_v32  ;;  %v16903_v51 = vld [vmem:[#allocation11_spill] sm:$0xff]  ;;  %v2098_v8 = vld [vmem:[%s16563_s5 + $0x7d8] sm:$0xff] }
 0x284   : > { %4361 = vmatpush1.bf16.msra.mxu0 %v9736_v56  ;;  %4229 = vmatprep.subr.bf16.mxu1 %v9601_v57  ;;  %v2103_v56 = vld [vmem:[%s16564_s6] sm:$0xff]  ;;  %v9712_v57 = vcombine.low %v1994_v46, %v1998_v44  ;;  %v9569_v44 = vcombine.high %v1850_v29, %v1854_v18  ;;  %v2102_v32 = vld [vmem:[%s16563_s5 + $0x7f8] sm:$0xff] }
 0x285   : > { %4362 = vmatprep.subr.bf16.mxu0 %v9729_v63  ;;  %v9577_v63 = vcombine.high %v1858_v28, %v1862_v27  ;;  %v13149_v46 = vrot.slane %v2103_v56, %v16903_v51 }
 0x287   : > { %4230 = vmatpush1.bf16.msra.mxu1 %v9600_v42  ;;  %v13140_v42 = vrot.slane %v2103_v56, %v16902_v54  ;;  %v9568_v56 = vcombine.low %v1850_v29, %v1854_v18 }
 0x288   : > { %4363 = vmatpush1.bf16.msra.mxu0 %v9728_v17  ;;  %4231 = vmatprep.subr.bf16.mxu1 %v9593_v38  ;;  %v1978_v17 = vld [vmem:[%s16563_s5 + $0x418] sm:$0xff] }
 0x289   : > { %4010 = vmatmul.mubr.bf16.gmra.mxu1 %v12452_v2  ;;  %4364 = vmatprep.subr.bf16.mxu0 %v9721_v21  ;;  %v1982_v38 = vld [vmem:[%s16563_s5 + $0x438] sm:$0xff]  ;;  %v9576_v21 = vcombine.low %v1858_v28, %v1862_v27  ;;  %v3592_v27 = vpop.f32.mrf.mxu0 }
 0x28a   : > { %4143 = vmatmul.mubr.bf16.gmra.mxu0 %v12462_v45  ;;  %4019 = vmatprep.mubr.bf16.mxu1 %v12517_v0 }
 0x28b   : > { %4152 = vmatprep.mubr.bf16.mxu0 %v12523_v20  ;;  %4232 = vmatpush1.bf16.msra.mxu1 %v9592_v35  ;;  %v3459_v35 = vpop.f32.mrf.mxu1 }
 0x28c   : > { %4365 = vmatpush1.bf16.msra.mxu0 %v9720_v16  ;;  %4233 = vmatprep.subr.bf16.mxu1 %v9585_v49  ;;  %v9697_v16 = vcombine.high %v1978_v17, %v1982_v38  ;;  %v1970_v49 = vld [vmem:[%s16563_s5 + $0x3d8] sm:$0xff]  ;;  %v3460_v28 = vadd.f32 %v3459_v35, %v13140_v42  ;;  %v3594_v35 = vpop.f32.mrf.mxu0 }
 0x28d   : > { %4366 = vmatprep.subr.bf16.mxu0 %v9713_v26  ;;  %v1974_v26 = vld [vmem:[%s16563_s5 + $0x3f8] sm:$0xff] }
 0x28e   : > { %v9689_v51 = vcombine.high %v1970_v49, %v1974_v26 }
 0x28f   : > { %4234 = vmatpush1.bf16.msra.mxu1 %v9584_v43  ;;  %v3461_v43 = vpop.f32.mrf.mxu1 }
 0x290   : > { %4367 = vmatpush1.bf16.msra.mxu0 %v9712_v57  ;;  %4235 = vmatprep.subr.bf16.mxu1 %v9577_v63  ;;  %v9696_v57 = vcombine.low %v1978_v17, %v1982_v38  ;;  %v3593_v63 = vadd.f32 %v3592_v27, %v3460_v28  ;;  %v3596_v17 = vpop.f32.mrf.mxu0  ;;  %v13181_v38 = vld [vmem:[%s16563_s5 + $0x798] sm:$0xff] }
 0x291   : > { %4020 = vmatmul.mubr.bf16.gmra.mxu1 %v12509_v33  ;;  %4368 = vmatprep.subr.bf16.mxu0 %v9705_v30  ;;  %v3462_v30 = vadd.f32 %v3461_v43, %v13149_v46  ;;  %v3463_v54 = vpop.f32.mrf.mxu1 }
 0x292   : > { %4153 = vmatmul.mubr.bf16.gmra.mxu0 %v12521_v53  ;;  %4029 = vmatprep.mubr.bf16.mxu1 %v12565_v3  ;;  %v9817_v3 = vcombine.high %v2098_v8, %v2102_v32  ;;  %v1962_v53 = vld [vmem:[%s16563_s5 + $0x398] sm:$0xff]  ;;  %v3464_v18 = vadd.f32 %v3463_v54, %v13140_v42  ;;  %v4649_v28 = vmul.f32 0.01, %v3593_v63  ;;  %v3598_v43 = vpop.f32.mrf.mxu0  ;;  %v9816_v54 = vcombine.low %v2098_v8, %v2102_v32 }
 0x293   : > { %4162 = vmatprep.mubr.bf16.mxu0 %v12567_v52  ;;  %4236 = vmatpush1.bf16.msra.mxu1 %v9576_v21  ;;  %v1966_v21 = vld [vmem:[%s16563_s5 + $0x3b8] sm:$0xff]  ;;  %v13175_v29 = vadd.f32 %v3594_v35, %v3462_v30  ;;  %vm4489_vm9 = vcmp.gt.f32.partialorder %v3593_v63, 0.0 }
 0x294   : > { %4369 = vmatpush1.bf16.msra.mxu0 %v9704_v36  ;;  %4237 = vmatprep.subr.bf16.mxu1 %v9569_v44  ;;  %v13186_v36 = vld [vmem:[%s16563_s5 + $0x7b8] sm:$0xff]  ;;  %v3465_v44 = vpop.f32.mrf.mxu1  ;;  %v3597_v27 = vadd.f32 %v3596_v17, %v3464_v18  ;;  %v9681_v30 = vcombine.high %v1962_v53, %v1966_v21 }
 0x295   : > { %4370 = vmatprep.subr.bf16.mxu0 %v9697_v16  ;;  %v9688_v16 = vcombine.low %v1970_v49, %v1974_v26  ;;  %v13191_v35 = vld [vmem:[%s16563_s5 + $0x358] sm:$0xff]  ;;  %v3466_v49 = vadd.f32 %v3465_v44, %v13149_v46  ;;  %v9808_v18 = vcombine.low %v13181_v38, %v13186_v36  ;;  %v4650_v17 = vmul.f32 0.01, %v13175_v29 }
 0x296   : > { %v13196_v52 = vld [vmem:[%s16563_s5 + $0x378] sm:$0xff]  ;;  %vm4497_vm10 = vcmp.gt.f32.partialorder %v3597_v27, 0.0  ;;  %v4657_v32 = vmul.f32 0.01, %v3597_v27  ;;  %vm4490_vm11 = vcmp.gt.f32.partialorder %v13175_v29, 0.0 }
 0x297   : > { %4238 = vmatpush1.bf16.msra.mxu1 %v9568_v56  ;;  %v13205_v26 = vld [vmem:[%s16563_s5 + $0x758] sm:$0xff]  ;;  %v3602_v56 = vpop.f32.mrf.mxu0  ;;  %v3599_v44 = vadd.f32 %v3598_v43, %v3466_v49 }
 0x298   : > { %4371 = vmatpush1.bf16.msra.mxu0 %v9696_v57  ;;  %4239 = vmatprep.subr.bf16.mxu1 %v9689_v51  ;;  %v9809_v51 = vcombine.high %v13181_v38, %v13186_v36  ;;  %v13210_v8 = vld [vmem:[%s16563_s5 + $0x778] sm:$0xff]  ;;  %v9680_v57 = vcombine.low %v1962_v53, %v1966_v21  ;;  %v4817_v33 = vsel %vm4497_vm10, %v3597_v27, %v4657_v32 }
 0x299   : > { %4030 = vmatmul.mubr.bf16.gmra.mxu1 %v12563_v61  ;;  %4372 = vmatprep.subr.bf16.mxu0 %v9817_v3  ;;  %v3469_v3 = vpop.f32.mrf.mxu1  ;;  %v3604_v21 = vpop.f32.mrf.mxu0  ;;  %v9801_v38 = vcombine.high %v13205_v26, %v13210_v8  ;;  %vm4498_vm12 = vcmp.gt.f32.partialorder %v3599_v44, 0.0  ;;  %v4658_v43 = vmul.f32 0.01, %v3599_v44 }
 0x29a   : > { %4163 = vmatmul.mubr.bf16.gmra.mxu0 %v12572_v15  ;;  %4039 = vmatprep.mubr.bf16.mxu1 %v12612_v4  ;;  %v3470_v61 = vadd.f32 %v3469_v3, %v13140_v42  ;;  %v9673_v15 = vcombine.high %v13191_v35, %v13196_v52  ;;  %v4809_v4 = vsel %vm4489_vm9, %v3593_v63, %v4649_v28  ;;  %v13230_v63 = vld [vmem:[%s16563_s5 + $0x318] sm:$0xff] }
 0x29b   : > { %4172 = vmatprep.mubr.bf16.mxu0 %v12617_v59  ;;  %4240 = vmatpush2.bf16.msra.mxu1 %v9688_v16  ;;  %v3471_v53 = vpop.f32.mrf.mxu1  ;;  %v13225_v36 = vpack.c.bf16 %v4817_v33, %v4809_v4  ;;  %v13235_v28 = vld [vmem:[%s16563_s5 + $0x338] sm:$0xff]  ;;  %v9672_v33 = vcombine.low %v13191_v35, %v13196_v52  ;;  %v4810_v52 = vsel %vm4490_vm11, %v13175_v29, %v4650_v17 }
 0x29c   : > { %4373 = vmatpush2.bf16.msra.mxu0 %v9816_v54  ;;  %4241 = vmatprep.subr.bf16.mxu1 %v9681_v30  ;;  %v3603_v16 = vadd.f32 %v3602_v56, %v3470_v61  ;;  %v3472_v27 = vadd.f32 %v3471_v53, %v13149_v46  ;;  %v3606_v30 = vpop.f32.mrf.mxu0  ;;  %v13243_v61 = vld [vmem:[%s16563_s5 + $0x718] sm:$0xff]  ;;  %v4818_v35 = vsel %vm4498_vm12, %v3599_v44, %v4658_v43 }
 0x29d   : > { %16904 = vst [vmem:[#allocation24_spill] sm:$0xff] %v13225_v36  ;;  %4374 = vmatprep.subr.bf16.mxu0 %v9809_v51  ;;  %v3473_v54 = vpop.f32.mrf.mxu1  ;;  %v13248_v4 = vld [vmem:[%s16563_s5 + $0x738] sm:$0xff]  ;;  %v9800_v51 = vcombine.low %v13205_v26, %v13210_v8  ;;  %v9665_v53 = vcombine.high %v13230_v63, %v13235_v28  ;;  %v13264_v26 = vpack.c.bf16 %v4818_v35, %v4810_v52 }
 0x29e   : > { %v3474_v49 = vadd.f32 %v3473_v54, %v13140_v42  ;;  %v4665_v32 = vmul.f32 0.01, %v3603_v16  ;;  %v3605_v3 = vadd.f32 %v3604_v21, %v3472_v27  ;;  %vm4505_vm13 = vcmp.gt.f32.partialorder %v3603_v16, 0.0  ;;  %v3608_v17 = vpop.f32.mrf.mxu0  ;;  %v13278_v44 = vld [vmem:[%s16563_s5 + $0x6d8] sm:$0xff] }
 0x29f   : > { %4242 = vmatpush2.bf16.msra.mxu1 %v9680_v57  ;;  %v3475_v56 = vpop.f32.mrf.mxu1  ;;  %v13262_v57 = vld [vmem:[%s16563_s5 + $0x2d8] sm:$0xff]  ;;  %16905 = vst [vmem:[#allocation25_spill] sm:$0xff] %v13264_v26  ;;  %v9664_v27 = vcombine.low %v13230_v63, %v13235_v28  ;;  %v9792_v54 = vcombine.low %v13243_v61, %v13248_v4 }
 0x2a0   : > { %4375 = vmatpush2.bf16.msra.mxu0 %v9808_v18  ;;  %4243 = vmatprep.subr.bf16.mxu1 %v9673_v15  ;;  %v3607_v29 = vadd.f32 %v3606_v30, %v3474_v49  ;;  %v3476_v8 = vadd.f32 %v3475_v56, %v13149_v46  ;;  %v9793_v15 = vcombine.high %v13243_v61, %v13248_v4  ;;  %v13273_v18 = vld [vmem:[%s16563_s5 + $0x2f8] sm:$0xff]  ;;  %vm4506_vm15 = vcmp.gt.f32.partialorder %v3605_v3, 0.0  ;;  %v3612_v36 = vpop.f32.mrf.mxu0 }
 0x2a1   : > { %4040 = vmatmul.mubr.bf16.gmra.mxu1 %v12610_v11  ;;  %4376 = vmatprep.subr.bf16.mxu0 %v9801_v38  ;;  %v13283_v21 = vld [vmem:[%s16563_s5 + $0x6f8] sm:$0xff]  ;;  %v4666_v38 = vmul.f32 0.01, %v3605_v3  ;;  %v3479_v43 = vpop.f32.mrf.mxu1  ;;  %v4825_v35 = vsel %vm4505_vm13, %v3603_v16, %v4665_v32  ;;  %v9657_v63 = vcombine.high %v13262_v57, %v13273_v18 }
 0x2a2   : > { %4173 = vmatmul.mubr.bf16.gmra.mxu0 %v12615_v58  ;;  %4049 = vmatprep.mubr.bf16.mxu1 %v12663_v47  ;;  %vm4513_vm14 = vcmp.gt.f32.partialorder %v3607_v29, 0.0  ;;  %v4673_v30 = vmul.f32 0.01, %v3607_v29  ;;  %v3609_v49 = vadd.f32 %v3608_v17, %v3476_v8  ;;  %v3480_v52 = vadd.f32 %v3479_v43, %v13140_v42  ;;  %v13302_v16 = vld [vmem:[%s16563_s5 + $0x298] sm:$0xff]  ;;  %v3614_v43 = vpop.f32.mrf.mxu0 }
 0x2a3   : > { %4182 = vmatprep.mubr.bf16.mxu0 %v12676_v50  ;;  %4244 = vmatpush2.bf16.msra.mxu1 %v9672_v33  ;;  %v3481_v56 = vpop.f32.mrf.mxu1  ;;  %v9785_v28 = vcombine.high %v13278_v44, %v13283_v21  ;;  %v13307_v33 = vld [vmem:[%s16563_s5 + $0x2b8] sm:$0xff] }
 0x2a4   : > { %4377 = vmatpush2.bf16.msra.mxu0 %v9800_v51  ;;  %4245 = vmatprep.subr.bf16.mxu1 %v9665_v53  ;;  %v4833_v61 = vsel %vm4513_vm14, %v3607_v29, %v4673_v30  ;;  %vm4514_vm0 = vcmp.gt.f32.partialorder %v3609_v49, 0.0  ;;  %v4674_v4 = vmul.f32 0.01, %v3609_v49  ;;  %v3482_v8 = vadd.f32 %v3481_v56, %v13149_v46  ;;  %v13316_v17 = vld [vmem:[%s16563_s5 + $0x698] sm:$0xff] }
 0x2a5   : > { %4378 = vmatprep.subr.bf16.mxu0 %v9793_v15  ;;  %v13309_v51 = vpack.c.bf16 %v4833_v61, %v4825_v35  ;;  %v3613_v32 = vadd.f32 %v3612_v36, %v3480_v52  ;;  %v3483_v53 = vpop.f32.mrf.mxu1  ;;  %v9656_v29 = vcombine.low %v13262_v57, %v13273_v18  ;;  %v2062_v15 = vld [vmem:[%s16563_s5 + $0x6b8] sm:$0xff]  ;;  %v9784_v36 = vcombine.low %v13278_v44, %v13283_v21 }
 0x2a6   : > { %v3484_v30 = vadd.f32 %v3483_v53, %v13140_v42  ;;  %v4826_v52 = vsel %vm4506_vm15, %v3605_v3, %v4666_v38  ;;  %v4834_v57 = vsel %vm4514_vm0, %v3609_v49, %v4674_v4  ;;  %v13326_v18 = vadd.f32 %v3614_v43, %v3482_v8  ;;  %v13333_v61 = vld [vmem:[%s16563_s5 + $0x258] sm:$0xff]  ;;  %v3616_v38 = vpop.f32.mrf.mxu0 }
 0x2a7   : > { %16906 = vst [vmem:[#allocation26_spill] sm:$0xff] %v13309_v51  ;;  %4246 = vmatpush2.bf16.msra.mxu1 %v9664_v27  ;;  %v3485_v35 = vpop.f32.mrf.mxu1  ;;  %v9649_v56 = vcombine.high %v13302_v16, %v13307_v33  ;;  %v13338_v44 = vld [vmem:[%s16563_s5 + $0x278] sm:$0xff]  ;;  %v13340_v3 = vpack.c.bf16 %v4834_v57, %v4826_v52  ;;  %v4681_v21 = vmul.f32 0.01, %v3613_v32  ;;  %vm4521_vm1 = vcmp.gt.f32.partialorder %v3613_v32, 0.0 }
 0x2a8   : > { %4379 = vmatpush2.bf16.msra.mxu0 %v9792_v54  ;;  %4247 = vmatprep.subr.bf16.mxu1 %v9657_v63  ;;  %v3486_v27 = vadd.f32 %v3485_v35, %v13149_v46  ;;  %v9777_v54 = vcombine.high %v13316_v17, %v2062_v15  ;;  %v3617_v49 = vadd.f32 %v3616_v38, %v3484_v30  ;;  %v2050_v63 = vld [vmem:[%s16563_s5 + $0x658] sm:$0xff]  ;;  %v3618_v8 = vpop.f32.mrf.mxu0  ;;  %vm4522_vm3 = vcmp.gt.f32.partialorder %v13326_v18, 0.0 }
 0x2a9   : > { %16907 = vst [vmem:[#allocation27_spill] sm:$0xff] %v13340_v3  ;;  %4050 = vmatmul.mubr.bf16.gmra.mxu1 %v16897_v62  ;;  %4380 = vmatprep.subr.bf16.mxu0 %v9785_v28  ;;  %v2054_v4 = vld [vmem:[%s16563_s5 + $0x678] sm:$0xff]  ;;  %v9648_v28 = vcombine.low %v13302_v16, %v13307_v33  ;;  %v9776_v53 = vcombine.low %v13316_v17, %v2062_v15  ;;  %v3489_v57 = vpop.f32.mrf.mxu1  ;;  %v4682_v33 = vmul.f32 0.01, %v13326_v18 }
 0x2aa   : > { %4183 = vmatmul.mubr.bf16.gmra.mxu0 %v16898_v7  ;;  %4059 = vmatprep.mubr.bf16.mxu1 %v12722_v25  ;;  %v9640_v43 = vcombine.low %v13333_v61, %v13338_v44  ;;  %vm4529_vm2 = vcmp.gt.f32.partialorder %v3617_v49, 0.0  ;;  %v4689_v30 = vmul.f32 0.01, %v3617_v49  ;;  %v3619_v52 = vadd.f32 %v3618_v8, %v3486_v27  ;;  %v3622_v15 = vpop.f32.mrf.mxu0 }
 0x2ab   : > { %4192 = vmatprep.mubr.bf16.mxu0 %v16899_v40  ;;  %4248 = vmatpush2.bf16.msra.mxu1 %v9656_v29  ;;  %v9641_v35 = vcombine.high %v13333_v61, %v13338_v44  ;;  %v1914_v29 = vld [vmem:[%s16563_s5 + $0x218] sm:$0xff]  ;;  %v4841_v16 = vsel %vm4521_vm1, %v3613_v32, %v4681_v21  ;;  %v3490_v17 = vadd.f32 %v3489_v57, %v13140_v42  ;;  %v3491_v21 = vpop.f32.mrf.mxu1 }
 0x2ac   : > { %4381 = vmatpush2.bf16.msra.mxu0 %v9784_v36  ;;  %4249 = vmatprep.subr.bf16.mxu1 %v9649_v56  ;;  %v9769_v38 = vcombine.high %v2050_v63, %v2054_v4  ;;  %v1918_v36 = vld [vmem:[%s16563_s5 + $0x238] sm:$0xff]  ;;  %v4849_v32 = vsel %vm4529_vm2, %v3617_v49, %v4689_v30  ;;  %vm4530_vm4 = vcmp.gt.f32.partialorder %v3619_v52, 0.0  ;;  %v4690_v44 = vmul.f32 0.01, %v3619_v52  ;;  %v3624_v57 = vpop.f32.mrf.mxu0 }
 0x2ad   : > { %4382 = vmatprep.subr.bf16.mxu0 %v9777_v54  ;;  %v2042_v56 = vld [vmem:[%s16563_s5 + $0x618] sm:$0xff]  ;;  %v13378_v27 = vpack.c.bf16 %v4849_v32, %v4841_v16  ;;  %v3623_v54 = vadd.f32 %v3622_v15, %v3490_v17  ;;  %v3492_v8 = vadd.f32 %v3491_v21, %v13149_v46  ;;  %v9768_v51 = vcombine.low %v2050_v63, %v2054_v4  ;;  %v3493_v3 = vpop.f32.mrf.mxu1 }
 0x2ae   : > { %v2046_v61 = vld [vmem:[%s16563_s5 + $0x638] sm:$0xff]  ;;  %v9633_v26 = vcombine.high %v1914_v29, %v1918_v36  ;;  %v4850_v25 = vsel %vm4530_vm4, %v3619_v52, %v4690_v44  ;;  %v3494_v30 = vadd.f32 %v3493_v3, %v13140_v42  ;;  %v3626_v7 = vpop.f32.mrf.mxu0  ;;  %v4842_v16 = vsel %vm4522_vm3, %v13326_v18, %v4682_v33  ;;  %v10472_v33 = vld [vmem:[%s16565_s7 + $0xe4] ss:$16 sps:$4 sm:$0xff]  }
 0x2af   : > { %4250 = vmatpush2.bf16.msra.mxu1 %v9648_v28  ;;  %v9761_v40 = vcombine.high %v2042_v56, %v2046_v61  ;;  %v3625_v49 = vadd.f32 %v3624_v57, %v3492_v8  ;;  %v3495_v63 = vpop.f32.mrf.mxu1  ;;  %v13388_v4 = vpack.c.bf16 %v4850_v25, %v4842_v16  ;;  %v4697_v28 = vmul.f32 0.01, %v3623_v54 }
 0x2b0   : > { %4383 = vmatpush2.bf16.msra.mxu0 %v9776_v53  ;;  %4251 = vmatprep.subr.bf16.mxu1 %v9641_v35  ;;  %v3627_v53 = vadd.f32 %v3626_v7, %v3494_v30  ;;  %v3628_v52 = vpop.f32.mrf.mxu0  ;;  %v9632_v3 = vcombine.low %v1914_v29, %v1918_v36  ;;  %vm4537_vm5 = vcmp.gt.f32.partialorder %v3623_v54, 0.0  ;;  %v3496_v35 = vadd.f32 %v3495_v63, %v13149_v46  ;;  %v10475_v7 = vld [vmem:[%s16565_s7 + $0x2e4] ss:$16 sps:$4 sm:$0xff]  }
 0x2b1   : > { %4060 = vmatmul.mubr.bf16.gmra.mxu1 %v16900_v6  ;;  %4384 = vmatprep.subr.bf16.mxu0 %v9769_v38  ;;  %16908 = vst [vmem:[#allocation28_spill] sm:$0xff] %v13388_v4  ;;  %v9760_v18 = vcombine.low %v2042_v56, %v2046_v61  ;;  %v3499_v17 = vpop.f32.mrf.mxu1  ;;  %vm4538_vm7 = vcmp.gt.f32.partialorder %v3625_v49, 0.0 }
 0x2b2   : > { %4193 = vmatmul.mubr.bf16.gmra.mxu0 %v16901_v60  ;;  %4069 = vmatprep.mubr.bf16.mxu1 %v12771_v31  ;;  %vm4545_vm6 = vcmp.gt.f32.partialorder %v3627_v53, 0.0  ;;  %v4705_v25 = vmul.f32 0.01, %v3627_v53  ;;  %v3629_v29 = vadd.f32 %v3628_v52, %v3496_v35  ;;  %v3500_v15 = vadd.f32 %v3499_v17, %v13140_v42  ;;  %v3632_v38 = vpop.f32.mrf.mxu0 }
 0x2b3   : > { %4202 = vmatprep.mubr.bf16.mxu0 %v12773_v48  ;;  %4252 = vmatpush2.bf16.msra.mxu1 %v9640_v43  ;;  %v4698_v43 = vmul.f32 0.01, %v3625_v49  ;;  %v3501_v36 = vpop.f32.mrf.mxu1 }
 0x2b4   : > { %4385 = vmatpush2.bf16.msra.mxu0 %v9768_v51  ;;  %4253 = vmatprep.subr.bf16.mxu1 %v9633_v26  ;;  %v4857_v51 = vsel %vm4537_vm5, %v3623_v54, %v4697_v28  ;;  %v4865_v26 = vsel %vm4545_vm6, %v3627_v53, %v4705_v25  ;;  %vm4546_vm8 = vcmp.gt.f32.partialorder %v3629_v29, 0.0  ;;  %v4706_v61 = vmul.f32 0.01, %v3629_v29 }
 0x2b5   : > { %4386 = vmatprep.subr.bf16.mxu0 %v9761_v40  ;;  %v13399_v56 = vpack.c.bf16 %v4865_v26, %v4857_v51  ;;  %v3633_v32 = vadd.f32 %v3632_v38, %v3500_v15  ;;  %v3634_v40 = vpop.f32.mrf.mxu0  ;;  %v3502_v44 = vadd.f32 %v3501_v36, %v13149_v46  ;;  %v3503_v21 = vpop.f32.mrf.mxu1  ;;  %v4858_v57 = vsel %vm4538_vm7, %v3625_v49, %v4698_v43 }
 0x2b6   : > { %v3504_v54 = vadd.f32 %v3503_v21, %v13140_v42  ;;  %v4866_v30 = vsel %vm4546_vm8, %v3629_v29, %v4706_v61 }
 0x2b7   : > { %4254 = vmatpush2.bf16.msra.mxu1 %v9632_v3  ;;  %v3636_v8 = vpop.f32.mrf.mxu0  ;;  %v4713_v16 = vmul.f32 0.01, %v3633_v32  ;;  %v3635_v63 = vadd.f32 %v3634_v40, %v3502_v44  ;;  %v3505_v28 = vpop.f32.mrf.mxu1  ;;  %v13408_v53 = vpack.c.bf16 %v4866_v30, %v4858_v57  ;;  %vm4553_vm9 = vcmp.gt.f32.partialorder %v3633_v32, 0.0 }
 0x2b8   : > { %4387 = vmatpush2.bf16.msra.mxu0 %v9760_v18  ;;  %6607 = vmatprep.subr.bf16.mxu1 %v10472_v33  ;;  %v3637_v52 = vadd.f32 %v3636_v8, %v3504_v54  ;;  %v3506_v3 = vadd.f32 %v3505_v28, %v13149_v46 }
 0x2b9   : > { %4070 = vmatmul.mubr.bf16.gmra.mxu1 %v12769_v55  ;;  %6740 = vmatprep.subr.bf16.mxu0 %v10475_v7  ;;  %v3638_v35 = vpop.f32.mrf.mxu0  ;;  %v4714_v18 = vmul.f32 0.01, %v3635_v63  ;;  %v3509_v33 = vpop.f32.mrf.mxu1  ;;  %v4873_v43 = vsel %vm4553_vm9, %v3633_v32, %v4713_v16  ;;  %vm4554_vm11 = vcmp.gt.f32.partialorder %v3635_v63, 0.0 }
 0x2ba   : > { %4203 = vmatmul.mubr.bf16.gmra.mxu0 %v12775_v9  ;;  %4079 = vmatprep.mubr.bf16.mxu1 %v12788_v41  ;;  %vm4561_vm10 = vcmp.gt.f32.partialorder %v3637_v52, 0.0  ;;  %v4721_v25 = vmul.f32 0.01, %v3637_v52  ;;  %v3639_v17 = vadd.f32 %v3638_v35, %v3506_v3  ;;  %v3510_v49 = vadd.f32 %v3509_v33, %v13140_v42 }
 0x2bb   : > { %4212 = vmatprep.mubr.bf16.mxu0 %v12792_v5  ;;  %v3642_v7 = vpop.f32.mrf.mxu0  ;;  %v3511_v29 = vpop.f32.mrf.mxu1  ;;  %v4874_v21 = vsel %vm4554_vm11, %v3635_v63, %v4714_v18  ;;  %v10473_v18 = vld [vmem:[%s16565_s7 + $0x2e0] ss:$16 sps:$4 sm:$0xff]  }
 0x2bc   : > { %v4881_v15 = vsel %vm4561_vm10, %v3637_v52, %v4721_v25  ;;  %vm4562_vm12 = vcmp.gt.f32.partialorder %v3639_v17, 0.0  ;;  %v4722_v38 = vmul.f32 0.01, %v3639_v17  ;;  %v3643_v51 = vadd.f32 %v3642_v7, %v3510_v49 }
 0x2bd   : > { %v3644_v26 = vpop.f32.mrf.mxu0  ;;  %v13412_v36 = vpack.c.bf16 %v4881_v15, %v4873_v43  ;;  %v3512_v61 = vadd.f32 %v3511_v29, %v13149_v46  ;;  %v3513_v40 = vpop.f32.mrf.mxu1  ;;  %v10478_v15 = vld [vmem:[%s16565_s7 + $0xc4] ss:$16 sps:$4 sm:$0xff]  }
 0x2be   : > { %v3514_v32 = vadd.f32 %v3513_v40, %v13140_v42  ;;  %v4882_v54 = vsel %vm4562_vm12, %v3639_v17, %v4722_v38  ;;  %v4729_v8 = vmul.f32 0.01, %v3643_v51  ;;  %vm4569_vm13 = vcmp.gt.f32.partialorder %v3643_v51, 0.0 }
 0x2bf   : > { %v3646_v44 = vpop.f32.mrf.mxu0  ;;  %v3645_v57 = vadd.f32 %v3644_v26, %v3512_v61  ;;  %v3515_v30 = vpop.f32.mrf.mxu1  ;;  %v13420_v16 = vpack.c.bf16 %v4882_v54, %v4874_v21  ;;  %v10481_v61 = vld [vmem:[%s16565_s7 + $0x2c4] ss:$16 sps:$4 sm:$0xff]  }
 0x2c0   : > { %v3647_v28 = vadd.f32 %v3646_v44, %v3514_v32  ;;  %v3516_v52 = vadd.f32 %v3515_v30, %v13149_v46  ;;  %v4889_v25 = vsel %vm4569_vm13, %v3643_v51, %v4729_v8 }
 0x2c1   : > { %4080 = vmatmul.mubr.bf16.gmra.mxu1 %v12790_v14  ;;  %v3648_v3 = vpop.f32.mrf.mxu0  ;;  %v4730_v49 = vmul.f32 0.01, %v3645_v57  ;;  %vm4570_vm15 = vcmp.gt.f32.partialorder %v3645_v57, 0.0 }
 0x2c2   : > { %4213 = vmatmul.mubr.bf16.gmra.mxu0 %v12794_v23  ;;  %4255 = vmatprep.mubr.bf16.mxu1 %v12367_v22  ;;  %vm4577_vm14 = vcmp.gt.f32.partialorder %v3647_v28, 0.0  ;;  %v4737_v35 = vmul.f32 0.01, %v3647_v28  ;;  %v3649_v22 = vadd.f32 %v3648_v3, %v3516_v52 }
 0x2c3   : > { %4388 = vmatprep.mubr.bf16.mxu0 %v12372_v12  ;;  %v10470_v12 = vld [vmem:[%s16565_s7 + $0xe0] ss:$16 sps:$4 sm:$0xff]   ;;  %v4890_v8 = vsel %vm4570_vm15, %v3645_v57, %v4730_v49  ;;  %v10487_v57 = vld [vmem:[%s16565_s7 + $0x2a4] ss:$16 sps:$4 sm:$0xff]  }
 0x2c4   : > { %v3519_v33 = vpop.f32.mrf.mxu1  ;;  %v4897_v17 = vsel %vm4577_vm14, %v3647_v28, %v4737_v35  ;;  %vm4578_vm0 = vcmp.gt.f32.partialorder %v3649_v22, 0.0  ;;  %v4738_v7 = vmul.f32 0.01, %v3649_v22 }
 0x2c5   : > { %v3520_v63 = vadd.f32 %v3519_v33, %v13140_v42  ;;  %v3652_v43 = vpop.f32.mrf.mxu0  ;;  %v13433_v38 = vpack.c.bf16 %v4897_v17, %v4889_v25  ;;  %v10482_v25 = vld [vmem:[%s16565_s7 + $0xa0] ss:$16 sps:$4 sm:$0xff]  }
 0x2c6   : > { %v3521_v29 = vpop.f32.mrf.mxu1  ;;  %v4898_v44 = vsel %vm4578_vm0, %v3649_v22, %v4738_v7 }
 0x2c7   : > { %v3653_v51 = vadd.f32 %v3652_v43, %v3520_v63  ;;  %v3522_v26 = vadd.f32 %v3521_v29, %v13149_v46  ;;  %v3654_v40 = vpop.f32.mrf.mxu0 }
 0x2c8   : > { %v3523_v32 = vpop.f32.mrf.mxu1 }
 0x2c9   : > { %4256 = vmatmul.mubr.bf16.vlgmr.msra.gmra.mxu1 %v16895_v24  ;;  %v3655_v21 = vadd.f32 %v3654_v40, %v3522_v26  ;;  %v3524_v54 = vadd.f32 %v3523_v32, %v13140_v42  ;;  %v10476_v24 = vld [vmem:[%s16565_s7 + $0xc0] ss:$16 sps:$4 sm:$0xff]   ;;  %v3656_v30 = vpop.f32.mrf.mxu0  ;;  %v4745_v52 = vmul.f32 0.01, %v3653_v51  ;;  %vm4585_vm1 = vcmp.gt.f32.partialorder %v3653_v51, 0.0 }
 0x2ca   : > { %4389 = vmatmul.mubr.bf16.vlgmr.msra.gmra.mxu0 %v16896_v10  ;;  %4265 = vmatprep.mubr.bf16.mxu1 %v12401_v19  ;;  %v3525_v28 = vpop.f32.mrf.mxu1  ;;  %v10479_v19 = vld [vmem:[%s16565_s7 + $0x2c0] ss:$16 sps:$4 sm:$0xff]   ;;  %v13454_v10 = vpack.c.bf16 %v4898_v44, %v4890_v8  ;;  %v10493_v26 = vld [vmem:[%s16565_s7 + $0x284] ss:$16 sps:$4 sm:$0xff]  }
 0x2cb   : > { %4398 = vmatprep.mubr.bf16.mxu0 %v12409_v13  ;;  %6608 = vmatpush1.bf16.msra.mxu1 %v10470_v12  ;;  %v10484_v13 = vld [vmem:[%s16565_s7 + $0xa4] ss:$16 sps:$4 sm:$0xff]   ;;  %v3657_v3 = vadd.f32 %v3656_v30, %v3524_v54  ;;  %v3526_v35 = vadd.f32 %v3525_v28, %v13149_v46  ;;  %v3658_v22 = vpop.f32.mrf.mxu0  ;;  %v10485_v12 = vld [vmem:[%s16565_s7 + $0x2a0] ss:$16 sps:$4 sm:$0xff]   ;;  %v4905_v17 = vsel %vm4585_vm1, %v3653_v51, %v4745_v52  ;;  %v4746_v7 = vmul.f32 0.01, %v3655_v21 }
 0x2cc   : > { %6741 = vmatpush1.bf16.msra.mxu0 %v10473_v18  ;;  %6609 = vmatprep.subr.bf16.mxu1 %v10478_v15  ;;  %v10490_v18 = vld [vmem:[%s16565_s7 + $0x84] ss:$16 sps:$4 sm:$0xff]   ;;  %vm4586_vm3 = vcmp.gt.f32.partialorder %v3655_v21, 0.0  ;;  %v10488_v54 = vld [vmem:[%s16565_s7 + $0x80] ss:$16 sps:$4 sm:$0xff]  }
 0x2cd   : > { %6742 = vmatprep.subr.bf16.mxu0 %v10481_v61  ;;  %vm4593_vm2 = vcmp.gt.f32.partialorder %v3657_v3, 0.0  ;;  %v4753_v33 = vmul.f32 0.01, %v3657_v3  ;;  %v3659_v49 = vadd.f32 %v3658_v22, %v3526_v35 }
 0x2cf   : > { %6610 = vmatpush1.bf16.msra.mxu1 %v10476_v24  ;;  %v3529_v63 = vpop.f32.mrf.mxu1  ;;  %v4913_v43 = vsel %vm4593_vm2, %v3657_v3, %v4753_v33  ;;  %vm4594_vm4 = vcmp.gt.f32.partialorder %v3659_v49, 0.0  ;;  %v4754_v40 = vmul.f32 0.01, %v3659_v49  ;;  %v10494_v33 = vld [vmem:[%s16565_s7 + $0x60] ss:$16 sps:$4 sm:$0xff]  }
 0x2d0   : > { %6743 = vmatpush1.bf16.msra.mxu0 %v10479_v19  ;;  %6611 = vmatprep.subr.bf16.mxu1 %v10484_v13  ;;  %v3530_v29 = vadd.f32 %v3529_v63, %v13140_v42  ;;  %v13474_v61 = vpack.c.bf16 %v4913_v43, %v4905_v17  ;;  %v10499_v19 = vld [vmem:[%s16565_s7 + $0x264] ss:$16 sps:$4 sm:$0xff]   ;;  %v4906_v13 = vsel %vm4586_vm3, %v3655_v21, %v4746_v7  ;;  %v10497_v21 = vld [vmem:[%s16565_s7 + $0x260] ss:$16 sps:$4 sm:$0xff]  }
 0x2d1   : > { %v3662_v15 = vpop.f32.mrf.mxu0  ;;  %4266 = vmatmul.mubr.bf16.gmra.mxu1 %v12407_v37  ;;  %6744 = vmatprep.subr.bf16.mxu0 %v10487_v57  ;;  %v3531_v51 = vpop.f32.mrf.mxu1 }
 0x2d2   : > { %16909 = vst [vmem:[#allocation29_spill] sm:$0xff] %v13474_v61  ;;  %4399 = vmatmul.mubr.bf16.gmra.mxu0 %v12417_v39  ;;  %4275 = vmatprep.mubr.bf16.mxu1 %v12454_v34  ;;  %v3663_v32 = vadd.f32 %v3662_v15, %v3530_v29  ;;  %v3532_v37 = vadd.f32 %v3531_v51, %v13149_v46  ;;  %v10491_v39 = vld [vmem:[%s16565_s7 + $0x280] ss:$16 sps:$4 sm:$0xff]   ;;  %v10496_v34 = vld [vmem:[%s16565_s7 + $0x64] ss:$16 sps:$4 sm:$0xff]  }
 0x2d3   : > { %4408 = vmatprep.mubr.bf16.mxu0 %v12474_v1  ;;  %v3664_v44 = vpop.f32.mrf.mxu0  ;;  %6612 = vmatpush1.bf16.msra.mxu1 %v10482_v25  ;;  %v3533_v24 = vpop.f32.mrf.mxu1  ;;  %v4914_v1 = vsel %vm4594_vm4, %v3659_v49, %v4754_v40  ;;  %v10502_v49 = vld [vmem:[%s16565_s7 + $0x44] ss:$16 sps:$4 sm:$0xff]   ;;  %v10500_v40 = vld [vmem:[%s16565_s7 + $0x40] ss:$16 sps:$4 sm:$0xff]  }
 0x2d4   : > { %6745 = vmatpush1.bf16.msra.mxu0 %v10485_v12  ;;  %6613 = vmatprep.subr.bf16.mxu1 %v10490_v18  ;;  %v3665_v8 = vadd.f32 %v3664_v44, %v3532_v37  ;;  %v3534_v30 = vadd.f32 %v3533_v24, %v13140_v42  ;;  %v13495_v3 = vpack.c.bf16 %v4914_v1, %v4906_v13  ;;  %v4761_v57 = vmul.f32 0.01, %v3663_v32  ;;  %v10505_v18 = vld [vmem:[%s16565_s7 + $0x244] ss:$16 sps:$4 sm:$0xff]   ;;  %v10503_v51 = vld [vmem:[%s16565_s7 + $0x240] ss:$16 sps:$4 sm:$0xff]  }
 0x2d5   : > { %v3666_v28 = vpop.f32.mrf.mxu0  ;;  %6746 = vmatprep.subr.bf16.mxu0 %v10493_v26  ;;  %v3535_v52 = vpop.f32.mrf.mxu1  ;;  %vm4601_vm5 = vcmp.gt.f32.partialorder %v3663_v32, 0.0  ;;  %v10511_v24 = vld [vmem:[%s16565_s7 + $0x224] ss:$16 sps:$4 sm:$0xff]  }
 0x2d6   : > { %16910 = vst [vmem:[#allocation30_spill] sm:$0xff] %v13495_v3  ;;  %v3667_v35 = vadd.f32 %v3666_v28, %v3534_v30  ;;  %v3536_v25 = vadd.f32 %v3535_v52, %v13149_v46  ;;  %v4762_v17 = vmul.f32 0.01, %v3665_v8  ;;  %v4921_v15 = vsel %vm4601_vm5, %v3663_v32, %v4761_v57  ;;  %v10506_v52 = vld [vmem:[%s16565_s7 + $0x20] ss:$16 sps:$4 sm:$0xff]  }
 0x2d7   : > { %v3668_v22 = vpop.f32.mrf.mxu0  ;;  %6614 = vmatpush1.bf16.msra.mxu1 %v10488_v54  ;;  %vm4602_vm7 = vcmp.gt.f32.partialorder %v3665_v8, 0.0 }
 0x2d8   : > { %6747 = vmatpush1.bf16.msra.mxu0 %v10491_v39  ;;  %6615 = vmatprep.subr.bf16.mxu1 %v10496_v34  ;;  %vm4609_vm6 = vcmp.gt.f32.partialorder %v3667_v35, 0.0  ;;  %v4769_v63 = vmul.f32 0.01, %v3667_v35  ;;  %v3669_v7 = vadd.f32 %v3668_v22, %v3536_v25  ;;  %v4922_v1 = vsel %vm4602_vm7, %v3665_v8, %v4762_v17  ;;  %v10509_v8 = vld [vmem:[%s16565_s7 + $0x220] ss:$16 sps:$4 sm:$0xff]  }
 0x2d9   : > { %v3539_v12 = vpop.f32.mrf.mxu1  ;;  %4276 = vmatmul.mubr.bf16.gmra.mxu1 %v12452_v2  ;;  %6748 = vmatprep.subr.bf16.mxu0 %v10499_v19  ;;  %v10514_v25 = vld [vmem:[%s16565_s7 + $0x4] ss:$16 sps:$4 sm:$0xff]  }
 0x2da   : > { %v3540_v43 = vadd.f32 %v3539_v12, %v13140_v42  ;;  %v3672_v29 = vpop.f32.mrf.mxu0  ;;  %4409 = vmatmul.mubr.bf16.gmra.mxu0 %v12462_v45  ;;  %4285 = vmatprep.mubr.bf16.mxu1 %v12517_v0  ;;  %v4929_v26 = vsel %vm4609_vm6, %v3667_v35, %v4769_v63  ;;  %vm4610_vm8 = vcmp.gt.f32.partialorder %v3669_v7, 0.0  ;;  %v4770_v45 = vmul.f32 0.01, %v3669_v7  ;;  %v16913_v63 = vld [vmem:[#allocation53_spill] sm:$0xff]  ;;  %v10517_v12 = vld [vmem:[%s16565_s7 + $0x204] ss:$16 sps:$4 sm:$0xff]  }
 0x2db   : > { %4418 = vmatprep.mubr.bf16.mxu0 %v12523_v20  ;;  %v3541_v2 = vpop.f32.mrf.mxu1  ;;  %6616 = vmatpush1.bf16.msra.mxu1 %v10494_v33  ;;  %v13522_v37 = vpack.c.bf16 %v4929_v26, %v4921_v15  ;;  %v10508_v20 = vld [vmem:[%s16565_s7 + $0x24] ss:$16 sps:$4 sm:$0xff]  }
 0x2dc   : > { %v3673_v0 = vadd.f32 %v3672_v29, %v3540_v43  ;;  %v3674_v32 = vpop.f32.mrf.mxu0  ;;  %6749 = vmatpush1.bf16.msra.mxu0 %v10497_v21  ;;  %6617 = vmatprep.subr.bf16.mxu1 %v10502_v49  ;;  %v3542_v44 = vadd.f32 %v3541_v2, %v13149_v46  ;;  %v4930_v30 = vsel %vm4610_vm8, %v3669_v7, %v4770_v45  ;;  %v16914_v29 = vld [vmem:[#allocation54_spill] sm:$0xff]  ;;  %v16915_v15 = vld [vmem:[#allocation16_spill] sm:$0xff]  ;;  %v16916_v2 = vld [vmem:[#allocation55_spill] sm:$0xff] }
 0x2dd   : > { %16911 = vst [vmem:[#allocation31_spill] sm:$0xff] %v13522_v37  ;;  %v3543_v54 = vpop.f32.mrf.mxu1  ;;  %6750 = vmatprep.subr.bf16.mxu0 %v10505_v18  ;;  %v13536_v57 = vpack.c.bf16 %v4930_v30, %v4922_v1  ;;  %v10515_v45 = vld [vmem:[%s16565_s7 + $0x200] ss:$16 sps:$4 sm:$0xff]   ;;  %v10523_v1 = vld [vmem:[%s16565_s7 + $0x3e4] ss:$16 sps:$4 sm:$0xff]  }
 0x2de   : > { %v3544_v39 = vadd.f32 %v3543_v54, %v13140_v42  ;;  %v3676_v34 = vpop.f32.mrf.mxu0  ;;  %v4777_v28 = vmul.f32 0.01, %v3673_v0  ;;  %v3675_v19 = vadd.f32 %v3674_v32, %v3542_v44  ;;  %vm4617_vm9 = vcmp.gt.f32.partialorder %v3673_v0, 0.0 }
 0x2df   : > { %v3545_v13 = vpop.f32.mrf.mxu1  ;;  %6618 = vmatpush1.bf16.msra.mxu1 %v10500_v40  ;;  %16912 = vst [vmem:[#allocation32_spill] sm:$0xff] %v13536_v57 }
 0x2e0   : > { %v3677_v35 = vadd.f32 %v3676_v34, %v3544_v39  ;;  %v3546_v22 = vadd.f32 %v3545_v13, %v13149_v46  ;;  %v3678_v33 = vpop.f32.mrf.mxu0  ;;  %6751 = vmatpush1.bf16.msra.mxu0 %v10503_v51  ;;  %6619 = vmatprep.subr.bf16.mxu1 %v10508_v20  ;;  %v4778_v21 = vmul.f32 0.01, %v3675_v19  ;;  %v4937_v26 = vsel %vm4617_vm9, %v3673_v0, %v4777_v28  ;;  %v10512_v51 = vld [vmem:[%s16565_s7] ss:$16 sps:$4 sm:$0xff]   ;;  %v10520_v0 = vld [vmem:[%s16565_s7 + $0x1e4] ss:$16 sps:$4 sm:$0xff]  }
 0x2e1   : > { %v3549_v49 = vpop.f32.mrf.mxu1  ;;  %4286 = vmatmul.mubr.bf16.gmra.mxu1 %v16913_v63  ;;  %6752 = vmatprep.subr.bf16.mxu0 %v10511_v24  ;;  %vm4618_vm11 = vcmp.gt.f32.partialorder %v3675_v19, 0.0 }
 0x2e2   : > { %vm4625_vm10 = vcmp.gt.f32.partialorder %v3677_v35, 0.0  ;;  %v4785_v18 = vmul.f32 0.01, %v3677_v35  ;;  %v3679_v17 = vadd.f32 %v3678_v33, %v3546_v22  ;;  %v3550_v7 = vadd.f32 %v3549_v49, %v13140_v42  ;;  %v3682_v43 = vpop.f32.mrf.mxu0  ;;  %4419 = vmatmul.mubr.bf16.gmra.mxu0 %v16914_v29  ;;  %4295 = vmatprep.mubr.bf16.mxu1 %v16915_v15  ;;  %v10518_v33 = vld [vmem:[%s16565_s7 + $0x1e0] ss:$16 sps:$4 sm:$0xff]  }
 0x2e3   : > { %4428 = vmatprep.mubr.bf16.mxu0 %v16916_v2  ;;  %v3551_v40 = vpop.f32.mrf.mxu1  ;;  %6620 = vmatpush1.bf16.msra.mxu1 %v10506_v52  ;;  %v4938_v13 = vsel %vm4618_vm11, %v3675_v19, %v4778_v21  ;;  %v10526_v19 = vld [vmem:[%s16565_s7 + $0x1c4] ss:$16 sps:$4 sm:$0xff]  }
 0x2e4   : > { %v4945_v32 = vsel %vm4625_vm10, %v3677_v35, %v4785_v18  ;;  %vm4626_vm12 = vcmp.gt.f32.partialorder %v3679_v17, 0.0  ;;  %v4786_v20 = vmul.f32 0.01, %v3679_v17  ;;  %v3683_v44 = vadd.f32 %v3682_v43, %v3550_v7  ;;  %v3684_v54 = vpop.f32.mrf.mxu0  ;;  %6753 = vmatpush1.bf16.msra.mxu0 %v10509_v8  ;;  %6621 = vmatprep.subr.bf16.mxu1 %v10514_v25  ;;  %v16919_v18 = vld [vmem:[#allocation15_spill] sm:$0xff]  ;;  %v16920_v15 = vld [vmem:[#allocation56_spill] sm:$0xff] }
 0x2e5   : > { %v13563_v24 = vpack.c.bf16 %v4945_v32, %v4937_v26  ;;  %v3552_v39 = vadd.f32 %v3551_v40, %v13149_v46  ;;  %v3553_v34 = vpop.f32.mrf.mxu1  ;;  %6754 = vmatprep.subr.bf16.mxu0 %v10517_v12  ;;  %v16921_v26 = vld [vmem:[#allocation17_spill] sm:$0xff]  ;;  %v10524_v40 = vld [vmem:[%s16565_s7 + $0x1c0] ss:$16 sps:$4 sm:$0xff]  }
 0x2e6   : > { %v3554_v30 = vadd.f32 %v3553_v34, %v13140_v42  ;;  %v3686_v28 = vpop.f32.mrf.mxu0  ;;  %v4946_v52 = vsel %vm4626_vm12, %v3679_v17, %v4786_v20  ;;  %v4793_v25 = vmul.f32 0.01, %v3683_v44  ;;  %v10521_v42 = vld [vmem:[%s16565_s7 + $0x3e0] ss:$16 sps:$4 sm:$0xff]   ;;  %vm4633_vm13 = vcmp.gt.f32.partialorder %v3683_v44, 0.0 }
 0x2e7   : > { %16917 = vst [vmem:[#allocation33_spill] sm:$0xff] %v13563_v24  ;;  %v3685_v35 = vadd.f32 %v3684_v54, %v3552_v39  ;;  %v3555_v22 = vpop.f32.mrf.mxu1  ;;  %6622 = vmatpush1.bf16.msra.mxu1 %v10512_v51  ;;  %v13574_v8 = vpack.c.bf16 %v4946_v52, %v4938_v13  ;;  %v10527_v51 = vld [vmem:[%s16565_s7 + $0x3c0] ss:$16 sps:$4 sm:$0xff]  }
 0x2e8   : > { %v3687_v49 = vadd.f32 %v3686_v28, %v3554_v30  ;;  %v3556_v63 = vadd.f32 %v3555_v22, %v13149_v46  ;;  %v3688_v12 = vpop.f32.mrf.mxu0  ;;  %6755 = vmatpush1.bf16.msra.mxu0 %v10515_v45  ;;  %6623 = vmatprep.subr.bf16.mxu1 %v10520_v0  ;;  %v10529_v46 = vld [vmem:[%s16565_s7 + $0x3c4] ss:$16 sps:$4 sm:$0xff]   ;;  %v4953_v45 = vsel %vm4633_vm13, %v3683_v44, %v4793_v25  ;;  %v10530_v13 = vld [vmem:[%s16565_s7 + $0x1a0] ss:$16 sps:$4 sm:$0xff]  }
 0x2e9   : > { %16918 = vst [vmem:[#allocation34_spill] sm:$0xff] %v13574_v8  ;;  %v13583_v21 = vpop.f32.mrf.mxu1  ;;  %4296 = vmatmul.mubr.bf16.gmra.mxu1 %v16919_v18  ;;  %6756 = vmatprep.subr.bf16.mxu0 %v10523_v1  ;;  %v4794_v17 = vmul.f32 0.01, %v3685_v35  ;;  %vm4634_vm15 = vcmp.gt.f32.partialorder %v3685_v35, 0.0  ;;  %v10535_v44 = vld [vmem:[%s16565_s7 + $0x3a4] ss:$16 sps:$4 sm:$0xff]  }
 0x2ea   : > { %vm4641_vm14 = vcmp.gt.f32.partialorder %v3687_v49, 0.0  ;;  %v4801_v7 = vmul.f32 0.01, %v3687_v49  ;;  %v3689_v43 = vadd.f32 %v3688_v12, %v3556_v63  ;;  %v13589_v29 = vpop.f32.mrf.mxu0  ;;  %4429 = vmatmul.mubr.bf16.gmra.mxu0 %v16920_v15  ;;  %4305 = vmatprep.mubr.bf16.mxu1 %v16921_v26  ;;  %v10550_v15 = vld [vmem:[%s16565_s7 + $0x144] ss:$16 sps:$4 sm:$0xff]  }
 0x2eb   : > { %4438 = vmatprep.mubr.bf16.mxu0 %v12617_v59  ;;  %v13594_v2 = vpop.f32.mrf.mxu1  ;;  %6624 = vmatpush2.bf16.msra.mxu1 %v10518_v33  ;;  %v10532_v59 = vld [vmem:[%s16565_s7 + $0x1a4] ss:$16 sps:$4 sm:$0xff]   ;;  %v4954_v1 = vsel %vm4634_vm15, %v3685_v35, %v4794_v17  ;;  %v10533_v33 = vld [vmem:[%s16565_s7 + $0x3a0] ss:$16 sps:$4 sm:$0xff]  }
 0x2ec   : > { %v4961_v32 = vsel %vm4641_vm14, %v3687_v49, %v4801_v7  ;;  %vm4642_vm0 = vcmp.gt.f32.partialorder %v3689_v43, 0.0  ;;  %v4802_v20 = vmul.f32 0.01, %v3689_v43  ;;  %v13603_v54 = vpop.f32.mrf.mxu0  ;;  %6757 = vmatpush2.bf16.msra.mxu0 %v10521_v42  ;;  %6625 = vmatprep.subr.bf16.mxu1 %v10526_v19  ;;  %v10538_v35 = vld [vmem:[%s16565_s7 + $0x184] ss:$16 sps:$4 sm:$0xff]  }
 0x2ed   : > { %v13608_v0 = vpack.c.bf16 %v4961_v32, %v4953_v45  ;;  %v13610_v39 = vpop.f32.mrf.mxu1  ;;  %6758 = vmatprep.subr.bf16.mxu0 %v10529_v46  ;;  %v10541_v49 = vld [vmem:[%s16565_s7 + $0x384] ss:$16 sps:$4 sm:$0xff]   ;;  %v10539_v19 = vld [vmem:[%s16565_s7 + $0x380] ss:$16 sps:$4 sm:$0xff]   ;;  %v16924_v45 = vld [vmem:[#allocation19_spill] sm:$0xff] }
 0x2ee   : > { %v13615_v34 = vpop.f32.mrf.mxu0  ;;  %v4962_v30 = vsel %vm4642_vm0, %v3689_v43, %v4802_v20  ;;  %v10542_v17 = vld [vmem:[%s16565_s7 + $0x160] ss:$16 sps:$4 sm:$0xff]   ;;  %v16925_v32 = vld [vmem:[#allocation21_spill] sm:$0xff]  ;;  %v16926_v20 = vld [vmem:[#allocation23_spill] sm:$0xff] }
 0x2ef   : > { %16922 = vst [vmem:[#allocation35_spill] sm:$0xff] %v13608_v0  ;;  %v13618_v28 = vpop.f32.mrf.mxu1  ;;  %6626 = vmatpush2.bf16.msra.mxu1 %v10524_v40  ;;  %v13623_v52 = vpack.c.bf16 %v4962_v30, %v4954_v1  ;;  %v10545_v43 = vld [vmem:[%s16565_s7 + $0x360] ss:$16 sps:$4 sm:$0xff]   ;;  %v10553_v40 = vld [vmem:[%s16565_s7 + $0x344] ss:$16 sps:$4 sm:$0xff]  }
 0x2f0   : > { %v13625_v22 = vpop.f32.mrf.mxu0  ;;  %6759 = vmatpush2.bf16.msra.mxu0 %v10527_v51  ;;  %6627 = vmatprep.subr.bf16.mxu1 %v10532_v59  ;;  %v10551_v1 = vld [vmem:[%s16565_s7 + $0x340] ss:$16 sps:$4 sm:$0xff]   ;;  %v10556_v30 = vld [vmem:[%s16565_s7 + $0x124] ss:$16 sps:$4 sm:$0xff]  }
 0x2f1   : > { %16923 = vst [vmem:[#allocation36_spill] sm:$0xff] %v13623_v52  ;;  %v13633_v25 = vpop.f32.mrf.mxu1  ;;  %4306 = vmatmul.mubr.bf16.gmra.mxu1 %v12610_v11  ;;  %6760 = vmatprep.subr.bf16.mxu0 %v10535_v44  ;;  %v10536_v11 = vld [vmem:[%s16565_s7 + $0x180] ss:$16 sps:$4 sm:$0xff]  }
 0x2f2   : > { %v13639_v63 = vpop.f32.mrf.mxu0  ;;  %4439 = vmatmul.mubr.bf16.gmra.mxu0 %v12615_v58  ;;  %4315 = vmatprep.mubr.bf16.mxu1 %v12663_v47  ;;  %v10544_v58 = vld [vmem:[%s16565_s7 + $0x164] ss:$16 sps:$4 sm:$0xff]  }
 0x2f3   : > { %4448 = vmatprep.mubr.bf16.mxu0 %v12676_v50  ;;  %v13644_v12 = vpop.f32.mrf.mxu1  ;;  %6628 = vmatpush2.bf16.msra.mxu1 %v10530_v13  ;;  %v10547_v50 = vld [vmem:[%s16565_s7 + $0x364] ss:$16 sps:$4 sm:$0xff]  }
 0x2f4   : > { %v13649_v42 = vpop.f32.mrf.mxu0  ;;  %6761 = vmatpush2.bf16.msra.mxu0 %v10533_v33  ;;  %6629 = vmatprep.subr.bf16.mxu1 %v10538_v35  ;;  %v10559_v33 = vld [vmem:[%s16565_s7 + $0x324] ss:$16 sps:$4 sm:$0xff]  }
 0x2f5   : > { %v13657_v47 = vpop.f32.mrf.mxu1  ;;  %6762 = vmatprep.subr.bf16.mxu0 %v10541_v49 }
 0x2f6   : > { %v13662_v18 = vpop.f32.mrf.mxu0 }
 0x2f7   : > { %v13664_v46 = vpop.f32.mrf.mxu1  ;;  %6630 = vmatpush2.bf16.msra.mxu1 %v10536_v11  ;;  %v10554_v11 = vld [vmem:[%s16565_s7 + $0x120] ss:$16 sps:$4 sm:$0xff]  }
 0x2f8   : > { %v13669_v7 = vpop.f32.mrf.mxu0  ;;  %6763 = vmatpush2.bf16.msra.mxu0 %v10539_v19  ;;  %6631 = vmatprep.subr.bf16.mxu1 %v10544_v58  ;;  %v13716_v19 = vld [vmem:[%s16564_s6] sm:$0xff] }
 0x2f9   : > { %v13677_v26 = vpop.f32.mrf.mxu1  ;;  %4316 = vmatmul.mubr.bf16.gmra.mxu1 %v16897_v62  ;;  %6764 = vmatprep.subr.bf16.mxu0 %v10547_v50  ;;  %v10548_v62 = vld [vmem:[%s16565_s7 + $0x140] ss:$16 sps:$4 sm:$0xff]   ;;  %16927 = vst [vmem:[#allocation37_spill] sm:$0xff] %v13716_v19 }
 0x2fa   : > { %v13683_v51 = vpop.f32.mrf.mxu0  ;;  %4449 = vmatmul.mubr.bf16.gmra.mxu0 %v16924_v45  ;;  %4325 = vmatprep.mubr.bf16.mxu1 %v16925_v32  ;;  %v16928_v58 = vld [vmem:[#allocation14_spill] sm:$0xff] }
 0x2fb   : > { %4458 = vmatprep.mubr.bf16.mxu0 %v16926_v20  ;;  %v13688_v59 = vpop.f32.mrf.mxu1  ;;  %6632 = vmatpush2.bf16.msra.mxu1 %v10542_v17  ;;  %v13720_v50 = vrot.slane %v13716_v19, %v16928_v58  ;;  %v10565_v45 = vld [vmem:[%s16565_s7 + $0x304] ss:$16 sps:$4 sm:$0xff]  }
 0x2fc   : > { %v13693_v44 = vpop.f32.mrf.mxu0  ;;  %6765 = vmatpush2.bf16.msra.mxu0 %v10545_v43  ;;  %6633 = vmatprep.subr.bf16.mxu1 %v10550_v15  ;;  %v10557_v43 = vld [vmem:[%s16565_s7 + $0x320] ss:$16 sps:$4 sm:$0xff]   ;;  %v10562_v15 = vld [vmem:[%s16565_s7 + $0x104] ss:$16 sps:$4 sm:$0xff]  }
 0x2fd   : > { %v13701_v13 = vpop.f32.mrf.mxu1  ;;  %6766 = vmatprep.subr.bf16.mxu0 %v10553_v40  ;;  %v3732_v32 = vadd.f32 %v13618_v28, %v13720_v50  ;;  %v10595_v28 = vld [vmem:[%s16565_s7 + $0x6e4] ss:$16 sps:$4 sm:$0xff]  }
 0x2fe   : > { %v13706_v35 = vpop.f32.mrf.mxu0 }
 0x2ff   : > { %v13708_v49 = vpop.f32.mrf.mxu1  ;;  %6634 = vmatpush2.bf16.msra.mxu1 %v10548_v62 }
 0x300   : > { %v13722_v17 = vpop.f32.mrf.mxu0  ;;  %6767 = vmatpush2.bf16.msra.mxu0 %v10551_v1  ;;  %6635 = vmatprep.subr.bf16.mxu1 %v10556_v30  ;;  %v3728_v1 = vadd.f32 %v13594_v2, %v13720_v50  ;;  %v3865_v2 = vadd.f32 %v13625_v22, %v3732_v32  ;;  %v3742_v32 = vadd.f32 %v13664_v46, %v13720_v50 }
 0x301   : > { %v13730_v40 = vpop.f32.mrf.mxu1  ;;  %4326 = vmatmul.mubr.bf16.gmra.mxu1 %v16900_v6  ;;  %6768 = vmatprep.subr.bf16.mxu0 %v10559_v33  ;;  %v10560_v6 = vld [vmem:[%s16565_s7 + $0x100] ss:$16 sps:$4 sm:$0xff]  }
 0x302   : > { %v13738_v20 = vpop.f32.mrf.mxu0  ;;  %4459 = vmatmul.mubr.bf16.gmra.mxu0 %v16901_v60  ;;  %4335 = vmatprep.mubr.bf16.mxu1 %v12771_v31  ;;  %v10563_v31 = vld [vmem:[%s16565_s7 + $0x300] ss:$16 sps:$4 sm:$0xff]   ;;  %v3861_v58 = vadd.f32 %v13603_v54, %v3728_v1  ;;  %v4660_v22 = vmul.f32 0.01, %v3865_v2  ;;  %vm4500_vm1 = vcmp.gt.f32.partialorder %v3865_v2, 0.0 }
 0x303   : > { %4468 = vmatprep.mubr.bf16.mxu0 %v12773_v48  ;;  %v13743_v62 = vpop.f32.mrf.mxu1  ;;  %6636 = vmatpush2.bf16.msra.mxu1 %v10554_v11  ;;  %v10568_v48 = vld [vmem:[%s16565_s7 + $0x4e4] ss:$16 sps:$4 sm:$0xff]   ;;  %v16929_v11 = vld [vmem:[#allocation13_spill] sm:$0xff] }
 0x304   : > { %v13750_v30 = vpop.f32.mrf.mxu0  ;;  %6769 = vmatpush2.bf16.msra.mxu0 %v10557_v43  ;;  %6637 = vmatprep.subr.bf16.mxu1 %v10562_v15  ;;  %v13768_v43 = vrot.slane %v13716_v19, %v16929_v11  ;;  %vm4492_vm2 = vcmp.gt.f32.partialorder %v3861_v58, 0.0 }
 0x305   : > { %v13758_v60 = vpop.f32.mrf.mxu1  ;;  %6770 = vmatprep.subr.bf16.mxu0 %v10565_v45 }
 0x306   : > { %v13764_v33 = vpop.f32.mrf.mxu0  ;;  %v3730_v45 = vadd.f32 %v13610_v39, %v13768_v43  ;;  %v3726_v54 = vadd.f32 %v13583_v21, %v13768_v43  ;;  %v4820_v21 = vsel %vm4500_vm1, %v3865_v2, %v4660_v22 }
 0x307   : > { %v13770_v15 = vpop.f32.mrf.mxu1  ;;  %6638 = vmatpush2.bf16.msra.mxu1 %v10560_v6  ;;  %v3738_v6 = vadd.f32 %v13644_v12, %v13720_v50 }
 0x308   : > { %v13773_v0 = vpop.f32.mrf.mxu0  ;;  %6771 = vmatpush2.bf16.msra.mxu0 %v10563_v31  ;;  %6873 = vmatprep.subr.bf16.mxu1 %v10568_v48  ;;  %v3863_v46 = vadd.f32 %v13615_v34, %v3730_v45  ;;  %v3740_v34 = vadd.f32 %v13657_v47, %v13768_v43  ;;  %v3736_v47 = vadd.f32 %v13633_v25, %v13768_v43 }
 0x309   : > { %v13777_v52 = vpop.f32.mrf.mxu1  ;;  %4336 = vmatmul.mubr.bf16.gmra.mxu1 %v12769_v55  ;;  %7006 = vmatprep.subr.bf16.mxu0 %v10595_v28  ;;  %v4652_v55 = vmul.f32 0.01, %v3861_v58  ;;  %v3871_v28 = vadd.f32 %v13649_v42, %v3738_v6  ;;  %v16931_v42 = vld [vmem:[#allocation25_spill] sm:$0xff] }
 0x30a   : > { %v13782_v11 = vpop.f32.mrf.mxu0  ;;  %4469 = vmatmul.mubr.bf16.gmra.mxu0 %v12775_v9  ;;  %4345 = vmatprep.mubr.bf16.mxu1 %v12788_v41  ;;  %v3875_v41 = vadd.f32 %v13669_v7, %v3742_v32  ;;  %v4659_v8 = vmul.f32 0.01, %v3863_v46  ;;  %vm4499_vm3 = vcmp.gt.f32.partialorder %v3863_v46, 0.0 }
 0x30b   : > { %4478 = vmatprep.mubr.bf16.mxu0 %v12792_v5  ;;  %v13789_v39 = vpop.f32.mrf.mxu1  ;;  %v3859_v5 = vadd.f32 %v13589_v29, %v3726_v54  ;;  %v4812_v12 = vsel %vm4492_vm2, %v3861_v58, %v4652_v55  ;;  %v3752_v29 = vadd.f32 %v13708_v49, %v13720_v50  ;;  %v4668_v32 = vmul.f32 0.01, %v3871_v28 }
 0x30c   : > { %v13793_v1 = vpop.f32.mrf.mxu0  ;;  %v13812_v7 = vpack.c.bf16 %v4820_v21, %v4812_v12  ;;  %v4676_v2 = vmul.f32 0.01, %v3875_v41  ;;  %vm4516_vm4 = vcmp.gt.f32.partialorder %v3875_v41, 0.0  ;;  %v3748_v49 = vadd.f32 %v13688_v59, %v13720_v50  ;;  %v10566_v59 = vld [vmem:[%s16565_s7 + $0x4e0] ss:$16 sps:$4 sm:$0xff]  }
 0x30d   : > { %v13796_v9 = vpop.f32.mrf.mxu1  ;;  %v4651_v58 = vmul.f32 0.01, %v3859_v5  ;;  %vm4491_vm5 = vcmp.gt.f32.partialorder %v3859_v5, 0.0  ;;  %v4819_v55 = vsel %vm4499_vm3, %v3863_v46, %v4659_v8  ;;  %vm4508_vm6 = vcmp.gt.f32.partialorder %v3871_v28, 0.0 }
 0x30e   : > { %v13799_v31 = vpop.f32.mrf.mxu0  ;;  %16930 = vst [vmem:[#allocation38_spill] sm:$0xff] %v13812_v7  ;;  %v3885_v25 = vadd.f32 %v13722_v17, %v3752_v29  ;;  %v4836_v12 = vsel %vm4516_vm4, %v3875_v41, %v4676_v2  ;;  %v10571_v17 = vld [vmem:[%s16565_s7 + $0x4c4] ss:$16 sps:$4 sm:$0xff]  }
 0x30f   : > { %v13802_v48 = vpop.f32.mrf.mxu1 }
 0x310   : > { %v13805_v24 = vpop.f32.mrf.mxu0  ;;  %v4692_v29 = vmul.f32 0.01, %v3885_v25  ;;  %vm4532_vm8 = vcmp.gt.f32.partialorder %v3885_v25, 0.0 }
 0x311   : > { %v13809_v45 = vpop.f32.mrf.mxu1  ;;  %4346 = vmatmul.mubr.bf16.gmra.mxu1 %v12790_v14 }
 0x312   : > { %v13816_v22 = vpop.f32.mrf.mxu0  ;;  %4479 = vmatmul.mubr.bf16.gmra.mxu0 %v12794_v23  ;;  %6639 = vmatprep.mubr.bf16.mxu1 %v16931_v42  ;;  %v3873_v23 = vadd.f32 %v13662_v18, %v3740_v34  ;;  %v3869_v42 = vadd.f32 %v13639_v63, %v3736_v47  ;;  %v3881_v18 = vadd.f32 %v13693_v44, %v3748_v49  ;;  %v10593_v63 = vld [vmem:[%s16565_s7 + $0x6e0] ss:$16 sps:$4 sm:$0xff]  }
 0x313   : > { %6772 = vmatprep.mubr.bf16.mxu0 %v13812_v7  ;;  %v13823_v14 = vpop.f32.mrf.mxu1  ;;  %v4811_v7 = vsel %vm4491_vm5, %v3859_v5, %v4651_v58  ;;  %v4828_v34 = vsel %vm4508_vm6, %v3871_v28, %v4668_v32  ;;  %v3750_v5 = vadd.f32 %v13701_v13, %v13768_v43  ;;  %v10601_v28 = vld [vmem:[%s16565_s7 + $0x6c4] ss:$16 sps:$4 sm:$0xff]   ;;  %v3762_v58 = vadd.f32 %v13770_v15, %v13720_v50  ;;  %v16935_v13 = vld [vmem:[#allocation27_spill] sm:$0xff]  ;;  %v10569_v32 = vld [vmem:[%s16565_s7 + $0x4c0] ss:$16 sps:$4 sm:$0xff]  }
 0x314   : > { %v13827_v54 = vpop.f32.mrf.mxu0  ;;  %v13841_v8 = vpack.c.bf16 %v4819_v55, %v4811_v7  ;;  %v4675_v41 = vmul.f32 0.01, %v3873_v23  ;;  %v16933_v7 = vld [vmem:[#allocation24_spill] sm:$0xff]  ;;  %v13857_v44 = vpack.c.bf16 %v4836_v12, %v4828_v34  ;;  %vm4515_vm7 = vcmp.gt.f32.partialorder %v3873_v23, 0.0 }
 0x315   : > { %v13830_v6 = vpop.f32.mrf.mxu1  ;;  %v4667_v49 = vmul.f32 0.01, %v3869_v42  ;;  %v3746_v55 = vadd.f32 %v13677_v26, %v13768_v43  ;;  %v10574_v15 = vld [vmem:[%s16565_s7 + $0x4a4] ss:$16 sps:$4 sm:$0xff]   ;;  %vm4507_vm9 = vcmp.gt.f32.partialorder %v3869_v42, 0.0  ;;  %vm4524_vm10 = vcmp.gt.f32.partialorder %v3881_v18, 0.0 }
 0x316   : > { %v13833_v21 = vpop.f32.mrf.mxu0  ;;  %16932 = vst [vmem:[#allocation39_spill] sm:$0xff] %v13841_v8  ;;  %16934 = vst [vmem:[#allocation40_spill] sm:$0xff] %v13857_v44  ;;  %v4684_v34 = vmul.f32 0.01, %v3881_v18  ;;  %v10599_v26 = vld [vmem:[%s16565_s7 + $0x6c0] ss:$16 sps:$4 sm:$0xff]   ;;  %v3895_v19 = vadd.f32 %v13773_v0, %v3762_v58 }
 0x317   : > { %v13836_v37 = vpop.f32.mrf.mxu1  ;;  %v4827_v57 = vsel %vm4507_vm9, %v3869_v42, %v4667_v49  ;;  %v10605_v42 = vld [vmem:[%s16565_s7 + $0x6a0] ss:$16 sps:$4 sm:$0xff]  }
 0x318   : > { %v13844_v46 = vpop.f32.mrf.mxu0  ;;  %v4844_v58 = vsel %vm4524_vm10, %v3881_v18, %v4684_v34  ;;  %v10613_v18 = vld [vmem:[%s16565_s7 + $0x684] ss:$16 sps:$4 sm:$0xff]   ;;  %vm4548_vm12 = vcmp.gt.f32.partialorder %v3895_v19, 0.0 }
 0x319   : > { %v13854_v2 = vpop.f32.mrf.mxu1  ;;  %6640 = vmatmul.mubr.bf16.vlgmr.msra.gmra.mxu1 %v16933_v7 }
 0x31a   : > { %v13864_v47 = vpop.f32.mrf.mxu0  ;;  %6773 = vmatmul.mubr.bf16.vlgmr.msra.gmra.mxu0 %v13841_v8  ;;  %6649 = vmatprep.mubr.bf16.mxu1 %v16935_v13  ;;  %v3758_v8 = vadd.f32 %v13743_v62, %v13720_v50  ;;  %v10607_v62 = vld [vmem:[%s16565_s7 + $0x6a4] ss:$16 sps:$4 sm:$0xff]  }
 0x31b   : > { %6782 = vmatprep.mubr.bf16.mxu0 %v13857_v44  ;;  %v13874_v12 = vpop.f32.mrf.mxu1  ;;  %6874 = vmatpush1.bf16.msra.mxu1 %v10566_v59  ;;  %v4835_v44 = vsel %vm4515_vm7, %v3873_v23, %v4675_v41  ;;  %v3883_v59 = vadd.f32 %v13706_v35, %v3750_v5  ;;  %v3879_v23 = vadd.f32 %v13683_v51, %v3746_v55  ;;  %v10572_v35 = vld [vmem:[%s16565_s7 + $0x4a0] ss:$16 sps:$4 sm:$0xff]   ;;  %v10577_v51 = vld [vmem:[%s16565_s7 + $0x484] ss:$16 sps:$4 sm:$0xff]  }
 0x31c   : > { %v13881_v13 = vpop.f32.mrf.mxu0  ;;  %6875 = vmatprep.subr.bf16.mxu1 %v10571_v17  ;;  %7007 = vmatpush1.bf16.msra.mxu0 %v10593_v63  ;;  %v4852_v63 = vsel %vm4532_vm8, %v3885_v25, %v4692_v29  ;;  %v13904_v5 = vpack.c.bf16 %v4835_v44, %v4827_v57  ;;  %v3760_v57 = vadd.f32 %v13758_v60, %v13768_v43  ;;  %v4708_v29 = vmul.f32 0.01, %v3895_v19  ;;  %v10575_v60 = vld [vmem:[%s16565_s7 + $0x480] ss:$16 sps:$4 sm:$0xff]  }
 0x31d   : > { %v13888_v7 = vpop.f32.mrf.mxu1  ;;  %7008 = vmatprep.subr.bf16.mxu0 %v10601_v28  ;;  %v3891_v28 = vadd.f32 %v13750_v30, %v3758_v8  ;;  %v4691_v25 = vmul.f32 0.01, %v3883_v59  ;;  %v16937_v30 = vld [vmem:[#allocation26_spill] sm:$0xff]  ;;  %v13921_v8 = vpack.c.bf16 %v4852_v63, %v4844_v58  ;;  %vm4531_vm11 = vcmp.gt.f32.partialorder %v3883_v59, 0.0 }
 0x31e   : > { %v13894_v17 = vpop.f32.mrf.mxu0  ;;  %16936 = vst [vmem:[#allocation41_spill] sm:$0xff] %v13904_v5  ;;  %v4683_v55 = vmul.f32 0.01, %v3879_v23  ;;  %vm4523_vm13 = vcmp.gt.f32.partialorder %v3879_v23, 0.0 }
 0x31f   : > { %v13899_v41 = vpop.f32.mrf.mxu1  ;;  %6876 = vmatpush1.bf16.msra.mxu1 %v10569_v32  ;;  %16938 = vst [vmem:[#allocation42_spill] sm:$0xff] %v13921_v8  ;;  %v3772_v32 = vadd.f32 %v13802_v48, %v13720_v50  ;;  %v10580_v48 = vld [vmem:[%s16565_s7 + $0x464] ss:$16 sps:$4 sm:$0xff]   ;;  %v4851_v58 = vsel %vm4531_vm11, %v3883_v59, %v4691_v25  ;;  %vm4540_vm14 = vcmp.gt.f32.partialorder %v3891_v28, 0.0 }
 0x320   : > { %v13907_v0 = vpop.f32.mrf.mxu0  ;;  %6877 = vmatprep.subr.bf16.mxu1 %v10574_v15  ;;  %7009 = vmatpush1.bf16.msra.mxu0 %v10599_v26  ;;  %v3756_v15 = vadd.f32 %v13730_v40, %v13768_v43  ;;  %v4700_v26 = vmul.f32 0.01, %v3891_v28  ;;  %v10611_v40 = vld [vmem:[%s16565_s7 + $0x680] ss:$16 sps:$4 sm:$0xff]  }
 0x321   : > { %v13918_v44 = vpop.f32.mrf.mxu1  ;;  %6650 = vmatmul.mubr.bf16.gmra.mxu1 %v16937_v30  ;;  %7010 = vmatprep.subr.bf16.mxu0 %v10607_v62  ;;  %v3768_v62 = vadd.f32 %v13789_v39, %v13720_v50  ;;  %v10622_v39 = vld [vmem:[%s16565_s7 + $0x664] ss:$16 sps:$4 sm:$0xff]  }
 0x322   : > { %v13928_v49 = vpop.f32.mrf.mxu0  ;;  %6783 = vmatmul.mubr.bf16.gmra.mxu0 %v13904_v5  ;;  %6659 = vmatprep.mubr.bf16.mxu1 %v13388_v4  ;;  %v3905_v5 = vadd.f32 %v13805_v24, %v3772_v32  ;;  %v4843_v4 = vsel %vm4523_vm13, %v3879_v23, %v4683_v55  ;;  %v3889_v59 = vadd.f32 %v13738_v20, %v3756_v15  ;;  %v10620_v20 = vld [vmem:[%s16565_s7 + $0x660] ss:$16 sps:$4 sm:$0xff]  }
 0x323   : > { %6792 = vmatprep.mubr.bf16.mxu0 %v13921_v8  ;;  %v13938_v34 = vpop.f32.mrf.mxu1  ;;  %6878 = vmatpush1.bf16.msra.mxu1 %v10572_v35  ;;  %v3893_v35 = vadd.f32 %v13764_v33, %v3760_v57  ;;  %v10578_v33 = vld [vmem:[%s16565_s7 + $0x460] ss:$16 sps:$4 sm:$0xff]   ;;  %v13968_v57 = vpack.c.bf16 %v4851_v58, %v4843_v4  ;;  %v4860_v32 = vsel %vm4540_vm14, %v3891_v28, %v4700_v26  ;;  %v10628_v28 = vld [vmem:[%s16565_s7 + $0x644] ss:$16 sps:$4 sm:$0xff]  }
 0x324   : > { %v13945_v63 = vpop.f32.mrf.mxu0  ;;  %6879 = vmatprep.subr.bf16.mxu1 %v10577_v51  ;;  %7011 = vmatpush1.bf16.msra.mxu0 %v10605_v42  ;;  %v4868_v42 = vsel %vm4548_vm12, %v3895_v19, %v4708_v29  ;;  %v10583_v19 = vld [vmem:[%s16565_s7 + $0x444] ss:$16 sps:$4 sm:$0xff]   ;;  %v3770_v4 = vadd.f32 %v13796_v9, %v13768_v43  ;;  %v3782_v55 = vadd.f32 %v13836_v37, %v13720_v50  ;;  %v10581_v9 = vld [vmem:[%s16565_s7 + $0x440] ss:$16 sps:$4 sm:$0xff]   ;;  %vm4564_vm0 = vcmp.gt.f32.partialorder %v3905_v5, 0.0 }
 0x325   : > { %v13952_v8 = vpop.f32.mrf.mxu1  ;;  %7012 = vmatprep.subr.bf16.mxu0 %v10613_v18  ;;  %16939 = vst [vmem:[#allocation43_spill] sm:$0xff] %v13968_v57  ;;  %v3901_v18 = vadd.f32 %v13793_v1, %v3768_v62  ;;  %v4707_v23 = vmul.f32 0.01, %v3893_v35  ;;  %v13985_v1 = vpack.c.bf16 %v4868_v42, %v4860_v32  ;;  %vm4547_vm15 = vcmp.gt.f32.partialorder %v3893_v35, 0.0  ;;  %v10586_v37 = vld [vmem:[%s16565_s7 + $0x424] ss:$16 sps:$4 sm:$0xff]  }
 0x326   : > { %v13958_v51 = vpop.f32.mrf.mxu0  ;;  %v3766_v26 = vadd.f32 %v13777_v52, %v13768_v43  ;;  %vm4539_vm1 = vcmp.gt.f32.partialorder %v3889_v59, 0.0  ;;  %v3778_v58 = vadd.f32 %v13823_v14, %v13720_v50  ;;  %v10626_v52 = vld [vmem:[%s16565_s7 + $0x640] ss:$16 sps:$4 sm:$0xff]   ;;  %v10634_v14 = vld [vmem:[%s16565_s7 + $0x624] ss:$16 sps:$4 sm:$0xff]  }
 0x327   : > { %v13963_v25 = vpop.f32.mrf.mxu1  ;;  %6880 = vmatpush1.bf16.msra.mxu1 %v10575_v60  ;;  %16940 = vst [vmem:[#allocation44_spill] sm:$0xff] %v13985_v1  ;;  %v4724_v60 = vmul.f32 0.01, %v3905_v5  ;;  %v4867_v42 = vsel %vm4547_vm15, %v3893_v35, %v4707_v23  ;;  %vm4556_vm2 = vcmp.gt.f32.partialorder %v3901_v18, 0.0 }
 0x328   : > { %v13971_v24 = vpop.f32.mrf.mxu0  ;;  %6881 = vmatprep.subr.bf16.mxu1 %v10580_v48  ;;  %7013 = vmatpush1.bf16.msra.mxu0 %v10611_v40  ;;  %v4699_v48 = vmul.f32 0.01, %v3889_v59  ;;  %v4716_v40 = vmul.f32 0.01, %v3901_v18  ;;  %v3899_v35 = vadd.f32 %v13782_v11, %v3766_v26  ;;  %v10589_v11 = vld [vmem:[%s16565_s7 + $0x404] ss:$16 sps:$4 sm:$0xff]  }
 0x329   : > { %v13982_v29 = vpop.f32.mrf.mxu1  ;;  %6660 = vmatmul.mubr.bf16.gmra.mxu1 %v13378_v27  ;;  %7014 = vmatprep.subr.bf16.mxu0 %v10622_v39 }
 0x32a   : > { %v13992_v15 = vpop.f32.mrf.mxu0  ;;  %6793 = vmatmul.mubr.bf16.gmra.mxu0 %v13968_v57  ;;  %6669 = vmatprep.mubr.bf16.mxu1 %v13408_v53  ;;  %v4859_v57 = vsel %vm4539_vm1, %v3889_v59, %v4699_v48  ;;  %v3792_v48 = vadd.f32 %v13899_v41, %v13720_v50  ;;  %v10592_v41 = vld [vmem:[%s16565_s7 + $0x5e4] ss:$16 sps:$4 sm:$0xff]   ;;  %vm4555_vm5 = vcmp.gt.f32.partialorder %v3899_v35, 0.0 }
 0x32b   : > { %6802 = vmatprep.mubr.bf16.mxu0 %v13985_v1  ;;  %v14002_v62 = vpop.f32.mrf.mxu1  ;;  %6882 = vmatpush1.bf16.msra.mxu1 %v10578_v33  ;;  %v3903_v33 = vadd.f32 %v13799_v31, %v3770_v4  ;;  %v3915_v1 = vadd.f32 %v13844_v46, %v3782_v55  ;;  %v10584_v31 = vld [vmem:[%s16565_s7 + $0x420] ss:$16 sps:$4 sm:$0xff]   ;;  %v14032_v4 = vpack.c.bf16 %v4867_v42, %v4859_v57 }
 0x32c   : > { %v14009_v39 = vpop.f32.mrf.mxu0  ;;  %6883 = vmatprep.subr.bf16.mxu1 %v10583_v19  ;;  %7015 = vmatpush1.bf16.msra.mxu0 %v10620_v20  ;;  %v4884_v20 = vsel %vm4564_vm0, %v3905_v5, %v4724_v60  ;;  %v4876_v55 = vsel %vm4556_vm2, %v3901_v18, %v4716_v40  ;;  %v10632_v5 = vld [vmem:[%s16565_s7 + $0x620] ss:$16 sps:$4 sm:$0xff]   ;;  %v3780_v57 = vadd.f32 %v13830_v6, %v13768_v43  ;;  %v10637_v18 = vld [vmem:[%s16565_s7 + $0x604] ss:$16 sps:$4 sm:$0xff]  }
 0x32d   : > { %v14016_v32 = vpop.f32.mrf.mxu1  ;;  %7016 = vmatprep.subr.bf16.mxu0 %v10628_v28  ;;  %16941 = vst [vmem:[#allocation45_spill] sm:$0xff] %v14032_v4  ;;  %v3911_v28 = vadd.f32 %v13827_v54, %v3778_v58  ;;  %v4723_v59 = vmul.f32 0.01, %v3903_v33  ;;  %v14049_v54 = vpack.c.bf16 %v4884_v20, %v4876_v55  ;;  %vm4563_vm3 = vcmp.gt.f32.partialorder %v3903_v33, 0.0  ;;  %v10587_v6 = vld [vmem:[%s16565_s7 + $0x400] ss:$16 sps:$4 sm:$0xff]  }
 0x32e   : > { %v14022_v19 = vpop.f32.mrf.mxu0  ;;  %v3776_v40 = vadd.f32 %v13809_v45, %v13768_v43  ;;  %vm4580_vm4 = vcmp.gt.f32.partialorder %v3915_v1, 0.0  ;;  %v3788_v42 = vadd.f32 %v13874_v12, %v13720_v50  ;;  %v10635_v45 = vld [vmem:[%s16565_s7 + $0x600] ss:$16 sps:$4 sm:$0xff]   ;;  %v10640_v12 = vld [vmem:[%s16565_s7 + $0x7e4] ss:$16 sps:$4 sm:$0xff]  }
 0x32f   : > { %v14027_v23 = vpop.f32.mrf.mxu1  ;;  %6884 = vmatpush1.bf16.msra.mxu1 %v10581_v9  ;;  %16942 = vst [vmem:[#allocation46_spill] sm:$0xff] %v14049_v54  ;;  %v4740_v9 = vmul.f32 0.01, %v3915_v1  ;;  %v4883_v20 = vsel %vm4563_vm3, %v3903_v33, %v4723_v59  ;;  %vm4572_vm6 = vcmp.gt.f32.partialorder %v3911_v28, 0.0 }
 0x330   : > { %v14035_v46 = vpop.f32.mrf.mxu0  ;;  %6885 = vmatprep.subr.bf16.mxu1 %v10586_v37  ;;  %7017 = vmatpush1.bf16.msra.mxu0 %v10626_v52  ;;  %v4715_v37 = vmul.f32 0.01, %v3899_v35  ;;  %v4732_v52 = vmul.f32 0.01, %v3911_v28  ;;  %v3909_v33 = vadd.f32 %v13816_v22, %v3776_v40  ;;  %v10598_v22 = vld [vmem:[%s16565_s7 + $0x5c4] ss:$16 sps:$4 sm:$0xff]  }
 0x331   : > { %v14046_v60 = vpop.f32.mrf.mxu1  ;;  %6670 = vmatmul.mubr.bf16.gmra.mxu1 %v13399_v56  ;;  %7018 = vmatprep.subr.bf16.mxu0 %v10634_v14 }
 0x332   : > { %v14056_v26 = vpop.f32.mrf.mxu0  ;;  %6803 = vmatmul.mubr.bf16.gmra.mxu0 %v14032_v4  ;;  %6679 = vmatprep.mubr.bf16.mxu1 %v13420_v16  ;;  %v4875_v4 = vsel %vm4555_vm5, %v3899_v35, %v4715_v37  ;;  %v3802_v37 = vadd.f32 %v13963_v25, %v13720_v50  ;;  %v10604_v25 = vld [vmem:[%s16565_s7 + $0x5a4] ss:$16 sps:$4 sm:$0xff]   ;;  %vm4571_vm9 = vcmp.gt.f32.partialorder %v3909_v33, 0.0 }
 0x333   : > { %6812 = vmatprep.mubr.bf16.mxu0 %v14049_v54  ;;  %v14066_v58 = vpop.f32.mrf.mxu1  ;;  %6886 = vmatpush1.bf16.msra.mxu1 %v10584_v31  ;;  %v3913_v31 = vadd.f32 %v13833_v21, %v3780_v57  ;;  %v3925_v54 = vadd.f32 %v13907_v0, %v3792_v48  ;;  %v10590_v21 = vld [vmem:[%s16565_s7 + $0x5e0] ss:$16 sps:$4 sm:$0xff]   ;;  %v14096_v57 = vpack.c.bf16 %v4883_v20, %v4875_v4 }
 0x334   : > { %v14073_v14 = vpop.f32.mrf.mxu0  ;;  %6887 = vmatprep.subr.bf16.mxu1 %v10589_v11  ;;  %7019 = vmatpush1.bf16.msra.mxu0 %v10632_v5  ;;  %v4900_v5 = vsel %vm4580_vm4, %v3915_v1, %v4740_v9  ;;  %v4892_v48 = vsel %vm4572_vm6, %v3911_v28, %v4732_v52  ;;  %v10638_v1 = vld [vmem:[%s16565_s7 + $0x7e0] ss:$16 sps:$4 sm:$0xff]   ;;  %v3790_v4 = vadd.f32 %v13888_v7, %v13768_v43  ;;  %v10643_v28 = vld [vmem:[%s16565_s7 + $0x7c4] ss:$16 sps:$4 sm:$0xff]  }
 0x335   : > { %v14080_v55 = vpop.f32.mrf.mxu1  ;;  %7020 = vmatprep.subr.bf16.mxu0 %v10637_v18  ;;  %16943 = vst [vmem:[#allocation47_spill] sm:$0xff] %v14096_v57  ;;  %v3921_v18 = vadd.f32 %v13881_v13, %v3788_v42  ;;  %v4739_v35 = vmul.f32 0.01, %v3913_v31  ;;  %v14113_v13 = vpack.c.bf16 %v4900_v5, %v4892_v48  ;;  %vm4579_vm7 = vcmp.gt.f32.partialorder %v3913_v31, 0.0  ;;  %v10596_v7 = vld [vmem:[%s16565_s7 + $0x5c0] ss:$16 sps:$4 sm:$0xff]  }
 0x336   : > { %v14086_v11 = vpop.f32.mrf.mxu0  ;;  %v3786_v52 = vadd.f32 %v13854_v2, %v13768_v43  ;;  %vm4596_vm8 = vcmp.gt.f32.partialorder %v3925_v54, 0.0  ;;  %v3798_v20 = vadd.f32 %v13938_v34, %v13720_v50  ;;  %v10641_v2 = vld [vmem:[%s16565_s7 + $0x7c0] ss:$16 sps:$4 sm:$0xff]   ;;  %v10649_v34 = vld [vmem:[%s16565_s7 + $0x7a4] ss:$16 sps:$4 sm:$0xff]  }
 0x337   : > { %v14091_v59 = vpop.f32.mrf.mxu1  ;;  %6888 = vmatpush1.bf16.msra.mxu1 %v10587_v6  ;;  %16944 = vst [vmem:[#allocation48_spill] sm:$0xff] %v14113_v13  ;;  %v4756_v6 = vmul.f32 0.01, %v3925_v54  ;;  %v4899_v5 = vsel %vm4579_vm7, %v3913_v31, %v4739_v35  ;;  %vm4588_vm10 = vcmp.gt.f32.partialorder %v3921_v18, 0.0 }
 0x338   : > { %v14099_v0 = vpop.f32.mrf.mxu0  ;;  %6889 = vmatprep.subr.bf16.mxu1 %v10592_v41  ;;  %7021 = vmatpush1.bf16.msra.mxu0 %v10635_v45  ;;  %v4731_v41 = vmul.f32 0.01, %v3909_v33  ;;  %v4748_v45 = vmul.f32 0.01, %v3921_v18  ;;  %v3919_v31 = vadd.f32 %v13864_v47, %v3786_v52  ;;  %v10610_v47 = vld [vmem:[%s16565_s7 + $0x584] ss:$16 sps:$4 sm:$0xff]  }
 0x339   : > { %v14110_v9 = vpop.f32.mrf.mxu1  ;;  %6680 = vmatmul.mubr.bf16.gmra.mxu1 %v13412_v36  ;;  %7022 = vmatprep.subr.bf16.mxu0 %v10640_v12 }
 0x33a   : > { %v14120_v40 = vpop.f32.mrf.mxu0  ;;  %6813 = vmatmul.mubr.bf16.gmra.mxu0 %v14096_v57  ;;  %6689 = vmatprep.mubr.bf16.mxu1 %v13454_v10  ;;  %v4891_v57 = vsel %vm4571_vm9, %v3909_v33, %v4731_v41  ;;  %v3812_v41 = vadd.f32 %v14027_v23, %v13720_v50  ;;  %v10616_v23 = vld [vmem:[%s16565_s7 + $0x564] ss:$16 sps:$4 sm:$0xff]   ;;  %vm4587_vm13 = vcmp.gt.f32.partialorder %v3919_v31, 0.0 }
 0x33b   : > { %6822 = vmatprep.mubr.bf16.mxu0 %v14113_v13  ;;  %v14130_v42 = vpop.f32.mrf.mxu1  ;;  %6890 = vmatpush2.bf16.msra.mxu1 %v10590_v21  ;;  %v3923_v21 = vadd.f32 %v13894_v17, %v3790_v4  ;;  %v3935_v13 = vadd.f32 %v13971_v24, %v3802_v37  ;;  %v10602_v17 = vld [vmem:[%s16565_s7 + $0x5a0] ss:$16 sps:$4 sm:$0xff]   ;;  %v14160_v4 = vpack.c.bf16 %v4899_v5, %v4891_v57 }
 0x33c   : > { %v14137_v12 = vpop.f32.mrf.mxu0  ;;  %6891 = vmatprep.subr.bf16.mxu1 %v10598_v22  ;;  %7023 = vmatpush2.bf16.msra.mxu0 %v10638_v1  ;;  %v4916_v1 = vsel %vm4596_vm8, %v3925_v54, %v4756_v6  ;;  %v4908_v37 = vsel %vm4588_vm10, %v3921_v18, %v4748_v45  ;;  %v10647_v54 = vld [vmem:[%s16565_s7 + $0x7a0] ss:$16 sps:$4 sm:$0xff]   ;;  %v3800_v57 = vadd.f32 %v13952_v8, %v13768_v43  ;;  %v10655_v18 = vld [vmem:[%s16565_s7 + $0x784] ss:$16 sps:$4 sm:$0xff]  }
 0x33d   : > { %v14144_v48 = vpop.f32.mrf.mxu1  ;;  %7024 = vmatprep.subr.bf16.mxu0 %v10643_v28  ;;  %16945 = vst [vmem:[#allocation49_spill] sm:$0xff] %v14160_v4  ;;  %v3931_v28 = vadd.f32 %v13945_v63, %v3798_v20  ;;  %v4755_v33 = vmul.f32 0.01, %v3923_v21  ;;  %v14177_v63 = vpack.c.bf16 %v4916_v1, %v4908_v37  ;;  %vm4595_vm11 = vcmp.gt.f32.partialorder %v3923_v21, 0.0  ;;  %v10608_v8 = vld [vmem:[%s16565_s7 + $0x580] ss:$16 sps:$4 sm:$0xff]  }
 0x33e   : > { %v14150_v22 = vpop.f32.mrf.mxu0  ;;  %v3796_v45 = vadd.f32 %v13918_v44, %v13768_v43  ;;  %vm4612_vm12 = vcmp.gt.f32.partialorder %v3935_v13, 0.0  ;;  %v3808_v5 = vadd.f32 %v14002_v62, %v13720_v50  ;;  %v10653_v44 = vld [vmem:[%s16565_s7 + $0x780] ss:$16 sps:$4 sm:$0xff]   ;;  %v10661_v62 = vld [vmem:[%s16565_s7 + $0x764] ss:$16 sps:$4 sm:$0xff]  }
 0x33f   : > { %v14155_v35 = vpop.f32.mrf.mxu1  ;;  %6892 = vmatpush2.bf16.msra.mxu1 %v10596_v7  ;;  %16946 = vst [vmem:[#allocation50_spill] sm:$0xff] %v14177_v63  ;;  %v4772_v7 = vmul.f32 0.01, %v3935_v13  ;;  %v4915_v1 = vsel %vm4595_vm11, %v3923_v21, %v4755_v33  ;;  %vm4604_vm14 = vcmp.gt.f32.partialorder %v3931_v28, 0.0 }
 0x340   : > { %v14163_v24 = vpop.f32.mrf.mxu0  ;;  %6893 = vmatprep.subr.bf16.mxu1 %v10604_v25  ;;  %7025 = vmatpush2.bf16.msra.mxu0 %v10641_v2  ;;  %v4747_v25 = vmul.f32 0.01, %v3919_v31  ;;  %v4764_v2 = vmul.f32 0.01, %v3931_v28  ;;  %v3929_v21 = vadd.f32 %v13928_v49, %v3796_v45  ;;  %v10619_v49 = vld [vmem:[%s16565_s7 + $0x544] ss:$16 sps:$4 sm:$0xff]  }
 0x341   : > { %v14174_v6 = vpop.f32.mrf.mxu1  ;;  %6690 = vmatmul.mubr.bf16.gmra.mxu1 %v13433_v38  ;;  %7026 = vmatprep.subr.bf16.mxu0 %v10649_v34 }
 0x342   : > { %v14184_v52 = vpop.f32.mrf.mxu0  ;;  %6823 = vmatmul.mubr.bf16.gmra.mxu0 %v14160_v4  ;;  %6699 = vmatprep.mubr.bf16.mxu1 %v13495_v3  ;;  %v4907_v4 = vsel %vm4587_vm13, %v3919_v31, %v4747_v25  ;;  %v3822_v25 = vadd.f32 %v14091_v59, %v13720_v50  ;;  %vm4603_vm1 = vcmp.gt.f32.partialorder %v3929_v21, 0.0 }
 0x343   : > { %6832 = vmatprep.mubr.bf16.mxu0 %v14177_v63  ;;  %v14194_v20 = vpop.f32.mrf.mxu1  ;;  %6894 = vmatpush2.bf16.msra.mxu1 %v10602_v17  ;;  %v3933_v17 = vadd.f32 %v13958_v51, %v3800_v57  ;;  %v3945_v63 = vadd.f32 %v14035_v46, %v3812_v41  ;;  %v10614_v51 = vld [vmem:[%s16565_s7 + $0x560] ss:$16 sps:$4 sm:$0xff]   ;;  %v14224_v57 = vpack.c.bf16 %v4915_v1, %v4907_v4 }
 0x344   : > { %v14201_v34 = vpop.f32.mrf.mxu0  ;;  %6895 = vmatprep.subr.bf16.mxu1 %v10610_v47  ;;  %7027 = vmatpush2.bf16.msra.mxu0 %v10647_v54  ;;  %v4932_v54 = vsel %vm4612_vm12, %v3935_v13, %v4772_v7  ;;  %v4924_v41 = vsel %vm4604_vm14, %v3931_v28, %v4764_v2  ;;  %v10659_v13 = vld [vmem:[%s16565_s7 + $0x760] ss:$16 sps:$4 sm:$0xff]   ;;  %v3810_v4 = vadd.f32 %v14016_v32, %v13768_v43  ;;  %v10670_v28 = vld [vmem:[%s16565_s7 + $0x744] ss:$16 sps:$4 sm:$0xff]   ;;  %v4763_v2 = vmul.f32 0.01, %v3929_v21 }
 0x345   : > { %v14208_v37 = vpop.f32.mrf.mxu1  ;;  %7028 = vmatprep.subr.bf16.mxu0 %v10655_v18  ;;  %16947 = vst [vmem:[#allocation51_spill] sm:$0xff] %v14224_v57  ;;  %v3941_v18 = vadd.f32 %v14009_v39, %v3808_v5  ;;  %v4771_v31 = vmul.f32 0.01, %v3933_v17  ;;  %v14241_v39 = vpack.c.bf16 %v4932_v54, %v4924_v41  ;;  %vm4611_vm15 = vcmp.gt.f32.partialorder %v3933_v17, 0.0  ;;  %v16949_v32 = vld [vmem:[#allocation32_spill] sm:$0xff] }
 0x346   : > { %v14214_v47 = vpop.f32.mrf.mxu0  ;;  %v3806_v5 = vadd.f32 %v13982_v29, %v13768_v43  ;;  %vm4628_vm0 = vcmp.gt.f32.partialorder %v3945_v63, 0.0  ;;  %v3818_v41 = vadd.f32 %v14066_v58, %v13720_v50  ;;  %v10668_v29 = vld [vmem:[%s16565_s7 + $0x740] ss:$16 sps:$4 sm:$0xff]   ;;  %v10676_v50 = vld [vmem:[%s16565_s7 + $0x724] ss:$16 sps:$4 sm:$0xff]   ;;  %v3955_v58 = vadd.f32 %v14099_v0, %v3822_v25 }
 0x347   : > { %v14219_v33 = vpop.f32.mrf.mxu1  ;;  %6896 = vmatpush2.bf16.msra.mxu1 %v10608_v8  ;;  %16948 = vst [vmem:[#allocation52_spill] sm:$0xff] %v14241_v39  ;;  %v4788_v8 = vmul.f32 0.01, %v3945_v63  ;;  %v4780_v54 = vmul.f32 0.01, %v3941_v18  ;;  %vm4620_vm2 = vcmp.gt.f32.partialorder %v3941_v18, 0.0 }
 0x348   : > { %v14227_v46 = vpop.f32.mrf.mxu0  ;;  %6897 = vmatprep.subr.bf16.mxu1 %v10616_v23  ;;  %7029 = vmatpush2.bf16.msra.mxu0 %v10653_v44  ;;  %v10617_v23 = vld [vmem:[%s16565_s7 + $0x540] ss:$16 sps:$4 sm:$0xff]   ;;  %v3951_v0 = vadd.f32 %v14073_v14, %v3818_v41  ;;  %v3816_v41 = vadd.f32 %v14046_v60, %v13768_v43  ;;  %vm4644_vm4 = vcmp.gt.f32.partialorder %v3955_v58, 0.0 }
 0x349   : > { %v14238_v7 = vpop.f32.mrf.mxu1  ;;  %6700 = vmatmul.mubr.bf16.gmra.mxu1 %v13474_v61  ;;  %7030 = vmatprep.subr.bf16.mxu0 %v10661_v62  ;;  %v16950_v44 = vld [vmem:[#allocation10_spill] sm:$0xff]  ;;  %v4923_v61 = vsel %vm4603_vm1, %v3929_v21, %v4763_v2 }
 0x34a   : > { %v14248_v45 = vpop.f32.mrf.mxu0  ;;  %6833 = vmatmul.mubr.bf16.gmra.mxu0 %v14224_v57  ;;  %6709 = vmatprep.mubr.bf16.mxu1 %v16949_v32  ;;  %v2127_v1 = vsub.s32 5, %v16950_v44  ;;  %v10625_v62 = vld [vmem:[%s16565_s7 + $0x524] ss:$16 sps:$4 sm:$0xff]   ;;  %v10674_v21 = vld [vmem:[%s16565_s7 + $0x720] ss:$16 sps:$4 sm:$0xff]   ;;  %vm4636_vm6 = vcmp.gt.f32.partialorder %v3951_v0, 0.0 }
 0x34b   : > { %6842 = vmatprep.mubr.bf16.mxu0 %v14241_v39  ;;  %v14259_v59 = vpop.f32.mrf.mxu1  ;;  %6898 = vmatpush2.bf16.msra.mxu1 %v10614_v51  ;;  %v4931_v39 = vsel %vm4611_vm15, %v3933_v17, %v4771_v31  ;;  %v3943_v51 = vadd.f32 %v14022_v19, %v3810_v4  ;;  %v3939_v17 = vadd.f32 %v13992_v15, %v3806_v5  ;;  %v16951_v31 = vld [vmem:[#allocation37_spill] sm:$0xff]  ;;  %v10623_v4 = vld [vmem:[%s16565_s7 + $0x520] ss:$16 sps:$4 sm:$0xff]   ;;  %v10631_v15 = vld [vmem:[%s16565_s7 + $0x504] ss:$16 sps:$4 sm:$0xff]  }
 0x34c   : > { %v14266_v57 = vpop.f32.mrf.mxu0  ;;  %6899 = vmatprep.subr.bf16.mxu1 %v10619_v49  ;;  %7031 = vmatpush2.bf16.msra.mxu0 %v10659_v13  ;;  %v4948_v13 = vsel %vm4628_vm0, %v3945_v63, %v4788_v8  ;;  %v14285_v3 = vrot.slane %v16951_v31, %v2127_v1  ;;  %v4940_v63 = vsel %vm4620_vm2, %v3941_v18, %v4780_v54  ;;  %v16953_v18 = vld [vmem:[#allocation31_spill] sm:$0xff]  ;;  %v10682_v2 = vld [vmem:[%s16565_s7 + $0x704] ss:$16 sps:$4 sm:$0xff]   ;;  %v4804_v5 = vmul.f32 0.01, %v3955_v58 }
 0x34d   : > { %v14273_v32 = vpop.f32.mrf.mxu1  ;;  %7032 = vmatprep.subr.bf16.mxu0 %v10670_v28  ;;  %v14292_v28 = vpack.c.bf16 %v4931_v39, %v4923_v61  ;;  %v4787_v8 = vmul.f32 0.01, %v3943_v51  ;;  %v3820_v61 = vadd.f32 %v14080_v55, %v13768_v43  ;;  %vm4627_vm3 = vcmp.gt.f32.partialorder %v3943_v51, 0.0  ;;  %v16955_v55 = vld [vmem:[#allocation34_spill] sm:$0xff] }
 0x34e   : > { %v14279_v49 = vpop.f32.mrf.mxu0  ;;  %v3998_v14 = vadd.f32 %v14155_v35, %v14285_v3  ;;  %v2123_v1 = vsub.s32 4, %v16950_v44  ;;  %v10629_v35 = vld [vmem:[%s16565_s7 + $0x500] ss:$16 sps:$4 sm:$0xff]   ;;  %v4779_v54 = vmul.f32 0.01, %v3939_v17  ;;  %vm4619_vm5 = vcmp.gt.f32.partialorder %v3939_v17, 0.0 }
 0x34f   : > { %v14287_v19 = vpop.f32.mrf.mxu1  ;;  %6900 = vmatpush2.bf16.msra.mxu1 %v10617_v23  ;;  %16952 = vst [vmem:[#allocation18_spill] sm:$0xff] %v14292_v28  ;;  %v14311_v23 = vpack.c.bf16 %v4948_v13, %v4940_v63  ;;  %v10646_v13 = vld [vmem:[%s16565_s7 + $0xec] ss:$16 sps:$4 sm:$0xff]   ;;  %v4796_v63 = vmul.f32 0.01, %v3951_v0  ;;  %v4947_v60 = vsel %vm4627_vm3, %v3943_v51, %v4787_v8 }
 0x350   : > { %v14295_v25 = vpop.f32.mrf.mxu0  ;;  %6901 = vmatprep.subr.bf16.mxu1 %v10625_v62  ;;  %7033 = vmatpush2.bf16.msra.mxu0 %v10668_v29  ;;  %v3994_v29 = vadd.f32 %v14130_v42, %v14285_v3  ;;  %v10680_v43 = vld [vmem:[%s16565_s7 + $0x700] ss:$16 sps:$4 sm:$0xff]   ;;  %v3953_v42 = vadd.f32 %v14086_v11, %v3820_v61  ;;  %v4939_v51 = vsel %vm4619_vm5, %v3939_v17, %v4779_v54 }
 0x351   : > { %v14308_v39 = vpop.f32.mrf.mxu1  ;;  %6710 = vmatmul.mubr.bf16.gmra.mxu1 %v16953_v18  ;;  %16954 = vst [vmem:[#allocation20_spill] sm:$0xff] %v14311_v23  ;;  %7034 = vmatprep.subr.bf16.mxu0 %v10676_v50  ;;  %v4964_v18 = vsel %vm4644_vm4, %v3955_v58, %v4804_v5  ;;  %v3949_v11 = vadd.f32 %v14056_v26, %v3816_v41  ;;  %v16957_v5 = vld [vmem:[#allocation33_spill] sm:$0xff] }
 0x352   : > { %v14317_v62 = vpop.f32.mrf.mxu0  ;;  %6843 = vmatmul.mubr.bf16.gmra.mxu0 %v14292_v28  ;;  %6719 = vmatprep.mubr.bf16.mxu1 %v16955_v55  ;;  %v10691_v55 = vld [vmem:[%s16565_s7 + $0x2ec] ss:$16 sps:$4 sm:$0xff]   ;;  %v14358_v61 = vpack.c.bf16 %v4947_v60, %v4939_v51  ;;  %v4803_v58 = vmul.f32 0.01, %v3953_v42  ;;  %v4008_v26 = vadd.f32 %v14219_v33, %v14285_v3  ;;  %vm4643_vm7 = vcmp.gt.f32.partialorder %v3953_v42, 0.0 }
 0x353   : > { %6852 = vmatprep.mubr.bf16.mxu0 %v14311_v23  ;;  %v14329_v50 = vpop.f32.mrf.mxu1  ;;  %6902 = vmatpush2.bf16.msra.mxu1 %v10623_v4  ;;  %v4131_v4 = vadd.f32 %v14163_v24, %v3998_v14  ;;  %v4127_v24 = vadd.f32 %v14137_v12, %v3994_v29  ;;  %v4795_v54 = vmul.f32 0.01, %v3949_v11  ;;  %v4004_v41 = vadd.f32 %v14194_v20, %v14285_v3 }
 0x354   : > { %v14334_v28 = vpop.f32.mrf.mxu0  ;;  %6903 = vmatprep.subr.bf16.mxu1 %v10631_v15  ;;  %7035 = vmatpush2.bf16.msra.mxu0 %v10674_v21  ;;  %v14348_v15 = vrot.slane %v16951_v31, %v2123_v1  ;;  %16956 = vst [vmem:[#allocation22_spill] sm:$0xff] %v14358_v61  ;;  %vm4635_vm9 = vcmp.gt.f32.partialorder %v3949_v11, 0.0  ;;  %v4963_v29 = vsel %vm4643_vm7, %v3953_v42, %v4803_v58 }
 0x355   : > { %v14342_v23 = vpop.f32.mrf.mxu1  ;;  %7036 = vmatprep.subr.bf16.mxu0 %v10682_v2  ;;  %v4956_v2 = vsel %vm4636_vm6, %v3951_v0, %v4796_v63  ;;  %v4662_v17 = vmul.f32 0.01, %v4131_v4  ;;  %vm4502_vm8 = vcmp.gt.f32.partialorder %v4131_v4, 0.0  ;;  %v4654_v33 = vmul.f32 0.01, %v4127_v24 }
 0x356   : > { %v14350_v21 = vpop.f32.mrf.mxu0  ;;  %v3996_v14 = vadd.f32 %v14144_v48, %v14348_v15  ;;  %v14370_v1 = vpack.c.bf16 %v4964_v18, %v4956_v2  ;;  %v3992_v48 = vadd.f32 %v14110_v9, %v14348_v15  ;;  %vm4494_vm10 = vcmp.gt.f32.partialorder %v4127_v24, 0.0 }
 0x357   : > { %v14356_v8 = vpop.f32.mrf.mxu1  ;;  %6904 = vmatpush2.bf16.msra.mxu1 %v10629_v35  ;;  %v16959_v35 = vld [vmem:[#allocation36_spill] sm:$0xff]  ;;  %v4955_v51 = vsel %vm4635_vm9, %v3949_v11, %v4795_v54  ;;  %v4137_v2 = vadd.f32 %v14201_v34, %v4004_v41  ;;  %v16962_v34 = vld [vmem:[#allocation35_spill] sm:$0xff] }
 0x358   : > { %v14362_v31 = vpop.f32.mrf.mxu0  ;;  %7139 = vmatprep.subr.bf16.mxu1 %v10646_v13  ;;  %7037 = vmatpush2.bf16.msra.mxu0 %v10680_v43  ;;  %16958 = vst [vmem:[#allocation53_spill] sm:$0xff] %v14370_v1  ;;  %v4129_v9 = vadd.f32 %v14150_v22, %v3996_v14  ;;  %v4141_v13 = vadd.f32 %v14227_v46, %v4008_v26 }
 0x359   : > { %v14367_v12 = vpop.f32.mrf.mxu1  ;;  %6720 = vmatmul.mubr.bf16.gmra.mxu1 %v16957_v5  ;;  %7272 = vmatprep.subr.bf16.mxu0 %v10691_v55  ;;  %v4822_v43 = vsel %vm4502_vm8, %v4131_v4, %v4662_v17  ;;  %v4125_v60 = vadd.f32 %v14120_v40, %v3992_v48  ;;  %v14396_v22 = vpack.c.bf16 %v4963_v29, %v4955_v51  ;;  %vm4510_vm14 = vcmp.gt.f32.partialorder %v4137_v2, 0.0 }
 0x35a   : > { %v14374_v0 = vpop.f32.mrf.mxu0  ;;  %6853 = vmatmul.mubr.bf16.gmra.mxu0 %v14358_v61  ;;  %6729 = vmatprep.mubr.bf16.mxu1 %v16959_v35  ;;  %v4814_v61 = vsel %vm4494_vm10, %v4127_v24, %v4654_v33  ;;  %v4661_v14 = vmul.f32 0.01, %v4129_v9  ;;  %v4006_v46 = vadd.f32 %v14208_v37, %v14348_v15  ;;  %vm4501_vm11 = vcmp.gt.f32.partialorder %v4129_v9, 0.0 }
 0x35b   : > { %6862 = vmatprep.mubr.bf16.mxu0 %v14370_v1  ;;  %v14381_v18 = vpop.f32.mrf.mxu1  ;;  %16960 = vst [vmem:[#allocation54_spill] sm:$0xff] %v14396_v22  ;;  %v14402_v58 = vpack.c.bf16 %v4822_v43, %v4814_v61  ;;  %v4678_v40 = vmul.f32 0.01, %v4141_v13  ;;  %v4018_v4 = vadd.f32 %v14287_v19, %v14285_v3  ;;  %v4653_v24 = vmul.f32 0.01, %v4125_v60 }
 0x35c   : > { %v14384_v55 = vpop.f32.mrf.mxu0  ;;  %v4002_v17 = vadd.f32 %v14174_v6, %v14348_v15  ;;  %vm4518_vm12 = vcmp.gt.f32.partialorder %v4141_v13, 0.0  ;;  %vm4493_vm13 = vcmp.gt.f32.partialorder %v4125_v60, 0.0  ;;  %v4670_v37 = vmul.f32 0.01, %v4137_v2 }
 0x35d   : > { %v14387_v63 = vpop.f32.mrf.mxu1  ;;  %16961 = vst [vmem:[#allocation16_spill] sm:$0xff] %v14402_v58  ;;  %v4014_v19 = vadd.f32 %v14259_v59, %v14285_v3  ;;  %v4821_v48 = vsel %vm4501_vm11, %v4129_v9, %v4661_v14  ;;  %v4139_v54 = vadd.f32 %v14214_v47, %v4006_v46  ;;  %v4151_v6 = vadd.f32 %v14295_v25, %v4018_v4  ;;  %v10644_v59 = vld [vmem:[%s16565_s7 + $0xe8] ss:$16 sps:$4 sm:$0xff]   ;;  %v10652_v25 = vld [vmem:[%s16565_s7 + $0xcc] ss:$16 sps:$4 sm:$0xff]  }
 0x35e   : > { %v14391_v20 = vpop.f32.mrf.mxu0  ;;  %v4838_v29 = vsel %vm4518_vm12, %v4141_v13, %v4678_v40  ;;  %v4813_v43 = vsel %vm4493_vm13, %v4125_v60, %v4653_v24  ;;  %v4135_v51 = vadd.f32 %v14184_v52, %v4002_v17  ;;  %v4830_v46 = vsel %vm4510_vm14, %v4137_v2, %v4670_v37 }
 0x35f   : > { %v14394_v1 = vpop.f32.mrf.mxu1  ;;  %v14431_v9 = vpack.c.bf16 %v4821_v48, %v4813_v43  ;;  %v4147_v47 = vadd.f32 %v14266_v57, %v4014_v19  ;;  %v4677_v13 = vmul.f32 0.01, %v4139_v54  ;;  %v4016_v52 = vadd.f32 %v14273_v32, %v14348_v15  ;;  %v10650_v32 = vld [vmem:[%s16565_s7 + $0xc8] ss:$16 sps:$4 sm:$0xff]  }
 0x360   : > { %v14400_v42 = vpop.f32.mrf.mxu0  ;;  %v14443_v40 = vpack.c.bf16 %v4838_v29, %v4830_v46  ;;  %vm4517_vm15 = vcmp.gt.f32.partialorder %v4139_v54, 0.0  ;;  %v4694_v4 = vmul.f32 0.01, %v4151_v6  ;;  %v4028_v57 = vadd.f32 %v14356_v8, %v14285_v3 }
 0x361   : > { %v14406_v11 = vpop.f32.mrf.mxu1  ;;  %6730 = vmatmul.mubr.bf16.gmra.mxu1 %v16962_v34  ;;  %16963 = vst [vmem:[#allocation55_spill] sm:$0xff] %v14431_v9  ;;  %v4669_v2 = vmul.f32 0.01, %v4135_v51  ;;  %v4012_v17 = vadd.f32 %v14238_v7, %v14348_v15  ;;  %vm4534_vm0 = vcmp.gt.f32.partialorder %v4151_v6, 0.0  ;;  %vm4509_vm1 = vcmp.gt.f32.partialorder %v4135_v51, 0.0 }
 0x362   : > { %v14411_v26 = vpop.f32.mrf.mxu0  ;;  %6863 = vmatmul.mubr.bf16.gmra.mxu0 %v14396_v22  ;;  %6905 = vmatprep.mubr.bf16.mxu1 %v14402_v58  ;;  %16964 = vst [vmem:[#allocation15_spill] sm:$0xff] %v14443_v40  ;;  %v4686_v8 = vmul.f32 0.01, %v4147_v47  ;;  %v4024_v19 = vadd.f32 %v14329_v50, %v14285_v3  ;;  %v10658_v7 = vld [vmem:[%s16565_s7 + $0xac] ss:$16 sps:$4 sm:$0xff]   ;;  %v4837_v29 = vsel %vm4517_vm15, %v4139_v54, %v4677_v13  ;;  %vm4526_vm2 = vcmp.gt.f32.partialorder %v4147_v47, 0.0 }
 0x363   : > { %v14417_v61 = vpop.f32.mrf.mxu1  ;;  %v4149_v43 = vadd.f32 %v14279_v49, %v4016_v52  ;;  %v4026_v50 = vadd.f32 %v14342_v23, %v14348_v15  ;;  %v4829_v58 = vsel %vm4509_vm1, %v4135_v51, %v4669_v2  ;;  %v4145_v54 = vadd.f32 %v14248_v45, %v4012_v17  ;;  %v10656_v49 = vld [vmem:[%s16565_s7 + $0xa8] ss:$16 sps:$4 sm:$0xff]   ;;  %v10664_v45 = vld [vmem:[%s16565_s7 + $0x8c] ss:$16 sps:$4 sm:$0xff]  }
 0x364   : > { %v14420_v33 = vpop.f32.mrf.mxu0  ;;  %v4157_v23 = vadd.f32 %v14334_v28, %v4024_v19  ;;  %v4032_v17 = vadd.f32 %v14367_v12, %v14348_v15 }
 0x365   : > { %v14423_v41 = vpop.f32.mrf.mxu1  ;;  %v4693_v51 = vmul.f32 0.01, %v4149_v43  ;;  %vm4533_vm3 = vcmp.gt.f32.partialorder %v4149_v43, 0.0  ;;  %vm4525_vm5 = vcmp.gt.f32.partialorder %v4145_v54, 0.0 }
 0x366   : > { %v14426_v22 = vpop.f32.mrf.mxu0  ;;  %v4702_v12 = vmul.f32 0.01, %v4157_v23  ;;  %vm4542_vm6 = vcmp.gt.f32.partialorder %v4157_v23, 0.0 }
 0x367   : > { %v14434_v14 = vpop.f32.mrf.mxu1 }
 0x368   : > { %v14441_v60 = vpop.f32.mrf.mxu0 }
 0x369   : > { %v14447_v24 = vpop.f32.mrf.mxu1  ;;  %6906 = vmatmul.mubr.bf16.vlgmr.msra.gmra.mxu1 %v14431_v9  ;;  %v4854_v9 = vsel %vm4534_vm0, %v4151_v6, %v4694_v4 }
 0x36a   : > { %v14452_v37 = vpop.f32.mrf.mxu0  ;;  %6915 = vmatprep.mubr.bf16.mxu1 %v14443_v40  ;;  %7140 = vmatpush1.bf16.msra.mxu1 %v10644_v59  ;;  %v4022_v59 = vadd.f32 %v14308_v39, %v14348_v15  ;;  %v4161_v40 = vadd.f32 %v14362_v31, %v4028_v57  ;;  %v14483_v39 = vpack.c.bf16 %v4837_v29, %v4829_v58 }
 0x36b   : > { %v14460_v48 = vpop.f32.mrf.mxu1  ;;  %7141 = vmatprep.subr.bf16.mxu1 %v10652_v25  ;;  %v4846_v31 = vsel %vm4526_vm2, %v4147_v47, %v4686_v8  ;;  %v4038_v58 = vadd.f32 %v14394_v1, %v14285_v3  ;;  %v4159_v47 = vadd.f32 %v14350_v21, %v4026_v50  ;;  %v4685_v8 = vmul.f32 0.01, %v4145_v54  ;;  %v10662_v21 = vld [vmem:[%s16565_s7 + $0x88] ss:$16 sps:$4 sm:$0xff]  }
 0x36c   : > { %v14469_v46 = vpop.f32.mrf.mxu0  ;;  %16965 = vst [vmem:[#allocation56_spill] sm:$0xff] %v14483_v39  ;;  %v4155_v4 = vadd.f32 %v14317_v62, %v4022_v59  ;;  %v14498_v28 = vpack.c.bf16 %v4854_v9, %v4846_v31  ;;  %v4710_v2 = vmul.f32 0.01, %v4161_v40  ;;  %vm4550_vm4 = vcmp.gt.f32.partialorder %v4161_v40, 0.0 }
 0x36d   : > { %v14474_v25 = vpop.f32.mrf.mxu1  ;;  %v4034_v62 = vadd.f32 %v14381_v18, %v14285_v3  ;;  %v4036_v1 = vadd.f32 %v14387_v63, %v14348_v15  ;;  %v10667_v18 = vld [vmem:[%s16565_s7 + $0x6c] ss:$16 sps:$4 sm:$0xff]   ;;  %v2135_v63 = vsub.s32 7, %v16950_v44  ;;  %v4171_v59 = vadd.f32 %v14400_v42, %v4038_v58  ;;  %v10665_v42 = vld [vmem:[%s16565_s7 + $0x68] ss:$16 sps:$4 sm:$0xff]  }
 0x36e   : > { %v14478_v13 = vpop.f32.mrf.mxu0  ;;  %7142 = vmatpush1.bf16.msra.mxu1 %v10650_v32  ;;  %16966 = vst [vmem:[#allocation17_spill] sm:$0xff] %v14498_v28  ;;  %v4701_v29 = vmul.f32 0.01, %v4155_v4  ;;  %vm4541_vm7 = vcmp.gt.f32.partialorder %v4155_v4, 0.0  ;;  %v4165_v31 = vadd.f32 %v14374_v0, %v4032_v17  ;;  %vm4549_vm8 = vcmp.gt.f32.partialorder %v4159_v47, 0.0 }
 0x36f   : > { %v14486_v52 = vpop.f32.mrf.mxu1  ;;  %7143 = vmatprep.subr.bf16.mxu1 %v10658_v7  ;;  %v4853_v7 = vsel %vm4533_vm3, %v4149_v43, %v4693_v51  ;;  %v4169_v43 = vadd.f32 %v14391_v20, %v4036_v1  ;;  %v4042_v0 = vadd.f32 %v14406_v11, %v14348_v15  ;;  %v10673_v20 = vld [vmem:[%s16565_s7 + $0x4c] ss:$16 sps:$4 sm:$0xff]   ;;  %v4726_v17 = vmul.f32 0.01, %v4171_v59 }
 0x370   : > { %v14496_v57 = vpop.f32.mrf.mxu0  ;;  %vm4557_vm9 = vcmp.gt.f32.partialorder %v4165_v31, 0.0  ;;  %vm4566_vm10 = vcmp.gt.f32.partialorder %v4171_v59, 0.0 }
 0x371   : > { %v14503_v32 = vpop.f32.mrf.mxu1  ;;  %6916 = vmatmul.mubr.bf16.gmra.mxu1 %v14483_v39  ;;  %v4167_v39 = vadd.f32 %v14384_v55, %v4034_v62  ;;  %v4862_v55 = vsel %vm4542_vm6, %v4157_v23, %v4702_v12  ;;  %v4717_v62 = vmul.f32 0.01, %v4165_v31  ;;  %vm4565_vm12 = vcmp.gt.f32.partialorder %v4169_v43, 0.0 }
 0x372   : > { %v14510_v9 = vpop.f32.mrf.mxu0  ;;  %6925 = vmatprep.mubr.bf16.mxu1 %v14498_v28  ;;  %7144 = vmatpush1.bf16.msra.mxu1 %v10656_v49  ;;  %v4709_v49 = vmul.f32 0.01, %v4159_v47  ;;  %v4845_v28 = vsel %vm4525_vm5, %v4145_v54, %v4685_v8 }
 0x373   : > { %v14516_v19 = vpop.f32.mrf.mxu1  ;;  %7145 = vmatprep.subr.bf16.mxu1 %v10664_v45  ;;  %v4870_v45 = vsel %vm4550_vm4, %v4161_v40, %v4710_v2  ;;  %v14538_v58 = vpack.c.bf16 %v4853_v7, %v4845_v28  ;;  %v4046_v40 = vadd.f32 %v14423_v41, %v14348_v15  ;;  %v4861_v2 = vsel %vm4541_vm7, %v4155_v4, %v4701_v29  ;;  %v10671_v4 = vld [vmem:[%s16565_s7 + $0x48] ss:$16 sps:$4 sm:$0xff]  }
 0x374   : > { %v14524_v50 = vpop.f32.mrf.mxu0  ;;  %v4048_v28 = vadd.f32 %v14434_v14, %v14285_v3  ;;  %v14555_v11 = vpack.c.bf16 %v4870_v45, %v4862_v55  ;;  %v4869_v41 = vsel %vm4549_vm8, %v4159_v47, %v4709_v49  ;;  %vm4558_vm11 = vcmp.gt.f32.partialorder %v4167_v39, 0.0 }
 0x375   : > { %v14527_v6 = vpop.f32.mrf.mxu1  ;;  %v4718_v1 = vmul.f32 0.01, %v4167_v39  ;;  %v4725_v14 = vmul.f32 0.01, %v4169_v43  ;;  %v14570_v47 = vadd.f32 %v14411_v26, %v4042_v0  ;;  %v4052_v7 = vadd.f32 %v14447_v24, %v14348_v15 }
 0x376   : > { %v14533_v51 = vpop.f32.mrf.mxu0  ;;  %7146 = vmatpush1.bf16.msra.mxu1 %v10662_v21  ;;  %v4044_v21 = vadd.f32 %v14417_v61, %v14285_v3  ;;  %v10679_v61 = vld [vmem:[%s16565_s7 + $0x2c] ss:$16 sps:$4 sm:$0xff]   ;;  %v4181_v49 = vadd.f32 %v14441_v60, %v4048_v28  ;;  %v4054_v45 = vadd.f32 %v14460_v48, %v14285_v3  ;;  %v4056_v26 = vadd.f32 %v14474_v25, %v14348_v15  ;;  %v11059_v60 = vld [vmem:[%s16564_s6] sm:$0xff]  ;;  %v10677_v28 = vld [vmem:[%s16565_s7 + $0x28] ss:$16 sps:$4 sm:$0xff]  }
 0x377   : > { %v14544_v54 = vpop.f32.mrf.mxu1  ;;  %7147 = vmatprep.subr.bf16.mxu1 %v10667_v18  ;;  %v4179_v18 = vadd.f32 %v14426_v22, %v4046_v40  ;;  %v4886_v22 = vsel %vm4566_vm10, %v4171_v59, %v4726_v17  ;;  %v14588_v24 = vpack.c.bf16 %v4869_v41, %v4861_v2  ;;  %v4058_v0 = vadd.f32 %v14486_v52, %v14285_v3 }
 0x378   : > { %v14553_v8 = vpop.f32.mrf.mxu0  ;;  %v16968_v48 = vsub.s32 6, %v16950_v44  ;;  %v14601_v25 = vrot.slane %v11059_v60, %v2135_v63  ;;  %v4885_v59 = vsel %vm4565_vm12, %v4169_v43, %v4725_v14  ;;  %v4177_v2 = vadd.f32 %v14420_v33, %v4044_v21  ;;  %v10685_v33 = vld [vmem:[%s16565_s7 + $0xc] ss:$16 sps:$4 sm:$0xff]  }
 0x379   : > { %v14558_v23 = vpop.f32.mrf.mxu1  ;;  %6926 = vmatmul.mubr.bf16.gmra.mxu1 %v14538_v58  ;;  %16967 = vst [vmem:[#allocation19_spill] sm:$0xff] %v14588_v24  ;;  %v4878_v52 = vsel %vm4558_vm11, %v4167_v39, %v4718_v1  ;;  %vm4573_vm13 = vcmp.gt.f32.partialorder %v14570_v47, 0.0  ;;  %v4741_v44 = vmul.f32 0.01, %v4179_v18  ;;  %v4185_v63 = vadd.f32 %v14452_v37, %v4052_v7 }
 0x37a   : > { %v14566_v12 = vpop.f32.mrf.mxu0  ;;  %6935 = vmatprep.mubr.bf16.mxu1 %v14555_v11  ;;  %7148 = vmatpush1.bf16.msra.mxu1 %v10665_v42  ;;  %v14599_v55 = vrot.slane %v11059_v60, %v16968_v48  ;;  %vm4581_vm14 = vcmp.gt.f32.partialorder %v4179_v18, 0.0  ;;  %v4742_v39 = vmul.f32 0.01, %v4181_v49  ;;  %v4187_v43 = vadd.f32 %v14469_v46, %v4054_v45 }
 0x37b   : > { %v14575_v29 = vpop.f32.mrf.mxu1  ;;  %7149 = vmatprep.subr.bf16.mxu1 %v10673_v20  ;;  %v4877_v20 = vsel %vm4557_vm9, %v4165_v31, %v4717_v62  ;;  %v14616_v31 = vpack.c.bf16 %v4886_v22, %v4878_v52  ;;  %v4189_v62 = vadd.f32 %v14478_v13, %v4056_v26  ;;  %v4733_v1 = vmul.f32 0.01, %v14570_v47 }
 0x37c   : > { %v14585_v42 = vpop.f32.mrf.mxu0  ;;  %vm4582_vm15 = vcmp.gt.f32.partialorder %v4181_v49, 0.0  ;;  %v4191_v37 = vadd.f32 %v14496_v57, %v4058_v0  ;;  %v4066_v14 = vadd.f32 %v14527_v6, %v14348_v15  ;;  %vm4574_vm0 = vcmp.gt.f32.partialorder %v4177_v2, 0.0  ;;  %v10683_v6 = vld [vmem:[%s16565_s7 + $0x8] ss:$16 sps:$4 sm:$0xff]  }
 0x37d   : > { %v14592_v40 = vpop.f32.mrf.mxu1  ;;  %16969 = vst [vmem:[#allocation21_spill] sm:$0xff] %v14616_v31  ;;  %v4734_v7 = vmul.f32 0.01, %v4177_v2  ;;  %v4062_v46 = vadd.f32 %v14503_v32, %v14348_v15  ;;  %v4068_v13 = vadd.f32 %v14544_v54, %v14285_v3  ;;  %v4901_v57 = vsel %vm4581_vm14, %v4179_v18, %v4741_v44  ;;  %v10688_v54 = vld [vmem:[%s16565_s7 + $0x1ec] ss:$16 sps:$4 sm:$0xff]  }
 0x37e   : > { %v14606_v17 = vpop.f32.mrf.mxu0  ;;  %7150 = vmatpush1.bf16.msra.mxu1 %v10671_v4  ;;  %vm4589_vm1 = vcmp.gt.f32.partialorder %v4185_v63, 0.0  ;;  %v4749_v45 = vmul.f32 0.01, %v4185_v63  ;;  %v4064_v26 = vadd.f32 %v14516_v19, %v14285_v3  ;;  %vm4590_vm2 = vcmp.gt.f32.partialorder %v4187_v43, 0.0 }
 0x37f   : > { %v14614_v41 = vpop.f32.mrf.mxu1  ;;  %7151 = vmatprep.subr.bf16.mxu1 %v10679_v61  ;;  %v4750_v22 = vmul.f32 0.01, %v4187_v43  ;;  %v4757_v0 = vmul.f32 0.01, %v4189_v62  ;;  %v4902_v48 = vsel %vm4582_vm15, %v4181_v49, %v4742_v39  ;;  %vm4597_vm3 = vcmp.gt.f32.partialorder %v4189_v62, 0.0 }
 0x380   : > { %v14623_v4 = vpop.f32.mrf.mxu0  ;;  %v4758_v18 = vmul.f32 0.01, %v4191_v37  ;;  %v4199_v52 = vadd.f32 %v14533_v51, %v4066_v14  ;;  %v4072_v19 = vadd.f32 %v14558_v23, %v14348_v15  ;;  %v4893_v44 = vsel %vm4573_vm13, %v14570_v47, %v4733_v1  ;;  %v10686_v51 = vld [vmem:[%s16565_s7 + $0x1e8] ss:$16 sps:$4 sm:$0xff]  }
 0x381   : > { %v14629_v21 = vpop.f32.mrf.mxu1  ;;  %6936 = vmatmul.mubr.bf16.gmra.mxu1 %v14588_v24  ;;  %vm4598_vm4 = vcmp.gt.f32.partialorder %v4191_v37, 0.0  ;;  %v14668_v49 = vpack.c.bf16 %v4885_v59, %v4877_v20  ;;  %v14670_v23 = vpack.c.bf16 %v4901_v57, %v4893_v44  ;;  %v4197_v39 = vadd.f32 %v14524_v50, %v4064_v26  ;;  %v10700_v26 = vld [vmem:[%s16565_s7 + $0x1ac] ss:$16 sps:$4 sm:$0xff]  }
 0x382   : > { %v14636_v61 = vpop.f32.mrf.mxu0  ;;  %6945 = vmatprep.mubr.bf16.mxu1 %v14616_v31  ;;  %7152 = vmatpush1.bf16.msra.mxu1 %v10677_v28  ;;  %v4201_v31 = vadd.f32 %v14553_v8, %v4068_v13  ;;  %v4894_v47 = vsel %vm4574_vm0, %v4177_v2, %v4734_v7  ;;  %v4909_v8 = vsel %vm4589_vm1, %v4185_v63, %v4749_v45  ;;  %v4773_v50 = vmul.f32 0.01, %v4199_v52  ;;  %v10692_v63 = vld [vmem:[%s16565_s7 + $0x1c8] ss:$16 sps:$4 sm:$0xff]  }
 0x383   : > { %v14645_v32 = vpop.f32.mrf.mxu1  ;;  %7153 = vmatprep.subr.bf16.mxu1 %v10685_v33  ;;  %v4195_v33 = vadd.f32 %v14510_v9, %v4062_v46  ;;  %v10694_v9 = vld [vmem:[%s16565_s7 + $0x1cc] ss:$16 sps:$4 sm:$0xff]   ;;  %v4917_v1 = vsel %vm4597_vm3, %v4189_v62, %v4757_v0  ;;  %v14683_v20 = vpack.c.bf16 %v4902_v48, %v4894_v47  ;;  %v4910_v59 = vsel %vm4590_vm2, %v4187_v43, %v4750_v22 }
 0x384   : > { %v14650_v60 = vpop.f32.mrf.mxu0  ;;  %v4205_v13 = vadd.f32 %v14566_v12, %v4072_v19  ;;  %v4074_v2 = vadd.f32 %v14575_v29, %v14285_v3  ;;  %vm4613_vm6 = vcmp.gt.f32.partialorder %v4199_v52, 0.0  ;;  %v4774_v57 = vmul.f32 0.01, %v4201_v31 }
 0x385   : > { %v14656_v28 = vpop.f32.mrf.mxu1  ;;  %vm4605_vm5 = vcmp.gt.f32.partialorder %v4195_v33, 0.0  ;;  %v4765_v62 = vmul.f32 0.01, %v4195_v33  ;;  %v4766_v12 = vmul.f32 0.01, %v4197_v39  ;;  %vm4614_vm7 = vcmp.gt.f32.partialorder %v4201_v31, 0.0 }
 0x386   : > { %v14663_v24 = vpop.f32.mrf.mxu0  ;;  %7154 = vmatpush1.bf16.msra.mxu1 %v10683_v6  ;;  %v4918_v6 = vsel %vm4598_vm4, %v4191_v37, %v4758_v18  ;;  %v4076_v29 = vadd.f32 %v14592_v40, %v14348_v15  ;;  %vm4606_vm8 = vcmp.gt.f32.partialorder %v4197_v39, 0.0  ;;  %v4078_v22 = vadd.f32 %v14614_v41, %v14285_v3 }
 0x387   : > { %v14673_v14 = vpop.f32.mrf.mxu1  ;;  %7155 = vmatprep.subr.bf16.mxu1 %v10688_v54  ;;  %v14701_v54 = vpack.c.bf16 %v4917_v1, %v4909_v8  ;;  %v14705_v48 = vpack.c.bf16 %v4918_v6, %v4910_v59  ;;  %v4933_v18 = vsel %vm4613_vm6, %v4199_v52, %v4773_v50  ;;  %v4781_v40 = vmul.f32 0.01, %v4205_v13  ;;  %v10698_v52 = vld [vmem:[%s16565_s7 + $0x1a8] ss:$16 sps:$4 sm:$0xff]  }
 0x388   : > { %v14681_v46 = vpop.f32.mrf.mxu0  ;;  %v14709_v19 = vadd.f32 %v14585_v42, %v4074_v2  ;;  %v4925_v47 = vsel %vm4605_vm5, %v4195_v33, %v4765_v62  ;;  %vm4621_vm9 = vcmp.gt.f32.partialorder %v4205_v13, 0.0  ;;  %v4934_v41 = vsel %vm4614_vm7, %v4201_v31, %v4774_v57  ;;  %v10706_v33 = vld [vmem:[%s16565_s7 + $0x18c] ss:$16 sps:$4 sm:$0xff]   ;;  %v10704_v62 = vld [vmem:[%s16565_s7 + $0x188] ss:$16 sps:$4 sm:$0xff]  }
 0x389   : > { %v4257_v7 = vpop.f32.mrf.mxu1  ;;  %6946 = vmatmul.mubr.bf16.gmra.mxu1 %v14668_v49  ;;  %v14719_v1 = vadd.f32 %v14606_v17, %v4076_v29  ;;  %v4926_v2 = vsel %vm4606_vm8, %v4197_v39, %v4766_v12  ;;  %v14728_v31 = vadd.f32 %v14623_v4, %v4078_v22  ;;  %v14735_v39 = vsel %vm4621_vm9, %v4205_v13, %v4781_v40  ;;  %v10712_v12 = vld [vmem:[%s16565_s7 + $0x16c] ss:$16 sps:$4 sm:$0xff]  }
 0x38a   : > { %v4390_v43 = vpop.f32.mrf.mxu0  ;;  %6955 = vmatprep.mubr.bf16.mxu1 %v14683_v20  ;;  %7156 = vmatpush2.bf16.msra.mxu1 %v10686_v51  ;;  %v4258_v45 = vadd.f32 %v4257_v7, %v14599_v55  ;;  %v14725_v7 = vpack.c.bf16 %v4933_v18, %v4925_v47  ;;  %vm4622_vm10 = vcmp.gt.f32.partialorder %v14709_v19, 0.0  ;;  %v4782_v57 = vmul.f32 0.01, %v14709_v19 }
 0x38b   : > { %v4259_v37 = vpop.f32.mrf.mxu1  ;;  %7157 = vmatprep.subr.bf16.mxu1 %v10694_v9  ;;  %v14740_v4 = vpack.c.bf16 %v4934_v41, %v4926_v2  ;;  %v14747_v13 = vmul.f32 0.01, %v14719_v1  ;;  %vm4630_vm13 = vcmp.gt.f32.partialorder %v14728_v31, 0.0  ;;  %v4088_v47 = vadd.f32 %v14673_v14, %v14285_v3 }
 0x38c   : > { %v4392_v0 = vpop.f32.mrf.mxu0  ;;  %v4260_v44 = vadd.f32 %v4259_v37, %v14601_v25  ;;  %v4391_v42 = vadd.f32 %v4390_v43, %v4258_v45  ;;  %vm4629_vm0 = vcmp.gt.f32.partialorder %v14719_v1, 0.0 }
 0x38d   : > { %v4261_v51 = vpop.f32.mrf.mxu1 }
 0x38e   : > { %v4262_v9 = vadd.f32 %v4261_v51, %v14599_v55  ;;  %v4394_v8 = vpop.f32.mrf.mxu0  ;;  %7158 = vmatpush2.bf16.msra.mxu1 %v10692_v63  ;;  %v4393_v59 = vadd.f32 %v4392_v0, %v4260_v44  ;;  %v4655_v22 = vmul.f32 0.01, %v4391_v42  ;;  %vm4495_vm14 = vcmp.gt.f32.partialorder %v4391_v42, 0.0 }
 0x38f   : > { %v4263_v50 = vpop.f32.mrf.mxu1  ;;  %7159 = vmatprep.subr.bf16.mxu1 %v10700_v26  ;;  %v4790_v51 = vmul.f32 0.01, %v14728_v31 }
 0x390   : > { %v4395_v6 = vadd.f32 %v4394_v8, %v4262_v9  ;;  %v4264_v63 = vadd.f32 %v4263_v50, %v14601_v25  ;;  %v4396_v17 = vpop.f32.mrf.mxu0  ;;  %v4656_v29 = vmul.f32 0.01, %v4393_v59  ;;  %vm4496_vm12 = vcmp.gt.f32.partialorder %v4393_v59, 0.0 }
 0x391   : > { %v4267_v43 = vpop.f32.mrf.mxu1  ;;  %6956 = vmatmul.mubr.bf16.gmra.mxu1 %v14670_v23 }
 0x392   : > { %vm4503_vm11 = vcmp.gt.f32.partialorder %v4395_v6, 0.0  ;;  %v4663_v45 = vmul.f32 0.01, %v4395_v6  ;;  %v4397_v37 = vadd.f32 %v4396_v17, %v4264_v63  ;;  %v4400_v26 = vpop.f32.mrf.mxu0  ;;  %6965 = vmatprep.mubr.bf16.mxu1 %v14705_v48  ;;  %7160 = vmatpush2.bf16.msra.mxu1 %v10698_v52  ;;  %v4268_v0 = vadd.f32 %v4267_v43, %v14599_v55 }
 0x393   : > { %v4269_v18 = vpop.f32.mrf.mxu1  ;;  %7161 = vmatprep.subr.bf16.mxu1 %v10706_v33  ;;  %v4084_v52 = vadd.f32 %v14645_v32, %v14285_v3  ;;  %v4816_v33 = vsel %vm4496_vm12, %v4393_v59, %v4656_v29  ;;  %v4815_v17 = vsel %vm4495_vm14, %v4391_v42, %v4655_v22  ;;  %v10710_v3 = vld [vmem:[%s16565_s7 + $0x168] ss:$16 sps:$4 sm:$0xff]   ;;  %v14772_v32 = vadd.f32 %v14629_v21, %v14348_v15 }
 0x394   : > { %vm4504_vm15 = vcmp.gt.f32.partialorder %v4397_v37, 0.0  ;;  %v4664_v40 = vmul.f32 0.01, %v4397_v37  ;;  %v4402_v44 = vpop.f32.mrf.mxu0  ;;  %v4823_v9 = vsel %vm4503_vm11, %v4395_v6, %v4663_v45  ;;  %v4270_v8 = vadd.f32 %v4269_v18, %v14601_v25  ;;  %v10689_v18 = vld [vmem:[%s16565_s7 + $0x2e8] ss:$16 sps:$4 sm:$0xff]  }
 0x395   : > { %v4271_v41 = vpop.f32.mrf.mxu1  ;;  %v4401_v14 = vadd.f32 %v4400_v26, %v4268_v0  ;;  %v14774_v59 = vpack.c.bf16 %v4823_v9, %v4815_v17  ;;  %v10715_v26 = vld [vmem:[%s16565_s7 + $0x14c] ss:$16 sps:$4 sm:$0xff]   ;;  %v10695_v0 = vld [vmem:[%s16565_s7 + $0x2c8] ss:$16 sps:$4 sm:$0xff]  }
 0x396   : > { %v4272_v50 = vadd.f32 %v4271_v41, %v14599_v55  ;;  %v4404_v2 = vpop.f32.mrf.mxu0  ;;  %v4824_v63 = vsel %vm4504_vm15, %v4397_v37, %v4664_v40  ;;  %7162 = vmatpush2.bf16.msra.mxu1 %v10704_v62  ;;  %v4403_v43 = vadd.f32 %v4402_v44, %v4270_v8  ;;  %v10697_v37 = vld [vmem:[%s16565_s7 + $0x2cc] ss:$16 sps:$4 sm:$0xff]   ;;  %v4942_v40 = vsel %vm4622_vm10, %v14709_v19, %v4782_v57 }
 0x397   : > { %v4273_v6 = vpop.f32.mrf.mxu1  ;;  %v14762_v45 = vpack.c.bf16 %v4824_v63, %v4816_v33  ;;  %7163 = vmatprep.subr.bf16.mxu1 %v10712_v12  ;;  %v14784_v12 = vadd.f32 %v14681_v46, %v4088_v47  ;;  %v4950_v44 = vsel %vm4630_vm13, %v14728_v31, %v4790_v51  ;;  %v10703_v41 = vld [vmem:[%s16565_s7 + $0x2ac] ss:$16 sps:$4 sm:$0xff]   ;;  %v14804_v19 = vadd.f32 %v14650_v60, %v4084_v52 }
 0x398   : > { %v4405_v42 = vadd.f32 %v4404_v2, %v4272_v50  ;;  %v4274_v62 = vadd.f32 %v4273_v6, %v14601_v25  ;;  %v4406_v29 = vpop.f32.mrf.mxu0  ;;  %v4672_v22 = vmul.f32 0.01, %v4403_v43  ;;  %v4086_v31 = vadd.f32 %v14656_v28, %v14348_v15  ;;  %v10713_v50 = vld [vmem:[%s16565_s7 + $0x148] ss:$16 sps:$4 sm:$0xff]   ;;  %v10721_v15 = vld [vmem:[%s16565_s7 + $0x12c] ss:$16 sps:$4 sm:$0xff]  }
 0x399   : > { %v4277_v21 = vpop.f32.mrf.mxu1  ;;  %6966 = vmatmul.mubr.bf16.gmra.mxu1 %v14701_v54  ;;  %7038 = vmatprep.mubr.bf16.mxu0 %v14762_v45  ;;  %v4671_v57 = vmul.f32 0.01, %v4401_v14  ;;  %vm4512_vm2 = vcmp.gt.f32.partialorder %v4403_v43, 0.0  ;;  %vm4511_vm3 = vcmp.gt.f32.partialorder %v4401_v14, 0.0  ;;  %v14811_v63 = vpack.c.bf16 %v4950_v44, %v4942_v40  ;;  %v10701_v40 = vld [vmem:[%s16565_s7 + $0x2a8] ss:$16 sps:$4 sm:$0xff]  }
 0x39a   : > { %vm4519_vm1 = vcmp.gt.f32.partialorder %v4405_v42, 0.0  ;;  %v4679_v46 = vmul.f32 0.01, %v4405_v42  ;;  %v4407_v47 = vadd.f32 %v4406_v29, %v4274_v62  ;;  %v4278_v9 = vadd.f32 %v4277_v21, %v14599_v55  ;;  %v4410_v8 = vpop.f32.mrf.mxu0  ;;  %6975 = vmatprep.mubr.bf16.mxu1 %v14740_v4  ;;  %7039 = vmatmul.mubr.bf16.vlgmr.msra.gmra.mxu0 %v14774_v59  ;;  %v10719_v44 = vld [vmem:[%s16565_s7 + $0x128] ss:$16 sps:$4 sm:$0xff]  }
 0x39b   : > { %7273 = vmatpush1.bf16.msra.mxu0 %v10689_v18  ;;  %v4279_v51 = vpop.f32.mrf.mxu1  ;;  %7164 = vmatpush2.bf16.msra.mxu1 %v10710_v3  ;;  %v4806_v60 = vmul.f32 0.01, %v14784_v12  ;;  %vm4646_vm5 = vcmp.gt.f32.partialorder %v14784_v12, 0.0  ;;  %v4832_v62 = vsel %vm4512_vm2, %v4403_v43, %v4672_v22  ;;  %v4798_v43 = vmul.f32 0.01, %v14804_v19 }
 0x39c   : > { %vm4520_vm4 = vcmp.gt.f32.partialorder %v4407_v47, 0.0  ;;  %v4680_v2 = vmul.f32 0.01, %v4407_v47  ;;  %v4412_v33 = vpop.f32.mrf.mxu0  ;;  %7274 = vmatprep.subr.bf16.mxu0 %v10697_v37  ;;  %7165 = vmatprep.subr.bf16.mxu1 %v10715_v26  ;;  %v4839_v28 = vsel %vm4519_vm1, %v4405_v42, %v4679_v46  ;;  %v14818_v52 = vadd.f32 %v4410_v8, %v4278_v9  ;;  %v10727_v9 = vld [vmem:[%s16565_s7 + $0x10c] ss:$16 sps:$4 sm:$0xff]  }
 0x39d   : > { %v4280_v17 = vadd.f32 %v4279_v51, %v14601_v25  ;;  %v4281_v6 = vpop.f32.mrf.mxu1  ;;  %v4831_v37 = vsel %vm4511_vm3, %v4401_v14, %v4671_v57  ;;  %v4949_v8 = vsel %vm4629_vm0, %v14719_v1, %v14747_v13  ;;  %vm4638_vm6 = vcmp.gt.f32.partialorder %v14804_v19, 0.0 }
 0x39e   : > { %v4282_v18 = vadd.f32 %v4281_v6, %v14599_v55  ;;  %v4414_v3 = vpop.f32.mrf.mxu0  ;;  %v4840_v29 = vsel %vm4520_vm4, %v4407_v47, %v4680_v2  ;;  %v14835_v22 = vpack.c.bf16 %v4839_v28, %v4831_v37  ;;  %v4687_v57 = vmul.f32 0.01, %v14818_v52 }
 0x39f   : > { %v4413_v26 = vadd.f32 %v4412_v33, %v4280_v17  ;;  %v4283_v21 = vpop.f32.mrf.mxu1  ;;  %7275 = vmatpush1.bf16.msra.mxu0 %v10695_v0  ;;  %v14826_v42 = vpack.c.bf16 %v4840_v29, %v4832_v62  ;;  %7166 = vmatpush2.bf16.msra.mxu1 %v10713_v50  ;;  %v10709_v0 = vld [vmem:[%s16565_s7 + $0x28c] ss:$16 sps:$4 sm:$0xff]   ;;  %v4966_v50 = vsel %vm4646_vm5, %v14784_v12, %v4806_v60  ;;  %vm4527_vm8 = vcmp.gt.f32.partialorder %v14818_v52, 0.0  ;;  %v10725_v60 = vld [vmem:[%s16565_s7 + $0x108] ss:$16 sps:$4 sm:$0xff]  }
 0x3a0   : > { %v4415_v46 = vadd.f32 %v4414_v3, %v4282_v18  ;;  %v4284_v14 = vadd.f32 %v4283_v21, %v14601_v25  ;;  %v4416_v47 = vpop.f32.mrf.mxu0  ;;  %7276 = vmatprep.subr.bf16.mxu0 %v10703_v41  ;;  %7167 = vmatprep.subr.bf16.mxu1 %v10721_v15  ;;  %v10707_v41 = vld [vmem:[%s16565_s7 + $0x288] ss:$16 sps:$4 sm:$0xff]   ;;  %v4219_v15 = vadd.f32 %v14663_v24, %v4086_v31  ;;  %v10718_v12 = vld [vmem:[%s16565_s7 + $0x26c] ss:$16 sps:$4 sm:$0xff]  }
 0x3a1   : > { %v4287_v51 = vpop.f32.mrf.mxu1  ;;  %6976 = vmatmul.mubr.bf16.gmra.mxu1 %v14725_v7  ;;  %7048 = vmatprep.mubr.bf16.mxu0 %v14826_v42  ;;  %v4688_v2 = vmul.f32 0.01, %v4413_v26  ;;  %vm4528_vm9 = vcmp.gt.f32.partialorder %v4413_v26, 0.0  ;;  %v4215_v6 = vadd.f32 %v14636_v61, %v14772_v32  ;;  %v4958_v18 = vsel %vm4638_vm6, %v14804_v19, %v4798_v43  ;;  %v10742_v3 = vld [vmem:[%s16565_s7 + $0x4ec] ss:$16 sps:$4 sm:$0xff]  }
 0x3a2   : > { %vm4535_vm7 = vcmp.gt.f32.partialorder %v4415_v46, 0.0  ;;  %v4695_v1 = vmul.f32 0.01, %v4415_v46  ;;  %v4417_v13 = vadd.f32 %v4416_v47, %v4284_v14  ;;  %v4420_v33 = vpop.f32.mrf.mxu0  ;;  %6985 = vmatprep.mubr.bf16.mxu1 %v14811_v63  ;;  %7049 = vmatmul.mubr.bf16.gmra.mxu0 %v14835_v22  ;;  %v4288_v28 = vadd.f32 %v4287_v51, %v14599_v55  ;;  %v10724_v51 = vld [vmem:[%s16565_s7 + $0x24c] ss:$16 sps:$4 sm:$0xff]  }
 0x3a3   : > { %v4289_v17 = vpop.f32.mrf.mxu1  ;;  %7277 = vmatpush1.bf16.msra.mxu0 %v10701_v40  ;;  %7168 = vmatpush2.bf16.msra.mxu1 %v10719_v44  ;;  %v14878_v62 = vpack.c.bf16 %v4949_v8, %v14735_v39  ;;  %v14882_v37 = vpack.c.bf16 %v4966_v50, %v4958_v18  ;;  %v4847_v21 = vsel %vm4527_vm8, %v14818_v52, %v4687_v57  ;;  %v4805_v39 = vmul.f32 0.01, %v4219_v15 }
 0x3a4   : > { %vm4536_vm10 = vcmp.gt.f32.partialorder %v4417_v13, 0.0  ;;  %v4696_v24 = vmul.f32 0.01, %v4417_v13  ;;  %v4422_v31 = vpop.f32.mrf.mxu0  ;;  %7278 = vmatprep.subr.bf16.mxu0 %v10709_v0  ;;  %7169 = vmatprep.subr.bf16.mxu1 %v10727_v9  ;;  %v4855_v29 = vsel %vm4535_vm7, %v4415_v46, %v4695_v1  ;;  %v4290_v61 = vadd.f32 %v4289_v17, %v14601_v25  ;;  %v10716_v9 = vld [vmem:[%s16565_s7 + $0x268] ss:$16 sps:$4 sm:$0xff]  }
 0x3a5   : > { %v4291_v32 = vpop.f32.mrf.mxu1  ;;  %v4848_v44 = vsel %vm4528_vm9, %v4413_v26, %v4688_v2  ;;  %v4421_v14 = vadd.f32 %v4420_v33, %v4288_v28  ;;  %vm4645_vm11 = vcmp.gt.f32.partialorder %v4219_v15, 0.0  ;;  %v14895_v52 = vpack.c.bf16 %v4855_v29, %v4847_v21 }
 0x3a6   : > { %v4292_v19 = vadd.f32 %v4291_v32, %v14599_v55  ;;  %v4424_v40 = vpop.f32.mrf.mxu0  ;;  %v4856_v43 = vsel %vm4536_vm10, %v4417_v13, %v4696_v24  ;;  %v4423_v47 = vadd.f32 %v4422_v31, %v4290_v61  ;;  %vm4637_vm12 = vcmp.gt.f32.partialorder %v4215_v6, 0.0  ;;  %v10722_v24 = vld [vmem:[%s16565_s7 + $0x248] ss:$16 sps:$4 sm:$0xff]  }
 0x3a7   : > { %v4293_v46 = vpop.f32.mrf.mxu1  ;;  %v14890_v0 = vpack.c.bf16 %v4856_v43, %v4848_v44  ;;  %7279 = vmatpush1.bf16.msra.mxu0 %v10707_v41  ;;  %7170 = vmatpush2.bf16.msra.mxu1 %v10725_v60  ;;  %v4797_v41 = vmul.f32 0.01, %v4215_v6  ;;  %v4965_v28 = vsel %vm4645_vm11, %v4219_v15, %v4805_v39  ;;  %v4703_v17 = vmul.f32 0.01, %v4421_v14 }
 0x3a8   : > { %v4425_v8 = vadd.f32 %v4424_v40, %v4292_v19  ;;  %v4294_v26 = vadd.f32 %v4293_v46, %v14601_v25  ;;  %v4426_v57 = vpop.f32.mrf.mxu0  ;;  %7280 = vmatprep.subr.bf16.mxu0 %v10718_v12  ;;  %7405 = vmatprep.subr.bf16.mxu1 %v10742_v3  ;;  %v4704_v2 = vmul.f32 0.01, %v4423_v47  ;;  %vm4544_vm14 = vcmp.gt.f32.partialorder %v4423_v47, 0.0  ;;  %v10730_v3 = vld [vmem:[%s16565_s7 + $0x22c] ss:$16 sps:$4 sm:$0xff]  }
 0x3a9   : > { %v4297_v50 = vpop.f32.mrf.mxu1  ;;  %6986 = vmatmul.mubr.bf16.gmra.mxu1 %v14878_v62  ;;  %7058 = vmatprep.mubr.bf16.mxu0 %v14890_v0  ;;  %vm4543_vm15 = vcmp.gt.f32.partialorder %v4421_v14, 0.0  ;;  %v4957_v15 = vsel %vm4637_vm12, %v4215_v6, %v4797_v41  ;;  %v10728_v6 = vld [vmem:[%s16565_s7 + $0x228] ss:$16 sps:$4 sm:$0xff]  }
 0x3aa   : > { %vm4551_vm13 = vcmp.gt.f32.partialorder %v4425_v8, 0.0  ;;  %v4711_v1 = vmul.f32 0.01, %v4425_v8  ;;  %v4427_v13 = vadd.f32 %v4426_v57, %v4294_v26  ;;  %v4430_v33 = vpop.f32.mrf.mxu0  ;;  %6995 = vmatprep.mubr.bf16.mxu1 %v14882_v37  ;;  %7059 = vmatmul.mubr.bf16.gmra.mxu0 %v14895_v52  ;;  %v4298_v12 = vadd.f32 %v4297_v50, %v14599_v55 }
 0x3ab   : > { %v4299_v60 = vpop.f32.mrf.mxu1  ;;  %7281 = vmatpush1.bf16.msra.mxu0 %v10716_v9  ;;  %v14916_v21 = vpack.c.bf16 %v4965_v28, %v4957_v15  ;;  %v4864_v44 = vsel %vm4544_vm14, %v4423_v47, %v4704_v2  ;;  %v4863_v39 = vsel %vm4543_vm15, %v4421_v14, %v4703_v17  ;;  %v10733_v14 = vld [vmem:[%s16565_s7 + $0x20c] ss:$16 sps:$4 sm:$0xff]  }
 0x3ac   : > { %vm4552_vm0 = vcmp.gt.f32.partialorder %v4427_v13, 0.0  ;;  %v4712_v31 = vmul.f32 0.01, %v4427_v13  ;;  %v4432_v18 = vpop.f32.mrf.mxu0  ;;  %7282 = vmatprep.subr.bf16.mxu0 %v10724_v51  ;;  %v4871_v29 = vsel %vm4551_vm13, %v4425_v8, %v4711_v1  ;;  %v4300_v61 = vadd.f32 %v4299_v60, %v14601_v25  ;;  %v16970_v28 = vld [vmem:[#allocation25_spill] sm:$0xff] }
 0x3ad   : > { %v4301_v32 = vpop.f32.mrf.mxu1  ;;  %v4431_v46 = vadd.f32 %v4430_v33, %v4298_v12  ;;  %v14925_v8 = vpack.c.bf16 %v4871_v29, %v4863_v39 }
 0x3ae   : > { %v4302_v19 = vadd.f32 %v4301_v32, %v14599_v55  ;;  %v4434_v40 = vpop.f32.mrf.mxu0  ;;  %v4872_v43 = vsel %vm4552_vm0, %v4427_v13, %v4712_v31  ;;  %v4433_v9 = vadd.f32 %v4432_v18, %v4300_v61 }
 0x3af   : > { %v4303_v26 = vpop.f32.mrf.mxu1  ;;  %v14920_v57 = vpack.c.bf16 %v4872_v43, %v4864_v44  ;;  %7283 = vmatpush1.bf16.msra.mxu0 %v10722_v24  ;;  %v4719_v17 = vmul.f32 0.01, %v4431_v46  ;;  %v10731_v24 = vld [vmem:[%s16565_s7 + $0x208] ss:$16 sps:$4 sm:$0xff]   ;;  %vm4559_vm3 = vcmp.gt.f32.partialorder %v4431_v46, 0.0 }
 0x3b0   : > { %v4435_v51 = vadd.f32 %v4434_v40, %v4302_v19  ;;  %v4304_v41 = vadd.f32 %v4303_v26, %v14601_v25  ;;  %v4436_v50 = vpop.f32.mrf.mxu0  ;;  %7284 = vmatprep.subr.bf16.mxu0 %v10730_v3  ;;  %v4720_v2 = vmul.f32 0.01, %v4433_v9  ;;  %vm4560_vm2 = vcmp.gt.f32.partialorder %v4433_v9, 0.0  ;;  %v10736_v3 = vld [vmem:[%s16565_s7 + $0x3ec] ss:$16 sps:$4 sm:$0xff]  }
 0x3b1   : > { %v4307_v47 = vpop.f32.mrf.mxu1  ;;  %6996 = vmatmul.mubr.bf16.gmra.mxu1 %v14916_v21  ;;  %7068 = vmatprep.mubr.bf16.mxu0 %v14920_v57  ;;  %v4879_v43 = vsel %vm4559_vm3, %v4431_v46, %v4719_v17  ;;  %v10737_v17 = vld [vmem:[%s16565_s7 + $0x3c8] ss:$16 sps:$4 sm:$0xff]  }
 0x3b2   : > { %vm4567_vm1 = vcmp.gt.f32.partialorder %v4435_v51, 0.0  ;;  %v4727_v1 = vmul.f32 0.01, %v4435_v51  ;;  %v4437_v13 = vadd.f32 %v4436_v50, %v4304_v41  ;;  %v4440_v33 = vpop.f32.mrf.mxu0  ;;  %7069 = vmatmul.mubr.bf16.gmra.mxu0 %v14925_v8  ;;  %7171 = vmatprep.mubr.bf16.mxu1 %v16970_v28  ;;  %v4308_v12 = vadd.f32 %v4307_v47, %v14599_v55  ;;  %v10740_v50 = vld [vmem:[%s16565_s7 + $0x4e8] ss:$16 sps:$4 sm:$0xff]   ;;  %v16971_v28 = vld [vmem:[#allocation24_spill] sm:$0xff] }
 0x3b3   : > { %v4309_v60 = vpop.f32.mrf.mxu1  ;;  %7285 = vmatpush1.bf16.msra.mxu0 %v10728_v6  ;;  %v4880_v40 = vsel %vm4560_vm2, %v4433_v9, %v4720_v2  ;;  %v10739_v2 = vld [vmem:[%s16565_s7 + $0x3cc] ss:$16 sps:$4 sm:$0xff]  }
 0x3b4   : > { %vm4568_vm4 = vcmp.gt.f32.partialorder %v4437_v13, 0.0  ;;  %v4728_v31 = vmul.f32 0.01, %v4437_v13  ;;  %v4442_v18 = vpop.f32.mrf.mxu0  ;;  %7286 = vmatprep.subr.bf16.mxu0 %v10733_v14  ;;  %v4887_v15 = vsel %vm4567_vm1, %v4435_v51, %v4727_v1  ;;  %v4310_v29 = vadd.f32 %v4309_v60, %v14601_v25  ;;  %v10734_v51 = vld [vmem:[%s16565_s7 + $0x3e8] ss:$16 sps:$4 sm:$0xff]  }
 0x3b5   : > { %v4311_v61 = vpop.f32.mrf.mxu1  ;;  %v4441_v39 = vadd.f32 %v4440_v33, %v4308_v12  ;;  %v14954_v14 = vpack.c.bf16 %v4887_v15, %v4879_v43  ;;  %v10748_v1 = vld [vmem:[%s16565_s7 + $0x4cc] ss:$16 sps:$4 sm:$0xff]  }
 0x3b6   : > { %v4312_v32 = vadd.f32 %v4311_v61, %v14599_v55  ;;  %v4444_v19 = vpop.f32.mrf.mxu0  ;;  %v4888_v44 = vsel %vm4568_vm4, %v4437_v13, %v4728_v31  ;;  %v4443_v26 = vadd.f32 %v4442_v18, %v4310_v29  ;;  %v16972_v18 = vld [vmem:[#allocation27_spill] sm:$0xff] }
 0x3b7   : > { %v4313_v6 = vpop.f32.mrf.mxu1  ;;  %v14946_v41 = vpack.c.bf16 %v4888_v44, %v4880_v40  ;;  %7287 = vmatpush1.bf16.msra.mxu0 %v10731_v24  ;;  %v4735_v15 = vmul.f32 0.01, %v4441_v39  ;;  %v10745_v61 = vld [vmem:[%s16565_s7 + $0x3ac] ss:$16 sps:$4 sm:$0xff]   ;;  %vm4575_vm7 = vcmp.gt.f32.partialorder %v4441_v39, 0.0 }
 0x3b8   : > { %v4445_v47 = vadd.f32 %v4444_v19, %v4312_v32  ;;  %v4314_v9 = vadd.f32 %v4313_v6, %v14601_v25  ;;  %v4446_v46 = vpop.f32.mrf.mxu0  ;;  %7288 = vmatprep.subr.bf16.mxu0 %v10736_v3  ;;  %v4736_v13 = vmul.f32 0.01, %v4443_v26  ;;  %v10746_v3 = vld [vmem:[%s16565_s7 + $0x4c8] ss:$16 sps:$4 sm:$0xff]   ;;  %vm4576_vm6 = vcmp.gt.f32.partialorder %v4443_v26, 0.0 }
 0x3b9   : > { %v4317_v33 = vpop.f32.mrf.mxu1  ;;  %7078 = vmatprep.mubr.bf16.mxu0 %v14946_v41  ;;  %7172 = vmatmul.mubr.bf16.vlgmr.msra.gmra.mxu1 %v16971_v28  ;;  %v10754_v40 = vld [vmem:[%s16565_s7 + $0x4ac] ss:$16 sps:$4 sm:$0xff]   ;;  %v4895_v28 = vsel %vm4575_vm7, %v4441_v39, %v4735_v15  ;;  %v10749_v15 = vld [vmem:[%s16565_s7 + $0x388] ss:$16 sps:$4 sm:$0xff]  }
 0x3ba   : > { %vm4583_vm5 = vcmp.gt.f32.partialorder %v4445_v47, 0.0  ;;  %v4743_v12 = vmul.f32 0.01, %v4445_v47  ;;  %v4447_v60 = vadd.f32 %v4446_v46, %v4314_v9  ;;  %v4318_v24 = vadd.f32 %v4317_v33, %v14599_v55  ;;  %v4450_v31 = vpop.f32.mrf.mxu0  ;;  %7079 = vmatmul.mubr.bf16.gmra.mxu0 %v14954_v14  ;;  %7181 = vmatprep.mubr.bf16.mxu1 %v16972_v18 }
 0x3bb   : > { %v4319_v29 = vpop.f32.mrf.mxu1  ;;  %7289 = vmatpush2.bf16.msra.mxu0 %v10734_v51  ;;  %7406 = vmatpush1.bf16.msra.mxu1 %v10740_v50  ;;  %v4896_v46 = vsel %vm4576_vm6, %v4443_v26, %v4736_v13  ;;  %v10751_v13 = vld [vmem:[%s16565_s7 + $0x38c] ss:$16 sps:$4 sm:$0xff]  }
 0x3bc   : > { %vm4584_vm8 = vcmp.gt.f32.partialorder %v4447_v60, 0.0  ;;  %v4744_v32 = vmul.f32 0.01, %v4447_v60  ;;  %v4452_v19 = vpop.f32.mrf.mxu0  ;;  %7290 = vmatprep.subr.bf16.mxu0 %v10739_v2  ;;  %7407 = vmatprep.subr.bf16.mxu1 %v10748_v1  ;;  %v4903_v44 = vsel %vm4583_vm5, %v4445_v47, %v4743_v12  ;;  %v4451_v43 = vadd.f32 %v4450_v31, %v4318_v24  ;;  %v10743_v47 = vld [vmem:[%s16565_s7 + $0x3a8] ss:$16 sps:$4 sm:$0xff]  }
 0x3bd   : > { %v4320_v6 = vadd.f32 %v4319_v29, %v14601_v25  ;;  %v4321_v51 = vpop.f32.mrf.mxu1  ;;  %v10752_v12 = vld [vmem:[%s16565_s7 + $0x4a8] ss:$16 sps:$4 sm:$0xff]   ;;  %v14992_v24 = vpack.c.bf16 %v4903_v44, %v4895_v28 }
 0x3be   : > { %v4322_v50 = vadd.f32 %v4321_v51, %v14599_v55  ;;  %v4454_v9 = vpop.f32.mrf.mxu0  ;;  %v4904_v33 = vsel %vm4584_vm8, %v4447_v60, %v4744_v32  ;;  %v4751_v60 = vmul.f32 0.01, %v4451_v43  ;;  %vm4591_vm10 = vcmp.gt.f32.partialorder %v4451_v43, 0.0  ;;  %v10758_v51 = vld [vmem:[%s16565_s7 + $0x488] ss:$16 sps:$4 sm:$0xff]  }
 0x3bf   : > { %v4453_v18 = vadd.f32 %v4452_v19, %v4320_v6  ;;  %v4323_v2 = vpop.f32.mrf.mxu1  ;;  %v14984_v1 = vpack.c.bf16 %v4904_v33, %v4896_v46  ;;  %7291 = vmatpush2.bf16.msra.mxu0 %v10737_v17  ;;  %7408 = vmatpush1.bf16.msra.mxu1 %v10746_v3  ;;  %16973 = vst [vmem:[#allocation23_spill] sm:$0xff] %v14992_v24  ;;  %v10760_v17 = vld [vmem:[%s16565_s7 + $0x48c] ss:$16 sps:$4 sm:$0xff]  }
 0x3c0   : > { %v4455_v31 = vadd.f32 %v4454_v9, %v4322_v50  ;;  %v4324_v26 = vadd.f32 %v4323_v2, %v14601_v25  ;;  %v4456_v39 = vpop.f32.mrf.mxu0  ;;  %7292 = vmatprep.subr.bf16.mxu0 %v10745_v61  ;;  %7409 = vmatprep.subr.bf16.mxu1 %v10754_v40  ;;  %v16974_v40 = vld [vmem:[#allocation28_spill] sm:$0xff]  ;;  %v10763_v46 = vld [vmem:[%s16565_s7 + $0x46c] ss:$16 sps:$4 sm:$0xff]  }
 0x3c1   : > { %v4327_v3 = vpop.f32.mrf.mxu1  ;;  %7088 = vmatprep.mubr.bf16.mxu0 %v14984_v1  ;;  %7182 = vmatmul.mubr.bf16.gmra.mxu1 %v16937_v30  ;;  %v4752_v29 = vmul.f32 0.01, %v4453_v18  ;;  %vm4592_vm11 = vcmp.gt.f32.partialorder %v4453_v18, 0.0  ;;  %v10757_v30 = vld [vmem:[%s16565_s7 + $0x36c] ss:$16 sps:$4 sm:$0xff]  }
 0x3c2   : > { %vm4599_vm9 = vcmp.gt.f32.partialorder %v4455_v31, 0.0  ;;  %v4759_v61 = vmul.f32 0.01, %v4455_v31  ;;  %v4457_v32 = vadd.f32 %v4456_v39, %v4324_v26  ;;  %v4460_v19 = vpop.f32.mrf.mxu0  ;;  %7089 = vmatmul.mubr.bf16.gmra.mxu0 %v14992_v24  ;;  %7191 = vmatprep.mubr.bf16.mxu1 %v16974_v40  ;;  %v4328_v44 = vadd.f32 %v4327_v3, %v14599_v55 }
 0x3c3   : > { %v4329_v6 = vpop.f32.mrf.mxu1  ;;  %7293 = vmatpush2.bf16.msra.mxu0 %v10743_v47  ;;  %7410 = vmatpush1.bf16.msra.mxu1 %v10752_v12  ;;  %v4911_v47 = vsel %vm4591_vm10, %v4451_v43, %v4751_v60  ;;  %v4912_v39 = vsel %vm4592_vm11, %v4453_v18, %v4752_v29  ;;  %v10761_v43 = vld [vmem:[%s16565_s7 + $0x468] ss:$16 sps:$4 sm:$0xff]  }
 0x3c4   : > { %vm4600_vm12 = vcmp.gt.f32.partialorder %v4457_v32, 0.0  ;;  %v4760_v50 = vmul.f32 0.01, %v4457_v32  ;;  %v4462_v9 = vpop.f32.mrf.mxu0  ;;  %7294 = vmatprep.subr.bf16.mxu0 %v10751_v13  ;;  %7411 = vmatprep.subr.bf16.mxu1 %v10760_v17  ;;  %v4919_v33 = vsel %vm4599_vm9, %v4455_v31, %v4759_v61  ;;  %v4330_v28 = vadd.f32 %v4329_v6, %v14601_v25  ;;  %v10755_v31 = vld [vmem:[%s16565_s7 + $0x368] ss:$16 sps:$4 sm:$0xff]  }
 0x3c5   : > { %v4331_v2 = vpop.f32.mrf.mxu1  ;;  %v4461_v40 = vadd.f32 %v4460_v19, %v4328_v44  ;;  %v15031_v60 = vpack.c.bf16 %v4919_v33, %v4911_v47  ;;  %v10764_v6 = vld [vmem:[%s16565_s7 + $0x348] ss:$16 sps:$4 sm:$0xff]  }
 0x3c6   : > { %v4332_v12 = vadd.f32 %v4331_v2, %v14599_v55  ;;  %v4464_v26 = vpop.f32.mrf.mxu0  ;;  %v4920_v3 = vsel %vm4600_vm12, %v4457_v32, %v4760_v50  ;;  %v4463_v13 = vadd.f32 %v4462_v9, %v4330_v28  ;;  %v10769_v32 = vld [vmem:[%s16565_s7 + $0x44c] ss:$16 sps:$4 sm:$0xff]  }
 0x3c7   : > { %v4333_v17 = vpop.f32.mrf.mxu1  ;;  %v15023_v24 = vpack.c.bf16 %v4920_v3, %v4912_v39  ;;  %7295 = vmatpush2.bf16.msra.mxu0 %v10749_v15  ;;  %7412 = vmatpush1.bf16.msra.mxu1 %v10758_v51  ;;  %16975 = vst [vmem:[#allocation26_spill] sm:$0xff] %v15031_v60  ;;  %v10766_v15 = vld [vmem:[%s16565_s7 + $0x34c] ss:$16 sps:$4 sm:$0xff]   ;;  %v4767_v33 = vmul.f32 0.01, %v4461_v40  ;;  %vm4607_vm15 = vcmp.gt.f32.partialorder %v4461_v40, 0.0 }
 0x3c8   : > { %v4465_v61 = vadd.f32 %v4464_v26, %v4332_v12  ;;  %v4334_v18 = vadd.f32 %v4333_v17, %v14601_v25  ;;  %v4466_v29 = vpop.f32.mrf.mxu0  ;;  %7296 = vmatprep.subr.bf16.mxu0 %v10757_v30  ;;  %7413 = vmatprep.subr.bf16.mxu1 %v10763_v46  ;;  %v4768_v19 = vmul.f32 0.01, %v4463_v13  ;;  %v10767_v46 = vld [vmem:[%s16565_s7 + $0x448] ss:$16 sps:$4 sm:$0xff]   ;;  %vm4608_vm14 = vcmp.gt.f32.partialorder %v4463_v13, 0.0 }
 0x3c9   : > { %v4337_v44 = vpop.f32.mrf.mxu1  ;;  %7098 = vmatprep.mubr.bf16.mxu0 %v15023_v24  ;;  %7192 = vmatmul.mubr.bf16.gmra.mxu1 %v13378_v27  ;;  %v10775_v28 = vld [vmem:[%s16565_s7 + $0x42c] ss:$16 sps:$4 sm:$0xff]  }
 0x3ca   : > { %vm4615_vm13 = vcmp.gt.f32.partialorder %v4465_v61, 0.0  ;;  %v4775_v30 = vmul.f32 0.01, %v4465_v61  ;;  %v4467_v51 = vadd.f32 %v4466_v29, %v4334_v18  ;;  %v4338_v50 = vadd.f32 %v4337_v44, %v14599_v55  ;;  %v4470_v9 = vpop.f32.mrf.mxu0  ;;  %7099 = vmatmul.mubr.bf16.gmra.mxu0 %v15031_v60  ;;  %7201 = vmatprep.mubr.bf16.mxu1 %v13408_v53  ;;  %v10772_v53 = vld [vmem:[%s16565_s7 + $0x32c] ss:$16 sps:$4 sm:$0xff]  }
 0x3cb   : > { %v4339_v27 = vpop.f32.mrf.mxu1  ;;  %7297 = vmatpush2.bf16.msra.mxu0 %v10755_v31  ;;  %7414 = vmatpush1.bf16.msra.mxu1 %v10761_v43  ;;  %v4928_v43 = vsel %vm4608_vm14, %v4463_v13, %v4768_v19  ;;  %v4927_v29 = vsel %vm4607_vm15, %v4461_v40, %v4767_v33  ;;  %v10778_v19 = vld [vmem:[%s16565_s7 + $0x30c] ss:$16 sps:$4 sm:$0xff]   ;;  %v5305_v33 = vld [vmem:[%s16566_s8] sm:$0xf] }
 0x3cc   : > { %vm4616_vm0 = vcmp.gt.f32.partialorder %v4467_v51, 0.0  ;;  %v4776_v2 = vmul.f32 0.01, %v4467_v51  ;;  %v4472_v47 = vpop.f32.mrf.mxu0  ;;  %7298 = vmatprep.subr.bf16.mxu0 %v10766_v15  ;;  %7415 = vmatprep.subr.bf16.mxu1 %v10769_v32  ;;  %v4935_v12 = vsel %vm4615_vm13, %v4465_v61, %v4775_v30  ;;  %v4471_v26 = vadd.f32 %v4470_v9, %v4338_v50  ;;  %v10770_v61 = vld [vmem:[%s16565_s7 + $0x328] ss:$16 sps:$4 sm:$0xff]  }
 0x3cd   : > { %v4340_v39 = vadd.f32 %v4339_v27, %v14601_v25  ;;  %v4341_v3 = vpop.f32.mrf.mxu1  ;;  %v10773_v30 = vld [vmem:[%s16565_s7 + $0x428] ss:$16 sps:$4 sm:$0xff]   ;;  %v15069_v50 = vpack.c.bf16 %v4935_v12, %v4927_v29 }
 0x3ce   : > { %v4342_v17 = vadd.f32 %v4341_v3, %v14599_v55  ;;  %v4474_v31 = vpop.f32.mrf.mxu0  ;;  %v4936_v18 = vsel %vm4616_vm0, %v4467_v51, %v4776_v2  ;;  %v4783_v51 = vmul.f32 0.01, %v4471_v26  ;;  %v10776_v27 = vld [vmem:[%s16565_s7 + $0x308] ss:$16 sps:$4 sm:$0xff]   ;;  %vm4623_vm2 = vcmp.gt.f32.partialorder %v4471_v26, 0.0 }
 0x3cf   : > { %v4473_v44 = vadd.f32 %v4472_v47, %v4340_v39  ;;  %v4343_v15 = vpop.f32.mrf.mxu1  ;;  %v15061_v32 = vpack.c.bf16 %v4936_v18, %v4928_v43  ;;  %7299 = vmatpush2.bf16.msra.mxu0 %v10764_v6  ;;  %7416 = vmatpush1.bf16.msra.mxu1 %v10767_v46  ;;  %16977 = vst [vmem:[#allocation37_spill] sm:$0xff] %v15069_v50  ;;  %v10781_v6 = vld [vmem:[%s16565_s7 + $0x40c] ss:$16 sps:$4 sm:$0xff]   ;;  %v10779_v39 = vld [vmem:[%s16565_s7 + $0x408] ss:$16 sps:$4 sm:$0xff]  }
 0x3d0   : > { %v4475_v9 = vadd.f32 %v4474_v31, %v4342_v17  ;;  %v4344_v13 = vadd.f32 %v4343_v15, %v14601_v25  ;;  %v4476_v40 = vpop.f32.mrf.mxu0  ;;  %7300 = vmatprep.subr.bf16.mxu0 %v10772_v53  ;;  %7417 = vmatprep.subr.bf16.mxu1 %v10775_v28  ;;  %v10784_v3 = vld [vmem:[%s16565_s7 + $0x5ec] ss:$16 sps:$4 sm:$0xff]   ;;  %v16978_v15 = vld [vmem:[#allocation12_spill] sm:$0xff] }
 0x3d1   : > { %16976 = vst [vmem:[#allocation10_spill] sm:$0xff] %v15061_v32  ;;  %v4347_v46 = vpop.f32.mrf.mxu1  ;;  %7108 = vmatprep.mubr.bf16.mxu0 %v15061_v32  ;;  %7202 = vmatmul.mubr.bf16.gmra.mxu1 %v13399_v56  ;;  %v4784_v28 = vmul.f32 0.01, %v4473_v44  ;;  %vm4624_vm3 = vcmp.gt.f32.partialorder %v4473_v44, 0.0 }
 0x3d2   : > { %vm4631_vm1 = vcmp.gt.f32.partialorder %v4475_v9, 0.0  ;;  %v4791_v2 = vmul.f32 0.01, %v4475_v9  ;;  %v4477_v47 = vadd.f32 %v4476_v40, %v4344_v13  ;;  %v4480_v53 = vpop.f32.mrf.mxu0  ;;  %7109 = vmatmul.mubr.bf16.gmra.mxu0 %v15069_v50  ;;  %7211 = vmatprep.mubr.bf16.mxu1 %v13420_v16  ;;  %v4348_v56 = vadd.f32 %v4347_v46, %v14599_v55  ;;  %v10787_v16 = vld [vmem:[%s16565_s7 + $0x6ec] ss:$16 sps:$4 sm:$0xff]  }
 0x3d3   : > { %v4349_v12 = vpop.f32.mrf.mxu1  ;;  %7301 = vmatpush2.bf16.msra.mxu0 %v10770_v61  ;;  %7418 = vmatpush1.bf16.msra.mxu1 %v10773_v30  ;;  %v15101_v61 = vrot.slane %v5305_v33, %v16978_v15  ;;  %v4943_v30 = vsel %vm4623_vm2, %v4471_v26, %v4783_v51 }
 0x3d4   : > { %vm4632_vm4 = vcmp.gt.f32.partialorder %v4477_v47, 0.0  ;;  %v4792_v17 = vmul.f32 0.01, %v4477_v47  ;;  %v4482_v31 = vpop.f32.mrf.mxu0  ;;  %7302 = vmatprep.subr.bf16.mxu0 %v10778_v19  ;;  %7419 = vmatprep.subr.bf16.mxu1 %v10781_v6  ;;  %v4951_v43 = vsel %vm4631_vm1, %v4475_v9, %v4791_v2  ;;  %v4350_v18 = vadd.f32 %v4349_v12, %v14601_v25  ;;  %v10782_v9 = vld [vmem:[%s16565_s7 + $0x5e8] ss:$16 sps:$4 sm:$0xff]  }
 0x3d5   : > { %v4351_v29 = vpop.f32.mrf.mxu1  ;;  %v4944_v19 = vsel %vm4624_vm3, %v4473_v44, %v4784_v28  ;;  %v4481_v46 = vadd.f32 %v4480_v53, %v4348_v56  ;;  %v15111_v2 = vpack.c.bf16 %v4951_v43, %v4943_v30  ;;  %v10790_v44 = vld [vmem:[%s16565_s7 + $0x5cc] ss:$16 sps:$4 sm:$0xff]  }
 0x3d6   : > { %v4352_v13 = vadd.f32 %v4351_v29, %v14599_v55  ;;  %v4484_v40 = vpop.f32.mrf.mxu0  ;;  %v4952_v6 = vsel %vm4632_vm4, %v4477_v47, %v4792_v17  ;;  %v4483_v50 = vadd.f32 %v4482_v31, %v4350_v18 }
 0x3d7   : > { %v4353_v32 = vpop.f32.mrf.mxu1  ;;  %v15106_v60 = vpack.c.bf16 %v4952_v6, %v4944_v19  ;;  %7303 = vmatpush2.bf16.msra.mxu0 %v10776_v27  ;;  %7420 = vmatpush1.bf16.msra.mxu1 %v10779_v39  ;;  %16979 = vst [vmem:[#allocation33_spill] sm:$0xff] %v15111_v2  ;;  %v16980_v27 = vld [vmem:[#allocation11_spill] sm:$0xff]  ;;  %v4799_v39 = vmul.f32 0.01, %v4481_v46  ;;  %vm4639_vm7 = vcmp.gt.f32.partialorder %v4481_v46, 0.0 }
 0x3d8   : > { %v4485_v26 = vadd.f32 %v4484_v40, %v4352_v13  ;;  %v4354_v55 = vadd.f32 %v4353_v32, %v14601_v25  ;;  %v4486_v51 = vpop.f32.mrf.mxu0  ;;  %7421 = vmatprep.subr.bf16.mxu1 %v10784_v3  ;;  %7538 = vmatprep.subr.bf16.mxu0 %v10787_v16  ;;  %v4800_v28 = vmul.f32 0.01, %v4483_v50  ;;  %v15120_v53 = vrot.slane %v5305_v33, %v16980_v27  ;;  %v10796_v16 = vld [vmem:[%s16565_s7 + $0x5ac] ss:$16 sps:$4 sm:$0xff]  }
 0x3d9   : > { %v6641_v47 = vpop.f32.mrf.mxu1  ;;  %7118 = vmatprep.mubr.bf16.mxu0 %v15106_v60  ;;  %7212 = vmatmul.mubr.bf16.gmra.mxu1 %v13412_v36  ;;  %vm4640_vm6 = vcmp.gt.f32.partialorder %v4483_v50, 0.0  ;;  %v10788_v36 = vld [vmem:[%s16565_s7 + $0x5c8] ss:$16 sps:$4 sm:$0xff]   ;;  %v4959_v19 = vsel %vm4639_vm7, %v4481_v46, %v4799_v39 }
 0x3da   : > { %vm4647_vm5 = vcmp.gt.f32.partialorder %v4485_v26, 0.0  ;;  %v4807_v56 = vmul.f32 0.01, %v4485_v26  ;;  %v4487_v12 = vadd.f32 %v4486_v51, %v4354_v55  ;;  %v6642_v25 = vadd.f32 %v6641_v47, %v15101_v61  ;;  %v6774_v32 = vpop.f32.mrf.mxu0  ;;  %7119 = vmatmul.mubr.bf16.gmra.mxu0 %v15111_v2  ;;  %7221 = vmatprep.mubr.bf16.mxu1 %v13454_v10  ;;  %v10800_v39 = vld [vmem:[%s16565_s7 + $0x588] ss:$16 sps:$4 sm:$0xff]   ;;  %v17000_v2 = vld [vmem:[#allocation16_spill] sm:$0xff] }
 0x3db   : > { %v6643_v3 = vpop.f32.mrf.mxu1  ;;  %7422 = vmatpush2.bf16.msra.mxu1 %v10782_v9  ;;  %v4960_v13 = vsel %vm4640_vm6, %v4483_v50, %v4800_v28  ;;  %v10802_v50 = vld [vmem:[%s16565_s7 + $0x58c] ss:$16 sps:$4 sm:$0xff]  }
 0x3dc   : > { %vm4648_vm8 = vcmp.gt.f32.partialorder %v4487_v12, 0.0  ;;  %v4808_v33 = vmul.f32 0.01, %v4487_v12  ;;  %v15128_v17 = vadd.f32 %v6774_v32, %v6642_v25  ;;  %v6776_v31 = vpop.f32.mrf.mxu0  ;;  %7423 = vmatprep.subr.bf16.mxu1 %v10790_v44  ;;  %v4967_v10 = vsel %vm4647_vm5, %v4485_v26, %v4807_v56  ;;  %v10794_v26 = vld [vmem:[%s16565_s7 + $0x5a8] ss:$16 sps:$4 sm:$0xff]   ;;  %v16984_v32 = vld [vmem:[#allocation38_spill] sm:$0xff] }
 0x3dd   : > { %v6644_v43 = vadd.f32 %v6643_v3, %v15120_v53  ;;  %v6645_v18 = vpop.f32.mrf.mxu1  ;;  %v15146_v51 = vpack.c.bf16 %v4967_v10, %v4959_v19  ;;  %v10806_v19 = vld [vmem:[%s16565_s7 + $0x568] ss:$16 sps:$4 sm:$0xff]  }
 0x3de   : > { %v6646_v29 = vadd.f32 %v6645_v18, %v15101_v61  ;;  %v6778_v30 = vpop.f32.mrf.mxu0  ;;  %v4968_v40 = vsel %vm4648_vm8, %v4487_v12, %v4808_v33  ;;  %v16983_v12 = vld [vmem:[#allocation30_spill] sm:$0xff]  ;;  %v10808_v33 = vld [vmem:[%s16565_s7 + $0x56c] ss:$16 sps:$4 sm:$0xff]  }
 0x3df   : > { %v15137_v6 = vadd.f32 %v6776_v31, %v6644_v43  ;;  %v15139_v9 = vpop.f32.mrf.mxu1  ;;  %v15141_v55 = vpack.c.bf16 %v4968_v40, %v4960_v13  ;;  %7424 = vmatpush2.bf16.msra.mxu1 %v10788_v36  ;;  %16982 = vst [vmem:[#allocation35_spill] sm:$0xff] %v15146_v51  ;;  %v10793_v40 = vld [vmem:[%s16565_s7 + $0x6cc] ss:$16 sps:$4 sm:$0xff]  }
 0x3e0   : > { %v15148_v44 = vadd.f32 %v6778_v30, %v6646_v29  ;;  %v15150_v47 = vpop.f32.mrf.mxu0  ;;  %7425 = vmatprep.subr.bf16.mxu1 %v10796_v16  ;;  %v10785_v29 = vld [vmem:[%s16565_s7 + $0x6e8] ss:$16 sps:$4 sm:$0xff]  }
 0x3e1   : > { %16981 = vst [vmem:[#allocation36_spill] sm:$0xff] %v15141_v55  ;;  %v6651_v46 = vpop.f32.mrf.mxu1  ;;  %7128 = vmatprep.mubr.bf16.mxu0 %v15141_v55  ;;  %7222 = vmatmul.mubr.bf16.gmra.mxu1 %v13433_v38 }
 0x3e2   : > { %v6652_v28 = vadd.f32 %v6651_v46, %v15101_v61  ;;  %v6784_v56 = vpop.f32.mrf.mxu0  ;;  %7129 = vmatmul.mubr.bf16.gmra.mxu0 %v15146_v51  ;;  %7231 = vmatprep.mubr.bf16.mxu1 %v16983_v12  ;;  %v10811_v46 = vld [vmem:[%s16565_s7 + $0x54c] ss:$16 sps:$4 sm:$0xff]   ;;  %v16986_v12 = vld [vmem:[#allocation32_spill] sm:$0xff] }
 0x3e3   : > { %v6653_v25 = vpop.f32.mrf.mxu1  ;;  %7304 = vmatprep.mubr.bf16.mxu0 %v16984_v32  ;;  %7426 = vmatpush2.bf16.msra.mxu1 %v10794_v26 }
 0x3e4   : > { %v15164_v3 = vadd.f32 %v6784_v56, %v6652_v28  ;;  %v6654_v36 = vadd.f32 %v6653_v25, %v15120_v53  ;;  %v6786_v38 = vpop.f32.mrf.mxu0  ;;  %7427 = vmatprep.subr.bf16.mxu1 %v10802_v50  ;;  %v16985_v50 = vld [vmem:[#allocation29_spill] sm:$0xff]  ;;  %v16987_v25 = vld [vmem:[#allocation39_spill] sm:$0xff] }
 0x3e5   : > { %v6655_v31 = vpop.f32.mrf.mxu1 }
 0x3e6   : > { %v15170_v16 = vadd.f32 %v6786_v38, %v6654_v36  ;;  %v6656_v10 = vadd.f32 %v6655_v31, %v15101_v61  ;;  %v6788_v43 = vpop.f32.mrf.mxu0  ;;  %v10791_v36 = vld [vmem:[%s16565_s7 + $0x6c8] ss:$16 sps:$4 sm:$0xff]  }
 0x3e7   : > { %v15173_v18 = vpop.f32.mrf.mxu1  ;;  %7428 = vmatpush2.bf16.msra.mxu1 %v10800_v39  ;;  %v16988_v39 = vld [vmem:[#allocation40_spill] sm:$0xff] }
 0x3e8   : > { %v15178_v30 = vadd.f32 %v6788_v43, %v6656_v10  ;;  %v15180_v13 = vpop.f32.mrf.mxu0  ;;  %7429 = vmatprep.subr.bf16.mxu1 %v10808_v33  ;;  %v10799_v10 = vld [vmem:[%s16565_s7 + $0x6ac] ss:$16 sps:$4 sm:$0xff]   ;;  %v10809_v43 = vld [vmem:[%s16565_s7 + $0x548] ss:$16 sps:$4 sm:$0xff]  }
 0x3e9   : > { %v6661_v26 = vpop.f32.mrf.mxu1  ;;  %7232 = vmatmul.mubr.bf16.gmra.mxu1 %v16985_v50 }
 0x3ea   : > { %v6662_v28 = vadd.f32 %v6661_v26, %v15101_v61  ;;  %v6794_v56 = vpop.f32.mrf.mxu0  ;;  %7241 = vmatprep.mubr.bf16.mxu1 %v16986_v12  ;;  %7305 = vmatmul.mubr.bf16.vlgmr.msra.gmra.mxu0 %v16987_v25  ;;  %v10817_v26 = vld [vmem:[%s16565_s7 + $0x52c] ss:$16 sps:$4 sm:$0xff]  }
 0x3eb   : > { %7539 = vmatpush1.bf16.msra.mxu0 %v10785_v29  ;;  %v6663_v32 = vpop.f32.mrf.mxu1  ;;  %7314 = vmatprep.mubr.bf16.mxu0 %v16988_v39 }
 0x3ec   : > { %v15199_v38 = vadd.f32 %v6794_v56, %v6662_v28  ;;  %v6664_v33 = vadd.f32 %v6663_v32, %v15120_v53  ;;  %v6796_v31 = vpop.f32.mrf.mxu0  ;;  %7540 = vmatprep.subr.bf16.mxu0 %v10793_v40  ;;  %7430 = vmatpush2.bf16.msra.mxu1 %v10806_v19  ;;  %v10797_v19 = vld [vmem:[%s16565_s7 + $0x6a8] ss:$16 sps:$4 sm:$0xff]  }
 0x3ed   : > { %v6665_v29 = vpop.f32.mrf.mxu1  ;;  %7431 = vmatprep.subr.bf16.mxu1 %v10811_v46  ;;  %v10805_v46 = vld [vmem:[%s16565_s7 + $0x68c] ss:$16 sps:$4 sm:$0xff]   ;;  %v10815_v32 = vld [vmem:[%s16565_s7 + $0x528] ss:$16 sps:$4 sm:$0xff]  }
 0x3ee   : > { %v15211_v50 = vadd.f32 %v6796_v31, %v6664_v33  ;;  %v6666_v28 = vadd.f32 %v6665_v29, %v15101_v61  ;;  %v6798_v40 = vpop.f32.mrf.mxu0  ;;  %v10823_v33 = vld [vmem:[%s16565_s7 + $0x50c] ss:$16 sps:$4 sm:$0xff]   ;;  %v16990_v29 = vld [vmem:[#allocation34_spill] sm:$0xff] }
 0x3ef   : > { %v15214_v56 = vpop.f32.mrf.mxu1  ;;  %7541 = vmatpush1.bf16.msra.mxu0 %v10791_v36  ;;  %v16989_v36 = vld [vmem:[#allocation31_spill] sm:$0xff] }
 0x3f0   : > { %v15219_v12 = vadd.f32 %v6798_v40, %v6666_v28  ;;  %v15221_v25 = vpop.f32.mrf.mxu0  ;;  %7542 = vmatprep.subr.bf16.mxu0 %v10799_v10  ;;  %7432 = vmatpush2.bf16.msra.mxu1 %v10809_v43  ;;  %v16991_v28 = vld [vmem:[#allocation41_spill] sm:$0xff]  ;;  %v16992_v40 = vld [vmem:[#allocation42_spill] sm:$0xff] }
 0x3f1   : > { %v6671_v39 = vpop.f32.mrf.mxu1  ;;  %7242 = vmatmul.mubr.bf16.gmra.mxu1 %v16989_v36  ;;  %7433 = vmatprep.subr.bf16.mxu1 %v10817_v26  ;;  %v10803_v36 = vld [vmem:[%s16565_s7 + $0x688] ss:$16 sps:$4 sm:$0xff]  }
 0x3f2   : > { %v6672_v31 = vadd.f32 %v6671_v39, %v15101_v61  ;;  %v6804_v10 = vpop.f32.mrf.mxu0  ;;  %7251 = vmatprep.mubr.bf16.mxu1 %v16990_v29  ;;  %7315 = vmatmul.mubr.bf16.gmra.mxu0 %v16991_v28  ;;  %v10814_v39 = vld [vmem:[%s16565_s7 + $0x66c] ss:$16 sps:$4 sm:$0xff]   ;;  %v10821_v29 = vld [vmem:[%s16565_s7 + $0x508] ss:$16 sps:$4 sm:$0xff]  }
 0x3f3   : > { %v6673_v43 = vpop.f32.mrf.mxu1  ;;  %7324 = vmatprep.mubr.bf16.mxu0 %v16992_v40  ;;  %7543 = vmatpush1.bf16.msra.mxu0 %v10797_v19 }
 0x3f4   : > { %v15240_v26 = vadd.f32 %v6804_v10, %v6672_v31  ;;  %v6674_v15 = vadd.f32 %v6673_v43, %v15120_v53  ;;  %v6806_v27 = vpop.f32.mrf.mxu0  ;;  %7544 = vmatprep.subr.bf16.mxu0 %v10805_v46  ;;  %7434 = vmatpush2.bf16.msra.mxu1 %v10815_v32  ;;  %v10847_v31 = vld [vmem:[%s16567_s9 + $0x74] ss:$8 sps:$4 sm:$0xff]   ;;  %v10812_v32 = vld [vmem:[%s16565_s7 + $0x668] ss:$16 sps:$4 sm:$0xff]  }
 0x3f5   : > { %v6675_v19 = vpop.f32.mrf.mxu1  ;;  %7435 = vmatprep.subr.bf16.mxu1 %v10823_v33 }
 0x3f6   : > { %v15252_v10 = vadd.f32 %v6806_v27, %v6674_v15  ;;  %v6676_v28 = vadd.f32 %v6675_v19, %v15101_v61  ;;  %v6808_v46 = vpop.f32.mrf.mxu0  ;;  %v10820_v15 = vld [vmem:[%s16565_s7 + $0x64c] ss:$16 sps:$4 sm:$0xff]  }
 0x3f7   : > { %v15255_v43 = vpop.f32.mrf.mxu1  ;;  %7545 = vmatpush1.bf16.msra.mxu0 %v10803_v36  ;;  %v16993_v19 = vld [vmem:[#allocation43_spill] sm:$0xff] }
 0x3f8   : > { %v15260_v40 = vadd.f32 %v6808_v46, %v6676_v28  ;;  %v15262_v51 = vpop.f32.mrf.mxu0  ;;  %7546 = vmatprep.subr.bf16.mxu0 %v10814_v39  ;;  %7436 = vmatpush2.bf16.msra.mxu1 %v10821_v29  ;;  %v16994_v46 = vld [vmem:[#allocation44_spill] sm:$0xff]  ;;  %v10818_v39 = vld [vmem:[%s16565_s7 + $0x648] ss:$16 sps:$4 sm:$0xff]  }
 0x3f9   : > { %v6681_v27 = vpop.f32.mrf.mxu1  ;;  %7252 = vmatmul.mubr.bf16.gmra.mxu1 %v16957_v5  ;;  %8347 = vmatprep.subr.bf16.mxu1 %v10847_v31 }
 0x3fa   : > { %v6682_v33 = vadd.f32 %v6681_v27, %v15101_v61  ;;  %v6814_v36 = vpop.f32.mrf.mxu0  ;;  %7261 = vmatprep.mubr.bf16.mxu1 %v16959_v35  ;;  %7325 = vmatmul.mubr.bf16.gmra.mxu0 %v16993_v19  ;;  %v10826_v35 = vld [vmem:[%s16565_s7 + $0x62c] ss:$16 sps:$4 sm:$0xff]  }
 0x3fb   : > { %v6683_v28 = vpop.f32.mrf.mxu1  ;;  %7334 = vmatprep.mubr.bf16.mxu0 %v16994_v46  ;;  %7547 = vmatpush1.bf16.msra.mxu0 %v10812_v32 }
 0x3fc   : > { %v15275_v29 = vadd.f32 %v6814_v36, %v6682_v33  ;;  %v6684_v5 = vadd.f32 %v6683_v28, %v15120_v53  ;;  %v6816_v31 = vpop.f32.mrf.mxu0  ;;  %7548 = vmatprep.subr.bf16.mxu0 %v10820_v15  ;;  %v10824_v33 = vld [vmem:[%s16565_s7 + $0x628] ss:$16 sps:$4 sm:$0xff]   ;;  %v10829_v28 = vld [vmem:[%s16565_s7 + $0x60c] ss:$16 sps:$4 sm:$0xff]  }
 0x3fd   : > { %v6685_v27 = vpop.f32.mrf.mxu1 }
 0x3fe   : > { %16995 = vst [vmem:[#allocation25_spill] sm:$0xff] %v15275_v29  ;;  %v15281_v19 = vadd.f32 %v6816_v31, %v6684_v5  ;;  %v6686_v46 = vadd.f32 %v6685_v27, %v15101_v61  ;;  %v6818_v32 = vpop.f32.mrf.mxu0 }
 0x3ff   : > { %v15284_v55 = vpop.f32.mrf.mxu1  ;;  %7549 = vmatpush1.bf16.msra.mxu0 %v10818_v39  ;;  %v16999_v39 = vld [vmem:[#allocation45_spill] sm:$0xff] }
 0x400   : > { %16996 = vst [vmem:[#allocation24_spill] sm:$0xff] %v15281_v19  ;;  %v15289_v36 = vadd.f32 %v6818_v32, %v6686_v46  ;;  %v15291_v15 = vpop.f32.mrf.mxu0  ;;  %7550 = vmatprep.subr.bf16.mxu0 %v10826_v35  ;;  %v17001_v46 = vld [vmem:[#allocation46_spill] sm:$0xff]  ;;  %v10827_v35 = vld [vmem:[%s16565_s7 + $0x608] ss:$16 sps:$4 sm:$0xff]  }
 0x401   : > { %16998 = vst [vmem:[#allocation28_spill] sm:$0xff] %v15291_v15  ;;  %v6691_v5 = vpop.f32.mrf.mxu1  ;;  %7262 = vmatmul.mubr.bf16.gmra.mxu1 %v16962_v34 }
 0x402   : > { %16997 = vst [vmem:[#allocation27_spill] sm:$0xff] %v15289_v36  ;;  %v6692_v31 = vadd.f32 %v6691_v5, %v15101_v61  ;;  %v6824_v27 = vpop.f32.mrf.mxu0  ;;  %7335 = vmatmul.mubr.bf16.gmra.mxu0 %v16999_v39  ;;  %7437 = vmatprep.mubr.bf16.mxu1 %v17000_v2  ;;  %v10832_v5 = vld [vmem:[%s16565_s7 + $0x7ec] ss:$16 sps:$4 sm:$0xff]  }
 0x403   : > { %v6693_v19 = vpop.f32.mrf.mxu1  ;;  %7344 = vmatprep.mubr.bf16.mxu0 %v17001_v46  ;;  %7551 = vmatpush1.bf16.msra.mxu0 %v10824_v33 }
 0x404   : > { %v15304_v32 = vadd.f32 %v6824_v27, %v6692_v31  ;;  %v6694_v36 = vadd.f32 %v6693_v19, %v15120_v53  ;;  %v6826_v34 = vpop.f32.mrf.mxu0  ;;  %7552 = vmatprep.subr.bf16.mxu0 %v10829_v28  ;;  %v10830_v31 = vld [vmem:[%s16565_s7 + $0x7e8] ss:$16 sps:$4 sm:$0xff]  }
 0x405   : > { %v6695_v39 = vpop.f32.mrf.mxu1  ;;  %v10845_v27 = vld [vmem:[%s16567_s9 + $0x70] ss:$8 sps:$4 sm:$0xff]  }
 0x406   : > { %17002 = vst [vmem:[#allocation30_spill] sm:$0xff] %v15304_v32  ;;  %v15310_v2 = vadd.f32 %v6826_v34, %v6694_v36  ;;  %v6696_v46 = vadd.f32 %v6695_v39, %v15101_v61  ;;  %v6828_v33 = vpop.f32.mrf.mxu0  ;;  %v10835_v36 = vld [vmem:[%s16565_s7 + $0x7cc] ss:$16 sps:$4 sm:$0xff]   ;;  %v10833_v32 = vld [vmem:[%s16565_s7 + $0x7c8] ss:$16 sps:$4 sm:$0xff]  }
 0x407   : > { %v15313_v15 = vpop.f32.mrf.mxu1  ;;  %7553 = vmatpush1.bf16.msra.mxu0 %v10827_v35  ;;  %v17007_v39 = vld [vmem:[#allocation55_spill] sm:$0xff] }
 0x408   : > { %17003 = vst [vmem:[#allocation38_spill] sm:$0xff] %v15310_v2  ;;  %17004 = vst [vmem:[#allocation29_spill] sm:$0xff] %v15313_v15  ;;  %v15318_v19 = vadd.f32 %v6828_v33, %v6696_v46  ;;  %v15320_v28 = vpop.f32.mrf.mxu0  ;;  %7554 = vmatprep.subr.bf16.mxu0 %v10832_v5  ;;  %v10853_v35 = vld [vmem:[%s16567_s9 + $0x64] ss:$8 sps:$4 sm:$0xff]   ;;  %v17010_v2 = vld [vmem:[#allocation48_spill] sm:$0xff] }
 0x409   : > { %17006 = vst [vmem:[#allocation39_spill] sm:$0xff] %v15320_v28  ;;  %v6701_v34 = vpop.f32.mrf.mxu1  ;;  %7438 = vmatmul.mubr.bf16.vlgmr.msra.gmra.mxu1 %v17007_v39  ;;  %v17009_v5 = vld [vmem:[#allocation15_spill] sm:$0xff] }
 0x40a   : > { %17005 = vst [vmem:[#allocation32_spill] sm:$0xff] %v15318_v19  ;;  %v6702_v46 = vadd.f32 %v6701_v34, %v15101_v61  ;;  %v6834_v33 = vpop.f32.mrf.mxu0  ;;  %v17008_v19 = vld [vmem:[#allocation47_spill] sm:$0xff]  ;;  %7447 = vmatprep.mubr.bf16.mxu1 %v17009_v5  ;;  %8348 = vmatpush1.bf16.msra.mxu1 %v10845_v27  ;;  %v10859_v34 = vld [vmem:[%s16567_s9 + $0x54] ss:$8 sps:$4 sm:$0xff]  }
 0x40b   : > { %7345 = vmatmul.mubr.bf16.gmra.mxu0 %v17008_v19  ;;  %v6703_v28 = vpop.f32.mrf.mxu1  ;;  %v10838_v19 = vld [vmem:[%s16565_s7 + $0x7ac] ss:$16 sps:$4 sm:$0xff]   ;;  %8349 = vmatprep.subr.bf16.mxu1 %v10853_v35  ;;  %v10836_v27 = vld [vmem:[%s16565_s7 + $0x7a8] ss:$16 sps:$4 sm:$0xff]  }
 0x40c   : > { %7354 = vmatprep.mubr.bf16.mxu0 %v17010_v2  ;;  %7555 = vmatpush2.bf16.msra.mxu0 %v10830_v31  ;;  %v15339_v39 = vadd.f32 %v6834_v33, %v6702_v46  ;;  %v6704_v15 = vadd.f32 %v6703_v28, %v15120_v53  ;;  %v6836_v29 = vpop.f32.mrf.mxu0  ;;  %v10851_v2 = vld [vmem:[%s16567_s9 + $0x60] ss:$8 sps:$4 sm:$0xff]  }
 0x40d   : > { %7556 = vmatprep.subr.bf16.mxu0 %v10835_v36  ;;  %v6705_v31 = vpop.f32.mrf.mxu1 }
 0x40e   : > { %17011 = vst [vmem:[#allocation40_spill] sm:$0xff] %v15339_v39  ;;  %v15351_v46 = vadd.f32 %v6836_v29, %v6704_v15  ;;  %v6706_v28 = vadd.f32 %v6705_v31, %v15101_v61  ;;  %v6838_v36 = vpop.f32.mrf.mxu0  ;;  %v10841_v29 = vld [vmem:[%s16565_s7 + $0x78c] ss:$16 sps:$4 sm:$0xff]   ;;  %8350 = vmatpush1.bf16.msra.mxu1 %v10851_v2  ;;  %v10857_v15 = vld [vmem:[%s16567_s9 + $0x50] ss:$8 sps:$4 sm:$0xff]  }
 0x40f   : > { %v15354_v33 = vpop.f32.mrf.mxu1  ;;  %8351 = vmatprep.subr.bf16.mxu1 %v10859_v34  ;;  %v10865_v31 = vld [vmem:[%s16567_s9 + $0x44] ss:$8 sps:$4 sm:$0xff]  }
 0x410   : > { %17012 = vst [vmem:[#allocation31_spill] sm:$0xff] %v15351_v46  ;;  %17013 = vst [vmem:[#allocation34_spill] sm:$0xff] %v15354_v33  ;;  %7557 = vmatpush2.bf16.msra.mxu0 %v10833_v32  ;;  %v15359_v5 = vadd.f32 %v6838_v36, %v6706_v28  ;;  %v15361_v39 = vpop.f32.mrf.mxu0  ;;  %v17016_v32 = vld [vmem:[#allocation56_spill] sm:$0xff]  ;;  %v17017_v36 = vld [vmem:[#allocation49_spill] sm:$0xff] }
 0x411   : > { %17015 = vst [vmem:[#allocation42_spill] sm:$0xff] %v15361_v39  ;;  %7558 = vmatprep.subr.bf16.mxu0 %v10838_v19  ;;  %v6711_v35 = vpop.f32.mrf.mxu1  ;;  %7448 = vmatmul.mubr.bf16.gmra.mxu1 %v17016_v32  ;;  %v17019_v39 = vld [vmem:[#allocation50_spill] sm:$0xff]  ;;  %v10839_v32 = vld [vmem:[%s16565_s7 + $0x788] ss:$16 sps:$4 sm:$0xff]  }
 0x412   : > { %17014 = vst [vmem:[#allocation41_spill] sm:$0xff] %v15359_v5  ;;  %v6712_v28 = vadd.f32 %v6711_v35, %v15101_v61  ;;  %v6844_v19 = vpop.f32.mrf.mxu0  ;;  %v17018_v5 = vld [vmem:[#allocation17_spill] sm:$0xff]  ;;  %8352 = vmatpush1.bf16.msra.mxu1 %v10857_v15 }
 0x413   : > { %7355 = vmatmul.mubr.bf16.gmra.mxu0 %v17017_v36  ;;  %7457 = vmatprep.mubr.bf16.mxu1 %v17018_v5  ;;  %v6713_v2 = vpop.f32.mrf.mxu1  ;;  %v10844_v35 = vld [vmem:[%s16565_s7 + $0x76c] ss:$16 sps:$4 sm:$0xff]   ;;  %v10842_v15 = vld [vmem:[%s16565_s7 + $0x768] ss:$16 sps:$4 sm:$0xff]  }
 0x414   : > { %7364 = vmatprep.mubr.bf16.mxu0 %v17019_v39  ;;  %7559 = vmatpush2.bf16.msra.mxu0 %v10836_v27  ;;  %v15380_v34 = vadd.f32 %v6844_v19, %v6712_v28  ;;  %v6714_v46 = vadd.f32 %v6713_v2, %v15120_v53  ;;  %v6846_v33 = vpop.f32.mrf.mxu0  ;;  %v10863_v39 = vld [vmem:[%s16567_s9 + $0x40] ss:$8 sps:$4 sm:$0xff]   ;;  %v10868_v5 = vld [vmem:[%s16567_s9 + $0x34] ss:$8 sps:$4 sm:$0xff]  }
 0x415   : > { %7560 = vmatprep.subr.bf16.mxu0 %v10841_v29  ;;  %v6715_v27 = vpop.f32.mrf.mxu1  ;;  %8353 = vmatprep.subr.bf16.mxu1 %v10865_v31 }
 0x416   : > { %17020 = vst [vmem:[#allocation43_spill] sm:$0xff] %v15380_v34  ;;  %v15392_v28 = vadd.f32 %v6846_v33, %v6714_v46  ;;  %v6716_v19 = vadd.f32 %v6715_v27, %v15101_v61  ;;  %v6848_v29 = vpop.f32.mrf.mxu0  ;;  %v10850_v46 = vld [vmem:[%s16565_s7 + $0x74c] ss:$16 sps:$4 sm:$0xff]   ;;  %8354 = vmatpush1.bf16.msra.mxu1 %v10863_v39  ;;  %v10866_v33 = vld [vmem:[%s16567_s9 + $0x30] ss:$8 sps:$4 sm:$0xff]  }
 0x417   : > { %v15395_v36 = vpop.f32.mrf.mxu1  ;;  %8355 = vmatprep.subr.bf16.mxu1 %v10868_v5 }
 0x418   : > { %7561 = vmatpush2.bf16.msra.mxu0 %v10839_v32  ;;  %v15400_v2 = vadd.f32 %v6848_v29, %v6716_v19  ;;  %v15402_v34 = vpop.f32.mrf.mxu0  ;;  %v10871_v32 = vld [vmem:[%s16567_s9 + $0x24] ss:$8 sps:$4 sm:$0xff]   ;;  %v17024_v29 = vld [vmem:[#allocation52_spill] sm:$0xff] }
 0x419   : > { %17022 = vst [vmem:[#allocation45_spill] sm:$0xff] %v15402_v34  ;;  %7562 = vmatprep.subr.bf16.mxu0 %v10844_v35  ;;  %v6721_v31 = vpop.f32.mrf.mxu1  ;;  %7458 = vmatmul.mubr.bf16.gmra.mxu1 %v14538_v58  ;;  %v17023_v19 = vld [vmem:[#allocation51_spill] sm:$0xff] }
 0x41a   : > { %17021 = vst [vmem:[#allocation44_spill] sm:$0xff] %v15400_v2  ;;  %v6722_v27 = vadd.f32 %v6721_v31, %v15101_v61  ;;  %v6854_v35 = vpop.f32.mrf.mxu0  ;;  %7467 = vmatprep.mubr.bf16.mxu1 %v14555_v11  ;;  %v10848_v58 = vld [vmem:[%s16565_s7 + $0x748] ss:$16 sps:$4 sm:$0xff]   ;;  %v10856_v31 = vld [vmem:[%s16565_s7 + $0x72c] ss:$16 sps:$4 sm:$0xff]   ;;  %8356 = vmatpush1.bf16.msra.mxu1 %v10866_v33 }
 0x41b   : > { %7365 = vmatmul.mubr.bf16.gmra.mxu0 %v17023_v19  ;;  %v6723_v39 = vpop.f32.mrf.mxu1  ;;  %v10869_v11 = vld [vmem:[%s16567_s9 + $0x20] ss:$8 sps:$4 sm:$0xff]   ;;  %8357 = vmatprep.subr.bf16.mxu1 %v10871_v32 }
 0x41c   : > { %7374 = vmatprep.mubr.bf16.mxu0 %v17024_v29  ;;  %7563 = vmatpush2.bf16.msra.mxu0 %v10842_v15  ;;  %v15421_v5 = vadd.f32 %v6854_v35, %v6722_v27  ;;  %v6724_v2 = vadd.f32 %v6723_v39, %v15120_v53  ;;  %v6856_v34 = vpop.f32.mrf.mxu0  ;;  %v10874_v27 = vld [vmem:[%s16567_s9 + $0x14] ss:$8 sps:$4 sm:$0xff]   ;;  %v10854_v33 = vld [vmem:[%s16565_s7 + $0x728] ss:$16 sps:$4 sm:$0xff]  }
 0x41d   : > { %7564 = vmatprep.subr.bf16.mxu0 %v10850_v46  ;;  %v6725_v15 = vpop.f32.mrf.mxu1 }
 0x41e   : > { %17025 = vst [vmem:[#allocation16_spill] sm:$0xff] %v15421_v5  ;;  %v15433_v35 = vadd.f32 %v6856_v34, %v6724_v2  ;;  %v6726_v19 = vadd.f32 %v6725_v15, %v15101_v61  ;;  %v6858_v46 = vpop.f32.mrf.mxu0  ;;  %v10862_v34 = vld [vmem:[%s16565_s7 + $0x70c] ss:$16 sps:$4 sm:$0xff]   ;;  %8358 = vmatpush1.bf16.msra.mxu1 %v10869_v11  ;;  %v10872_v2 = vld [vmem:[%s16567_s9 + $0x10] ss:$8 sps:$4 sm:$0xff]  }
 0x41f   : > { %v15436_v39 = vpop.f32.mrf.mxu1  ;;  %8359 = vmatprep.subr.bf16.mxu1 %v10874_v27  ;;  %v10877_v15 = vld [vmem:[%s16567_s9 + $0x4] ss:$8 sps:$4 sm:$0xff]  }
 0x420   : > { %17026 = vst [vmem:[#allocation46_spill] sm:$0xff] %v15433_v35  ;;  %17027 = vst [vmem:[#allocation55_spill] sm:$0xff] %v15436_v39  ;;  %7565 = vmatpush2.bf16.msra.mxu0 %v10848_v58  ;;  %v15441_v29 = vadd.f32 %v6858_v46, %v6726_v19  ;;  %v15443_v5 = vpop.f32.mrf.mxu0  ;;  %v17030_v58 = vld [vmem:[#allocation19_spill] sm:$0xff]  ;;  %v17031_v46 = vld [vmem:[#allocation18_spill] sm:$0xff] }
 0x421   : > { %17029 = vst [vmem:[#allocation15_spill] sm:$0xff] %v15443_v5  ;;  %7566 = vmatprep.subr.bf16.mxu0 %v10856_v31  ;;  %v6731_v32 = vpop.f32.mrf.mxu1  ;;  %7468 = vmatmul.mubr.bf16.gmra.mxu1 %v17030_v58  ;;  %v17033_v5 = vld [vmem:[#allocation20_spill] sm:$0xff]  ;;  %v10860_v58 = vld [vmem:[%s16565_s7 + $0x708] ss:$16 sps:$4 sm:$0xff]  }
 0x422   : > { %17028 = vst [vmem:[#allocation47_spill] sm:$0xff] %v15441_v29  ;;  %v6732_v19 = vadd.f32 %v6731_v32, %v15101_v61  ;;  %v6864_v31 = vpop.f32.mrf.mxu0  ;;  %v17032_v29 = vld [vmem:[#allocation21_spill] sm:$0xff]  ;;  %8360 = vmatpush1.bf16.msra.mxu1 %v10872_v2  ;;  %v10875_v32 = vld [vmem:[%s16567_s9] ss:$8 sps:$4 sm:$0xff]  }
 0x423   : > { %7375 = vmatmul.mubr.bf16.gmra.mxu0 %v17031_v46  ;;  %7477 = vmatprep.mubr.bf16.mxu1 %v17032_v29  ;;  %v6733_v11 = vpop.f32.mrf.mxu1  ;;  %v10878_v2 = vld [vmem:[%s16567_s9 + $0xf0] ss:$8 sps:$4 sm:$0xff]  }
 0x424   : > { %7384 = vmatprep.mubr.bf16.mxu0 %v17033_v5  ;;  %7567 = vmatpush2.bf16.msra.mxu0 %v10854_v33  ;;  %v15462_v27 = vadd.f32 %v6864_v31, %v6732_v19  ;;  %v6734_v35 = vadd.f32 %v6733_v11, %v15120_v53  ;;  %v6866_v39 = vpop.f32.mrf.mxu0  ;;  %v10880_v5 = vld [vmem:[%s16567_s9 + $0xf4] ss:$8 sps:$4 sm:$0xff]  }
 0x425   : > { %7568 = vmatprep.subr.bf16.mxu0 %v10862_v34  ;;  %v6735_v29 = vpop.f32.mrf.mxu1  ;;  %8361 = vmatprep.subr.bf16.mxu1 %v10877_v15  ;;  %v17039_v11 = vld [vmem:[#allocation53_spill] sm:$0xff] }
 0x426   : > { %17034 = vst [vmem:[#allocation48_spill] sm:$0xff] %v15462_v27  ;;  %v15471_v33 = vadd.f32 %v6866_v39, %v6734_v35  ;;  %v6736_v19 = vadd.f32 %v6735_v29, %v15101_v61  ;;  %v6868_v31 = vpop.f32.mrf.mxu0  ;;  %8362 = vmatpush1.bf16.msra.mxu1 %v10875_v32  ;;  %v10883_v61 = vld [vmem:[%s16567_s9 + $0xe4] ss:$8 sps:$4 sm:$0xff]   ;;  %v6658_v27 = vadd.f32 %v15173_v18, %v15120_v53 }
 0x427   : > { %v15474_v46 = vpop.f32.mrf.mxu1  ;;  %8363 = vmatprep.subr.bf16.mxu1 %v10880_v5  ;;  %v17038_v35 = vld [vmem:[#allocation22_spill] sm:$0xff] }
 0x428   : > { %17035 = vst [vmem:[#allocation56_spill] sm:$0xff] %v15471_v33  ;;  %17036 = vst [vmem:[#allocation49_spill] sm:$0xff] %v15474_v46  ;;  %7569 = vmatpush2.bf16.msra.mxu0 %v10860_v58  ;;  %v15476_v34 = vadd.f32 %v6868_v31, %v6736_v19  ;;  %v10881_v58 = vld [vmem:[%s16567_s9 + $0xe0] ss:$8 sps:$4 sm:$0xff]   ;;  %v10889_v19 = vld [vmem:[%s16567_s9 + $0xc4] ss:$8 sps:$4 sm:$0xff]  }
 0x429   : > { %v15481_v15 = vpop.f32.mrf.mxu1  ;;  %7478 = vmatmul.mubr.bf16.gmra.mxu1 %v14668_v49  ;;  %v10886_v49 = vld [vmem:[%s16567_s9 + $0xd4] ss:$8 sps:$4 sm:$0xff]   ;;  %v17040_v31 = vld [vmem:[#allocation54_spill] sm:$0xff] }
 0x42a   : > { %17037 = vst [vmem:[#allocation17_spill] sm:$0xff] %v15476_v34  ;;  %7487 = vmatprep.mubr.bf16.mxu1 %v14683_v20  ;;  %8364 = vmatpush2.bf16.msra.mxu1 %v10878_v2  ;;  %v10884_v20 = vld [vmem:[%s16567_s9 + $0xd0] ss:$8 sps:$4 sm:$0xff]  }
 0x42b   : > { %7385 = vmatmul.mubr.bf16.gmra.mxu0 %v17038_v35  ;;  %v15489_v39 = vpop.f32.mrf.mxu1  ;;  %8365 = vmatprep.subr.bf16.mxu1 %v10883_v61  ;;  %v10887_v61 = vld [vmem:[%s16567_s9 + $0xc0] ss:$8 sps:$4 sm:$0xff]  }
 0x42c   : > { %7394 = vmatprep.mubr.bf16.mxu0 %v17039_v11 }
 0x42d   : > { %v15495_v32 = vpop.f32.mrf.mxu1 }
 0x42e   : > { %8366 = vmatpush2.bf16.msra.mxu1 %v10881_v58  ;;  %v10895_v58 = vld [vmem:[%s16567_s9 + $0xa4] ss:$8 sps:$4 sm:$0xff]  }
 0x42f   : > { %v15500_v29 = vpop.f32.mrf.mxu1  ;;  %8367 = vmatprep.subr.bf16.mxu1 %v10886_v49  ;;  %v10902_v49 = vld [vmem:[%s16567_s9 + $0x170] ss:$8 sps:$4 sm:$0xff]  }
 0x431   : > { %v15505_v5 = vpop.f32.mrf.mxu1  ;;  %7488 = vmatmul.mubr.bf16.gmra.mxu1 %v14670_v23  ;;  %v10892_v23 = vld [vmem:[%s16567_s9 + $0xb4] ss:$8 sps:$4 sm:$0xff]  }
 0x432   : > { %7497 = vmatprep.mubr.bf16.mxu1 %v14705_v48  ;;  %8368 = vmatpush2.bf16.msra.mxu1 %v10884_v20  ;;  %v10890_v48 = vld [vmem:[%s16567_s9 + $0xb0] ss:$8 sps:$4 sm:$0xff]   ;;  %v10904_v20 = vld [vmem:[%s16567_s9 + $0x174] ss:$8 sps:$4 sm:$0xff]  }
 0x433   : > { %7395 = vmatmul.mubr.bf16.gmra.mxu0 %v17040_v31  ;;  %v15513_v2 = vpop.f32.mrf.mxu1  ;;  %8369 = vmatprep.subr.bf16.mxu1 %v10889_v19 }
 0x434   : > { %7570 = vmatprep.mubr.bf16.mxu0 %v14762_v45  ;;  %8480 = vmatprep.subr.bf16.mxu0 %v10904_v20  ;;  %v10908_v20 = vld [vmem:[%s16567_s9 + $0x150] ss:$8 sps:$4 sm:$0xff]  }
 0x435   : > { %v15519_v35 = vpop.f32.mrf.mxu1 }
 0x436   : > { %8370 = vmatpush2.bf16.msra.mxu1 %v10887_v61 }
 0x437   : > { %v15524_v11 = vpop.f32.mrf.mxu1  ;;  %8371 = vmatprep.subr.bf16.mxu1 %v10892_v23  ;;  %v10896_v23 = vld [vmem:[%s16567_s9 + $0x90] ss:$8 sps:$4 sm:$0xff]  }
 0x439   : > { %v15529_v45 = vpop.f32.mrf.mxu1  ;;  %7498 = vmatmul.mubr.bf16.gmra.mxu1 %v14701_v54  ;;  %v10893_v54 = vld [vmem:[%s16567_s9 + $0xa0] ss:$8 sps:$4 sm:$0xff]  }
 0x43a   : > { %7507 = vmatprep.mubr.bf16.mxu1 %v14740_v4  ;;  %8372 = vmatpush2.bf16.msra.mxu1 %v10890_v48  ;;  %v10898_v4 = vld [vmem:[%s16567_s9 + $0x94] ss:$8 sps:$4 sm:$0xff]  }
 0x43b   : > { %7571 = vmatmul.mubr.bf16.vlgmr.msra.gmra.mxu0 %v14774_v59  ;;  %v15543_v19 = vpop.f32.mrf.mxu1  ;;  %8373 = vmatprep.subr.bf16.mxu1 %v10895_v58  ;;  %v10907_v59 = vld [vmem:[%s16567_s9 + $0x164] ss:$8 sps:$4 sm:$0xff]  }
 0x43c   : > { %7580 = vmatprep.mubr.bf16.mxu0 %v14826_v42  ;;  %8481 = vmatpush1.bf16.msra.mxu0 %v10902_v49  ;;  %v10905_v42 = vld [vmem:[%s16567_s9 + $0x160] ss:$8 sps:$4 sm:$0xff]   ;;  %v10901_v58 = vld [vmem:[%s16567_s9 + $0x84] ss:$8 sps:$4 sm:$0xff]  }
 0x43d   : > { %v15549_v31 = vpop.f32.mrf.mxu1  ;;  %8482 = vmatprep.subr.bf16.mxu0 %v10907_v59 }
 0x43e   : > { %8374 = vmatpush2.bf16.msra.mxu1 %v10893_v54 }
 0x43f   : > { %v15557_v61 = vpop.f32.mrf.mxu1  ;;  %8375 = vmatprep.subr.bf16.mxu1 %v10898_v4  ;;  %v10913_v4 = vld [vmem:[%s16567_s9 + $0x144] ss:$8 sps:$4 sm:$0xff]  }
 0x440   : > { %8483 = vmatpush1.bf16.msra.mxu0 %v10905_v42 }
 0x441   : > { %v15565_v48 = vpop.f32.mrf.mxu1  ;;  %7508 = vmatmul.mubr.bf16.gmra.mxu1 %v14725_v7  ;;  %v10910_v7 = vld [vmem:[%s16567_s9 + $0x154] ss:$8 sps:$4 sm:$0xff]  }
 0x442   : > { %7517 = vmatprep.mubr.bf16.mxu1 %v14811_v63  ;;  %8376 = vmatpush2.bf16.msra.mxu1 %v10896_v23  ;;  %v10899_v63 = vld [vmem:[%s16567_s9 + $0x80] ss:$8 sps:$4 sm:$0xff]  }
 0x443   : > { %7581 = vmatmul.mubr.bf16.gmra.mxu0 %v14835_v22  ;;  %v15573_v49 = vpop.f32.mrf.mxu1  ;;  %8377 = vmatprep.subr.bf16.mxu1 %v10901_v58  ;;  %v10914_v58 = vld [vmem:[%s16567_s9 + $0x130] ss:$8 sps:$4 sm:$0xff]  }
 0x444   : > { %7590 = vmatprep.mubr.bf16.mxu0 %v14890_v0  ;;  %8484 = vmatprep.subr.bf16.mxu0 %v10910_v7  ;;  %v10911_v0 = vld [vmem:[%s16567_s9 + $0x140] ss:$8 sps:$4 sm:$0xff]  }
 0x445   : > { %v15585_v54 = vpop.f32.mrf.mxu1  ;;  %8485 = vmatpush1.bf16.msra.mxu0 %v10908_v20 }
 0x446   : > { %8378 = vmatpush2.bf16.msra.mxu1 %v10899_v63  ;;  %8486 = vmatprep.subr.bf16.mxu0 %v10913_v4  ;;  %v15636_v4 = vpop.f32.mrf.mxu0 }
 0x447   : > { %v15587_v22 = vpop.f32.mrf.mxu1  ;;  %17041 = vst [vmem:[#allocation50_spill] sm:$0xff] %v15636_v4 }
 0x449   : > { %v15595_v59 = vpop.f32.mrf.mxu1  ;;  %7518 = vmatmul.mubr.bf16.gmra.mxu1 %v14878_v62  ;;  %8487 = vmatpush1.bf16.msra.mxu0 %v10911_v0  ;;  %v10916_v62 = vld [vmem:[%s16567_s9 + $0x134] ss:$8 sps:$4 sm:$0xff]  }
 0x44a   : > { %7527 = vmatprep.mubr.bf16.mxu1 %v14882_v37  ;;  %8488 = vmatprep.subr.bf16.mxu0 %v10916_v62 }
 0x44b   : > { %7591 = vmatmul.mubr.bf16.gmra.mxu0 %v14895_v52  ;;  %v15600_v42 = vpop.f32.mrf.mxu1  ;;  %v10917_v52 = vld [vmem:[%s16567_s9 + $0x120] ss:$8 sps:$4 sm:$0xff]  }
 0x44c   : > { %7600 = vmatprep.mubr.bf16.mxu0 %v14920_v57  ;;  %v10919_v57 = vld [vmem:[%s16567_s9 + $0x124] ss:$8 sps:$4 sm:$0xff]  }
 0x44d   : > { %v15603_v23 = vpop.f32.mrf.mxu1  ;;  %8489 = vmatpush1.bf16.msra.mxu0 %v10914_v58  ;;  %v6648_v58 = vadd.f32 %v15139_v9, %v15120_v53  ;;  %v10925_v9 = vld [vmem:[%s16567_s9 + $0x104] ss:$8 sps:$4 sm:$0xff]  }
 0x44e   : > { %8490 = vmatprep.subr.bf16.mxu0 %v10919_v57  ;;  %v6910_v57 = vadd.f32 %v15489_v39, %v15137_v6  ;;  %v6912_v6 = vadd.f32 %v15495_v32, %v15148_v44  ;;  %v6918_v44 = vadd.f32 %v15505_v5, %v15164_v3  ;;  %v10928_v3 = vld [vmem:[%s16567_s9 + $0x1f4] ss:$8 sps:$4 sm:$0xff]  }
 0x44f   : > { %v15611_v20 = vpop.f32.mrf.mxu1 }
 0x451   : > { %v15613_v37 = vpop.f32.mrf.mxu1  ;;  %7528 = vmatmul.mubr.bf16.gmra.mxu1 %v14916_v21  ;;  %8491 = vmatpush1.bf16.msra.mxu0 %v10917_v52  ;;  %v10920_v21 = vld [vmem:[%s16567_s9 + $0x110] ss:$8 sps:$4 sm:$0xff]  }
 0x453   : > { %7601 = vmatmul.mubr.bf16.gmra.mxu0 %v14925_v8  ;;  %v15623_v7 = vpop.f32.mrf.mxu1  ;;  %v10922_v8 = vld [vmem:[%s16567_s9 + $0x114] ss:$8 sps:$4 sm:$0xff]  }
 0x454   : > { %7610 = vmatprep.mubr.bf16.mxu0 %v14946_v41  ;;  %v6908_v41 = vadd.f32 %v15481_v15, %v15128_v17  ;;  %8492 = vmatprep.subr.bf16.mxu0 %v10922_v8  ;;  %v10923_v17 = vld [vmem:[%s16567_s9 + $0x100] ss:$8 sps:$4 sm:$0xff]  }
 0x455   : > { %v15626_v63 = vpop.f32.mrf.mxu1  ;;  %8493 = vmatpush1.bf16.msra.mxu0 %v10920_v21 }
 0x456   : > { %8494 = vmatprep.subr.bf16.mxu0 %v10925_v9 }
 0x457   : > { %v15628_v0 = vpop.f32.mrf.mxu1 }
 0x459   : > { %v15642_v62 = vpop.f32.mrf.mxu1  ;;  %8495 = vmatpush1.bf16.msra.mxu0 %v10923_v17  ;;  %v6920_v17 = vadd.f32 %v15513_v2, %v15170_v16  ;;  %v6922_v2 = vadd.f32 %v15519_v35, %v15178_v30 }
 0x45a   : > { %v7040_v52 = vpop.f32.mrf.mxu0  ;;  %8496 = vmatprep.subr.bf16.mxu0 %v10928_v3 }
 0x45b   : > { %7611 = vmatmul.mubr.bf16.gmra.mxu0 %v14954_v14  ;;  %v7041_v34 = vadd.f32 %v7040_v52, %v6908_v41  ;;  %v15647_v33 = vpop.f32.mrf.mxu1  ;;  %v6781_v14 = vadd.f32 %v15150_v47, %v6648_v58 }
 0x45c   : > { %7620 = vmatprep.mubr.bf16.mxu0 %v14984_v1  ;;  %v7042_v4 = vpop.f32.mrf.mxu0 }
 0x45d   : > { %v7043_v15 = vadd.f32 %v7042_v4, %v6910_v57  ;;  %v15659_v39 = vpop.f32.mrf.mxu1  ;;  %v7751_v8 = vmul.f32 0.01, %v7041_v34  ;;  %v6914_v21 = vadd.f32 %v15500_v29, %v6781_v14  ;;  %vm7671_vm9 = vcmp.gt.f32.partialorder %v7041_v34, 0.0  ;;  %v10926_v29 = vld [vmem:[%s16567_s9 + $0x1f0] ss:$8 sps:$4 sm:$0xff]   ;;  %v17042_v14 = vld [vmem:[#allocation23_spill] sm:$0xff] }
 0x45e   : > { %v7044_v1 = vpop.f32.mrf.mxu0  ;;  %8497 = vmatpush2.bf16.msra.mxu0 %v10926_v29 }
 0x45f   : > { %v7045_v41 = vadd.f32 %v7044_v1, %v6912_v6  ;;  %v15662_v52 = vpop.f32.mrf.mxu1  ;;  %v7752_v47 = vmul.f32 0.01, %v7043_v15  ;;  %v7831_v9 = vsel %vm7671_vm9, %v7041_v34, %v7751_v8  ;;  %vm7672_vm11 = vcmp.gt.f32.partialorder %v7043_v15, 0.0 }
 0x460   : > { %v7046_v58 = vpop.f32.mrf.mxu0 }
 0x461   : > { %vm7675_vm10 = vcmp.gt.f32.partialorder %v7045_v41, 0.0  ;;  %v7755_v32 = vmul.f32 0.01, %v7045_v41  ;;  %v7047_v4 = vadd.f32 %v7046_v58, %v6914_v21  ;;  %v15668_v57 = vpop.f32.mrf.mxu1  ;;  %v6791_v58 = vadd.f32 %v15180_v13, %v6658_v27  ;;  %v10931_v13 = vld [vmem:[%s16567_s9 + $0x1e4] ss:$8 sps:$4 sm:$0xff]  }
 0x462   : > { %v7050_v18 = vpop.f32.mrf.mxu0  ;;  %8498 = vmatprep.subr.bf16.mxu0 %v10931_v13 }
 0x463   : > { %7621 = vmatmul.mubr.bf16.gmra.mxu0 %v17042_v14  ;;  %v7835_v5 = vsel %vm7675_vm10, %v7045_v41, %v7755_v32  ;;  %vm7676_vm12 = vcmp.gt.f32.partialorder %v7047_v4, 0.0  ;;  %v7756_v6 = vmul.f32 0.01, %v7047_v4  ;;  %v7051_v1 = vadd.f32 %v7050_v18, %v6918_v44  ;;  %v15679_v21 = vpop.f32.mrf.mxu1 }
 0x464   : > { %7630 = vmatprep.mubr.bf16.mxu0 %v15023_v24  ;;  %v7911_v16 = vpack.c.bf16 %v7835_v5, %v7831_v9  ;;  %v7052_v34 = vpop.f32.mrf.mxu0  ;;  %v7832_v41 = vsel %vm7672_vm11, %v7043_v15, %v7752_v47  ;;  %v10929_v24 = vld [vmem:[%s16567_s9 + $0x1e0] ss:$8 sps:$4 sm:$0xff]   ;;  %v6924_v30 = vadd.f32 %v15524_v11, %v6791_v58  ;;  %v6668_v15 = vadd.f32 %v15214_v56, %v15120_v53 }
 0x465   : > { %v7053_v8 = vadd.f32 %v7052_v34, %v6920_v17  ;;  %v15685_v14 = vpop.f32.mrf.mxu1  ;;  %v7836_v32 = vsel %vm7676_vm12, %v7047_v4, %v7756_v6  ;;  %v7759_v44 = vmul.f32 0.01, %v7051_v1  ;;  %vm7679_vm13 = vcmp.gt.f32.partialorder %v7051_v1, 0.0  ;;  %8499 = vmatpush2.bf16.msra.mxu0 %v10929_v24  ;;  %v17043_v6 = vld [vmem:[#allocation26_spill] sm:$0xff] }
 0x466   : > { %v7054_v18 = vpop.f32.mrf.mxu0  ;;  %v7912_v46 = vpack.c.bf16 %v7836_v32, %v7832_v41  ;;  %v6928_v47 = vadd.f32 %v15529_v45, %v15199_v38  ;;  %v6930_v11 = vadd.f32 %v15543_v19, %v15211_v50  ;;  %v17044_v34 = vld [vmem:[#allocation10_spill] sm:$0xff]  ;;  %v6801_v50 = vadd.f32 %v15221_v25, %v6668_v15 }
 0x467   : > { %v7055_v27 = vadd.f32 %v7054_v18, %v6922_v2  ;;  %v15695_v35 = vpop.f32.mrf.mxu1  ;;  %v7760_v29 = vmul.f32 0.01, %v7053_v8  ;;  %v7839_v5 = vsel %vm7679_vm13, %v7051_v1, %v7759_v44  ;;  %vm7680_vm15 = vcmp.gt.f32.partialorder %v7053_v8, 0.0  ;;  %v10934_v2 = vld [vmem:[%s16567_s9 + $0x1d4] ss:$8 sps:$4 sm:$0xff]  }
 0x468   : > { %v7056_v4 = vpop.f32.mrf.mxu0  ;;  %8379 = vmatprep.mubr.bf16.mxu1 %v7912_v46  ;;  %v6932_v41 = vadd.f32 %v15549_v31, %v15219_v12  ;;  %8500 = vmatprep.subr.bf16.mxu0 %v10934_v2  ;;  %v6934_v25 = vadd.f32 %v15557_v61, %v6801_v50  ;;  %v6678_v12 = vadd.f32 %v15255_v43, %v15120_v53  ;;  %v10937_v61 = vld [vmem:[%s16567_s9 + $0x1c4] ss:$8 sps:$4 sm:$0xff]   ;;  %v10938_v2 = vld [vmem:[%s16567_s9 + $0x1b0] ss:$8 sps:$4 sm:$0xff]  }
 0x469   : > { %vm7683_vm14 = vcmp.gt.f32.partialorder %v7055_v27, 0.0  ;;  %v7763_v17 = vmul.f32 0.01, %v7055_v27  ;;  %v7057_v9 = vadd.f32 %v7056_v4, %v6924_v30  ;;  %v15701_v3 = vpop.f32.mrf.mxu1  ;;  %8380 = vmatmul.mubr.bf16.vlgmr.msra.gmra.mxu1 %v7911_v16  ;;  %v10932_v16 = vld [vmem:[%s16567_s9 + $0x1d0] ss:$8 sps:$4 sm:$0xff]   ;;  %v7840_v18 = vsel %vm7680_vm15, %v7053_v8, %v7760_v29 }
 0x46a   : > { %v7060_v56 = vpop.f32.mrf.mxu0  ;;  %8501 = vmatpush2.bf16.msra.mxu0 %v10932_v16  ;;  %v6938_v31 = vadd.f32 %v15565_v48, %v15240_v26  ;;  %v10935_v8 = vld [vmem:[%s16567_s9 + $0x1c0] ss:$8 sps:$4 sm:$0xff]   ;;  %v6940_v26 = vadd.f32 %v15573_v49, %v15252_v10  ;;  %v6942_v49 = vadd.f32 %v15585_v54, %v15260_v40 }
 0x46b   : > { %7631 = vmatmul.mubr.bf16.gmra.mxu0 %v17043_v6  ;;  %v7843_v38 = vsel %vm7683_vm14, %v7055_v27, %v7763_v17  ;;  %vm7684_vm0 = vcmp.gt.f32.partialorder %v7057_v9, 0.0  ;;  %v7764_v46 = vmul.f32 0.01, %v7057_v9  ;;  %v7061_v45 = vadd.f32 %v7060_v56, %v6928_v47  ;;  %v15707_v58 = vpop.f32.mrf.mxu1  ;;  %8502 = vmatprep.subr.bf16.mxu0 %v10937_v61  ;;  %v17048_v61 = vld [vmem:[#allocation33_spill] sm:$0xff] }
 0x46c   : > { %7640 = vmatprep.mubr.bf16.mxu0 %v17044_v34  ;;  %v7915_v19 = vpack.c.bf16 %v7843_v38, %v7839_v5  ;;  %v7062_v1 = vpop.f32.mrf.mxu0  ;;  %v17045_v5 = vld [vmem:[#allocation37_spill] sm:$0xff]  ;;  %v6811_v34 = vadd.f32 %v15262_v51, %v6678_v12 }
 0x46d   : > { %v7063_v32 = vadd.f32 %v7062_v1, %v6930_v11  ;;  %v15719_v44 = vpop.f32.mrf.mxu1  ;;  %v7844_v24 = vsel %vm7684_vm0, %v7057_v9, %v7764_v46  ;;  %v7767_v13 = vmul.f32 0.01, %v7061_v45  ;;  %vm7687_vm1 = vcmp.gt.f32.partialorder %v7061_v45, 0.0  ;;  %v10940_v51 = vld [vmem:[%s16567_s9 + $0x1b4] ss:$8 sps:$4 sm:$0xff]  }
 0x46e   : > { %v7064_v30 = vpop.f32.mrf.mxu0  ;;  %v7916_v27 = vpack.c.bf16 %v7844_v24, %v7840_v18  ;;  %8503 = vmatpush2.bf16.msra.mxu0 %v10935_v8  ;;  %v6944_v24 = vadd.f32 %v15587_v22, %v6811_v34  ;;  %v17047_v22 = vld [vmem:[#allocation24_spill] sm:$0xff] }
 0x46f   : > { %v7065_v15 = vadd.f32 %v7064_v30, %v6932_v41  ;;  %v15723_v47 = vpop.f32.mrf.mxu1  ;;  %v7768_v29 = vmul.f32 0.01, %v7063_v32  ;;  %v7847_v43 = vsel %vm7687_vm1, %v7061_v45, %v7767_v13  ;;  %vm7688_vm3 = vcmp.gt.f32.partialorder %v7063_v32, 0.0  ;;  %v17046_v13 = vld [vmem:[#allocation25_spill] sm:$0xff]  ;;  %8504 = vmatprep.subr.bf16.mxu0 %v10940_v51 }
 0x470   : > { %v7066_v4 = vpop.f32.mrf.mxu0  ;;  %8389 = vmatprep.mubr.bf16.mxu1 %v7916_v27  ;;  %v6948_v30 = vadd.f32 %v15595_v59, %v17046_v13  ;;  %v10941_v59 = vld [vmem:[%s16567_s9 + $0x1a0] ss:$8 sps:$4 sm:$0xff]  }
 0x471   : > { %vm7691_vm2 = vcmp.gt.f32.partialorder %v7065_v15, 0.0  ;;  %v7771_v17 = vmul.f32 0.01, %v7065_v15  ;;  %v7067_v9 = vadd.f32 %v7066_v4, %v6934_v25  ;;  %v15735_v11 = vpop.f32.mrf.mxu1  ;;  %8390 = vmatmul.mubr.bf16.gmra.mxu1 %v7915_v19  ;;  %v7848_v19 = vsel %vm7688_vm3, %v7063_v32, %v7768_v29  ;;  %v10943_v29 = vld [vmem:[%s16567_s9 + $0x1a4] ss:$8 sps:$4 sm:$0xff]  }
 0x472   : > { %v7070_v48 = vpop.f32.mrf.mxu0  ;;  %v6688_v32 = vadd.f32 %v15284_v55, %v15120_v53  ;;  %8505 = vmatpush2.bf16.msra.mxu0 %v10938_v2  ;;  %v6950_v4 = vadd.f32 %v15600_v42, %v17047_v22  ;;  %v17049_v42 = vld [vmem:[#allocation36_spill] sm:$0xff]  ;;  %v17053_v13 = vld [vmem:[#allocation30_spill] sm:$0xff] }
 0x473   : > { %7641 = vmatmul.mubr.bf16.gmra.mxu0 %v17045_v5  ;;  %v7851_v56 = vsel %vm7691_vm2, %v7065_v15, %v7771_v17  ;;  %vm7692_vm4 = vcmp.gt.f32.partialorder %v7067_v9, 0.0  ;;  %v7772_v6 = vmul.f32 0.01, %v7067_v9  ;;  %v7071_v38 = vadd.f32 %v7070_v48, %v6938_v31  ;;  %v15741_v46 = vpop.f32.mrf.mxu1  ;;  %v17050_v48 = vld [vmem:[#allocation28_spill] sm:$0xff]  ;;  %8506 = vmatprep.subr.bf16.mxu0 %v10943_v29 }
 0x474   : > { %7650 = vmatprep.mubr.bf16.mxu0 %v15106_v60  ;;  %v7919_v16 = vpack.c.bf16 %v7851_v56, %v7847_v43  ;;  %v7072_v10 = vpop.f32.mrf.mxu0  ;;  %v6821_v5 = vadd.f32 %v17050_v48, %v6688_v32 }
 0x475   : > { %v7073_v45 = vadd.f32 %v7072_v10, %v6940_v26  ;;  %v15747_v50 = vpop.f32.mrf.mxu1  ;;  %v7852_v1 = vsel %vm7692_vm4, %v7067_v9, %v7772_v6  ;;  %v7775_v41 = vmul.f32 0.01, %v7071_v38  ;;  %vm7695_vm5 = vcmp.gt.f32.partialorder %v7071_v38, 0.0 }
 0x476   : > { %v7074_v60 = vpop.f32.mrf.mxu0  ;;  %v7920_v18 = vpack.c.bf16 %v7852_v1, %v7848_v19  ;;  %8507 = vmatpush2.bf16.msra.mxu0 %v10941_v59 }
 0x477   : > { %v7075_v40 = vadd.f32 %v7074_v60, %v6942_v49  ;;  %v15757_v54 = vpop.f32.mrf.mxu1  ;;  %v7776_v25 = vmul.f32 0.01, %v7073_v45  ;;  %v7855_v8 = vsel %vm7695_vm5, %v7071_v38, %v7775_v41  ;;  %vm7696_vm7 = vcmp.gt.f32.partialorder %v7073_v45, 0.0  ;;  %v17051_v38 = vld [vmem:[#allocation27_spill] sm:$0xff] }
 0x478   : > { %v7076_v27 = vpop.f32.mrf.mxu0  ;;  %8399 = vmatprep.mubr.bf16.mxu1 %v7920_v18  ;;  %v6952_v34 = vadd.f32 %v15603_v23, %v17051_v38  ;;  %v6954_v60 = vadd.f32 %v15611_v20, %v6821_v5  ;;  %v10946_v20 = vld [vmem:[%s16567_s9 + $0x194] ss:$8 sps:$4 sm:$0xff]  }
 0x479   : > { %vm7699_vm6 = vcmp.gt.f32.partialorder %v7075_v40, 0.0  ;;  %v7779_v15 = vmul.f32 0.01, %v7075_v40  ;;  %v7077_v12 = vadd.f32 %v7076_v27, %v6944_v24  ;;  %v15763_v31 = vpop.f32.mrf.mxu1  ;;  %8400 = vmatmul.mubr.bf16.gmra.mxu1 %v7919_v16  ;;  %v7856_v49 = vsel %vm7696_vm7, %v7073_v45, %v7776_v25  ;;  %v17052_v24 = vld [vmem:[#allocation29_spill] sm:$0xff]  ;;  %8508 = vmatprep.subr.bf16.mxu0 %v10946_v20 }
 0x47a   : > { %v7080_v55 = vpop.f32.mrf.mxu0  ;;  %v6958_v45 = vadd.f32 %v15613_v37, %v17053_v13  ;;  %v10944_v37 = vld [vmem:[%s16567_s9 + $0x190] ss:$8 sps:$4 sm:$0xff]  }
 0x47b   : > { %7651 = vmatmul.mubr.bf16.gmra.mxu0 %v17048_v61  ;;  %v7859_v17 = vsel %vm7699_vm6, %v7075_v40, %v7779_v15  ;;  %vm7700_vm8 = vcmp.gt.f32.partialorder %v7077_v12, 0.0  ;;  %v7780_v9 = vmul.f32 0.01, %v7077_v12  ;;  %v7081_v26 = vadd.f32 %v7080_v55, %v6948_v30  ;;  %v15775_v43 = vpop.f32.mrf.mxu1  ;;  %v17054_v15 = vld [vmem:[#allocation38_spill] sm:$0xff] }
 0x47c   : > { %7660 = vmatprep.mubr.bf16.mxu0 %v17049_v42  ;;  %v7923_v56 = vpack.c.bf16 %v7859_v17, %v7855_v8  ;;  %v7082_v6 = vpop.f32.mrf.mxu0  ;;  %v6698_v40 = vadd.f32 %v17052_v24, %v15120_v53  ;;  %v17055_v8 = vld [vmem:[#allocation35_spill] sm:$0xff]  ;;  %8509 = vmatpush2.bf16.msra.mxu0 %v10944_v37  ;;  %v17059_v24 = vld [vmem:[#allocation40_spill] sm:$0xff] }
 0x47d   : > { %v7083_v16 = vadd.f32 %v7082_v6, %v6950_v4  ;;  %v15781_v10 = vpop.f32.mrf.mxu1  ;;  %v7860_v19 = vsel %vm7700_vm8, %v7077_v12, %v7780_v9  ;;  %v7783_v1 = vmul.f32 0.01, %v7081_v26  ;;  %vm7703_vm9 = vcmp.gt.f32.partialorder %v7081_v26, 0.0  ;;  %v17056_v17 = vld [vmem:[#allocation39_spill] sm:$0xff] }
 0x47e   : > { %v7084_v2 = vpop.f32.mrf.mxu0  ;;  %v7924_v41 = vpack.c.bf16 %v7860_v19, %v7856_v49  ;;  %v6960_v12 = vadd.f32 %v15623_v7, %v17054_v15  ;;  %v6831_v9 = vadd.f32 %v17056_v17, %v6698_v40  ;;  %v6968_v40 = vadd.f32 %v15642_v62, %v17059_v24  ;;  %v17062_v17 = vld [vmem:[#allocation41_spill] sm:$0xff] }
 0x47f   : > { %v7085_v18 = vadd.f32 %v7084_v2, %v6952_v34  ;;  %v15785_v51 = vpop.f32.mrf.mxu1  ;;  %v7784_v23 = vmul.f32 0.01, %v7083_v16  ;;  %v7863_v22 = vsel %vm7703_vm9, %v7081_v26, %v7783_v1  ;;  %vm7704_vm11 = vcmp.gt.f32.partialorder %v7083_v16, 0.0  ;;  %v17057_v26 = vld [vmem:[#allocation32_spill] sm:$0xff]  ;;  %v10949_v34 = vld [vmem:[%s16567_s9 + $0x184] ss:$8 sps:$4 sm:$0xff]  }
 0x480   : > { %v7086_v32 = vpop.f32.mrf.mxu0  ;;  %8409 = vmatprep.mubr.bf16.mxu1 %v7924_v41  ;;  %v6962_v48 = vadd.f32 %v15626_v63, %v17057_v26  ;;  %v10947_v2 = vld [vmem:[%s16567_s9 + $0x180] ss:$8 sps:$4 sm:$0xff]   ;;  %v6964_v41 = vadd.f32 %v15628_v0, %v6831_v9  ;;  %8510 = vmatprep.subr.bf16.mxu0 %v10949_v34  ;;  %v6972_v9 = vadd.f32 %v15659_v39, %v17062_v17 }
 0x481   : > { %vm7707_vm10 = vcmp.gt.f32.partialorder %v7085_v18, 0.0  ;;  %v7787_v30 = vmul.f32 0.01, %v7085_v18  ;;  %v7087_v27 = vadd.f32 %v7086_v32, %v6954_v60  ;;  %v15791_v25 = vpop.f32.mrf.mxu1  ;;  %8410 = vmatmul.mubr.bf16.gmra.mxu1 %v7923_v56  ;;  %v7864_v6 = vsel %vm7704_vm11, %v7083_v16, %v7784_v23  ;;  %v17058_v16 = vld [vmem:[#allocation34_spill] sm:$0xff]  ;;  %8511 = vmatpush2.bf16.msra.mxu0 %v10947_v2  ;;  %v17060_v0 = vld [vmem:[#allocation31_spill] sm:$0xff] }
 0x482   : > { %v7090_v4 = vpop.f32.mrf.mxu0  ;;  %v17066_v17 = vld [vmem:[#allocation55_spill] sm:$0xff] }
 0x483   : > { %7661 = vmatmul.mubr.bf16.gmra.mxu0 %v17055_v8  ;;  %v7867_v55 = vsel %vm7707_vm10, %v7085_v18, %v7787_v30  ;;  %vm7708_vm12 = vcmp.gt.f32.partialorder %v7087_v27, 0.0  ;;  %v7788_v61 = vmul.f32 0.01, %v7087_v27  ;;  %v7091_v59 = vadd.f32 %v7090_v4, %v6958_v45  ;;  %v15802_v29 = vpop.f32.mrf.mxu1  ;;  %v17061_v8 = vld [vmem:[#allocation42_spill] sm:$0xff] }
 0x484   : > { %v7927_v42 = vpack.c.bf16 %v7867_v55, %v7863_v22  ;;  %v7092_v7 = vpop.f32.mrf.mxu0  ;;  %v6708_v18 = vadd.f32 %v17058_v16, %v15120_v53 }
 0x485   : > { %v7093_v5 = vadd.f32 %v7092_v7, %v6960_v12  ;;  %v15807_v56 = vpop.f32.mrf.mxu1  ;;  %v7868_v38 = vsel %vm7708_vm12, %v7087_v27, %v7788_v61  ;;  %v7791_v49 = vmul.f32 0.01, %v7091_v59  ;;  %vm7711_vm13 = vcmp.gt.f32.partialorder %v7091_v59, 0.0 }
 0x486   : > { %v7094_v19 = vpop.f32.mrf.mxu0  ;;  %v7928_v1 = vpack.c.bf16 %v7868_v38, %v7864_v6  ;;  %v6970_v27 = vadd.f32 %v15647_v33, %v17060_v0  ;;  %v6841_v37 = vadd.f32 %v17061_v8, %v6708_v18 }
 0x487   : > { %v7095_v63 = vadd.f32 %v7094_v19, %v6962_v48  ;;  %v15817_v60 = vpop.f32.mrf.mxu1  ;;  %v7792_v32 = vmul.f32 0.01, %v7093_v5  ;;  %v7871_v20 = vsel %vm7711_vm13, %v7091_v59, %v7791_v49  ;;  %vm7712_vm15 = vcmp.gt.f32.partialorder %v7093_v5, 0.0 }
 0x488   : > { %v7096_v23 = vpop.f32.mrf.mxu0  ;;  %8419 = vmatprep.mubr.bf16.mxu1 %v7928_v1  ;;  %v6974_v38 = vadd.f32 %v15662_v52, %v6841_v37  ;;  %v6718_v19 = vadd.f32 %v15395_v36, %v15120_v53  ;;  %v17063_v1 = vld [vmem:[#allocation43_spill] sm:$0xff]  ;;  %v6980_v52 = vadd.f32 %v15679_v21, %v15392_v28 }
 0x489   : > { %vm7715_vm14 = vcmp.gt.f32.partialorder %v7095_v63, 0.0  ;;  %v7795_v13 = vmul.f32 0.01, %v7095_v63  ;;  %v7097_v45 = vadd.f32 %v7096_v23, %v6964_v41  ;;  %v15823_v30 = vpop.f32.mrf.mxu1  ;;  %8420 = vmatmul.mubr.bf16.gmra.mxu1 %v7927_v42  ;;  %v7872_v33 = vsel %vm7712_vm15, %v7093_v5, %v7792_v32  ;;  %v17064_v32 = vld [vmem:[#allocation45_spill] sm:$0xff] }
 0x48a   : > { %v7100_v15 = vpop.f32.mrf.mxu0  ;;  %v6978_v39 = vadd.f32 %v15668_v57, %v17063_v1 }
 0x48b   : > { %v7875_v12 = vsel %vm7715_vm14, %v7095_v63, %v7795_v13  ;;  %vm7716_vm0 = vcmp.gt.f32.partialorder %v7097_v45, 0.0  ;;  %v7796_v62 = vmul.f32 0.01, %v7097_v45  ;;  %v7101_v22 = vadd.f32 %v7100_v15, %v6968_v40  ;;  %v15828_v4 = vpop.f32.mrf.mxu1 }
 0x48c   : > { %v7931_v55 = vpack.c.bf16 %v7875_v12, %v7871_v20  ;;  %v7102_v61 = vpop.f32.mrf.mxu0  ;;  %v6851_v13 = vadd.f32 %v17064_v32, %v6718_v19 }
 0x48d   : > { %v7103_v42 = vadd.f32 %v7102_v61, %v6970_v27  ;;  %v15833_v7 = vpop.f32.mrf.mxu1  ;;  %v7876_v59 = vsel %vm7716_vm0, %v7097_v45, %v7796_v62  ;;  %v7799_v26 = vmul.f32 0.01, %v7101_v22  ;;  %vm7719_vm1 = vcmp.gt.f32.partialorder %v7101_v22, 0.0  ;;  %v17065_v27 = vld [vmem:[#allocation44_spill] sm:$0xff] }
 0x48e   : > { %v7104_v48 = vpop.f32.mrf.mxu0  ;;  %v7932_v6 = vpack.c.bf16 %v7876_v59, %v7872_v33  ;;  %v6982_v20 = vadd.f32 %v15685_v14, %v17065_v27  ;;  %v6984_v37 = vadd.f32 %v15695_v35, %v6851_v13  ;;  %v17067_v33 = vld [vmem:[#allocation16_spill] sm:$0xff]  ;;  %v17068_v35 = vld [vmem:[#allocation46_spill] sm:$0xff] }
 0x48f   : > { %v7105_v34 = vadd.f32 %v7104_v48, %v6972_v9  ;;  %v15836_v49 = vpop.f32.mrf.mxu1  ;;  %v7800_v41 = vmul.f32 0.01, %v7103_v42  ;;  %v7879_v18 = vsel %vm7719_vm1, %v7101_v22, %v7799_v26  ;;  %vm7720_vm3 = vcmp.gt.f32.partialorder %v7103_v42, 0.0 }
 0x490   : > { %v7106_v2 = vpop.f32.mrf.mxu0  ;;  %8429 = vmatprep.mubr.bf16.mxu1 %v7932_v6  ;;  %v6728_v9 = vadd.f32 %v17066_v17, %v15120_v53  ;;  %v6988_v14 = vadd.f32 %v15701_v3, %v17067_v33 }
 0x491   : > { %vm7723_vm2 = vcmp.gt.f32.partialorder %v7105_v34, 0.0  ;;  %v7803_v5 = vmul.f32 0.01, %v7105_v34  ;;  %v7107_v63 = vadd.f32 %v7106_v2, %v6974_v38  ;;  %v15842_v16 = vpop.f32.mrf.mxu1  ;;  %8430 = vmatmul.mubr.bf16.gmra.mxu1 %v7931_v55  ;;  %v7880_v28 = vsel %vm7720_vm3, %v7103_v42, %v7800_v41  ;;  %v17069_v41 = vld [vmem:[#allocation15_spill] sm:$0xff] }
 0x492   : > { %v7110_v24 = vpop.f32.mrf.mxu0  ;;  %v6990_v38 = vadd.f32 %v15707_v58, %v17068_v35  ;;  %v17075_v35 = vld [vmem:[#allocation13_spill] sm:$0xff] }
 0x493   : > { %v7883_v40 = vsel %vm7723_vm2, %v7105_v34, %v7803_v5  ;;  %vm7724_vm4 = vcmp.gt.f32.partialorder %v7107_v63, 0.0  ;;  %v7804_v36 = vmul.f32 0.01, %v7107_v63  ;;  %v7111_v23 = vadd.f32 %v7110_v24, %v6978_v39  ;;  %v15846_v57 = vpop.f32.mrf.mxu1 }
 0x494   : > { %v7935_v45 = vpack.c.bf16 %v7883_v40, %v7879_v18  ;;  %v7112_v0 = vpop.f32.mrf.mxu0  ;;  %v6861_v5 = vadd.f32 %v17069_v41, %v6728_v9  ;;  %v17070_v18 = vld [vmem:[#allocation47_spill] sm:$0xff] }
 0x495   : > { %v7113_v15 = vadd.f32 %v7112_v0, %v6980_v52  ;;  %v15851_v12 = vpop.f32.mrf.mxu1  ;;  %v7884_v21 = vsel %vm7724_vm4, %v7107_v63, %v7804_v36  ;;  %v7807_v62 = vmul.f32 0.01, %v7111_v23  ;;  %vm7727_vm5 = vcmp.gt.f32.partialorder %v7111_v23, 0.0 }
 0x496   : > { %v7114_v22 = vpop.f32.mrf.mxu0  ;;  %v7936_v8 = vpack.c.bf16 %v7884_v21, %v7880_v28  ;;  %v6992_v24 = vadd.f32 %v15719_v44, %v17070_v18  ;;  %v6994_v0 = vadd.f32 %v15723_v47, %v6861_v5  ;;  %v17071_v28 = vld [vmem:[#allocation49_spill] sm:$0xff]  ;;  %v17073_v47 = vld [vmem:[#allocation56_spill] sm:$0xff] }
 0x497   : > { %v7115_v55 = vadd.f32 %v7114_v22, %v6982_v20  ;;  %v15854_v61 = vpop.f32.mrf.mxu1  ;;  %v7808_v26 = vmul.f32 0.01, %v7113_v15  ;;  %v7887_v34 = vsel %vm7727_vm5, %v7111_v23, %v7807_v62  ;;  %vm7728_vm7 = vcmp.gt.f32.partialorder %v7113_v15, 0.0  ;;  %v17072_v62 = vld [vmem:[#allocation48_spill] sm:$0xff] }
 0x498   : > { %v7116_v59 = vpop.f32.mrf.mxu0  ;;  %8439 = vmatprep.mubr.bf16.mxu1 %v7936_v8  ;;  %v6738_v21 = vadd.f32 %v17071_v28, %v15120_v53  ;;  %v6998_v44 = vadd.f32 %v15735_v11, %v17072_v62  ;;  %v7000_v17 = vadd.f32 %v15741_v46, %v17073_v47 }
 0x499   : > { %vm7731_vm6 = vcmp.gt.f32.partialorder %v7115_v55, 0.0  ;;  %v7811_v42 = vmul.f32 0.01, %v7115_v55  ;;  %v7117_v48 = vadd.f32 %v7116_v59, %v6984_v37  ;;  %v15860_v6 = vpop.f32.mrf.mxu1  ;;  %8440 = vmatmul.mubr.bf16.gmra.mxu1 %v7935_v45  ;;  %v7888_v58 = vsel %vm7728_vm7, %v7113_v15, %v7808_v26  ;;  %v17074_v26 = vld [vmem:[#allocation50_spill] sm:$0xff] }
 0x49a   : > { %v7120_v19 = vpop.f32.mrf.mxu0 }
 0x49b   : > { %v7891_v1 = vsel %vm7731_vm6, %v7115_v55, %v7811_v42  ;;  %vm7732_vm8 = vcmp.gt.f32.partialorder %v7117_v48, 0.0  ;;  %v7812_v39 = vmul.f32 0.01, %v7117_v48  ;;  %v7121_v2 = vadd.f32 %v7120_v19, %v6988_v14  ;;  %v15864_v3 = vpop.f32.mrf.mxu1  ;;  %v17076_v19 = vld [vmem:[#allocation17_spill] sm:$0xff] }
 0x49c   : > { %v7939_v63 = vpack.c.bf16 %v7891_v1, %v7887_v34  ;;  %v7122_v52 = vpop.f32.mrf.mxu0  ;;  %v6871_v42 = vadd.f32 %v17074_v26, %v6738_v21  ;;  %v7002_v1 = vadd.f32 %v15747_v50, %v17076_v19 }
 0x49d   : > { %v7123_v40 = vadd.f32 %v7122_v52, %v6990_v38  ;;  %v15869_v36 = vpop.f32.mrf.mxu1  ;;  %v7892_v23 = vsel %vm7732_vm8, %v7117_v48, %v7812_v39  ;;  %v7815_v32 = vmul.f32 0.01, %v7121_v2  ;;  %vm7735_vm9 = vcmp.gt.f32.partialorder %v7121_v2, 0.0  ;;  %v11060_v48 = vld [vmem:[%s16566_s8] sm:$0xf] }
 0x49e   : > { %v7124_v13 = vpop.f32.mrf.mxu0  ;;  %v7940_v45 = vpack.c.bf16 %v7892_v23, %v7888_v58  ;;  %v15889_v38 = vrot.slane %v11060_v48, %v17075_v35  ;;  %v7004_v23 = vadd.f32 %v15757_v54, %v6871_v42 }
 0x49f   : > { %v7125_v27 = vadd.f32 %v7124_v13, %v6992_v24  ;;  %v15872_v20 = vpop.f32.mrf.mxu1  ;;  %v7816_v8 = vmul.f32 0.01, %v7123_v40  ;;  %v7895_v9 = vsel %vm7735_vm9, %v7121_v2, %v7815_v32  ;;  %vm7736_vm11 = vcmp.gt.f32.partialorder %v7123_v40, 0.0 }
 0x4a0   : > { %v7126_v22 = vpop.f32.mrf.mxu0  ;;  %8449 = vmatprep.mubr.bf16.mxu1 %v7940_v45  ;;  %v7174_v50 = vadd.f32 %v15763_v31, %v15889_v38  ;;  %v7178_v47 = vadd.f32 %v15781_v10, %v15889_v38 }
 0x4a1   : > { %vm7739_vm10 = vcmp.gt.f32.partialorder %v7125_v27, 0.0  ;;  %v7819_v15 = vmul.f32 0.01, %v7125_v27  ;;  %v7127_v37 = vadd.f32 %v7126_v22, %v6994_v0  ;;  %v15878_v55 = vpop.f32.mrf.mxu1  ;;  %8450 = vmatmul.mubr.bf16.gmra.mxu1 %v7939_v63  ;;  %v7896_v41 = vsel %vm7736_vm11, %v7123_v40, %v7816_v8  ;;  %v17077_v63 = vld [vmem:[#allocation14_spill] sm:$0xff] }
 0x4a2   : > { %v7130_v33 = vpop.f32.mrf.mxu0  ;;  %v15896_v52 = vrot.slane %v11060_v48, %v17077_v63  ;;  %v7184_v48 = vadd.f32 %v15791_v25, %v15889_v38 }
 0x4a3   : > { %v7899_v14 = vsel %vm7739_vm10, %v7125_v27, %v7819_v15  ;;  %vm7740_vm12 = vcmp.gt.f32.partialorder %v7127_v37, 0.0  ;;  %v7820_v53 = vmul.f32 0.01, %v7127_v37  ;;  %v7131_v59 = vadd.f32 %v7130_v33, %v6998_v44  ;;  %v15882_v11 = vpop.f32.mrf.mxu1 }
 0x4a4   : > { %v7943_v34 = vpack.c.bf16 %v7899_v14, %v7895_v9  ;;  %v7132_v46 = vpop.f32.mrf.mxu0  ;;  %v7176_v21 = vadd.f32 %v15775_v43, %v15896_v52 }
 0x4a5   : > { %v7133_v39 = vadd.f32 %v7132_v46, %v7000_v17  ;;  %v15893_v2 = vpop.f32.mrf.mxu1  ;;  %v7900_v5 = vsel %vm7740_vm12, %v7127_v37, %v7820_v53  ;;  %v7823_v18 = vmul.f32 0.01, %v7131_v59  ;;  %vm7743_vm13 = vcmp.gt.f32.partialorder %v7131_v59, 0.0 }
 0x4a6   : > { %v7134_v24 = vpop.f32.mrf.mxu0  ;;  %v7944_v58 = vpack.c.bf16 %v7900_v5, %v7896_v41 }
 0x4a7   : > { %v7135_v32 = vadd.f32 %v7134_v24, %v7002_v1  ;;  %v15899_v13 = vpop.f32.mrf.mxu1  ;;  %v7824_v0 = vmul.f32 0.01, %v7133_v39  ;;  %v7903_v54 = vsel %vm7743_vm13, %v7131_v59, %v7823_v18  ;;  %vm7744_vm15 = vcmp.gt.f32.partialorder %v7133_v39, 0.0 }
 0x4a8   : > { %v7136_v45 = vpop.f32.mrf.mxu0  ;;  %8459 = vmatprep.mubr.bf16.mxu1 %v7944_v58 }
 0x4a9   : > { %vm7747_vm14 = vcmp.gt.f32.partialorder %v7135_v32, 0.0  ;;  %v7827_v40 = vmul.f32 0.01, %v7135_v32  ;;  %v7137_v27 = vadd.f32 %v7136_v45, %v7004_v23  ;;  %v15903_v28 = vpop.f32.mrf.mxu1  ;;  %8460 = vmatmul.mubr.bf16.gmra.mxu1 %v7943_v34  ;;  %v7904_v43 = vsel %vm7744_vm15, %v7133_v39, %v7824_v0 }
 0x4aa   : > { %v7306_v62 = vpop.f32.mrf.mxu0  ;;  %v7186_v34 = vadd.f32 %v15802_v29, %v15896_v52  ;;  %v7188_v39 = vadd.f32 %v15807_v56, %v15889_v38  ;;  %v7194_v29 = vadd.f32 %v15823_v30, %v15889_v38  ;;  %v7196_v56 = vadd.f32 %v15828_v4, %v15896_v52 }
 0x4ab   : > { %v7907_v44 = vsel %vm7747_vm14, %v7135_v32, %v7827_v40  ;;  %vm7748_vm0 = vcmp.gt.f32.partialorder %v7137_v27, 0.0  ;;  %v7828_v22 = vmul.f32 0.01, %v7137_v27  ;;  %v15907_v8 = vadd.f32 %v7306_v62, %v7174_v50  ;;  %v15909_v31 = vpop.f32.mrf.mxu1 }
 0x4ac   : > { %v7947_v15 = vpack.c.bf16 %v7907_v44, %v7903_v54  ;;  %v7308_v37 = vpop.f32.mrf.mxu0  ;;  %v7198_v0 = vadd.f32 %v15833_v7, %v15889_v38  ;;  %v7204_v4 = vadd.f32 %v15842_v16, %v15889_v38  ;;  %v7206_v7 = vadd.f32 %v15846_v57, %v15896_v52 }
 0x4ad   : > { %v15913_v17 = vadd.f32 %v7308_v37, %v7176_v21  ;;  %v15915_v9 = vpop.f32.mrf.mxu1  ;;  %v7908_v33 = vsel %vm7748_vm0, %v7137_v27, %v7828_v22  ;;  %v7214_v57 = vadd.f32 %v15860_v6, %v15889_v38 }
 0x4ae   : > { %v7310_v14 = vpop.f32.mrf.mxu0  ;;  %v7948_v53 = vpack.c.bf16 %v7908_v33, %v7904_v43  ;;  %v7208_v43 = vadd.f32 %v15851_v12, %v15889_v38  ;;  %v7216_v12 = vadd.f32 %v15864_v3, %v15896_v52  ;;  %v7224_v3 = vadd.f32 %v15878_v55, %v15889_v38 }
 0x4af   : > { %v15917_v59 = vadd.f32 %v7310_v14, %v7178_v47  ;;  %v15919_v26 = vpop.f32.mrf.mxu1 }
 0x4b0   : > { %17078 = vst [vmem:[#allocation51_spill] sm:$0xff] %v15919_v26  ;;  %v15921_v42 = vpop.f32.mrf.mxu0  ;;  %8469 = vmatprep.mubr.bf16.mxu1 %v7948_v53 }
 0x4b1   : > { %v15925_v35 = vpop.f32.mrf.mxu1  ;;  %8470 = vmatmul.mubr.bf16.gmra.mxu1 %v7947_v15 }
 0x4b2   : > { %v7316_v10 = vpop.f32.mrf.mxu0 }
 0x4b3   : > { %v15929_v46 = vadd.f32 %v7316_v10, %v7184_v48  ;;  %v15931_v19 = vpop.f32.mrf.mxu1 }
 0x4b4   : > { %v7318_v1 = vpop.f32.mrf.mxu0 }
 0x4b5   : > { %v15935_v41 = vadd.f32 %v7318_v1, %v7186_v34  ;;  %v15937_v5 = vpop.f32.mrf.mxu1 }
 0x4b6   : > { %v7320_v25 = vpop.f32.mrf.mxu0 }
 0x4b7   : > { %v15939_v63 = vadd.f32 %v7320_v25, %v7188_v39  ;;  %v15941_v18 = vpop.f32.mrf.mxu1 }
 0x4b8   : > { %17079 = vst [vmem:[#allocation52_spill] sm:$0xff] %v15941_v18  ;;  %v15943_v24 = vpop.f32.mrf.mxu0 }
 0x4b9   : > { %v15947_v58 = vpop.f32.mrf.mxu1 }
 0x4ba   : > { %v7326_v23 = vpop.f32.mrf.mxu0 }
 0x4bb   : > { %v15951_v32 = vadd.f32 %v7326_v23, %v7194_v29  ;;  %v15953_v50 = vpop.f32.mrf.mxu1  ;;  %v7218_v23 = vadd.f32 %v15869_v36, %v15889_v38  ;;  %v7226_v36 = vadd.f32 %v15882_v11, %v15896_v52  ;;  %v7234_v11 = vadd.f32 %v15903_v28, %v15889_v38 }
 0x4bc   : > { %v7328_v45 = vpop.f32.mrf.mxu0 }
 0x4bd   : > { %v15957_v40 = vadd.f32 %v7328_v45, %v7196_v56  ;;  %v15959_v27 = vpop.f32.mrf.mxu1 }
 0x4be   : > { %v7330_v21 = vpop.f32.mrf.mxu0 }
 0x4bf   : > { %v15961_v30 = vadd.f32 %v7330_v21, %v7198_v0  ;;  %v15963_v54 = vpop.f32.mrf.mxu1 }
 0x4c0   : > { %17080 = vst [vmem:[#allocation19_spill] sm:$0xff] %v15963_v54  ;;  %v15965_v62 = vpop.f32.mrf.mxu0 }
 0x4c1   : > { %v15969_v44 = vpop.f32.mrf.mxu1 }
 0x4c2   : > { %v7336_v22 = vpop.f32.mrf.mxu0 }
 0x4c3   : > { %v15973_v15 = vadd.f32 %v7336_v22, %v7204_v4  ;;  %v15975_v37 = vpop.f32.mrf.mxu1 }
 0x4c4   : > { %v7338_v47 = vpop.f32.mrf.mxu0 }
 0x4c5   : > { %v15979_v33 = vadd.f32 %v7338_v47, %v7206_v7  ;;  %v15981_v14 = vpop.f32.mrf.mxu1 }
 0x4c6   : > { %v7340_v53 = vpop.f32.mrf.mxu0 }
 0x4c7   : > { %v15983_v16 = vadd.f32 %v7340_v53, %v7208_v43  ;;  %v15985_v48 = vpop.f32.mrf.mxu1 }
 0x4c8   : > { %17081 = vst [vmem:[#allocation18_spill] sm:$0xff] %v15985_v48  ;;  %v15987_v10 = vpop.f32.mrf.mxu0 }
 0x4c9   : > { %v15991_v34 = vpop.f32.mrf.mxu1 }
 0x4cb   : > { %v7346_v1 = vpop.f32.mrf.mxu0  ;;  %v15997_v25 = vpop.f32.mrf.mxu1 }
 0x4cc   : > { %v15995_v39 = vadd.f32 %v7346_v1, %v7214_v57  ;;  %v7228_v57 = vadd.f32 %v15893_v2, %v15889_v38  ;;  %v7236_v2 = vadd.f32 %v15909_v31, %v15896_v52  ;;  %v7244_v31 = vadd.f32 %v15925_v35, %v15889_v38 }
 0x4cd   : > { %v7348_v29 = vpop.f32.mrf.mxu0  ;;  %v16003_v45 = vpop.f32.mrf.mxu1 }
 0x4ce   : > { %v16001_v56 = vadd.f32 %v7348_v29, %v7216_v12 }
 0x4cf   : > { %v7350_v0 = vpop.f32.mrf.mxu0  ;;  %v16007_v21 = vpop.f32.mrf.mxu1 }
 0x4d0   : > { %v16005_v6 = vadd.f32 %v7350_v0, %v7218_v23 }
 0x4d1   : > { %v16009_v4 = vpop.f32.mrf.mxu0  ;;  %v16013_v22 = vpop.f32.mrf.mxu1 }
 0x4d3   : > { %v7356_v7 = vpop.f32.mrf.mxu0  ;;  %v16019_v43 = vpop.f32.mrf.mxu1 }
 0x4d4   : > { %v16017_v47 = vadd.f32 %v7356_v7, %v7224_v3 }
 0x4d5   : > { %v7358_v53 = vpop.f32.mrf.mxu0  ;;  %v16025_v12 = vpop.f32.mrf.mxu1 }
 0x4d6   : > { %v16023_v1 = vadd.f32 %v7358_v53, %v7226_v36 }
 0x4d7   : > { %v7360_v29 = vpop.f32.mrf.mxu0  ;;  %v16029_v23 = vpop.f32.mrf.mxu1 }
 0x4d8   : > { %17082 = vst [vmem:[#allocation21_spill] sm:$0xff] %v16023_v1  ;;  %v16027_v55 = vadd.f32 %v7360_v29, %v7228_v57  ;;  %v7238_v57 = vadd.f32 %v15915_v9, %v15889_v38  ;;  %v7246_v9 = vadd.f32 %v15931_v19, %v15896_v52  ;;  %v7254_v19 = vadd.f32 %v15947_v58, %v15889_v38 }
 0x4d9   : > { %v16031_v0 = vpop.f32.mrf.mxu0  ;;  %v16035_v3 = vpop.f32.mrf.mxu1 }
 0x4da   : > { %17083 = vst [vmem:[#allocation20_spill] sm:$0xff] %v16027_v55  ;;  %17084 = vst [vmem:[#allocation22_spill] sm:$0xff] %v16031_v0 }
 0x4db   : > { %v7366_v7 = vpop.f32.mrf.mxu0  ;;  %v16041_v53 = vpop.f32.mrf.mxu1 }
 0x4dc   : > { %v16039_v36 = vadd.f32 %v7366_v7, %v7234_v11 }
 0x4dd   : > { %v7368_v48 = vpop.f32.mrf.mxu0  ;;  %v16047_v54 = vpop.f32.mrf.mxu1 }
 0x4de   : > { %17085 = vst [vmem:[#allocation53_spill] sm:$0xff] %v16039_v36  ;;  %v16045_v29 = vadd.f32 %v7368_v48, %v7236_v2 }
 0x4df   : > { %v7370_v18 = vpop.f32.mrf.mxu0  ;;  %v16051_v26 = vpop.f32.mrf.mxu1 }
 0x4e0   : > { %17086 = vst [vmem:[#allocation54_spill] sm:$0xff] %v16045_v29  ;;  %v16049_v28 = vadd.f32 %v7370_v18, %v7238_v57  ;;  %v7248_v18 = vadd.f32 %v15937_v5, %v15889_v38  ;;  %v7256_v5 = vadd.f32 %v15953_v50, %v15896_v52  ;;  %v7264_v50 = vadd.f32 %v15969_v44, %v15889_v38 }
 0x4e1   : > { %v16053_v55 = vpop.f32.mrf.mxu0  ;;  %v16057_v11 = vpop.f32.mrf.mxu1 }
 0x4e2   : > { %17087 = vst [vmem:[#allocation23_spill] sm:$0xff] %v16049_v28  ;;  %17088 = vst [vmem:[#allocation26_spill] sm:$0xff] %v16053_v55 }
 0x4e3   : > { %v7376_v7 = vpop.f32.mrf.mxu0  ;;  %v16063_v2 = vpop.f32.mrf.mxu1 }
 0x4e4   : > { %v16061_v48 = vadd.f32 %v7376_v7, %v7244_v31 }
 0x4e5   : > { %v7378_v29 = vpop.f32.mrf.mxu0  ;;  %v16069_v28 = vpop.f32.mrf.mxu1 }
 0x4e6   : > { %17089 = vst [vmem:[#allocation10_spill] sm:$0xff] %v16061_v48  ;;  %v16067_v57 = vadd.f32 %v7378_v29, %v7246_v9 }
 0x4e7   : > { %v7380_v55 = vpop.f32.mrf.mxu0  ;;  %v16073_v36 = vpop.f32.mrf.mxu1 }
 0x4e8   : > { %17090 = vst [vmem:[#allocation37_spill] sm:$0xff] %v16067_v57  ;;  %v16071_v35 = vadd.f32 %v7380_v55, %v7248_v18  ;;  %v7258_v55 = vadd.f32 %v15959_v27, %v15889_v38 }
 0x4e9   : > { %v16075_v0 = vpop.f32.mrf.mxu0  ;;  %v16079_v31 = vpop.f32.mrf.mxu1 }
 0x4ea   : > { %17091 = vst [vmem:[#allocation25_spill] sm:$0xff] %v16071_v35  ;;  %17092 = vst [vmem:[#allocation24_spill] sm:$0xff] %v16075_v0 }
 0x4eb   : > { %v7386_v7 = vpop.f32.mrf.mxu0  ;;  %v16085_v9 = vpop.f32.mrf.mxu1 }
 0x4ec   : > { %v16083_v29 = vadd.f32 %v7386_v7, %v7254_v19  ;;  %v7266_v7 = vadd.f32 %v15975_v37, %v15896_v52  ;;  %v10950_v37 = vld [vmem:[%s16569_s11 + $0x78] sm:$0xff]  }
 0x4ed   : > { %v7388_v57 = vpop.f32.mrf.mxu0  ;;  %v16093_v58 = vpop.f32.mrf.mxu1  ;;  %10188 = vmatprep.subr.bf16.mxu1 %v10950_v37 }
 0x4ee   : > { %17093 = vst [vmem:[#allocation33_spill] sm:$0xff] %v16083_v29  ;;  %v16089_v18 = vadd.f32 %v7388_v57, %v7256_v5  ;;  %v7268_v57 = vadd.f32 %v15981_v14, %v15889_v38  ;;  %v10952_v38 = vld [vmem:[%s16569_s11 + $0x70] sm:$0xff]   ;;  %v7440_v14 = vadd.f32 %v15991_v34, %v15907_v8  ;;  %v10954_v8 = vld [vmem:[%s16569_s11 + $0x68] sm:$0xff]  }
 0x4ef   : > { %v7390_v35 = vpop.f32.mrf.mxu0  ;;  %v16103_v1 = vpop.f32.mrf.mxu1 }
 0x4f0   : > { %v16091_v0 = vadd.f32 %v7390_v35, %v7258_v55 }
 0x4f1   : > { %v16095_v48 = vpop.f32.mrf.mxu0 }
 0x4f2   : > { %17094 = vst [vmem:[#allocation36_spill] sm:$0xff] %v16091_v0  ;;  %v16111_v0 = vpop.f32.mrf.mxu1 }
 0x4f3   : > { %v7396_v19 = vpop.f32.mrf.mxu0 }
 0x4f4   : > { %v16101_v29 = vadd.f32 %v7396_v19, %v7264_v50  ;;  %v10951_v50 = vld [vmem:[%s16569_s11 + $0x38] sm:$0xff]  }
 0x4f5   : > { %v7398_v27 = vpop.f32.mrf.mxu0  ;;  %10189 = vmatpush3.bf16.msra.mxu1 %v10951_v50 }
 0x4f6   : > { %v16107_v35 = vadd.f32 %v7398_v27, %v7266_v7  ;;  %v7180_v7 = vadd.f32 %v15785_v51, %v15896_v52  ;;  %v7442_v27 = vadd.f32 %v15997_v25, %v15913_v17  ;;  %10190 = vmatprep.subr.bf16.mxu1 %v10952_v38  ;;  %v7444_v51 = vadd.f32 %v16003_v45, %v15917_v59  ;;  %v10955_v38 = vld [vmem:[%s16569_s11 + $0x28] sm:$0xff]   ;;  %v10956_v59 = vld [vmem:[%s16569_s11 + $0x60] sm:$0xff]  }
 0x4f7   : > { %v7400_v5 = vpop.f32.mrf.mxu0 }
 0x4f8   : > { %17095 = vst [vmem:[#allocation28_spill] sm:$0xff] %v16107_v35  ;;  %v16109_v55 = vadd.f32 %v7400_v5, %v7268_v57  ;;  %v10953_v5 = vld [vmem:[%s16569_s11 + $0x30] sm:$0xff]   ;;  %v7313_v34 = vadd.f32 %v15921_v42, %v7180_v7  ;;  %v7190_v7 = vadd.f32 %v15817_v60, %v15896_v52 }
 0x4f9   : > { %v16113_v44 = vpop.f32.mrf.mxu0  ;;  %10191 = vmatpush3.bf16.msra.mxu1 %v10953_v5 }
 0x4fa   : > { %17096 = vst [vmem:[#allocation27_spill] sm:$0xff] %v16109_v55  ;;  %17097 = vst [vmem:[#allocation29_spill] sm:$0xff] %v16113_v44  ;;  %v16133_v55 = vpop.f32.mrf.mxu1  ;;  %v7446_v50 = vadd.f32 %v16007_v21, %v7313_v34  ;;  %10192 = vmatprep.subr.bf16.mxu1 %v10954_v8 }
 0x4fb   : > { %v7572_v19 = vpop.f32.mrf.mxu0 }
 0x4fc   : > { %v7573_v57 = vadd.f32 %v7572_v19, %v7440_v14  ;;  %v7450_v19 = vadd.f32 %v16013_v22, %v15929_v46  ;;  %v16147_v35 = vpop.f32.mrf.mxu1 }
 0x4fd   : > { %v7574_v44 = vpop.f32.mrf.mxu0  ;;  %10193 = vmatpush3.bf16.msra.mxu1 %v10955_v38 }
 0x4fe   : > { %v7575_v17 = vadd.f32 %v7574_v44, %v7442_v27  ;;  %v7753_v25 = vmul.f32 0.01, %v7573_v57  ;;  %vm7673_vm1 = vcmp.gt.f32.partialorder %v7573_v57, 0.0  ;;  %v7452_v27 = vadd.f32 %v16019_v43, %v15935_v41  ;;  %10194 = vmatprep.subr.bf16.mxu1 %v10956_v59  ;;  %v10958_v41 = vld [vmem:[%s16569_s11 + $0x58] sm:$0xff]  }
 0x4ff   : > { %v7576_v37 = vpop.f32.mrf.mxu0  ;;  %v7454_v43 = vadd.f32 %v16025_v12, %v15939_v63  ;;  %v10959_v59 = vld [vmem:[%s16569_s11 + $0x18] sm:$0xff]  }
 0x500   : > { %v7577_v14 = vadd.f32 %v7576_v37, %v7444_v51  ;;  %v7754_v45 = vmul.f32 0.01, %v7575_v17  ;;  %v7833_v5 = vsel %vm7673_vm1, %v7573_v57, %v7753_v25  ;;  %vm7674_vm3 = vcmp.gt.f32.partialorder %v7575_v17, 0.0  ;;  %v10957_v51 = vld [vmem:[%s16569_s11 + $0x20] sm:$0xff]  }
 0x501   : > { %v7578_v42 = vpop.f32.mrf.mxu0  ;;  %v7323_v37 = vadd.f32 %v15943_v24, %v7190_v7  ;;  %10195 = vmatpush3.bf16.msra.mxu1 %v10957_v51 }
 0x502   : > { %vm7677_vm2 = vcmp.gt.f32.partialorder %v7577_v14, 0.0  ;;  %v7757_v21 = vmul.f32 0.01, %v7577_v14  ;;  %v7579_v44 = vadd.f32 %v7578_v42, %v7446_v50  ;;  %v16160_v50 = vpop.f32.mrf.mxu1  ;;  %v7834_v25 = vsel %vm7674_vm3, %v7575_v17, %v7754_v45  ;;  %10196 = vmatprep.subr.bf16.mxu1 %v10958_v41  ;;  %v10960_v17 = vld [vmem:[%s16569_s11 + $0x50] sm:$0xff]  }
 0x503   : > { %v7582_v46 = vpop.f32.mrf.mxu0  ;;  %v7456_v24 = vadd.f32 %v16029_v23, %v7323_v37  ;;  %v10961_v37 = vld [vmem:[%s16569_s11 + $0x10] sm:$0xff]  }
 0x504   : > { %v7837_v22 = vsel %vm7677_vm2, %v7577_v14, %v7757_v21  ;;  %vm7678_vm4 = vcmp.gt.f32.partialorder %v7579_v44, 0.0  ;;  %v7758_v8 = vmul.f32 0.01, %v7579_v44  ;;  %v7583_v34 = vadd.f32 %v7582_v46, %v7450_v19  ;;  %v16174_v63 = vpop.f32.mrf.mxu1 }
 0x505   : > { %v7913_v60 = vpack.c.bf16 %v7837_v22, %v7833_v5  ;;  %v7584_v42 = vpop.f32.mrf.mxu0  ;;  %v7460_v5 = vadd.f32 %v16035_v3, %v15951_v32  ;;  %v7462_v32 = vadd.f32 %v16041_v53, %v15957_v40  ;;  %10197 = vmatpush3.bf16.msra.mxu1 %v10959_v59  ;;  %v10962_v40 = vld [vmem:[%s16569_s11 + $0x48] sm:$0xff]   ;;  %v7464_v53 = vadd.f32 %v16047_v54, %v15961_v30 }
 0x506   : > { %v7585_v57 = vadd.f32 %v7584_v42, %v7452_v27  ;;  %v7838_v14 = vsel %vm7678_vm4, %v7579_v44, %v7758_v8  ;;  %v7761_v38 = vmul.f32 0.01, %v7583_v34  ;;  %vm7681_vm5 = vcmp.gt.f32.partialorder %v7583_v34, 0.0  ;;  %v16188_v42 = vpop.f32.mrf.mxu1  ;;  %10198 = vmatprep.subr.bf16.mxu1 %v10960_v17 }
 0x507   : > { %v7586_v19 = vpop.f32.mrf.mxu0  ;;  %v7914_v21 = vpack.c.bf16 %v7838_v14, %v7834_v25  ;;  %v7200_v27 = vadd.f32 %v15836_v49, %v15896_v52 }
 0x508   : > { %v7587_v7 = vadd.f32 %v7586_v19, %v7454_v43  ;;  %v7762_v23 = vmul.f32 0.01, %v7585_v57  ;;  %v7841_v3 = vsel %vm7681_vm5, %v7583_v34, %v7761_v38  ;;  %vm7682_vm7 = vcmp.gt.f32.partialorder %v7585_v57, 0.0  ;;  %v16202_v30 = vpop.f32.mrf.mxu1 }
 0x509   : > { %v7588_v12 = vpop.f32.mrf.mxu0  ;;  %8512 = vmatprep.mubr.bf16.mxu0 %v7914_v21  ;;  %10199 = vmatpush3.bf16.msra.mxu1 %v10961_v37 }
 0x50a   : > { %vm7685_vm6 = vcmp.gt.f32.partialorder %v7587_v7, 0.0  ;;  %v7765_v45 = vmul.f32 0.01, %v7587_v7  ;;  %v7589_v44 = vadd.f32 %v7588_v12, %v7456_v24  ;;  %8513 = vmatmul.mubr.bf16.vlgmr.msra.gmra.mxu0 %v7913_v60  ;;  %v7333_v60 = vadd.f32 %v15965_v62, %v7200_v27  ;;  %v10963_v24 = vld [vmem:[%s16569_s11 + $0x8] sm:$0xff]   ;;  %10200 = vmatprep.subr.bf16.mxu1 %v10962_v40  ;;  %v16210_v27 = vpop.f32.mrf.mxu1 }
 0x50b   : > { %v7592_v46 = vpop.f32.mrf.mxu0  ;;  %v7842_v43 = vsel %vm7682_vm7, %v7585_v57, %v7762_v23  ;;  %v7472_v12 = vadd.f32 %v16063_v2, %v15979_v33 }
 0x50c   : > { %v7845_v22 = vsel %vm7685_vm6, %v7587_v7, %v7765_v45  ;;  %vm7686_vm8 = vcmp.gt.f32.partialorder %v7589_v44, 0.0  ;;  %v7766_v8 = vmul.f32 0.01, %v7589_v44  ;;  %v7593_v51 = vadd.f32 %v7592_v46, %v7460_v5 }
 0x50d   : > { %v7917_v49 = vpack.c.bf16 %v7845_v22, %v7841_v3  ;;  %v7594_v41 = vpop.f32.mrf.mxu0  ;;  %v7466_v62 = vadd.f32 %v16051_v26, %v7333_v60  ;;  %v7470_v7 = vadd.f32 %v16057_v11, %v15973_v15  ;;  %v7210_v26 = vadd.f32 %v15854_v61, %v15896_v52  ;;  %10201 = vmatpush3.bf16.msra.mxu1 %v10963_v24 }
 0x50e   : > { %v7595_v34 = vadd.f32 %v7594_v41, %v7462_v32  ;;  %v7846_v25 = vsel %vm7686_vm8, %v7589_v44, %v7766_v8  ;;  %v7769_v14 = vmul.f32 0.01, %v7593_v51  ;;  %vm7689_vm9 = vcmp.gt.f32.partialorder %v7593_v51, 0.0 }
 0x50f   : > { %v7596_v38 = vpop.f32.mrf.mxu0  ;;  %v7918_v19 = vpack.c.bf16 %v7846_v25, %v7842_v43  ;;  %v7343_v44 = vadd.f32 %v15987_v10, %v7210_v26  ;;  %v7474_v61 = vadd.f32 %v16069_v28, %v15983_v16  ;;  %v7480_v10 = vadd.f32 %v16079_v31, %v15995_v39 }
 0x510   : > { %v7597_v21 = vadd.f32 %v7596_v38, %v7464_v53  ;;  %v7770_v57 = vmul.f32 0.01, %v7595_v34  ;;  %v7849_v17 = vsel %vm7689_vm9, %v7593_v51, %v7769_v14  ;;  %vm7690_vm11 = vcmp.gt.f32.partialorder %v7595_v34, 0.0 }
 0x511   : > { %v7598_v54 = vpop.f32.mrf.mxu0  ;;  %8522 = vmatprep.mubr.bf16.mxu0 %v7918_v19  ;;  %v7476_v37 = vadd.f32 %v16073_v36, %v7343_v44  ;;  %v7220_v53 = vadd.f32 %v15872_v20, %v15896_v52  ;;  %v7482_v36 = vadd.f32 %v16085_v9, %v16001_v56  ;;  %v17099_v44 = vld [vmem:[#allocation22_spill] sm:$0xff] }
 0x512   : > { %vm7693_vm10 = vcmp.gt.f32.partialorder %v7597_v21, 0.0  ;;  %v7773_v59 = vmul.f32 0.01, %v7597_v21  ;;  %v7599_v5 = vadd.f32 %v7598_v54, %v7466_v62  ;;  %8523 = vmatmul.mubr.bf16.gmra.mxu0 %v7917_v49  ;;  %v7850_v33 = vsel %vm7690_vm11, %v7595_v34, %v7770_v57  ;;  %v16217_v49 = vpop.f32.mrf.mxu1 }
 0x513   : > { %v7602_v15 = vpop.f32.mrf.mxu0  ;;  %v7353_v14 = vadd.f32 %v16009_v4, %v7220_v53  ;;  %v7490_v4 = vadd.f32 %v16111_v0, %v16017_v47 }
 0x514   : > { %v7853_v11 = vsel %vm7693_vm10, %v7597_v21, %v7773_v59  ;;  %vm7694_vm12 = vcmp.gt.f32.partialorder %v7599_v5, 0.0  ;;  %v7774_v23 = vmul.f32 0.01, %v7599_v5  ;;  %v7603_v45 = vadd.f32 %v7602_v15, %v7470_v7  ;;  %v16224_v38 = vpop.f32.mrf.mxu1  ;;  %v17098_v15 = vld [vmem:[#allocation21_spill] sm:$0xff] }
 0x515   : > { %v7921_v32 = vpack.c.bf16 %v7853_v11, %v7849_v17  ;;  %v7604_v3 = vpop.f32.mrf.mxu0  ;;  %v7484_v21 = vadd.f32 %v16093_v58, %v16005_v6  ;;  %v7486_v57 = vadd.f32 %v16103_v1, %v7353_v14  ;;  %v7230_v17 = vadd.f32 %v15899_v13, %v15896_v52 }
 0x516   : > { %v7605_v46 = vadd.f32 %v7604_v3, %v7472_v12  ;;  %v7854_v2 = vsel %vm7694_vm12, %v7599_v5, %v7774_v23  ;;  %v7777_v22 = vmul.f32 0.01, %v7603_v45  ;;  %vm7697_vm13 = vcmp.gt.f32.partialorder %v7603_v45, 0.0  ;;  %v16231_v5 = vpop.f32.mrf.mxu1 }
 0x517   : > { %v7606_v8 = vpop.f32.mrf.mxu0  ;;  %v7922_v51 = vpack.c.bf16 %v7854_v2, %v7850_v33  ;;  %v7492_v1 = vadd.f32 %v16133_v55, %v17098_v15  ;;  %v17100_v33 = vld [vmem:[#allocation20_spill] sm:$0xff] }
 0x518   : > { %v7607_v60 = vadd.f32 %v7606_v8, %v7474_v61  ;;  %v7778_v40 = vmul.f32 0.01, %v7605_v46  ;;  %v7857_v34 = vsel %vm7697_vm13, %v7603_v45, %v7777_v22  ;;  %vm7698_vm15 = vcmp.gt.f32.partialorder %v7605_v46, 0.0  ;;  %v16238_v3 = vpop.f32.mrf.mxu1 }
 0x519   : > { %v7608_v41 = vpop.f32.mrf.mxu0  ;;  %8532 = vmatprep.mubr.bf16.mxu0 %v7922_v51  ;;  %v7494_v2 = vadd.f32 %v16147_v35, %v17100_v33  ;;  %v17109_v33 = vld [vmem:[#allocation24_spill] sm:$0xff] }
 0x51a   : > { %vm7701_vm14 = vcmp.gt.f32.partialorder %v7607_v60, 0.0  ;;  %v7781_v16 = vmul.f32 0.01, %v7607_v60  ;;  %v7609_v28 = vadd.f32 %v7608_v41, %v7476_v37  ;;  %8533 = vmatmul.mubr.bf16.gmra.mxu0 %v7921_v32  ;;  %v7858_v24 = vsel %vm7698_vm15, %v7605_v46, %v7778_v40  ;;  %v17101_v41 = vld [vmem:[#allocation53_spill] sm:$0xff] }
 0x51b   : > { %v7612_v43 = vpop.f32.mrf.mxu0  ;;  %v7363_v32 = vadd.f32 %v17099_v44, %v7230_v17  ;;  %v7500_v40 = vadd.f32 %v16174_v63, %v17101_v41 }
 0x51c   : > { %v7861_v25 = vsel %vm7701_vm14, %v7607_v60, %v7781_v16  ;;  %vm7702_vm0 = vcmp.gt.f32.partialorder %v7609_v28, 0.0  ;;  %v7782_v39 = vmul.f32 0.01, %v7609_v28  ;;  %v7613_v31 = vadd.f32 %v7612_v43, %v7480_v10  ;;  %v16245_v16 = vpop.f32.mrf.mxu1 }
 0x51d   : > { %v7925_v19 = vpack.c.bf16 %v7861_v25, %v7857_v34  ;;  %v7614_v62 = vpop.f32.mrf.mxu0  ;;  %v7496_v60 = vadd.f32 %v16160_v50, %v7363_v32  ;;  %v17102_v34 = vld [vmem:[#allocation51_spill] sm:$0xff]  ;;  %v17103_v25 = vld [vmem:[#allocation54_spill] sm:$0xff] }
 0x51e   : > { %v7615_v20 = vadd.f32 %v7614_v62, %v7482_v36  ;;  %v7862_v7 = vsel %vm7702_vm0, %v7609_v28, %v7782_v39  ;;  %v7785_v56 = vmul.f32 0.01, %v7613_v31  ;;  %vm7705_vm1 = vcmp.gt.f32.partialorder %v7613_v31, 0.0  ;;  %v17104_v62 = vld [vmem:[#allocation26_spill] sm:$0xff] }
 0x51f   : > { %v7616_v9 = vpop.f32.mrf.mxu0  ;;  %v7926_v54 = vpack.c.bf16 %v7862_v7, %v7858_v24  ;;  %v7240_v43 = vadd.f32 %v17102_v34, %v15896_v52  ;;  %v7502_v50 = vadd.f32 %v16188_v42, %v17103_v25 }
 0x520   : > { %v7617_v59 = vadd.f32 %v7616_v9, %v7484_v21  ;;  %v7786_v12 = vmul.f32 0.01, %v7615_v20  ;;  %v7865_v11 = vsel %vm7705_vm1, %v7613_v31, %v7785_v56  ;;  %vm7706_vm3 = vcmp.gt.f32.partialorder %v7615_v20, 0.0  ;;  %v17105_v56 = vld [vmem:[#allocation23_spill] sm:$0xff] }
 0x521   : > { %v7618_v26 = vpop.f32.mrf.mxu0  ;;  %8542 = vmatprep.mubr.bf16.mxu0 %v7926_v54  ;;  %v7373_v21 = vadd.f32 %v17104_v62, %v7240_v43  ;;  %v7504_v9 = vadd.f32 %v16202_v30, %v17105_v56 }
 0x522   : > { %vm7709_vm2 = vcmp.gt.f32.partialorder %v7617_v59, 0.0  ;;  %v7789_v6 = vmul.f32 0.01, %v7617_v59  ;;  %v7619_v58 = vadd.f32 %v7618_v26, %v7486_v57  ;;  %8543 = vmatmul.mubr.bf16.gmra.mxu0 %v7925_v19  ;;  %v7866_v22 = vsel %vm7706_vm3, %v7615_v20, %v7786_v12  ;;  %v7521_v20 = vpop.f32.mrf.mxu1 }
 0x523   : > { %v7622_v23 = vpop.f32.mrf.mxu0  ;;  %v7506_v12 = vadd.f32 %v16210_v27, %v7373_v21 }
 0x524   : > { %v7869_v45 = vsel %vm7709_vm2, %v7617_v59, %v7789_v6  ;;  %vm7710_vm4 = vcmp.gt.f32.partialorder %v7619_v58, 0.0  ;;  %v7790_v47 = vmul.f32 0.01, %v7619_v58  ;;  %v7623_v0 = vadd.f32 %v7622_v23, %v7490_v4  ;;  %v7523_v15 = vpop.f32.mrf.mxu1 }
 0x525   : > { %v7929_v61 = vpack.c.bf16 %v7869_v45, %v7865_v11  ;;  %v7624_v46 = vpop.f32.mrf.mxu0  ;;  %v17107_v45 = vld [vmem:[#allocation52_spill] sm:$0xff] }
 0x526   : > { %v7625_v13 = vadd.f32 %v7624_v46, %v7492_v1  ;;  %v7870_v8 = vsel %vm7710_vm4, %v7619_v58, %v7790_v47  ;;  %v7793_v55 = vmul.f32 0.01, %v7623_v0  ;;  %vm7713_vm5 = vcmp.gt.f32.partialorder %v7623_v0, 0.0  ;;  %v17106_v58 = vld [vmem:[#allocation10_spill] sm:$0xff] }
 0x527   : > { %v7626_v51 = vpop.f32.mrf.mxu0  ;;  %v7930_v37 = vpack.c.bf16 %v7870_v8, %v7866_v22  ;;  %v7510_v17 = vadd.f32 %v16217_v49, %v17106_v58  ;;  %v7250_v47 = vadd.f32 %v17107_v45, %v15896_v52 }
 0x528   : > { %v7627_v10 = vadd.f32 %v7626_v51, %v7494_v2  ;;  %v7794_v53 = vmul.f32 0.01, %v7625_v13  ;;  %v7873_v39 = vsel %vm7713_vm5, %v7623_v0, %v7793_v55  ;;  %vm7714_vm7 = vcmp.gt.f32.partialorder %v7625_v13, 0.0  ;;  %v17108_v0 = vld [vmem:[#allocation37_spill] sm:$0xff] }
 0x529   : > { %v7628_v28 = vpop.f32.mrf.mxu0  ;;  %8552 = vmatprep.mubr.bf16.mxu0 %v7930_v37  ;;  %v7512_v44 = vadd.f32 %v16224_v38, %v17108_v0  ;;  %v7383_v2 = vadd.f32 %v17109_v33, %v7250_v47  ;;  %v17110_v55 = vld [vmem:[#allocation25_spill] sm:$0xff] }
 0x52a   : > { %vm7717_vm6 = vcmp.gt.f32.partialorder %v7627_v10, 0.0  ;;  %v7797_v35 = vmul.f32 0.01, %v7627_v10  ;;  %v7629_v36 = vadd.f32 %v7628_v28, %v7496_v60  ;;  %8553 = vmatmul.mubr.bf16.gmra.mxu0 %v7929_v61  ;;  %v7874_v57 = vsel %vm7714_vm7, %v7625_v13, %v7794_v53  ;;  %v7525_v13 = vpop.f32.mrf.mxu1 }
 0x52b   : > { %v7632_v31 = vpop.f32.mrf.mxu0  ;;  %v7514_v51 = vadd.f32 %v16231_v5, %v17110_v55  ;;  %v7516_v28 = vadd.f32 %v16238_v3, %v7383_v2  ;;  %v17117_v2 = vld [vmem:[#allocation27_spill] sm:$0xff] }
 0x52c   : > { %v7877_v14 = vsel %vm7717_vm6, %v7627_v10, %v7797_v35  ;;  %vm7718_vm8 = vcmp.gt.f32.partialorder %v7629_v36, 0.0  ;;  %v7798_v63 = vmul.f32 0.01, %v7629_v36  ;;  %v7633_v19 = vadd.f32 %v7632_v31, %v7500_v40  ;;  %v17111_v35 = vld [vmem:[#allocation33_spill] sm:$0xff]  ;;  %v7529_v34 = vpop.f32.mrf.mxu1 }
 0x52d   : > { %v7933_v24 = vpack.c.bf16 %v7877_v14, %v7873_v39  ;;  %v7634_v7 = vpop.f32.mrf.mxu0  ;;  %v17112_v39 = vld [vmem:[#allocation19_spill] sm:$0xff]  ;;  %v7522_v14 = vadd.f32 %v7521_v20, %v16089_v18 }
 0x52e   : > { %v7635_v54 = vadd.f32 %v7634_v7, %v7502_v50  ;;  %v7878_v59 = vsel %vm7718_vm8, %v7629_v36, %v7798_v63  ;;  %v7801_v4 = vmul.f32 0.01, %v7633_v19  ;;  %vm7721_vm9 = vcmp.gt.f32.partialorder %v7633_v19, 0.0 }
 0x52f   : > { %v7636_v42 = vpop.f32.mrf.mxu0  ;;  %v7934_v26 = vpack.c.bf16 %v7878_v59, %v7874_v57  ;;  %v7520_v36 = vadd.f32 %v16245_v16, %v17111_v35  ;;  %v7260_v31 = vadd.f32 %v17112_v39, %v15896_v52  ;;  %v10965_v39 = vld [vmem:[%s16569_s11] sm:$0xff]  }
 0x530   : > { %v7637_v6 = vadd.f32 %v7636_v42, %v7504_v9  ;;  %v7802_v11 = vmul.f32 0.01, %v7635_v54  ;;  %v7881_v27 = vsel %vm7721_vm9, %v7633_v19, %v7801_v4  ;;  %vm7722_vm11 = vcmp.gt.f32.partialorder %v7635_v54, 0.0  ;;  %v17113_v9 = vld [vmem:[#allocation36_spill] sm:$0xff] }
 0x531   : > { %v7638_v1 = vpop.f32.mrf.mxu0  ;;  %8562 = vmatprep.mubr.bf16.mxu0 %v7934_v26  ;;  %v7393_v21 = vadd.f32 %v16095_v48, %v7260_v31 }
 0x532   : > { %vm7725_vm10 = vcmp.gt.f32.partialorder %v7637_v6, 0.0  ;;  %v7805_v23 = vmul.f32 0.01, %v7637_v6  ;;  %v7639_v30 = vadd.f32 %v7638_v1, %v7506_v12  ;;  %8563 = vmatmul.mubr.bf16.gmra.mxu0 %v7933_v24  ;;  %v7882_v60 = vsel %vm7722_vm11, %v7635_v54, %v7802_v11  ;;  %v7531_v24 = vpop.f32.mrf.mxu1 }
 0x533   : > { %v7642_v32 = vpop.f32.mrf.mxu0  ;;  %v7524_v54 = vadd.f32 %v7523_v15, %v17113_v9  ;;  %v7526_v20 = vadd.f32 %v7525_v13, %v7393_v21  ;;  %v17114_v15 = vld [vmem:[#allocation18_spill] sm:$0xff]  ;;  %v10966_v9 = vld [vmem:[%s16571_s13 + $0x38] sm:$0xff]  }
 0x534   : > { %v7885_v61 = vsel %vm7725_vm10, %v7637_v6, %v7805_v23  ;;  %vm7726_vm12 = vcmp.gt.f32.partialorder %v7639_v30, 0.0  ;;  %v7806_v49 = vmul.f32 0.01, %v7639_v30  ;;  %v7643_v46 = vadd.f32 %v7642_v32, %v7510_v17  ;;  %v7533_v58 = vpop.f32.mrf.mxu1  ;;  %v17116_v32 = vld [vmem:[#allocation29_spill] sm:$0xff]  ;;  %10282 = vmatprep.subr.bf16.mxu0 %v10966_v9 }
 0x535   : > { %v7937_v22 = vpack.c.bf16 %v7885_v61, %v7881_v27  ;;  %v7644_v8 = vpop.f32.mrf.mxu0  ;;  %v7530_v6 = vadd.f32 %v7529_v34, %v16101_v29  ;;  %v7270_v23 = vadd.f32 %v17114_v15, %v15896_v52  ;;  %v7534_v13 = vadd.f32 %v7533_v58, %v17117_v2  ;;  %10283 = vmatpush3.bf16.msra.mxu0 %v10966_v9 }
 0x536   : > { %v7645_v37 = vadd.f32 %v7644_v8, %v7512_v44  ;;  %v7886_v10 = vsel %vm7726_vm12, %v7639_v30, %v7806_v49  ;;  %v7809_v41 = vmul.f32 0.01, %v7643_v46  ;;  %vm7729_vm13 = vcmp.gt.f32.partialorder %v7643_v46, 0.0  ;;  %v17115_v30 = vld [vmem:[#allocation28_spill] sm:$0xff]  ;;  %v7535_v49 = vpop.f32.mrf.mxu1 }
 0x537   : > { %v7646_v38 = vpop.f32.mrf.mxu0  ;;  %v7938_v40 = vpack.c.bf16 %v7886_v10, %v7882_v60  ;;  %v7532_v45 = vadd.f32 %v7531_v24, %v17115_v30  ;;  %v7403_v61 = vadd.f32 %v17116_v32, %v7270_v23 }
 0x538   : > { %v7647_v53 = vadd.f32 %v7646_v38, %v7514_v51  ;;  %v7810_v25 = vmul.f32 0.01, %v7645_v37  ;;  %v7889_v63 = vsel %vm7729_vm13, %v7643_v46, %v7809_v41  ;;  %vm7730_vm15 = vcmp.gt.f32.partialorder %v7645_v37, 0.0  ;;  %v8381_v31 = vpop.f32.mrf.mxu1 }
 0x539   : > { %v7648_v43 = vpop.f32.mrf.mxu0  ;;  %8572 = vmatprep.mubr.bf16.mxu0 %v7938_v40 }
 0x53a   : > { %vm7733_vm14 = vcmp.gt.f32.partialorder %v7647_v53, 0.0  ;;  %v7813_v50 = vmul.f32 0.01, %v7647_v53  ;;  %v7649_v5 = vadd.f32 %v7648_v43, %v7516_v28  ;;  %8573 = vmatmul.mubr.bf16.gmra.mxu0 %v7937_v22  ;;  %v7890_v59 = vsel %vm7730_vm15, %v7645_v37, %v7810_v25 }
 0x53b   : > { %v7652_v3 = vpop.f32.mrf.mxu0  ;;  %v7536_v37 = vadd.f32 %v7535_v49, %v7403_v61 }
 0x53c   : > { %v7893_v19 = vsel %vm7733_vm14, %v7647_v53, %v7813_v50  ;;  %vm7734_vm0 = vcmp.gt.f32.partialorder %v7649_v5, 0.0  ;;  %v7814_v62 = vmul.f32 0.01, %v7649_v5  ;;  %v7653_v16 = vadd.f32 %v7652_v3, %v7520_v36 }
 0x53d   : > { %v7941_v7 = vpack.c.bf16 %v7893_v19, %v7889_v63  ;;  %v7654_v56 = vpop.f32.mrf.mxu0 }
 0x53e   : > { %v7655_v57 = vadd.f32 %v7654_v56, %v7522_v14  ;;  %v7894_v4 = vsel %vm7734_vm0, %v7649_v5, %v7814_v62  ;;  %v7817_v42 = vmul.f32 0.01, %v7653_v16  ;;  %vm7737_vm1 = vcmp.gt.f32.partialorder %v7653_v16, 0.0  ;;  %v10964_v5 = vld [vmem:[%s16569_s11 + $0x40] sm:$0xff]   ;;  %v8383_v14 = vpop.f32.mrf.mxu1 }
 0x53f   : > { %v7656_v26 = vpop.f32.mrf.mxu0  ;;  %v7942_v18 = vpack.c.bf16 %v7894_v4, %v7890_v59  ;;  %10202 = vmatprep.subr.bf16.mxu1 %v10964_v5  ;;  %v10968_v59 = vld [vmem:[%s16571_s13 + $0x28] sm:$0xff]  }
 0x540   : > { %v7657_v12 = vadd.f32 %v7656_v26, %v7524_v54  ;;  %v7818_v48 = vmul.f32 0.01, %v7655_v57  ;;  %v7897_v47 = vsel %vm7737_vm1, %v7653_v16, %v7817_v42  ;;  %vm7738_vm3 = vcmp.gt.f32.partialorder %v7655_v57, 0.0  ;;  %10203 = vmatpush3.bf16.msra.mxu1 %v10965_v39  ;;  %v8385_v63 = vpop.f32.mrf.mxu1  ;;  %v10967_v54 = vld [vmem:[%s16571_s13 + $0x30] sm:$0xff]  }
 0x541   : > { %v7658_v17 = vpop.f32.mrf.mxu0  ;;  %8582 = vmatprep.mubr.bf16.mxu0 %v7942_v18  ;;  %10284 = vmatprep.subr.bf16.mxu0 %v10967_v54 }
 0x542   : > { %vm7741_vm2 = vcmp.gt.f32.partialorder %v7657_v12, 0.0  ;;  %v7821_v1 = vmul.f32 0.01, %v7657_v12  ;;  %v7659_v11 = vadd.f32 %v7658_v17, %v7526_v20  ;;  %8583 = vmatmul.mubr.bf16.gmra.mxu0 %v7941_v7  ;;  %v7898_v8 = vsel %vm7738_vm3, %v7655_v57, %v7818_v48  ;;  %v8387_v3 = vpop.f32.mrf.mxu1  ;;  %v8015_v17 = vld [vmem:[%s16568_s10] sm:$0x3]  ;;  %v17118_v48 = vld [vmem:[#allocation11_spill] sm:$0xff] }
 0x543   : > { %v7662_v0 = vpop.f32.mrf.mxu0  ;;  %10285 = vmatpush3.bf16.msra.mxu0 %v10967_v54 }
 0x544   : > { %v7901_v44 = vsel %vm7741_vm2, %v7657_v12, %v7821_v1  ;;  %vm7742_vm4 = vcmp.gt.f32.partialorder %v7659_v11, 0.0  ;;  %v7822_v27 = vmul.f32 0.01, %v7659_v11  ;;  %v7663_v29 = vadd.f32 %v7662_v0, %v7530_v6  ;;  %v8391_v19 = vpop.f32.mrf.mxu1  ;;  %10286 = vmatprep.subr.bf16.mxu0 %v10968_v59 }
 0x545   : > { %v7945_v46 = vpack.c.bf16 %v7901_v44, %v7897_v47  ;;  %v7664_v33 = vpop.f32.mrf.mxu0  ;;  %v16321_v1 = vrot.slane %v8015_v17, %v17118_v48 }
 0x546   : > { %v7665_v22 = vadd.f32 %v7664_v33, %v7532_v45  ;;  %v7902_v55 = vsel %vm7742_vm4, %v7659_v11, %v7822_v27  ;;  %v7825_v60 = vmul.f32 0.01, %v7663_v29  ;;  %vm7745_vm5 = vcmp.gt.f32.partialorder %v7663_v29, 0.0  ;;  %v8393_v62 = vpop.f32.mrf.mxu1  ;;  %v17119_v11 = vld [vmem:[#allocation12_spill] sm:$0xff] }
 0x547   : > { %v7666_v52 = vpop.f32.mrf.mxu0  ;;  %v7946_v51 = vpack.c.bf16 %v7902_v55, %v7898_v8  ;;  %10287 = vmatpush3.bf16.msra.mxu0 %v10968_v59  ;;  %v16324_v15 = vrot.slane %v8015_v17, %v17119_v11  ;;  %v8384_v45 = vadd.f32 %v8383_v14, %v16321_v1  ;;  %v8388_v49 = vadd.f32 %v8387_v3, %v16321_v1 }
 0x548   : > { %v7667_v10 = vadd.f32 %v7666_v52, %v7534_v13  ;;  %v7826_v38 = vmul.f32 0.01, %v7665_v22  ;;  %vm7746_vm7 = vcmp.gt.f32.partialorder %v7665_v22, 0.0  ;;  %v7905_v53 = vsel %vm7745_vm5, %v7663_v29, %v7825_v60  ;;  %v8395_v16 = vpop.f32.mrf.mxu1 }
 0x549   : > { %v7668_v41 = vpop.f32.mrf.mxu0  ;;  %8592 = vmatprep.mubr.bf16.mxu0 %v7946_v51  ;;  %v8382_v47 = vadd.f32 %v8381_v31, %v16324_v15  ;;  %v8386_v27 = vadd.f32 %v8385_v63, %v16324_v15  ;;  %v8394_v51 = vadd.f32 %v8393_v62, %v16321_v1  ;;  %v8392_v60 = vadd.f32 %v8391_v19, %v16324_v15 }
 0x54a   : > { %vm7749_vm6 = vcmp.gt.f32.partialorder %v7667_v10, 0.0  ;;  %v7829_v40 = vmul.f32 0.01, %v7667_v10  ;;  %v7669_v28 = vadd.f32 %v7668_v41, %v7536_v37  ;;  %8593 = vmatmul.mubr.bf16.gmra.mxu0 %v7945_v46  ;;  %v7906_v43 = vsel %vm7746_vm7, %v7665_v22, %v7826_v38  ;;  %v8397_v21 = vpop.f32.mrf.mxu1 }
 0x54c   : > { %v7909_v35 = vsel %vm7749_vm6, %v7667_v10, %v7829_v40  ;;  %vm7750_vm8 = vcmp.gt.f32.partialorder %v7669_v28, 0.0  ;;  %v7830_v36 = vmul.f32 0.01, %v7669_v28  ;;  %v16284_v24 = vpop.f32.mrf.mxu1  ;;  %v8396_v40 = vadd.f32 %v8395_v16, %v16324_v15 }
 0x54d   : > { %v7949_v34 = vpack.c.bf16 %v7909_v35, %v7905_v53  ;;  %v8402_v54 = vadd.f32 %v16284_v24, %v16324_v15 }
 0x54e   : > { %v7910_v25 = vsel %vm7750_vm8, %v7669_v28, %v7830_v36  ;;  %v16286_v7 = vpop.f32.mrf.mxu1 }
 0x54f   : > { %v7950_v50 = vpack.c.bf16 %v7910_v25, %v7906_v43  ;;  %v8404_v9 = vadd.f32 %v16286_v7, %v16321_v1 }
 0x550   : > { %v16288_v56 = vpop.f32.mrf.mxu1 }
 0x551   : > { %8602 = vmatprep.mubr.bf16.mxu0 %v7950_v50  ;;  %v8398_v50 = vadd.f32 %v8397_v21, %v16321_v1  ;;  %v8406_v11 = vadd.f32 %v16288_v56, %v16324_v15 }
 0x552   : > { %8603 = vmatmul.mubr.bf16.gmra.mxu0 %v7949_v34  ;;  %v16296_v57 = vpop.f32.mrf.mxu1 }
 0x554   : > { %v16301_v4 = vpop.f32.mrf.mxu1 }
 0x556   : > { %v16303_v42 = vpop.f32.mrf.mxu1 }
 0x558   : > { %v16305_v26 = vpop.f32.mrf.mxu1 }
 0x55a   : > { %v16307_v18 = vpop.f32.mrf.mxu1 }
 0x55c   : > { %v16309_v20 = vpop.f32.mrf.mxu1 }
 0x55e   : > { %v16311_v12 = vpop.f32.mrf.mxu1 }
 0x560   : > { %v16313_v6 = vpop.f32.mrf.mxu1 }
 0x562   : > { %v16315_v58 = vpop.f32.mrf.mxu1 }
 0x564   : > { %v16326_v23 = vpop.f32.mrf.mxu1 }
 0x566   : > { %v16330_v0 = vpop.f32.mrf.mxu1 }
 0x568   : > { %v16334_v33 = vpop.f32.mrf.mxu1 }
 0x56a   : > { %v16338_v10 = vpop.f32.mrf.mxu1 }
 0x56c   : > { %v16342_v31 = vpop.f32.mrf.mxu1 }
 0x56e   : > { %v16348_v59 = vpop.f32.mrf.mxu1 }
 0x570   : > { %v16354_v24 = vpop.f32.mrf.mxu1 }
 0x5ca   : > { %v8514_v30 = vpop.f32.mrf.mxu0 }
 0x5cb   : > { %v8515_v32 = vadd.f32 %v8514_v30, %v8382_v47 }
 0x5cc   : > { %v8516_v44 = vpop.f32.mrf.mxu0 }
 0x5cd   : > { %v8517_v29 = vadd.f32 %v8516_v44, %v8384_v45  ;;  %v8653_v55 = vmul.f32 0.01, %v8515_v32  ;;  %vm8613_vm11 = vcmp.gt.f32.partialorder %v8515_v32, 0.0 }
 0x5ce   : > { %v8518_v61 = vpop.f32.mrf.mxu0 }
 0x5cf   : > { %v8519_v46 = vadd.f32 %v8518_v61, %v8386_v27  ;;  %v8654_v13 = vmul.f32 0.01, %v8517_v29  ;;  %vm8614_vm10 = vcmp.gt.f32.partialorder %v8517_v29, 0.0  ;;  %v8693_v36 = vsel %vm8613_vm11, %v8515_v32, %v8653_v55 }
 0x5d0   : > { %v8520_v2 = vpop.f32.mrf.mxu0  ;;  %v8408_v32 = vadd.f32 %v16296_v57, %v16321_v1  ;;  %v8414_v55 = vadd.f32 %v16303_v42, %v16321_v1 }
 0x5d1   : > { %vm8615_vm9 = vcmp.gt.f32.partialorder %v8519_v46, 0.0  ;;  %v8655_v22 = vmul.f32 0.01, %v8519_v46  ;;  %v8521_v8 = vadd.f32 %v8520_v2, %v8388_v49  ;;  %v8694_v53 = vsel %vm8614_vm10, %v8517_v29, %v8654_v13 }
 0x5d2   : > { %v8524_v52 = vpop.f32.mrf.mxu0 }
 0x5d3   : > { %vm8616_vm12 = vcmp.gt.f32.partialorder %v8521_v8, 0.0  ;;  %v8656_v37 = vmul.f32 0.01, %v8521_v8  ;;  %v8695_v41 = vsel %vm8615_vm9, %v8519_v46, %v8655_v22  ;;  %v8525_v34 = vadd.f32 %v8524_v52, %v8392_v60 }
 0x5d4   : > { %v8526_v38 = vpop.f32.mrf.mxu0  ;;  %v8733_v5 = vpack.c.bf16 %v8695_v41, %v8693_v36  ;;  %v8412_v52 = vadd.f32 %v16301_v4, %v16324_v15  ;;  %v8416_v41 = vadd.f32 %v16305_v26, %v16324_v15 }
 0x5d5   : > { %v8527_v28 = vadd.f32 %v8526_v38, %v8394_v51  ;;  %v8696_v35 = vsel %vm8616_vm12, %v8521_v8, %v8656_v37  ;;  %v8657_v62 = vmul.f32 0.01, %v8525_v34  ;;  %vm8617_vm15 = vcmp.gt.f32.partialorder %v8525_v34, 0.0  ;;  %v16360_v51 = vpop.f32.mrf.mxu1 }
 0x5d6   : > { %v8528_v43 = vpop.f32.mrf.mxu0  ;;  %v8734_v25 = vpack.c.bf16 %v8696_v35, %v8694_v53 }
 0x5d7   : > { %v8529_v39 = vadd.f32 %v8528_v43, %v8396_v40  ;;  %v8658_v63 = vmul.f32 0.01, %v8527_v28  ;;  %vm8618_vm14 = vcmp.gt.f32.partialorder %v8527_v28, 0.0  ;;  %v8697_v44 = vsel %vm8617_vm15, %v8525_v34, %v8657_v62  ;;  %v16366_v4 = vpop.f32.mrf.mxu1 }
 0x5d8   : > { %v8530_v14 = vpop.f32.mrf.mxu0  ;;  %8920 = vmatprep.mubr.bf16.mxu1 %v8734_v25  ;;  %v8418_v34 = vadd.f32 %v16307_v18, %v16321_v1 }
 0x5d9   : > { %vm8619_vm13 = vcmp.gt.f32.partialorder %v8529_v39, 0.0  ;;  %v8659_v3 = vmul.f32 0.01, %v8529_v39  ;;  %v8531_v19 = vadd.f32 %v8530_v14, %v8398_v50  ;;  %8921 = vmatmul.mubr.bf16.vlgmr.msra.gmra.mxu1 %v8733_v5  ;;  %v8698_v45 = vsel %vm8618_vm14, %v8527_v28, %v8658_v63  ;;  %v16372_v62 = vpop.f32.mrf.mxu1 }
 0x5da   : > { %v8534_v16 = vpop.f32.mrf.mxu0 }
 0x5db   : > { %vm8620_vm0 = vcmp.gt.f32.partialorder %v8531_v19, 0.0  ;;  %v8660_v21 = vmul.f32 0.01, %v8531_v19  ;;  %v8699_v17 = vsel %vm8619_vm13, %v8529_v39, %v8659_v3  ;;  %v8535_v27 = vadd.f32 %v8534_v16, %v8402_v54 }
 0x5dc   : > { %v8536_v48 = vpop.f32.mrf.mxu0  ;;  %v8735_v61 = vpack.c.bf16 %v8699_v17, %v8697_v44  ;;  %v8424_v3 = vadd.f32 %v16311_v12, %v16321_v1 }
 0x5dd   : > { %v8537_v30 = vadd.f32 %v8536_v48, %v8404_v9  ;;  %v8700_v47 = vsel %vm8620_vm0, %v8531_v19, %v8660_v21  ;;  %v8661_v22 = vmul.f32 0.01, %v8535_v27  ;;  %vm8621_vm3 = vcmp.gt.f32.partialorder %v8535_v27, 0.0 }
 0x5de   : > { %v8538_v29 = vpop.f32.mrf.mxu0  ;;  %v8736_v7 = vpack.c.bf16 %v8700_v47, %v8698_v45  ;;  %v8422_v19 = vadd.f32 %v16309_v20, %v16324_v15  ;;  %v8426_v21 = vadd.f32 %v16313_v6, %v16324_v15  ;;  %v8428_v47 = vadd.f32 %v16315_v58, %v16321_v1  ;;  %v16378_v20 = vpop.f32.mrf.mxu1 }
 0x5df   : > { %v8539_v49 = vadd.f32 %v8538_v29, %v8406_v11  ;;  %v8662_v2 = vmul.f32 0.01, %v8537_v30  ;;  %vm8622_vm2 = vcmp.gt.f32.partialorder %v8537_v30, 0.0  ;;  %v8701_v53 = vsel %vm8621_vm3, %v8535_v27, %v8661_v22 }
 0x5e0   : > { %v8540_v46 = vpop.f32.mrf.mxu0  ;;  %8928 = vmatprep.mubr.bf16.mxu1 %v8736_v7 }
 0x5e1   : > { %vm8623_vm1 = vcmp.gt.f32.partialorder %v8539_v49, 0.0  ;;  %v8663_v13 = vmul.f32 0.01, %v8539_v49  ;;  %v8541_v56 = vadd.f32 %v8540_v46, %v8408_v32  ;;  %8929 = vmatmul.mubr.bf16.gmra.mxu1 %v8735_v61  ;;  %v8702_v40 = vsel %vm8622_vm2, %v8537_v30, %v8662_v2 }
 0x5e2   : > { %v8544_v8 = vpop.f32.mrf.mxu0  ;;  %v8434_v46 = vadd.f32 %v16330_v0, %v16321_v1  ;;  %v8432_v2 = vadd.f32 %v16326_v23, %v16324_v15 }
 0x5e3   : > { %vm8624_vm4 = vcmp.gt.f32.partialorder %v8541_v56, 0.0  ;;  %v8664_v57 = vmul.f32 0.01, %v8541_v56  ;;  %v8703_v37 = vsel %vm8623_vm1, %v8539_v49, %v8663_v13  ;;  %v8545_v35 = vadd.f32 %v8544_v8, %v8412_v52  ;;  %v16384_v13 = vpop.f32.mrf.mxu1 }
 0x5e4   : > { %v8546_v60 = vpop.f32.mrf.mxu0  ;;  %v8737_v43 = vpack.c.bf16 %v8703_v37, %v8701_v53  ;;  %v8436_v8 = vadd.f32 %v16334_v33, %v16324_v15 }
 0x5e5   : > { %v8547_v38 = vadd.f32 %v8546_v60, %v8414_v55  ;;  %v8704_v28 = vsel %vm8624_vm4, %v8541_v56, %v8664_v57  ;;  %v8665_v14 = vmul.f32 0.01, %v8545_v35  ;;  %vm8625_vm7 = vcmp.gt.f32.partialorder %v8545_v35, 0.0  ;;  %v16390_v23 = vpop.f32.mrf.mxu1 }
 0x5e6   : > { %v8548_v36 = vpop.f32.mrf.mxu0  ;;  %v8738_v42 = vpack.c.bf16 %v8704_v28, %v8702_v40 }
 0x5e7   : > { %v8549_v25 = vadd.f32 %v8548_v36, %v8416_v41  ;;  %v8666_v5 = vmul.f32 0.01, %v8547_v38  ;;  %vm8626_vm6 = vcmp.gt.f32.partialorder %v8547_v38, 0.0  ;;  %v8705_v11 = vsel %vm8625_vm7, %v8545_v35, %v8665_v14 }
 0x5e8   : > { %v8550_v50 = vpop.f32.mrf.mxu0  ;;  %8936 = vmatprep.mubr.bf16.mxu1 %v8738_v42 }
 0x5e9   : > { %vm8627_vm5 = vcmp.gt.f32.partialorder %v8549_v25, 0.0  ;;  %v8667_v39 = vmul.f32 0.01, %v8549_v25  ;;  %v8551_v26 = vadd.f32 %v8550_v50, %v8418_v34  ;;  %8937 = vmatmul.mubr.bf16.gmra.mxu1 %v8737_v43  ;;  %v8706_v17 = vsel %vm8626_vm6, %v8547_v38, %v8666_v5  ;;  %v8463_v50 = vpop.f32.mrf.mxu1 }
 0x5ea   : > { %v8554_v63 = vpop.f32.mrf.mxu0  ;;  %v8438_v38 = vadd.f32 %v16338_v10, %v16321_v1  ;;  %v8444_v43 = vadd.f32 %v16348_v59, %v16321_v1  ;;  %v8448_v59 = vadd.f32 %v16360_v51, %v16321_v1  ;;  %v8452_v51 = vadd.f32 %v16366_v4, %v16324_v15 }
 0x5eb   : > { %vm8628_vm8 = vcmp.gt.f32.partialorder %v8551_v26, 0.0  ;;  %v8668_v18 = vmul.f32 0.01, %v8551_v26  ;;  %v8707_v16 = vsel %vm8627_vm5, %v8549_v25, %v8667_v39  ;;  %v8555_v30 = vadd.f32 %v8554_v63, %v8422_v19 }
 0x5ec   : > { %v8556_v9 = vpop.f32.mrf.mxu0  ;;  %v8739_v44 = vpack.c.bf16 %v8707_v16, %v8705_v11  ;;  %v8442_v25 = vadd.f32 %v16342_v31, %v16324_v15 }
 0x5ed   : > { %v8557_v54 = vadd.f32 %v8556_v9, %v8424_v3  ;;  %v8708_v48 = vsel %vm8628_vm8, %v8551_v26, %v8668_v18  ;;  %v8669_v61 = vmul.f32 0.01, %v8555_v30  ;;  %vm8629_vm11 = vcmp.gt.f32.partialorder %v8555_v30, 0.0 }
 0x5ee   : > { %v8558_v45 = vpop.f32.mrf.mxu0  ;;  %v8740_v12 = vpack.c.bf16 %v8708_v48, %v8706_v17  ;;  %v8446_v26 = vadd.f32 %v16354_v24, %v16324_v15  ;;  %v8465_v17 = vpop.f32.mrf.mxu1 }
 0x5ef   : > { %v8559_v27 = vadd.f32 %v8558_v45, %v8426_v21  ;;  %v8670_v7 = vmul.f32 0.01, %v8557_v54  ;;  %vm8630_vm10 = vcmp.gt.f32.partialorder %v8557_v54, 0.0  ;;  %v8709_v37 = vsel %vm8629_vm11, %v8555_v30, %v8669_v61 }
 0x5f0   : > { %v8560_v29 = vpop.f32.mrf.mxu0  ;;  %8944 = vmatprep.mubr.bf16.mxu1 %v8740_v12  ;;  %v8454_v12 = vadd.f32 %v16372_v62, %v16321_v1  ;;  %v8458_v62 = vadd.f32 %v16384_v13, %v16321_v1  ;;  %v8462_v13 = vadd.f32 %v16390_v23, %v16324_v15 }
 0x5f1   : > { %vm8631_vm9 = vcmp.gt.f32.partialorder %v8559_v27, 0.0  ;;  %v8671_v32 = vmul.f32 0.01, %v8559_v27  ;;  %v8561_v6 = vadd.f32 %v8560_v29, %v8428_v47  ;;  %8945 = vmatmul.mubr.bf16.gmra.mxu1 %v8739_v44  ;;  %v8710_v57 = vsel %vm8630_vm10, %v8557_v54, %v8670_v7  ;;  %v8467_v44 = vpop.f32.mrf.mxu1 }
 0x5f2   : > { %v8564_v49 = vpop.f32.mrf.mxu0  ;;  %v8456_v7 = vadd.f32 %v16378_v20, %v16324_v15 }
 0x5f3   : > { %vm8632_vm12 = vcmp.gt.f32.partialorder %v8561_v6, 0.0  ;;  %v8672_v58 = vmul.f32 0.01, %v8561_v6  ;;  %v8711_v56 = vsel %vm8631_vm9, %v8559_v27, %v8671_v32  ;;  %v8565_v60 = vadd.f32 %v8564_v49, %v8432_v2 }
 0x5f4   : > { %v8566_v22 = vpop.f32.mrf.mxu0  ;;  %v8741_v40 = vpack.c.bf16 %v8711_v56, %v8709_v37 }
 0x5f5   : > { %v8567_v55 = vadd.f32 %v8566_v22, %v8434_v46  ;;  %v8712_v52 = vsel %vm8632_vm12, %v8561_v6, %v8672_v58  ;;  %v8673_v42 = vmul.f32 0.01, %v8565_v60  ;;  %vm8633_vm15 = vcmp.gt.f32.partialorder %v8565_v60, 0.0 }
 0x5f6   : > { %v8568_v41 = vpop.f32.mrf.mxu0  ;;  %v8742_v0 = vpack.c.bf16 %v8712_v52, %v8710_v57 }
 0x5f7   : > { %v8569_v28 = vadd.f32 %v8568_v41, %v8436_v8  ;;  %v8674_v35 = vmul.f32 0.01, %v8567_v55  ;;  %vm8634_vm14 = vcmp.gt.f32.partialorder %v8567_v55, 0.0  ;;  %v8713_v18 = vsel %vm8633_vm15, %v8565_v60, %v8673_v42  ;;  %v8471_v8 = vpop.f32.mrf.mxu1 }
 0x5f8   : > { %v8570_v53 = vpop.f32.mrf.mxu0  ;;  %8952 = vmatprep.mubr.bf16.mxu1 %v8742_v0  ;;  %v8464_v60 = vadd.f32 %v8463_v50, %v16321_v1 }
 0x5f9   : > { %vm8635_vm13 = vcmp.gt.f32.partialorder %v8569_v28, 0.0  ;;  %v8675_v36 = vmul.f32 0.01, %v8569_v28  ;;  %v8571_v33 = vadd.f32 %v8570_v53, %v8438_v38  ;;  %8953 = vmatmul.mubr.bf16.gmra.mxu1 %v8741_v40  ;;  %v8714_v63 = vsel %vm8634_vm14, %v8567_v55, %v8674_v35  ;;  %v8473_v0 = vpop.f32.mrf.mxu1 }
 0x5fa   : > { %v8574_v34 = vpop.f32.mrf.mxu0 }
 0x5fb   : > { %vm8636_vm0 = vcmp.gt.f32.partialorder %v8571_v33, 0.0  ;;  %v8676_v10 = vmul.f32 0.01, %v8571_v33  ;;  %v8715_v5 = vsel %vm8635_vm13, %v8569_v28, %v8675_v36  ;;  %v8575_v19 = vadd.f32 %v8574_v34, %v8442_v25 }
 0x5fc   : > { %v8576_v39 = vpop.f32.mrf.mxu0  ;;  %v8743_v21 = vpack.c.bf16 %v8715_v5, %v8713_v18  ;;  %v8466_v28 = vadd.f32 %v8465_v17, %v16324_v15  ;;  %v8475_v5 = vpop.f32.mrf.mxu1  ;;  %v8474_v18 = vadd.f32 %v8473_v0, %v16321_v1 }
 0x5fd   : > { %v8577_v14 = vadd.f32 %v8576_v39, %v8444_v43  ;;  %v8716_v3 = vsel %vm8636_vm0, %v8571_v33, %v8676_v10  ;;  %v8677_v24 = vmul.f32 0.01, %v8575_v19  ;;  %vm8637_vm3 = vcmp.gt.f32.partialorder %v8575_v19, 0.0 }
 0x5fe   : > { %v8578_v16 = vpop.f32.mrf.mxu0  ;;  %v8744_v9 = vpack.c.bf16 %v8716_v3, %v8714_v63  ;;  %v8468_v10 = vadd.f32 %v8467_v44, %v16321_v1 }
 0x5ff   : > { %v8579_v54 = vadd.f32 %v8578_v16, %v8446_v26  ;;  %v8678_v48 = vmul.f32 0.01, %v8577_v14  ;;  %vm8638_vm2 = vcmp.gt.f32.partialorder %v8577_v14, 0.0  ;;  %v8717_v49 = vsel %vm8637_vm3, %v8575_v19, %v8677_v24 }
 0x600   : > { %v8580_v31 = vpop.f32.mrf.mxu0  ;;  %8960 = vmatprep.mubr.bf16.mxu1 %v8744_v9  ;;  %v8472_v16 = vadd.f32 %v8471_v8, %v16324_v15  ;;  %v8477_v9 = vpop.f32.mrf.mxu1  ;;  %v10973_v8 = vld [vmem:[%s16571_s13] sm:$0xff]  }
 0x601   : > { %vm8639_vm1 = vcmp.gt.f32.partialorder %v8579_v54, 0.0  ;;  %v8679_v11 = vmul.f32 0.01, %v8579_v54  ;;  %v8581_v30 = vadd.f32 %v8580_v31, %v8448_v59  ;;  %8961 = vmatmul.mubr.bf16.gmra.mxu1 %v8743_v21  ;;  %v8718_v6 = vsel %vm8638_vm2, %v8577_v14, %v8678_v48 }
 0x602   : > { %v8584_v45 = vpop.f32.mrf.mxu0 }
 0x603   : > { %vm8640_vm4 = vcmp.gt.f32.partialorder %v8581_v30, 0.0  ;;  %v8680_v47 = vmul.f32 0.01, %v8581_v30  ;;  %v8719_v27 = vsel %vm8639_vm1, %v8579_v54, %v8679_v11  ;;  %v8585_v46 = vadd.f32 %v8584_v45, %v8452_v51 }
 0x604   : > { %v8586_v29 = vpop.f32.mrf.mxu0  ;;  %v8745_v56 = vpack.c.bf16 %v8719_v27, %v8717_v49  ;;  %v8476_v54 = vadd.f32 %v8475_v5, %v16324_v15 }
 0x605   : > { %v8587_v32 = vadd.f32 %v8586_v29, %v8454_v12  ;;  %v8720_v61 = vsel %vm8640_vm4, %v8581_v30, %v8680_v47  ;;  %v8681_v20 = vmul.f32 0.01, %v8585_v46  ;;  %vm8641_vm7 = vcmp.gt.f32.partialorder %v8585_v46, 0.0 }
 0x606   : > { %v8588_v58 = vpop.f32.mrf.mxu0  ;;  %v8746_v2 = vpack.c.bf16 %v8720_v61, %v8718_v6  ;;  %v8478_v12 = vadd.f32 %v8477_v9, %v16321_v1  ;;  %v10969_v1 = vld [vmem:[%s16571_s13 + $0x20] sm:$0xff]  }
 0x607   : > { %v8589_v22 = vadd.f32 %v8588_v58, %v8456_v7  ;;  %v8682_v55 = vmul.f32 0.01, %v8587_v32  ;;  %vm8642_vm6 = vcmp.gt.f32.partialorder %v8587_v32, 0.0  ;;  %v8721_v33 = vsel %vm8641_vm7, %v8585_v46, %v8681_v20  ;;  %10288 = vmatprep.subr.bf16.mxu0 %v10969_v1 }
 0x608   : > { %v8590_v4 = vpop.f32.mrf.mxu0  ;;  %8968 = vmatprep.mubr.bf16.mxu1 %v8746_v2  ;;  %10289 = vmatpush3.bf16.msra.mxu0 %v10969_v1 }
 0x609   : > { %vm8643_vm5 = vcmp.gt.f32.partialorder %v8589_v22, 0.0  ;;  %v8683_v57 = vmul.f32 0.01, %v8589_v22  ;;  %v8591_v52 = vadd.f32 %v8590_v4, %v8458_v62  ;;  %8969 = vmatmul.mubr.bf16.gmra.mxu1 %v8745_v56  ;;  %v8722_v35 = vsel %vm8642_vm6, %v8587_v32, %v8682_v55  ;;  %v10970_v62 = vld [vmem:[%s16571_s13 + $0x18] sm:$0xff]   ;;  %v10971_v56 = vld [vmem:[%s16571_s13 + $0x10] sm:$0xff]  }
 0x60a   : > { %v8594_v37 = vpop.f32.mrf.mxu0  ;;  %10290 = vmatprep.subr.bf16.mxu0 %v10970_v62  ;;  %v16435_v55 = vld [vmem:[%s16570_s12] ss:$0 sm:$0xff] }
 0x60b   : > { %vm8644_vm8 = vcmp.gt.f32.partialorder %v8591_v52, 0.0  ;;  %v8684_v41 = vmul.f32 0.01, %v8591_v52  ;;  %v8723_v38 = vsel %vm8643_vm5, %v8589_v22, %v8683_v57  ;;  %v8595_v42 = vadd.f32 %v8594_v37, %v8462_v13  ;;  %v10972_v22 = vld [vmem:[%s16571_s13 + $0x8] sm:$0xff]  }
 0x60c   : > { %v8596_v40 = vpop.f32.mrf.mxu0  ;;  %v8747_v25 = vpack.c.bf16 %v8723_v38, %v8721_v33  ;;  %10291 = vmatpush3.bf16.msra.mxu0 %v10970_v62 }
 0x60d   : > { %v8597_v53 = vadd.f32 %v8596_v40, %v8464_v60  ;;  %v8724_v36 = vsel %vm8644_vm8, %v8591_v52, %v8684_v41  ;;  %v8685_v63 = vmul.f32 0.01, %v8595_v42  ;;  %vm8645_vm11 = vcmp.gt.f32.partialorder %v8595_v42, 0.0  ;;  %10292 = vmatprep.subr.bf16.mxu0 %v10971_v56 }
 0x60e   : > { %v8598_v34 = vpop.f32.mrf.mxu0  ;;  %v8748_v43 = vpack.c.bf16 %v8724_v36, %v8722_v35 }
 0x60f   : > { %v8599_v50 = vadd.f32 %v8598_v34, %v8466_v28  ;;  %v8686_v23 = vmul.f32 0.01, %v8597_v53  ;;  %vm8646_vm10 = vcmp.gt.f32.partialorder %v8597_v53, 0.0  ;;  %v8725_v11 = vsel %vm8645_vm11, %v8595_v42, %v8685_v63 }
 0x610   : > { %v8600_v39 = vpop.f32.mrf.mxu0  ;;  %8976 = vmatprep.mubr.bf16.mxu1 %v8748_v43  ;;  %10293 = vmatpush3.bf16.msra.mxu0 %v10971_v56 }
 0x611   : > { %vm8647_vm9 = vcmp.gt.f32.partialorder %v8599_v50, 0.0  ;;  %v8687_v26 = vmul.f32 0.01, %v8599_v50  ;;  %v8601_v14 = vadd.f32 %v8600_v39, %v8468_v10  ;;  %8977 = vmatmul.mubr.bf16.gmra.mxu1 %v8747_v25  ;;  %v8726_v31 = vsel %vm8646_vm10, %v8597_v53, %v8686_v23  ;;  %10294 = vmatprep.subr.bf16.mxu0 %v10972_v22 }
 0x612   : > { %v8604_v3 = vpop.f32.mrf.mxu0 }
 0x613   : > { %vm8648_vm12 = vcmp.gt.f32.partialorder %v8601_v14, 0.0  ;;  %v8688_v19 = vmul.f32 0.01, %v8601_v14  ;;  %v8727_v59 = vsel %vm8647_vm9, %v8599_v50, %v8687_v26  ;;  %v8605_v30 = vadd.f32 %v8604_v3, %v8472_v16 }
 0x614   : > { %v8606_v21 = vpop.f32.mrf.mxu0  ;;  %v8749_v47 = vpack.c.bf16 %v8727_v59, %v8725_v11  ;;  %10295 = vmatpush3.bf16.msra.mxu0 %v10972_v22 }
 0x615   : > { %v8607_v17 = vadd.f32 %v8606_v21, %v8474_v18  ;;  %v8728_v48 = vsel %vm8648_vm12, %v8601_v14, %v8688_v19  ;;  %v8689_v32 = vmul.f32 0.01, %v8605_v30  ;;  %vm8649_vm15 = vcmp.gt.f32.partialorder %v8605_v30, 0.0  ;;  %10296 = vmatprep.subr.bf16.mxu0 %v10973_v8 }
 0x616   : > { %v8608_v24 = vpop.f32.mrf.mxu0  ;;  %v8750_v45 = vpack.c.bf16 %v8728_v48, %v8726_v31 }
 0x617   : > { %v8609_v51 = vadd.f32 %v8608_v24, %v8476_v54  ;;  %v8690_v27 = vmul.f32 0.01, %v8607_v17  ;;  %vm8650_vm14 = vcmp.gt.f32.partialorder %v8607_v17, 0.0  ;;  %v8729_v46 = vsel %vm8649_vm15, %v8605_v30, %v8689_v32 }
 0x618   : > { %v8610_v44 = vpop.f32.mrf.mxu0  ;;  %8984 = vmatprep.mubr.bf16.mxu1 %v8750_v45  ;;  %10297 = vmatpush3.bf16.msra.mxu0 %v10973_v8 }
 0x619   : > { %vm8651_vm13 = vcmp.gt.f32.partialorder %v8609_v51, 0.0  ;;  %v8691_v29 = vmul.f32 0.01, %v8609_v51  ;;  %v8611_v7 = vadd.f32 %v8610_v44, %v8478_v12  ;;  %8985 = vmatmul.mubr.bf16.gmra.mxu1 %v8749_v47  ;;  %v8730_v61 = vsel %vm8650_vm14, %v8607_v17, %v8690_v27 }
 0x61b   : > { %vm8652_vm0 = vcmp.gt.f32.partialorder %v8611_v7, 0.0  ;;  %v8692_v15 = vmul.f32 0.01, %v8611_v7  ;;  %v8731_v6 = vsel %vm8651_vm13, %v8609_v51, %v8691_v29 }
 0x61c   : > { %v8751_v2 = vpack.c.bf16 %v8731_v6, %v8729_v46 }
 0x61d   : > { %v8732_v49 = vsel %vm8652_vm0, %v8611_v7, %v8692_v15 }
 0x61e   : > { %v8752_v58 = vpack.c.bf16 %v8732_v49, %v8730_v61 }
 0x620   : > { %8992 = vmatprep.mubr.bf16.mxu1 %v8752_v58 }
 0x621   : > { %8993 = vmatmul.mubr.bf16.gmra.mxu1 %v8751_v2 }
 0x699   : > { %v10204_v4 = vpop.f32.mrf.mxu1 }
 0x69b   : > { %v10205_v57 = vpop.f32.mrf.mxu1 }
 0x69c   : > { %v10206_v52 = vadd.f32 %v10205_v57, %v10204_v4 }
 0x69d   : > { %v10207_v20 = vpop.f32.mrf.mxu1 }
 0x69e   : > { %v8923_v37 = vadd.f32 %v10206_v52, %v16435_v55 }
 0x69f   : > { %v10208_v60 = vpop.f32.mrf.mxu1 }
 0x6a0   : > { %v10209_v41 = vadd.f32 %v10208_v60, %v10207_v20  ;;  %v9021_v0 = vmul.f32 0.01, %v8923_v37  ;;  %vm9001_vm1 = vcmp.gt.f32.partialorder %v8923_v37, 0.0 }
 0x6a1   : > { %v10210_v13 = vpop.f32.mrf.mxu1 }
 0x6a2   : > { %v8926_v38 = vadd.f32 %v10209_v41, %v16435_v55  ;;  %v9041_v33 = vsel %vm9001_vm1, %v8923_v37, %v9021_v0 }
 0x6a3   : > { %v10211_v40 = vpop.f32.mrf.mxu1 }
 0x6a4   : > { %vm9002_vm2 = vcmp.gt.f32.partialorder %v8926_v38, 0.0  ;;  %v9022_v28 = vmul.f32 0.01, %v8926_v38  ;;  %v10212_v53 = vadd.f32 %v10211_v40, %v10210_v13 }
 0x6a5   : > { %v10213_v35 = vpop.f32.mrf.mxu1 }
 0x6a6   : > { %v8931_v36 = vadd.f32 %v10212_v53, %v16435_v55  ;;  %v9042_v42 = vsel %vm9002_vm2, %v8926_v38, %v9022_v28 }
 0x6a7   : > { %v10214_v34 = vpop.f32.mrf.mxu1  ;;  %v9061_v43 = vpack.c.bf16 %v9042_v42, %v9041_v33 }
 0x6a8   : > { %v10215_v10 = vadd.f32 %v10214_v34, %v10213_v35  ;;  %v9023_v50 = vmul.f32 0.01, %v8931_v36  ;;  %vm9003_vm3 = vcmp.gt.f32.partialorder %v8931_v36, 0.0 }
 0x6a9   : > { %v10216_v25 = vpop.f32.mrf.mxu1  ;;  %10298 = vmatprep.mubr.bf16.mxu0 %v9061_v43 }
 0x6aa   : > { %v8934_v5 = vadd.f32 %v10215_v10, %v16435_v55  ;;  %v9043_v63 = vsel %vm9003_vm3, %v8931_v36, %v9023_v50 }
 0x6ab   : > { %v10217_v39 = vpop.f32.mrf.mxu1 }
 0x6ac   : > { %vm9004_vm4 = vcmp.gt.f32.partialorder %v8934_v5, 0.0  ;;  %v9024_v23 = vmul.f32 0.01, %v8934_v5  ;;  %v10218_v26 = vadd.f32 %v10217_v39, %v10216_v25 }
 0x6ad   : > { %v10219_v14 = vpop.f32.mrf.mxu1 }
 0x6ae   : > { %v9044_v3 = vsel %vm9004_vm4, %v8934_v5, %v9024_v23  ;;  %v8939_v18 = vadd.f32 %v10218_v26, %v16435_v55 }
 0x6af   : > { %v9062_v19 = vpack.c.bf16 %v9044_v3, %v9043_v63  ;;  %v10220_v16 = vpop.f32.mrf.mxu1 }
 0x6b0   : > { %v10221_v9 = vadd.f32 %v10220_v16, %v10219_v14  ;;  %v9025_v21 = vmul.f32 0.01, %v8939_v18  ;;  %vm9005_vm5 = vcmp.gt.f32.partialorder %v8939_v18, 0.0 }
 0x6b1   : > { %v10222_v59 = vpop.f32.mrf.mxu1  ;;  %10299 = vmatmul.mubr.bf16.vlgmr.msra.gmra.mxu0 %v9062_v19 }
 0x6b2   : > { %v8942_v54 = vadd.f32 %v10221_v9, %v16435_v55  ;;  %v9045_v24 = vsel %vm9005_vm5, %v8939_v18, %v9025_v21 }
 0x6b3   : > { %v10223_v17 = vpop.f32.mrf.mxu1 }
 0x6b4   : > { %vm9006_vm6 = vcmp.gt.f32.partialorder %v8942_v54, 0.0  ;;  %v9026_v31 = vmul.f32 0.01, %v8942_v54  ;;  %v10224_v48 = vadd.f32 %v10223_v17, %v10222_v59 }
 0x6b5   : > { %v10225_v11 = vpop.f32.mrf.mxu1 }
 0x6b6   : > { %v8947_v30 = vadd.f32 %v10224_v48, %v16435_v55  ;;  %v9046_v45 = vsel %vm9006_vm6, %v8942_v54, %v9026_v31 }
 0x6b7   : > { %v10226_v12 = vpop.f32.mrf.mxu1  ;;  %v9063_v47 = vpack.c.bf16 %v9046_v45, %v9045_v24 }
 0x6b8   : > { %v10227_v51 = vadd.f32 %v10226_v12, %v10225_v11  ;;  %v9027_v27 = vmul.f32 0.01, %v8947_v30  ;;  %vm9007_vm7 = vcmp.gt.f32.partialorder %v8947_v30, 0.0 }
 0x6b9   : > { %v10228_v44 = vpop.f32.mrf.mxu1  ;;  %10302 = vmatprep.mubr.bf16.mxu0 %v9063_v47 }
 0x6ba   : > { %v8950_v29 = vadd.f32 %v10227_v51, %v16435_v55  ;;  %v9047_v61 = vsel %vm9007_vm7, %v8947_v30, %v9027_v27 }
 0x6bb   : > { %v10229_v7 = vpop.f32.mrf.mxu1 }
 0x6bc   : > { %vm9008_vm8 = vcmp.gt.f32.partialorder %v8950_v29, 0.0  ;;  %v9028_v32 = vmul.f32 0.01, %v8950_v29  ;;  %v10230_v15 = vadd.f32 %v10229_v7, %v10228_v44 }
 0x6bd   : > { %v10231_v6 = vpop.f32.mrf.mxu1 }
 0x6be   : > { %v9048_v49 = vsel %vm9008_vm8, %v8950_v29, %v9028_v32  ;;  %v8955_v1 = vadd.f32 %v10230_v15, %v16435_v55 }
 0x6bf   : > { %v10232_v46 = vpop.f32.mrf.mxu1  ;;  %v9064_v58 = vpack.c.bf16 %v9048_v49, %v9047_v61 }
 0x6c0   : > { %v10233_v2 = vadd.f32 %v10232_v46, %v10231_v6  ;;  %v9029_v56 = vmul.f32 0.01, %v8955_v1  ;;  %vm9009_vm9 = vcmp.gt.f32.partialorder %v8955_v1, 0.0 }
 0x6c1   : > { %v10234_v62 = vpop.f32.mrf.mxu1  ;;  %10303 = vmatmul.mubr.bf16.gmra.mxu0 %v9064_v58 }
 0x6c2   : > { %v8958_v22 = vadd.f32 %v10233_v2, %v16435_v55  ;;  %v9049_v37 = vsel %vm9009_vm9, %v8955_v1, %v9029_v56 }
 0x6c3   : > { %v10235_v8 = vpop.f32.mrf.mxu1 }
 0x6c4   : > { %vm9010_vm10 = vcmp.gt.f32.partialorder %v8958_v22, 0.0  ;;  %v9030_v4 = vmul.f32 0.01, %v8958_v22  ;;  %v10236_v57 = vadd.f32 %v10235_v8, %v10234_v62 }
 0x6c5   : > { %v10237_v52 = vpop.f32.mrf.mxu1 }
 0x6c6   : > { %v8963_v20 = vadd.f32 %v10236_v57, %v16435_v55  ;;  %v9050_v60 = vsel %vm9010_vm10, %v8958_v22, %v9030_v4 }
 0x6c7   : > { %v10238_v41 = vpop.f32.mrf.mxu1  ;;  %v9065_v13 = vpack.c.bf16 %v9050_v60, %v9049_v37  ;;  %v16460_v37 = vld [vmem:[%s16572_s14] ss:$0 sm:$0xff] }
 0x6c8   : > { %v10239_v0 = vadd.f32 %v10238_v41, %v10237_v52  ;;  %v9031_v40 = vmul.f32 0.01, %v8963_v20  ;;  %vm9011_vm11 = vcmp.gt.f32.partialorder %v8963_v20, 0.0 }
 0x6c9   : > { %v10240_v38 = vpop.f32.mrf.mxu1  ;;  %10306 = vmatprep.mubr.bf16.mxu0 %v9065_v13 }
 0x6ca   : > { %v8966_v28 = vadd.f32 %v10239_v0, %v16435_v55  ;;  %v9051_v42 = vsel %vm9011_vm11, %v8963_v20, %v9031_v40 }
 0x6cb   : > { %v10241_v53 = vpop.f32.mrf.mxu1 }
 0x6cc   : > { %vm9012_vm12 = vcmp.gt.f32.partialorder %v8966_v28, 0.0  ;;  %v9032_v35 = vmul.f32 0.01, %v8966_v28  ;;  %v10242_v36 = vadd.f32 %v10241_v53, %v10240_v38 }
 0x6cd   : > { %v10243_v33 = vpop.f32.mrf.mxu1 }
 0x6ce   : > { %v9052_v34 = vsel %vm9012_vm12, %v8966_v28, %v9032_v35  ;;  %v8971_v43 = vadd.f32 %v10242_v36, %v16435_v55 }
 0x6cf   : > { %v10244_v10 = vpop.f32.mrf.mxu1  ;;  %v9066_v25 = vpack.c.bf16 %v9052_v34, %v9051_v42 }
 0x6d0   : > { %v10245_v50 = vadd.f32 %v10244_v10, %v10243_v33  ;;  %v9033_v39 = vmul.f32 0.01, %v8971_v43  ;;  %vm9013_vm13 = vcmp.gt.f32.partialorder %v8971_v43, 0.0 }
 0x6d1   : > { %v10246_v5 = vpop.f32.mrf.mxu1  ;;  %10307 = vmatmul.mubr.bf16.gmra.mxu0 %v9066_v25 }
 0x6d2   : > { %v8974_v23 = vadd.f32 %v10245_v50, %v16435_v55  ;;  %v9053_v19 = vsel %vm9013_vm13, %v8971_v43, %v9033_v39 }
 0x6d3   : > { %v10247_v26 = vpop.f32.mrf.mxu1 }
 0x6d4   : > { %vm9014_vm14 = vcmp.gt.f32.partialorder %v8974_v23, 0.0  ;;  %v9034_v14 = vmul.f32 0.01, %v8974_v23  ;;  %v10248_v63 = vadd.f32 %v10247_v26, %v10246_v5 }
 0x6d5   : > { %v10249_v3 = vpop.f32.mrf.mxu1 }
 0x6d6   : > { %v8979_v18 = vadd.f32 %v10248_v63, %v16435_v55  ;;  %v9054_v16 = vsel %vm9014_vm14, %v8974_v23, %v9034_v14 }
 0x6d7   : > { %v10250_v9 = vpop.f32.mrf.mxu1  ;;  %v9067_v59 = vpack.c.bf16 %v9054_v16, %v9053_v19 }
 0x6d8   : > { %v10251_v21 = vadd.f32 %v10250_v9, %v10249_v3  ;;  %v9035_v17 = vmul.f32 0.01, %v8979_v18  ;;  %vm9015_vm15 = vcmp.gt.f32.partialorder %v8979_v18, 0.0 }
 0x6d9   : > { %v10252_v54 = vpop.f32.mrf.mxu1  ;;  %10310 = vmatprep.mubr.bf16.mxu0 %v9067_v59 }
 0x6da   : > { %v8982_v31 = vadd.f32 %v10251_v21, %v16435_v55  ;;  %v9055_v45 = vsel %vm9015_vm15, %v8979_v18, %v9035_v17 }
 0x6db   : > { %v10253_v48 = vpop.f32.mrf.mxu1 }
 0x6dc   : > { %vm9016_vm0 = vcmp.gt.f32.partialorder %v8982_v31, 0.0  ;;  %v9036_v11 = vmul.f32 0.01, %v8982_v31  ;;  %v10254_v30 = vadd.f32 %v10253_v48, %v10252_v54 }
 0x6dd   : > { %v10255_v24 = vpop.f32.mrf.mxu1 }
 0x6de   : > { %v9056_v12 = vsel %vm9016_vm0, %v8982_v31, %v9036_v11  ;;  %v8987_v47 = vadd.f32 %v10254_v30, %v16435_v55 }
 0x6df   : > { %v10256_v51 = vpop.f32.mrf.mxu1  ;;  %v9068_v44 = vpack.c.bf16 %v9056_v12, %v9055_v45 }
 0x6e0   : > { %v10257_v27 = vadd.f32 %v10256_v51, %v10255_v24  ;;  %v9037_v7 = vmul.f32 0.01, %v8987_v47  ;;  %vm9017_vm1 = vcmp.gt.f32.partialorder %v8987_v47, 0.0 }
 0x6e1   : > { %v10258_v29 = vpop.f32.mrf.mxu1  ;;  %10311 = vmatmul.mubr.bf16.gmra.mxu0 %v9068_v44 }
 0x6e2   : > { %v8990_v32 = vadd.f32 %v10257_v27, %v16435_v55  ;;  %v9057_v46 = vsel %vm9017_vm1, %v8987_v47, %v9037_v7 }
 0x6e3   : > { %v10259_v15 = vpop.f32.mrf.mxu1 }
 0x6e4   : > { %vm9018_vm2 = vcmp.gt.f32.partialorder %v8990_v32, 0.0  ;;  %v9038_v6 = vmul.f32 0.01, %v8990_v32  ;;  %v10260_v61 = vadd.f32 %v10259_v15, %v10258_v29 }
 0x6e5   : > { %v10261_v49 = vpop.f32.mrf.mxu1 }
 0x6e6   : > { %v8995_v1 = vadd.f32 %v10260_v61, %v16435_v55  ;;  %v9058_v58 = vsel %vm9018_vm2, %v8990_v32, %v9038_v6 }
 0x6e7   : > { %v10262_v2 = vpop.f32.mrf.mxu1  ;;  %v9069_v62 = vpack.c.bf16 %v9058_v58, %v9057_v46 }
 0x6e8   : > { %v10263_v56 = vadd.f32 %v10262_v2, %v10261_v49  ;;  %v9039_v22 = vmul.f32 0.01, %v8995_v1  ;;  %vm9019_vm3 = vcmp.gt.f32.partialorder %v8995_v1, 0.0 }
 0x6e9   : > { %10314 = vmatprep.mubr.bf16.mxu0 %v9069_v62 }
 0x6ea   : > { %v8998_v8 = vadd.f32 %v10263_v56, %v16435_v55  ;;  %v9059_v57 = vsel %vm9019_vm3, %v8995_v1, %v9039_v22 }
 0x6ec   : > { %vm9020_vm4 = vcmp.gt.f32.partialorder %v8998_v8, 0.0  ;;  %v9040_v4 = vmul.f32 0.01, %v8998_v8 }
 0x6ee   : > { %v9060_v52 = vsel %vm9020_vm4, %v8998_v8, %v9040_v4 }
 0x6ef   : > { %v9070_v20 = vpack.c.bf16 %v9060_v52, %v9059_v57 }
 0x6f1   : > { %10315 = vmatmul.mubr.bf16.gmra.mxu0 %v9070_v20 }
 0x771   : > { %v10300_v60 = vpop.f32.mrf.mxu0 }
 0x772   : > { %v9185_v41 = vadd.f32 %v10300_v60, %v16460_v37 }
 0x773   : > { %v9176_v13 = vpop.f32.mrf.mxu0 }
 0x774   : > { %v10166_v0 = vmul.f32 -1.442695, %v9185_v41  ;;  %v9177_v38 = vadd.f32 %v16460_v37, %v9176_v13 }
 0x775   : > { %v10301_v55 = vpop.f32.mrf.mxu0 }
 0x776   : > { %10974 = vpow2.f32 %v10166_v0  ;;  %v10164_v40 = vmul.f32 -1.442695, %v9177_v38  ;;  %v9188_v28 = vadd.f32 %v10301_v55, %v16460_v37 }
 0x777   : > { %v9179_v53 = vpop.f32.mrf.mxu0 }
 0x778   : > { %10976 = vpow2.f32 %v10164_v40  ;;  %v10167_v35 = vmul.f32 -1.442695, %v9188_v28  ;;  %v9180_v36 = vadd.f32 %v16460_v37, %v9179_v53 }
 0x77a   : > { %10978 = vpow2.f32 %v10167_v35  ;;  %v10165_v33 = vmul.f32 -1.442695, %v9180_v36 }
 0x77c   : > { %10980 = vpow2.f32 %v10165_v33 }
 0x781   : > { %v10304_v42 = vpop.f32.mrf.mxu0 }
 0x782   : > { %v9201_v34 = vadd.f32 %v10304_v42, %v16460_v37 }
 0x783   : > { %v10975_v43 = vpop.eup %10974  ;;  %v9192_v10 = vpop.f32.mrf.mxu0 }
 0x784   : > { %v9317_v25 = vadd.f32 1.0, %v10975_v43  ;;  %v10170_v50 = vmul.f32 -1.442695, %v9201_v34  ;;  %v9193_v5 = vadd.f32 %v16460_v37, %v9192_v10 }
 0x785   : > { %v10977_v39 = vpop.eup %10976  ;;  %v10305_v23 = vpop.f32.mrf.mxu0 }
 0x786   : > { %10982 = vrcp.f32 %v9317_v25  ;;  %v9315_v26 = vadd.f32 1.0, %v10977_v39  ;;  %v10168_v14 = vmul.f32 -1.442695, %v9193_v5  ;;  %v9204_v63 = vadd.f32 %v10305_v23, %v16460_v37 }
 0x787   : > { %v10979_v3 = vpop.eup %10978  ;;  %10984 = vpow2.f32 %v10170_v50  ;;  %v9195_v18 = vpop.f32.mrf.mxu0 }
 0x788   : > { %10986 = vrcp.f32 %v9315_v26  ;;  %v9318_v19 = vadd.f32 1.0, %v10979_v3  ;;  %v10171_v16 = vmul.f32 -1.442695, %v9204_v63  ;;  %v9196_v9 = vadd.f32 %v16460_v37, %v9195_v18 }
 0x789   : > { %v10981_v59 = vpop.eup %10980  ;;  %10988 = vpow2.f32 %v10168_v14 }
 0x78a   : > { %10990 = vrcp.f32 %v9318_v19  ;;  %v9316_v21 = vadd.f32 1.0, %v10981_v59  ;;  %v10169_v54 = vmul.f32 -1.442695, %v9196_v9 }
 0x78b   : > { %10992 = vpow2.f32 %v10171_v16 }
 0x78c   : > { %10994 = vrcp.f32 %v9316_v21 }
 0x78d   : > { %10996 = vpow2.f32 %v10169_v54 }
 0x791   : > { %v10308_v17 = vpop.f32.mrf.mxu0 }
 0x792   : > { %v9217_v31 = vadd.f32 %v10308_v17, %v16460_v37 }
 0x793   : > { %v10983_v48 = vpop.eup %10982  ;;  %v9208_v11 = vpop.f32.mrf.mxu0 }
 0x794   : > { %v10985_v30 = vpop.eup %10984  ;;  %9377 = vst [vmem:[%s16474_s24 + $0x10] sm:$0xff] %v10983_v48  ;;  %v10174_v24 = vmul.f32 -1.442695, %v9217_v31  ;;  %v9209_v45 = vadd.f32 %v16460_v37, %v9208_v11 }
 0x795   : > { %v10987_v12 = vpop.eup %10986  ;;  %v9321_v47 = vadd.f32 1.0, %v10985_v30  ;;  %v10309_v51 = vpop.f32.mrf.mxu0 }
 0x796   : > { %v10989_v44 = vpop.eup %10988  ;;  %9375 = vst [vmem:[%s16474_s24] sm:$0xff] %v10987_v12  ;;  %10998 = vpow2.f32 %v10174_v24  ;;  %v10172_v27 = vmul.f32 -1.442695, %v9209_v45  ;;  %v9220_v29 = vadd.f32 %v10309_v51, %v16460_v37 }
 0x797   : > { %v10991_v7 = vpop.eup %10990  ;;  %11000 = vrcp.f32 %v9321_v47  ;;  %v9319_v32 = vadd.f32 1.0, %v10989_v44  ;;  %v9211_v15 = vpop.f32.mrf.mxu0 }
 0x798   : > { %v10993_v6 = vpop.eup %10992  ;;  %9378 = vst [vmem:[%s16474_s24 + $0x18] sm:$0xff] %v10991_v7  ;;  %11002 = vpow2.f32 %v10172_v27  ;;  %v10175_v61 = vmul.f32 -1.442695, %v9220_v29  ;;  %v9212_v49 = vadd.f32 %v16460_v37, %v9211_v15 }
 0x799   : > { %v10995_v1 = vpop.eup %10994  ;;  %11004 = vrcp.f32 %v9319_v32  ;;  %v9322_v46 = vadd.f32 1.0, %v10993_v6 }
 0x79a   : > { %v10997_v58 = vpop.eup %10996  ;;  %9376 = vst [vmem:[%s16474_s24 + $0x8] sm:$0xff] %v10995_v1  ;;  %11006 = vpow2.f32 %v10175_v61  ;;  %v10173_v2 = vmul.f32 -1.442695, %v9212_v49 }
 0x79b   : > { %11008 = vrcp.f32 %v9322_v46  ;;  %v9320_v62 = vadd.f32 1.0, %v10997_v58 }
 0x79c   : > { %11010 = vpow2.f32 %v10173_v2 }
 0x79d   : > { %11012 = vrcp.f32 %v9320_v62 }
 0x7a1   : > { %v10312_v56 = vpop.f32.mrf.mxu0 }
 0x7a2   : > { %v9233_v22 = vadd.f32 %v10312_v56, %v16460_v37 }
 0x7a3   : > { %v10999_v8 = vpop.eup %10998  ;;  %v9224_v4 = vpop.f32.mrf.mxu0 }
 0x7a4   : > { %v11001_v57 = vpop.eup %11000  ;;  %v9325_v52 = vadd.f32 1.0, %v10999_v8  ;;  %v10178_v20 = vmul.f32 -1.442695, %v9233_v22  ;;  %v9225_v60 = vadd.f32 %v16460_v37, %v9224_v4 }
 0x7a5   : > { %v11003_v41 = vpop.eup %11002  ;;  %9381 = vst [vmem:[%s16474_s24 + $0x30] sm:$0xff] %v11001_v57  ;;  %v10313_v13 = vpop.f32.mrf.mxu0 }
 0x7a6   : > { %v11005_v0 = vpop.eup %11004  ;;  %11014 = vrcp.f32 %v9325_v52  ;;  %v9323_v38 = vadd.f32 1.0, %v11003_v41  ;;  %v10176_v55 = vmul.f32 -1.442695, %v9225_v60  ;;  %v9236_v40 = vadd.f32 %v10313_v13, %v16460_v37 }
 0x7a7   : > { %v11007_v28 = vpop.eup %11006  ;;  %9379 = vst [vmem:[%s16474_s24 + $0x20] sm:$0xff] %v11005_v0  ;;  %11016 = vpow2.f32 %v10178_v20  ;;  %v9227_v53 = vpop.f32.mrf.mxu0 }
 0x7a8   : > { %v11009_v35 = vpop.eup %11008  ;;  %11018 = vrcp.f32 %v9323_v38  ;;  %v9326_v36 = vadd.f32 1.0, %v11007_v28  ;;  %v10179_v33 = vmul.f32 -1.442695, %v9236_v40  ;;  %v9228_v42 = vadd.f32 %v16460_v37, %v9227_v53 }
 0x7a9   : > { %v11011_v34 = vpop.eup %11010  ;;  %9382 = vst [vmem:[%s16474_s24 + $0x38] sm:$0xff] %v11009_v35  ;;  %11020 = vpow2.f32 %v10176_v55 }
 0x7aa   : > { %v11013_v43 = vpop.eup %11012  ;;  %11022 = vrcp.f32 %v9326_v36  ;;  %v9324_v10 = vadd.f32 1.0, %v11011_v34  ;;  %v10177_v25 = vmul.f32 -1.442695, %v9228_v42 }
 0x7ab   : > { %9380 = vst [vmem:[%s16474_s24 + $0x28] sm:$0xff] %v11013_v43  ;;  %11024 = vpow2.f32 %v10179_v33 }
 0x7ac   : > { %11026 = vrcp.f32 %v9324_v10 }
 0x7ad   : > { %11028 = vpow2.f32 %v10177_v25 }
 0x7b1   : > { %v10316_v50 = vpop.f32.mrf.mxu0 }
 0x7b2   : > { %v9249_v5 = vadd.f32 %v10316_v50, %v16460_v37 }
 0x7b3   : > { %v11015_v39 = vpop.eup %11014  ;;  %v9240_v23 = vpop.f32.mrf.mxu0 }
 0x7b4   : > { %v11017_v26 = vpop.eup %11016  ;;  %9385 = vst [vmem:[%s16474_s24 + $0x50] sm:$0xff] %v11015_v39  ;;  %v10182_v14 = vmul.f32 -1.442695, %v9249_v5  ;;  %v9241_v63 = vadd.f32 %v16460_v37, %v9240_v23 }
 0x7b5   : > { %v11019_v3 = vpop.eup %11018  ;;  %v9329_v18 = vadd.f32 1.0, %v11017_v26  ;;  %v10317_v19 = vpop.f32.mrf.mxu0 }
 0x7b6   : > { %v11021_v16 = vpop.eup %11020  ;;  %9383 = vst [vmem:[%s16474_s24 + $0x40] sm:$0xff] %v11019_v3  ;;  %11030 = vpow2.f32 %v10182_v14  ;;  %v10180_v9 = vmul.f32 -1.442695, %v9241_v63  ;;  %v9252_v59 = vadd.f32 %v10317_v19, %v16460_v37 }
 0x7b7   : > { %v11023_v21 = vpop.eup %11022  ;;  %11032 = vrcp.f32 %v9329_v18  ;;  %v9327_v54 = vadd.f32 1.0, %v11021_v16  ;;  %v9243_v17 = vpop.f32.mrf.mxu0 }
 0x7b8   : > { %v11025_v31 = vpop.eup %11024  ;;  %9386 = vst [vmem:[%s16474_s24 + $0x58] sm:$0xff] %v11023_v21  ;;  %11034 = vpow2.f32 %v10180_v9  ;;  %v10183_v48 = vmul.f32 -1.442695, %v9252_v59  ;;  %v9244_v11 = vadd.f32 %v16460_v37, %v9243_v17 }
 0x7b9   : > { %v11027_v30 = vpop.eup %11026  ;;  %11036 = vrcp.f32 %v9327_v54  ;;  %v9330_v24 = vadd.f32 1.0, %v11025_v31 }
 0x7ba   : > { %v11029_v45 = vpop.eup %11028  ;;  %9384 = vst [vmem:[%s16474_s24 + $0x48] sm:$0xff] %v11027_v30  ;;  %11038 = vpow2.f32 %v10183_v48  ;;  %v10181_v12 = vmul.f32 -1.442695, %v9244_v11 }
 0x7bb   : > { %11040 = vrcp.f32 %v9330_v24  ;;  %v9328_v47 = vadd.f32 1.0, %v11029_v45 }
 0x7bc   : > { %11042 = vpow2.f32 %v10181_v12 }
 0x7bd   : > { %11044 = vrcp.f32 %v9328_v47 }
 0x7c3   : > { %v11031_v51 = vpop.eup %11030 }
 0x7c4   : > { %v11033_v44 = vpop.eup %11032  ;;  %v9333_v27 = vadd.f32 1.0, %v11031_v51 }
 0x7c5   : > { %v11035_v29 = vpop.eup %11034  ;;  %9389 = vst [vmem:[%s16474_s24 + $0x70] sm:$0xff] %v11033_v44 }
 0x7c6   : > { %v11037_v37 = vpop.eup %11036  ;;  %11046 = vrcp.f32 %v9333_v27  ;;  %v9331_v7 = vadd.f32 1.0, %v11035_v29 }
 0x7c7   : > { %v11039_v32 = vpop.eup %11038  ;;  %9387 = vst [vmem:[%s16474_s24 + $0x60] sm:$0xff] %v11037_v37 }
 0x7c8   : > { %v11041_v15 = vpop.eup %11040  ;;  %11048 = vrcp.f32 %v9331_v7  ;;  %v9334_v6 = vadd.f32 1.0, %v11039_v32 }
 0x7c9   : > { %v11043_v61 = vpop.eup %11042  ;;  %9390 = vst [vmem:[%s16474_s24 + $0x78] sm:$0xff] %v11041_v15 }
 0x7ca   : > { %v11045_v49 = vpop.eup %11044  ;;  %11050 = vrcp.f32 %v9334_v6  ;;  %v9332_v1 = vadd.f32 1.0, %v11043_v61 }
 0x7cb   : > { %9388 = vst [vmem:[%s16474_s24 + $0x68] sm:$0xff] %v11045_v49 }
 0x7cc   : > { %11052 = vrcp.f32 %v9332_v1 }
 0x7d3   : > { %v11047_v46 = vpop.eup %11046 }
 0x7d4   : > { %9393 = vst [vmem:[%s16474_s24 + $0x90] sm:$0xff] %v11047_v46 }
 0x7d5   : > { %v11049_v58 = vpop.eup %11048 }
 0x7d6   : > { %9391 = vst [vmem:[%s16474_s24 + $0x80] sm:$0xff] %v11049_v58 }
 0x7d7   : > { %v11051_v2 = vpop.eup %11050 }
 0x7d8   : > { %9394 = vst [vmem:[%s16474_s24 + $0x98] sm:$0xff] %v11051_v2 }
 0x7d9   : > { %v11053_v62 = vpop.eup %11052 }
 0x7da   : > { %9392 = vst [vmem:[%s16474_s24 + $0x88] sm:$0xff] %v11053_v62 }
 0x7db   : > { %11074 = shalt.err (!%p11071_p3)
}
 0x7dc   : > { %s11075_s17 = scalar_lea.hbm %s16513_s23, 2560  ;;  %s11079_s29 = scalar_lea.hbm %s16573_s15, 5120 }
 0x7dd   : > { %p11076_p4 = scmp.ne.s32.totalorder %s16513_s23, %s11075_s17  ;;  %p11080_p9 = scmp.lt.s32.totalorder %s16513_s23, %s16573_s15 }
 0x7de   : > { %p11081_p10 = scmp.lt.s32.totalorder %s11079_s29, %s11075_s17 }
 0x7df   : > { %p11077_p7 = pnand %p11076_p4, %p11245_p5 }
 0x7e0   : > { %p11082_p11 = por %p11081_p10, %p11080_p9 }
 0x7e1   : > { %p11078_p8 = pneg %p11077_p7 }
 0x7e3   : > { %p11083_p12 = pnand %p11082_p11, %p11078_p8 }
 0x7e5   : > { %11086 = shalt.err (!%p11083_p12)
}
 0x7e6   : > { %s11125_s22 = smov 128   ;;  %s11126_s25 = smov 8  }
 0x7e7   : > { %10319 = dma.vmem_to_hbm [thread:$0]  (%p11245_p5), %s16507_s30, 2560, %s16513_s23, %s16518_s1, %s11125_s22, %s11125_s22, %s11126_s25  }
 0x7e8 PF: > { %s17120_s27 = sld [smem:[#allocation5_spill]]  ;;  %p10325_p13 = scmp.ge.s32.totalorder %s11121_s21, 2 }
 0x7ea   : > { %p10322_p0 = pnand %p10325_p13, %p11249_p6 }
 0x7ec   : > { %p10323_p1 = pneg %p10322_p0 }
 0x7ee   : > { %s9424_s20 = sand.u32 1, %s17120_s27  }
 0x7ef   : > { %s9425_s17 = scalar_lea.sflag [#allocation3], %s9424_s20 }
 0x7f0   : > { %11104 = dma.done.wait (%p10323_p1), %s9425_s17, 2560  }
 0x7f1   : > { %11106 = vsyncadd (%p10323_p1), %s9425_s17, 4294964736  ;;  %s17122_s21 = sld [smem:[#allocation7_spill]]  ;;  %s17125_s18 = smov %s11113_s19 }
 0x7f2   : > { %s17123_s24 = sld [smem:[#allocation6_spill]] }
 0x7f3   : > { %s17124_s20 = sld [smem:[#allocation8_spill]] }
 0x7f7   : > { %p25_p2 = scmp.ge.s32.totalorder %s17122_s21, 4  }
 0x7f8   : > { %s17126_s19 = smov %s17123_s24 }
 0x7f9   :  { %27 = sbr.rel (!%p25_p2) target bundleno = 5 (0x5), region = 115 }
 0x7fe   :  { %9430 = vsyncpa [#allocation3], 1 }
 0x7ff   :  { %9432 = vsyncpa [#allocation3 + $0x1], 1 }

</bundles_post_ra>
